<compile_context>
chip_gen: v7x
topology: tpu7x:2x2x1
jax: 0.10.0
libtpu: 0.0.40
codegen_flags: <defaults>
</compile_context>

<pallas_src>
import functools

import jax
import jax.numpy as jnp
from jax import lax
from jax.experimental import pallas as pl
from jax.experimental.pallas import tpu as pltpu

RP = 128       # BOTTLENECK_WIDTH
EPS = 1e-5     # nn.InstanceNorm2d default eps


def _instance_norm_relu(v, gamma, beta, inv_n):
    # v: (HW, C) f32. Per-channel biased stats over the spatial axis, single pass
    # (sum + sum of squares). Matches nn.InstanceNorm2d(affine=True,
    # track_running_stats=False) followed by ReLU.
    s = jnp.sum(v, axis=0, keepdims=True)
    ss = jnp.sum(v * v, axis=0, keepdims=True)
    mean = s * inv_n
    var = jnp.maximum(ss * inv_n - mean * mean, 0.0)   # clamp catastrophic cancel
    scale = lax.rsqrt(var + EPS) * gamma
    return jnp.maximum((v - mean) * scale + beta, 0.0)


def bottleneck_kernel(x_ref, w1_ref, w2_ref, affine_ref, out_ref, acc_ref,
                      *, H, W, B_blk):
    # x_ref:      (B_blk, H*W, Cin) bf16  input, spatial dims pre-flattened
    # w1_ref:     (Cin, RP)         bf16  conv1x1 weight (in, out)
    # w2_ref:     (9, RP, RP)       bf16  conv3x3 weight, index = 3*ky + kx
    # affine_ref: (4, RP)           f32   [gamma1, beta1, gamma2, beta2]
    # out_ref:    (B_blk, H*W, RP)  f32
    # acc_ref:    (H*W, RP)         f32   VMEM scratch: conv3x3 accumulator
    HW = H * W
    HWmW = HW - W
    inv_n = 1.0 / HW

    # Column-in-row masks for the kx = 0 / kx = 2 taps (hoisted out of the b loop;
    # they also make the flattened-axis roll wrap harmless at every slice boundary).
    col = lax.broadcasted_iota(jnp.int32, (HW, RP), 0) % W
    at_left = col == 0
    at_right = col == W - 1

    for b in range(B_blk):
        # ---- conv1x1: (HW, Cin) x (Cin, RP) on the MXU, bf16 in / f32 acc ----
        h = jnp.dot(x_ref[b], w1_ref[...], preferred_element_type=jnp.float32)

        # ---- InstanceNorm #1 + ReLU ----
        h = _instance_norm_relu(h, affine_ref[0:1, :], affine_ref[1:2, :], inv_n)

        # ---- kx tap images, built once and reused by all three ky rows ----
        # center / left / right neighbours along w, zero at the image edges.
        c = h.astype(jnp.bfloat16)
        l = jnp.where(at_left, 0.0,
                      pltpu.roll(h, shift=1, axis=0)).astype(jnp.bfloat16)
        r = jnp.where(at_right, 0.0,
                      pltpu.roll(h, shift=HW - 1, axis=0)).astype(jnp.bfloat16)

        def tap_dots(cc, ll, rr, ky):
            # value-chained so partial sums stay in vregs / MXU result path
            return (jnp.dot(cc, w2_ref[3 * ky + 1], preferred_element_type=jnp.float32)
                    + jnp.dot(ll, w2_ref[3 * ky + 0], preferred_element_type=jnp.float32)
                    + jnp.dot(rr, w2_ref[3 * ky + 2], preferred_element_type=jnp.float32))

        # ---- conv3x3 (padding=1): 9 direct K=128 dots, row-offset accumulation ----
        # ky = 1 (same row): initializes the whole accumulator.
        acc_ref[...] = tap_dots(c, l, r, 1)
        if HWmW > 0:
            # ky = 0 (row above): output rows [W, HW) read input rows [0, HW - W).
            acc_ref[pl.ds(W, HWmW), :] = (
                acc_ref[pl.ds(W, HWmW), :]
                + tap_dots(c[0:HWmW], l[0:HWmW], r[0:HWmW], 0))
            # ky = 2 (row below): output rows [0, HW - W) read input rows [W, HW).
            acc_ref[pl.ds(0, HWmW), :] = (
                acc_ref[pl.ds(0, HWmW), :]
                + tap_dots(c[W:HW], l[W:HW], r[W:HW], 2))

        # ---- InstanceNorm #2 + ReLU ----
        y = _instance_norm_relu(acc_ref[...], affine_ref[2:3, :], affine_ref[3:4, :],
                                inv_n)
        out_ref[b] = y.astype(out_ref.dtype)


def _pick_batch_block(N, HW, max_rows=4096, max_b=8):
    # Block several samples per grid step when HW is small, to amortize the
    # ~0.35us/step pipeline overhead. Must divide N evenly.
    best = 1
    for b in range(1, min(N, max_b) + 1):
        if N % b == 0 and b * HW <= max_rows:
            best = b
    return best


def _vmem_limit_bytes(B_blk, HW):
    # Shape-aware scoped-VMEM limit (double-buffered I/O blocks, single-buffered
    # weights, accumulator scratch, Mosaic temporary headroom), capped at the
    # device's physical VMEM.
    in_buf = 2 * B_blk * HW * 128 * 2          # bf16 input, lane-padded Cin -> 128
    out_buf = 2 * B_blk * HW * RP * 4          # f32 output
    wgt = 9 * RP * RP * 2 + 16 * RP * 2 + 8 * RP * 4
    acc = HW * RP * 4
    temps = 10 * HW * RP * 4                   # tap images, rolls, dot partials
    need = in_buf + out_buf + wgt + acc + temps + (2 << 20)
    try:
        phys = getattr(pltpu.get_tpu_info(), "vmem_capacity_bytes",
                       128 * 1024 * 1024)
    except Exception:
        phys = 64 * 1024 * 1024
    cap = min(100 * 1024 * 1024, int(phys * 0.85))
    return int(min(max(need, 16 * 1024 * 1024), cap))


def bottleneck_shared_nhwc(x_nhwc, w1, w2_hwio, gamma1, beta1, gamma2, beta2):
    """x_nhwc: (N, H, W, Cin) -> (N, H, W, RP) f32 (channels-last, no transposes)."""
    N, H, W, Cin = x_nhwc.shape
    assert W % 8 == 0, "W must be a multiple of 8 (aligned spatial flattening)"
    HW = H * W
    B_blk = _pick_batch_block(N, HW)

    x_flat = x_nhwc.reshape(N, HW, Cin).astype(jnp.bfloat16)
    w1_b = w1.astype(jnp.bfloat16)                              # (Cin, RP)
    w2_b = w2_hwio.reshape(9, RP, RP).astype(jnp.bfloat16)      # index = 3*ky + kx
    affine = jnp.stack([gamma1, beta1, gamma2, beta2]).astype(jnp.float32)

    out_flat = pl.pallas_call(
        functools.partial(bottleneck_kernel, H=H, W=W, B_blk=B_blk),
        out_shape=jax.ShapeDtypeStruct((N, HW, RP), jnp.float32),
        grid_spec=pltpu.PrefetchScalarGridSpec(
            num_scalar_prefetch=0,
            grid=(N // B_blk,),
            in_specs=[
                pl.BlockSpec((B_blk, HW, Cin), lambda n: (n, 0, 0)),
                # grid-invariant operands: single-buffered
                pl.BlockSpec((Cin, RP), lambda n: (0, 0),
                             pipeline_mode=pl.Buffered(1)),
                pl.BlockSpec((9, RP, RP), lambda n: (0, 0, 0),
                             pipeline_mode=pl.Buffered(1)),
                pl.BlockSpec((4, RP), lambda n: (0, 0),
                             pipeline_mode=pl.Buffered(1)),
            ],
            out_specs=pl.BlockSpec((B_blk, HW, RP), lambda n: (n, 0, 0)),
            scratch_shapes=[
                pltpu.VMEM((HW, RP), jnp.float32),   # conv3x3 accumulator
            ],
        ),
        compiler_params=pltpu.CompilerParams(
            dimension_semantics=("parallel",),
            vmem_limit_bytes=_vmem_limit_bytes(B_blk, HW),
        ),
    )(x_flat, w1_b, w2_b, affine)
    return out_flat.reshape(N, H, W, RP)


def bottleneck_shared(x_nchw, w1, w2_hwio, gamma1, beta1, gamma2, beta2):
    """NCHW wrapper matching the PyTorch module interface.

    Prefer `bottleneck_shared_nhwc` downstream to avoid the two extra HBM
    round-trip transposes.
    """
    x = jnp.transpose(x_nchw, (0, 2, 3, 1))
    out = bottleneck_shared_nhwc(x, w1, w2_hwio, gamma1, beta1, gamma2, beta2)
    return jnp.transpose(out, (0, 3, 1, 2))


def reference(x_nchw, w1, w2_hwio, gamma1, beta1, gamma2, beta2):
    # Pure-XLA reference with the same bf16-operand / f32-accumulate matmul
    # precision as the kernel. It uses standard conv / reduction ops, so it checks
    # padding, tap ordering, affine instance-norm and ReLU semantics.
    x = jnp.transpose(x_nchw, (0, 2, 3, 1))

    def inorm(v, g, b):
        m = jnp.mean(v, axis=(1, 2), keepdims=True)
        var = jnp.mean((v - m) ** 2, axis=(1, 2), keepdims=True)
        return (v - m) * lax.rsqrt(var + EPS) * g + b

    h = jnp.einsum('nhwc,cd->nhwd', x.astype(jnp.bfloat16),
                   w1.astype(jnp.bfloat16), preferred_element_type=jnp.float32)
    h = jnp.maximum(inorm(h, gamma1, beta1), 0.0)
    h2 = lax.conv_general_dilated(
        h.astype(jnp.bfloat16), w2_hwio.astype(jnp.bfloat16),
        window_strides=(1, 1), padding='SAME',
        dimension_numbers=('NHWC', 'HWIO', 'NHWC'),
        preferred_element_type=jnp.float32)
    h2 = jnp.maximum(inorm(h2, gamma2, beta2), 0.0)
    return jnp.transpose(h2, (0, 3, 1, 2))


if __name__ == "__main__":
    key = jax.random.PRNGKey(0)
    N, Cin, H, W = 2, 4, 16, 16
    k = jax.random.split(key, 7)

    # deterministic synthetic parameters (shapes follow the PyTorch module)
    x = jax.random.normal(k[0], (N, Cin, H, W), jnp.float32)
    w1 = jax.random.normal(k[1], (Cin, RP), jnp.float32) * (1.0 / Cin ** 0.5)
    w2 = jax.random.normal(k[2], (3, 3, RP, RP), jnp.float32) * (1.0 / (9 * RP) ** 0.5)
    gamma1 = 1.0 + 0.1 * jax.random.normal(k[3], (RP,), jnp.float32)
    beta1 = 0.1 * jax.random.normal(k[4], (RP,), jnp.float32)
    gamma2 = 1.0 + 0.1 * jax.random.normal(k[5], (RP,), jnp.float32)
    beta2 = 0.1 * jax.random.normal(k[6], (RP,), jnp.float32)

    out = bottleneck_shared(x, w1, w2, gamma1, beta1, gamma2, beta2)
    out = jax.block_until_ready(out)

    ref = reference(x, w1, w2, gamma1, beta1, gamma2, beta2)
    assert out.shape == (N, RP, H, W), out.shape
    max_err = float(jnp.max(jnp.abs(out - ref)))
    assert jnp.allclose(out, ref, rtol=5e-3, atol=5e-3), max_err
    print("KERNEL_OK")
</pallas_src>

<mosaic_0001>
module attributes {stable_mosaic.version = 11 : i64} {
  func.func @bottleneck_kernel(%arg0: i32, %arg1: memref<2x256x4xbf16, #tpu.memory_space<vmem>>, %arg2: memref<4x128xbf16, #tpu.memory_space<vmem>>, %arg3: memref<9x128x128xbf16, #tpu.memory_space<vmem>>, %arg4: memref<4x128xf32, #tpu.memory_space<vmem>>, %arg5: memref<2x256x128xf32, #tpu.memory_space<vmem>>, %arg6: memref<256x128xf32, #tpu.memory_space<vmem>>) attributes {dimension_semantics = [#tpu.dimension_semantics<parallel>], iteration_bounds = array<i64: 1>, scalar_prefetch = 0 : i64, scratch_operands = 1 : i64, tpu.core_type = #tpu.core_type<tc>, window_params = [{transform_indices = @transform_0, window_bounds = array<i64: 2, 256, 4>}, {pipeline_mode = #tpu.pipeline_mode<synchronous>, transform_indices = @transform_1, window_bounds = array<i64: 4, 128>}, {pipeline_mode = #tpu.pipeline_mode<synchronous>, transform_indices = @transform_2, window_bounds = array<i64: 9, 128, 128>}, {pipeline_mode = #tpu.pipeline_mode<synchronous>, transform_indices = @transform_3, window_bounds = array<i64: 4, 128>}, {transform_indices = @transform_4, window_bounds = array<i64: 2, 256, 128>}]} {
    %0 = tpu.iota {dimensions = array<i32: 0>} : vector<256x128xi32>
    %c16_i32 = arith.constant 16 : i32
    %c0_i32 = arith.constant 0 : i32
    %1 = arith.cmpi eq, %c16_i32, %c0_i32 : i32
    %c1_i32 = arith.constant 1 : i32
    %2 = arith.select %1, %c1_i32, %c16_i32 : i32
    %3 = vector.broadcast %2 : i32 to vector<256x128xi32>
    %4 = arith.remsi %0, %3 : vector<256x128xi32>
    %c0_i32_0 = arith.constant 0 : i32
    %5 = vector.broadcast %c0_i32_0 : i32 to vector<256x128xi32>
    %6 = arith.cmpi ne, %4, %5 : vector<256x128xi32>
    %c0_i32_1 = arith.constant 0 : i32
    %7 = vector.broadcast %c0_i32_1 : i32 to vector<256x128xi32>
    %8 = arith.cmpi slt, %4, %7 : vector<256x128xi32>
    %c0_i32_2 = arith.constant 0 : i32
    %9 = arith.cmpi slt, %2, %c0_i32_2 : i32
    %10 = vector.broadcast %9 : i1 to vector<256x128xi1>
    %11 = vector.broadcast %10 : vector<256x128xi1> to vector<256x128xi1>
    %12 = arith.xori %8, %11 : vector<256x128xi1>
    %13 = arith.andi %12, %6 : vector<256x128xi1>
    %14 = vector.broadcast %2 : i32 to vector<256x128xi32>
    %15 = arith.addi %4, %14 : vector<256x128xi32>
    %16 = arith.select %13, %15, %4 : vector<256x128xi1>, vector<256x128xi32>
    %c0_i32_3 = arith.constant 0 : i32
    %17 = vector.broadcast %c0_i32_3 : i32 to vector<256x128xi32>
    %18 = arith.cmpi eq, %16, %17 : vector<256x128xi32>
    %c15_i32 = arith.constant 15 : i32
    %19 = vector.broadcast %c15_i32 : i32 to vector<256x128xi32>
    %20 = arith.cmpi eq, %16, %19 : vector<256x128xi32>
    %c0 = arith.constant 0 : index
    %c0_4 = arith.constant 0 : index
    %c0_5 = arith.constant 0 : index
    %21 = vector.load %arg1[%c0, %c0_4, %c0_5] : memref<2x256x4xbf16, #tpu.memory_space<vmem>>, vector<1x256x4xbf16>
    %22 = vector.shape_cast %21 : vector<1x256x4xbf16> to vector<256x4xbf16>
    %c0_6 = arith.constant 0 : index
    %c0_7 = arith.constant 0 : index
    %23 = vector.load %arg2[%c0_6, %c0_7] : memref<4x128xbf16, #tpu.memory_space<vmem>>, vector<4x128xbf16>
    %cst = arith.constant dense<0.000000e+00> : vector<256x128xf32>
    %24 = tpu.matmul %22, %23, %cst {dimension_numbers = #tpu.dot_dimension_numbers<[1], [0], [0], [1], [0, 0, 1, 1], [], []>} : vector<256x4xbf16>, vector<4x128xbf16>, vector<256x128xf32> -> vector<256x128xf32>
    %c0_8 = arith.constant 0 : index
    %c0_9 = arith.constant 0 : index
    %25 = vector.load %arg4[%c0_8, %c0_9] : memref<4x128xf32, #tpu.memory_space<vmem>>, vector<1x128xf32>
    %c1 = arith.constant 1 : index
    %c0_10 = arith.constant 0 : index
    %26 = vector.load %arg4[%c1, %c0_10] : memref<4x128xf32, #tpu.memory_space<vmem>>, vector<1x128xf32>
    %cst_11 = arith.constant dense<0.000000e+00> : vector<128xf32>
    %27 = vector.multi_reduction <add>, %24, %cst_11 [0] : vector<256x128xf32> to vector<128xf32>
    %28 = vector.shape_cast %27 : vector<128xf32> to vector<1x128xf32>
    %29 = arith.mulf %24, %24 : vector<256x128xf32>
    %cst_12 = arith.constant dense<0.000000e+00> : vector<128xf32>
    %30 = vector.multi_reduction <add>, %29, %cst_12 [0] : vector<256x128xf32> to vector<128xf32>
    %31 = vector.shape_cast %30 : vector<128xf32> to vector<1x128xf32>
    %cst_13 = arith.constant 3.906250e-03 : f32
    %32 = vector.broadcast %cst_13 : f32 to vector<1x128xf32>
    %33 = arith.mulf %28, %32 : vector<1x128xf32>
    %cst_14 = arith.constant 3.906250e-03 : f32
    %34 = vector.broadcast %cst_14 : f32 to vector<1x128xf32>
    %35 = arith.mulf %31, %34 : vector<1x128xf32>
    %36 = arith.mulf %33, %33 : vector<1x128xf32>
    %37 = arith.subf %35, %36 : vector<1x128xf32>
    %cst_15 = arith.constant 0.000000e+00 : f32
    %38 = vector.broadcast %cst_15 : f32 to vector<1x128xf32>
    %39 = arith.maximumf %37, %38 : vector<1x128xf32>
    %cst_16 = arith.constant 9.99999974E-6 : f32
    %40 = vector.broadcast %cst_16 : f32 to vector<1x128xf32>
    %41 = arith.addf %39, %40 : vector<1x128xf32>
    %42 = math.rsqrt %41 : vector<1x128xf32>
    %43 = arith.mulf %42, %25 : vector<1x128xf32>
    %44 = vector.broadcast %33 : vector<1x128xf32> to vector<256x128xf32>
    %45 = arith.subf %24, %44 : vector<256x128xf32>
    %46 = vector.broadcast %43 : vector<1x128xf32> to vector<256x128xf32>
    %47 = arith.mulf %45, %46 : vector<256x128xf32>
    %48 = vector.broadcast %26 : vector<1x128xf32> to vector<256x128xf32>
    %49 = arith.addf %47, %48 : vector<256x128xf32>
    %cst_17 = arith.constant 0.000000e+00 : f32
    %50 = vector.broadcast %cst_17 : f32 to vector<256x128xf32>
    %51 = arith.maximumf %49, %50 : vector<256x128xf32>
    %52 = arith.truncf %51 : vector<256x128xf32> to vector<256x128xbf16>
    %c1_i32_18 = arith.constant 1 : i32
    %53 = tpu.dynamic_rotate %51 by %c1_i32_18 dim 0 : vector<256x128xf32>, i32 -> vector<256x128xf32>
    %cst_19 = arith.constant 0.000000e+00 : f32
    %54 = vector.broadcast %cst_19 : f32 to vector<256x128xf32>
    %55 = arith.select %18, %54, %53 : vector<256x128xi1>, vector<256x128xf32>
    %56 = arith.truncf %55 : vector<256x128xf32> to vector<256x128xbf16>
    %c255_i32 = arith.constant 255 : i32
    %57 = tpu.dynamic_rotate %51 by %c255_i32 dim 0 : vector<256x128xf32>, i32 -> vector<256x128xf32>
    %cst_20 = arith.constant 0.000000e+00 : f32
    %58 = vector.broadcast %cst_20 : f32 to vector<256x128xf32>
    %59 = arith.select %20, %58, %57 : vector<256x128xi1>, vector<256x128xf32>
    %60 = arith.truncf %59 : vector<256x128xf32> to vector<256x128xbf16>
    %c4 = arith.constant 4 : index
    %c0_21 = arith.constant 0 : index
    %c0_22 = arith.constant 0 : index
    %61 = vector.load %arg3[%c4, %c0_21, %c0_22] : memref<9x128x128xbf16, #tpu.memory_space<vmem>>, vector<1x128x128xbf16>
    %62 = vector.shape_cast %61 : vector<1x128x128xbf16> to vector<128x128xbf16>
    %cst_23 = arith.constant dense<0.000000e+00> : vector<256x128xf32>
    %63 = tpu.matmul %52, %62, %cst_23 {dimension_numbers = #tpu.dot_dimension_numbers<[1], [0], [0], [1], [0, 0, 1, 1], [], []>} : vector<256x128xbf16>, vector<128x128xbf16>, vector<256x128xf32> -> vector<256x128xf32>
    %c3 = arith.constant 3 : index
    %c0_24 = arith.constant 0 : index
    %c0_25 = arith.constant 0 : index
    %64 = vector.load %arg3[%c3, %c0_24, %c0_25] : memref<9x128x128xbf16, #tpu.memory_space<vmem>>, vector<1x128x128xbf16>
    %65 = vector.shape_cast %64 : vector<1x128x128xbf16> to vector<128x128xbf16>
    %cst_26 = arith.constant dense<0.000000e+00> : vector<256x128xf32>
    %66 = tpu.matmul %56, %65, %cst_26 {dimension_numbers = #tpu.dot_dimension_numbers<[1], [0], [0], [1], [0, 0, 1, 1], [], []>} : vector<256x128xbf16>, vector<128x128xbf16>, vector<256x128xf32> -> vector<256x128xf32>
    %67 = arith.addf %63, %66 : vector<256x128xf32>
    %c5 = arith.constant 5 : index
    %c0_27 = arith.constant 0 : index
    %c0_28 = arith.constant 0 : index
    %68 = vector.load %arg3[%c5, %c0_27, %c0_28] : memref<9x128x128xbf16, #tpu.memory_space<vmem>>, vector<1x128x128xbf16>
    %69 = vector.shape_cast %68 : vector<1x128x128xbf16> to vector<128x128xbf16>
    %cst_29 = arith.constant dense<0.000000e+00> : vector<256x128xf32>
    %70 = tpu.matmul %60, %69, %cst_29 {dimension_numbers = #tpu.dot_dimension_numbers<[1], [0], [0], [1], [0, 0, 1, 1], [], []>} : vector<256x128xbf16>, vector<128x128xbf16>, vector<256x128xf32> -> vector<256x128xf32>
    %71 = arith.addf %67, %70 : vector<256x128xf32>
    %c0_30 = arith.constant 0 : index
    %c0_31 = arith.constant 0 : index
    %72 = vector.load %arg6[%c0_30, %c0_31] : memref<256x128xf32, #tpu.memory_space<vmem>>, vector<256x128xf32>
    tpu.vector_store %arg6[%c0_30, %c0_31], %71 {strides = array<i32>} : memref<256x128xf32, #tpu.memory_space<vmem>>, vector<256x128xf32>,
    %c16 = arith.constant 16 : index
    %c0_32 = arith.constant 0 : index
    %73 = vector.load %arg6[%c16, %c0_32] : memref<256x128xf32, #tpu.memory_space<vmem>>, vector<240x128xf32>
    %74 = vector.extract_strided_slice %52 {offsets = [0, 0], sizes = [240, 128], strides = [1, 1]} : vector<256x128xbf16> to vector<240x128xbf16>
    %75 = vector.extract_strided_slice %56 {offsets = [0, 0], sizes = [240, 128], strides = [1, 1]} : vector<256x128xbf16> to vector<240x128xbf16>
    %76 = vector.extract_strided_slice %60 {offsets = [0, 0], sizes = [240, 128], strides = [1, 1]} : vector<256x128xbf16> to vector<240x128xbf16>
    %c1_33 = arith.constant 1 : index
    %c0_34 = arith.constant 0 : index
    %c0_35 = arith.constant 0 : index
    %77 = vector.load %arg3[%c1_33, %c0_34, %c0_35] : memref<9x128x128xbf16, #tpu.memory_space<vmem>>, vector<1x128x128xbf16>
    %78 = vector.shape_cast %77 : vector<1x128x128xbf16> to vector<128x128xbf16>
    %cst_36 = arith.constant dense<0.000000e+00> : vector<240x128xf32>
    %79 = tpu.matmul %74, %78, %cst_36 {dimension_numbers = #tpu.dot_dimension_numbers<[1], [0], [0], [1], [0, 0, 1, 1], [], []>} : vector<240x128xbf16>, vector<128x128xbf16>, vector<240x128xf32> -> vector<240x128xf32>
    %c0_37 = arith.constant 0 : index
    %c0_38 = arith.constant 0 : index
    %c0_39 = arith.constant 0 : index
    %80 = vector.load %arg3[%c0_37, %c0_38, %c0_39] : memref<9x128x128xbf16, #tpu.memory_space<vmem>>, vector<1x128x128xbf16>
    %81 = vector.shape_cast %80 : vector<1x128x128xbf16> to vector<128x128xbf16>
    %cst_40 = arith.constant dense<0.000000e+00> : vector<240x128xf32>
    %82 = tpu.matmul %75, %81, %cst_40 {dimension_numbers = #tpu.dot_dimension_numbers<[1], [0], [0], [1], [0, 0, 1, 1], [], []>} : vector<240x128xbf16>, vector<128x128xbf16>, vector<240x128xf32> -> vector<240x128xf32>
    %83 = arith.addf %79, %82 : vector<240x128xf32>
    %c2 = arith.constant 2 : index
    %c0_41 = arith.constant 0 : index
    %c0_42 = arith.constant 0 : index
    %84 = vector.load %arg3[%c2, %c0_41, %c0_42] : memref<9x128x128xbf16, #tpu.memory_space<vmem>>, vector<1x128x128xbf16>
    %85 = vector.shape_cast %84 : vector<1x128x128xbf16> to vector<128x128xbf16>
    %cst_43 = arith.constant dense<0.000000e+00> : vector<240x128xf32>
    %86 = tpu.matmul %76, %85, %cst_43 {dimension_numbers = #tpu.dot_dimension_numbers<[1], [0], [0], [1], [0, 0, 1, 1], [], []>} : vector<240x128xbf16>, vector<128x128xbf16>, vector<240x128xf32> -> vector<240x128xf32>
    %87 = arith.addf %83, %86 : vector<240x128xf32>
    %88 = arith.addf %73, %87 : vector<240x128xf32>
    %c16_44 = arith.constant 16 : index
    %c0_45 = arith.constant 0 : index
    %89 = vector.load %arg6[%c16_44, %c0_45] : memref<256x128xf32, #tpu.memory_space<vmem>>, vector<240x128xf32>
    tpu.vector_store %arg6[%c16_44, %c0_45], %88 {strides = array<i32>} : memref<256x128xf32, #tpu.memory_space<vmem>>, vector<240x128xf32>,
    %c0_46 = arith.constant 0 : index
    %c0_47 = arith.constant 0 : index
    %90 = vector.load %arg6[%c0_46, %c0_47] : memref<256x128xf32, #tpu.memory_space<vmem>>, vector<240x128xf32>
    %91 = vector.extract_strided_slice %52 {offsets = [16, 0], sizes = [240, 128], strides = [1, 1]} : vector<256x128xbf16> to vector<240x128xbf16>
    %92 = vector.extract_strided_slice %56 {offsets = [16, 0], sizes = [240, 128], strides = [1, 1]} : vector<256x128xbf16> to vector<240x128xbf16>
    %93 = vector.extract_strided_slice %60 {offsets = [16, 0], sizes = [240, 128], strides = [1, 1]} : vector<256x128xbf16> to vector<240x128xbf16>
    %c7 = arith.constant 7 : index
    %c0_48 = arith.constant 0 : index
    %c0_49 = arith.constant 0 : index
    %94 = vector.load %arg3[%c7, %c0_48, %c0_49] : memref<9x128x128xbf16, #tpu.memory_space<vmem>>, vector<1x128x128xbf16>
    %95 = vector.shape_cast %94 : vector<1x128x128xbf16> to vector<128x128xbf16>
    %cst_50 = arith.constant dense<0.000000e+00> : vector<240x128xf32>
    %96 = tpu.matmul %91, %95, %cst_50 {dimension_numbers = #tpu.dot_dimension_numbers<[1], [0], [0], [1], [0, 0, 1, 1], [], []>} : vector<240x128xbf16>, vector<128x128xbf16>, vector<240x128xf32> -> vector<240x128xf32>
    %c6 = arith.constant 6 : index
    %c0_51 = arith.constant 0 : index
    %c0_52 = arith.constant 0 : index
    %97 = vector.load %arg3[%c6, %c0_51, %c0_52] : memref<9x128x128xbf16, #tpu.memory_space<vmem>>, vector<1x128x128xbf16>
    %98 = vector.shape_cast %97 : vector<1x128x128xbf16> to vector<128x128xbf16>
    %cst_53 = arith.constant dense<0.000000e+00> : vector<240x128xf32>
    %99 = tpu.matmul %92, %98, %cst_53 {dimension_numbers = #tpu.dot_dimension_numbers<[1], [0], [0], [1], [0, 0, 1, 1], [], []>} : vector<240x128xbf16>, vector<128x128xbf16>, vector<240x128xf32> -> vector<240x128xf32>
    %100 = arith.addf %96, %99 : vector<240x128xf32>
    %c8 = arith.constant 8 : index
    %c0_54 = arith.constant 0 : index
    %c0_55 = arith.constant 0 : index
    %101 = vector.load %arg3[%c8, %c0_54, %c0_55] : memref<9x128x128xbf16, #tpu.memory_space<vmem>>, vector<1x128x128xbf16>
    %102 = vector.shape_cast %101 : vector<1x128x128xbf16> to vector<128x128xbf16>
    %cst_56 = arith.constant dense<0.000000e+00> : vector<240x128xf32>
    %103 = tpu.matmul %93, %102, %cst_56 {dimension_numbers = #tpu.dot_dimension_numbers<[1], [0], [0], [1], [0, 0, 1, 1], [], []>} : vector<240x128xbf16>, vector<128x128xbf16>, vector<240x128xf32> -> vector<240x128xf32>
    %104 = arith.addf %100, %103 : vector<240x128xf32>
    %105 = arith.addf %90, %104 : vector<240x128xf32>
    %c0_57 = arith.constant 0 : index
    %c0_58 = arith.constant 0 : index
    %106 = vector.load %arg6[%c0_57, %c0_58] : memref<256x128xf32, #tpu.memory_space<vmem>>, vector<240x128xf32>
    tpu.vector_store %arg6[%c0_57, %c0_58], %105 {strides = array<i32>} : memref<256x128xf32, #tpu.memory_space<vmem>>, vector<240x128xf32>,
    %c0_59 = arith.constant 0 : index
    %c0_60 = arith.constant 0 : index
    %107 = vector.load %arg6[%c0_59, %c0_60] : memref<256x128xf32, #tpu.memory_space<vmem>>, vector<256x128xf32>
    %c2_61 = arith.constant 2 : index
    %c0_62 = arith.constant 0 : index
    %108 = vector.load %arg4[%c2_61, %c0_62] : memref<4x128xf32, #tpu.memory_space<vmem>>, vector<1x128xf32>
    %c3_63 = arith.constant 3 : index
    %c0_64 = arith.constant 0 : index
    %109 = vector.load %arg4[%c3_63, %c0_64] : memref<4x128xf32, #tpu.memory_space<vmem>>, vector<1x128xf32>
    %cst_65 = arith.constant dense<0.000000e+00> : vector<128xf32>
    %110 = vector.multi_reduction <add>, %107, %cst_65 [0] : vector<256x128xf32> to vector<128xf32>
    %111 = vector.shape_cast %110 : vector<128xf32> to vector<1x128xf32>
    %112 = arith.mulf %107, %107 : vector<256x128xf32>
    %cst_66 = arith.constant dense<0.000000e+00> : vector<128xf32>
    %113 = vector.multi_reduction <add>, %112, %cst_66 [0] : vector<256x128xf32> to vector<128xf32>
    %114 = vector.shape_cast %113 : vector<128xf32> to vector<1x128xf32>
    %cst_67 = arith.constant 3.906250e-03 : f32
    %115 = vector.broadcast %cst_67 : f32 to vector<1x128xf32>
    %116 = arith.mulf %111, %115 : vector<1x128xf32>
    %cst_68 = arith.constant 3.906250e-03 : f32
    %117 = vector.broadcast %cst_68 : f32 to vector<1x128xf32>
    %118 = arith.mulf %114, %117 : vector<1x128xf32>
    %119 = arith.mulf %116, %116 : vector<1x128xf32>
    %120 = arith.subf %118, %119 : vector<1x128xf32>
    %cst_69 = arith.constant 0.000000e+00 : f32
    %121 = vector.broadcast %cst_69 : f32 to vector<1x128xf32>
    %122 = arith.maximumf %120, %121 : vector<1x128xf32>
    %cst_70 = arith.constant 9.99999974E-6 : f32
    %123 = vector.broadcast %cst_70 : f32 to vector<1x128xf32>
    %124 = arith.addf %122, %123 : vector<1x128xf32>
    %125 = math.rsqrt %124 : vector<1x128xf32>
    %126 = arith.mulf %125, %108 : vector<1x128xf32>
    %127 = vector.broadcast %116 : vector<1x128xf32> to vector<256x128xf32>
    %128 = arith.subf %107, %127 : vector<256x128xf32>
    %129 = vector.broadcast %126 : vector<1x128xf32> to vector<256x128xf32>
    %130 = arith.mulf %128, %129 : vector<256x128xf32>
    %131 = vector.broadcast %109 : vector<1x128xf32> to vector<256x128xf32>
    %132 = arith.addf %130, %131 : vector<256x128xf32>
    %cst_71 = arith.constant 0.000000e+00 : f32
    %133 = vector.broadcast %cst_71 : f32 to vector<256x128xf32>
    %134 = arith.maximumf %132, %133 : vector<256x128xf32>
    %c0_72 = arith.constant 0 : index
    %c0_73 = arith.constant 0 : index
    %c0_74 = arith.constant 0 : index
    %135 = vector.load %arg5[%c0_72, %c0_73, %c0_74] : memref<2x256x128xf32, #tpu.memory_space<vmem>>, vector<1x256x128xf32>
    %136 = vector.shape_cast %135 : vector<1x256x128xf32> to vector<256x128xf32>
    %137 = vector.shape_cast %134 : vector<256x128xf32> to vector<1x256x128xf32>
    tpu.vector_store %arg5[%c0_72, %c0_73, %c0_74], %137 {strides = array<i32>} : memref<2x256x128xf32, #tpu.memory_space<vmem>>, vector<1x256x128xf32>,
    %c1_75 = arith.constant 1 : index
    %c0_76 = arith.constant 0 : index
    %c0_77 = arith.constant 0 : index
    %138 = vector.load %arg1[%c1_75, %c0_76, %c0_77] : memref<2x256x4xbf16, #tpu.memory_space<vmem>>, vector<1x256x4xbf16>
    %139 = vector.shape_cast %138 : vector<1x256x4xbf16> to vector<256x4xbf16>
    %c0_78 = arith.constant 0 : index
    %c0_79 = arith.constant 0 : index
    %140 = vector.load %arg2[%c0_78, %c0_79] : memref<4x128xbf16, #tpu.memory_space<vmem>>, vector<4x128xbf16>
    %cst_80 = arith.constant dense<0.000000e+00> : vector<256x128xf32>
    %141 = tpu.matmul %139, %140, %cst_80 {dimension_numbers = #tpu.dot_dimension_numbers<[1], [0], [0], [1], [0, 0, 1, 1], [], []>} : vector<256x4xbf16>, vector<4x128xbf16>, vector<256x128xf32> -> vector<256x128xf32>
    %c0_81 = arith.constant 0 : index
    %c0_82 = arith.constant 0 : index
    %142 = vector.load %arg4[%c0_81, %c0_82] : memref<4x128xf32, #tpu.memory_space<vmem>>, vector<1x128xf32>
    %c1_83 = arith.constant 1 : index
    %c0_84 = arith.constant 0 : index
    %143 = vector.load %arg4[%c1_83, %c0_84] : memref<4x128xf32, #tpu.memory_space<vmem>>, vector<1x128xf32>
    %cst_85 = arith.constant dense<0.000000e+00> : vector<128xf32>
    %144 = vector.multi_reduction <add>, %141, %cst_85 [0] : vector<256x128xf32> to vector<128xf32>
    %145 = vector.shape_cast %144 : vector<128xf32> to vector<1x128xf32>
    %146 = arith.mulf %141, %141 : vector<256x128xf32>
    %cst_86 = arith.constant dense<0.000000e+00> : vector<128xf32>
    %147 = vector.multi_reduction <add>, %146, %cst_86 [0] : vector<256x128xf32> to vector<128xf32>
    %148 = vector.shape_cast %147 : vector<128xf32> to vector<1x128xf32>
    %cst_87 = arith.constant 3.906250e-03 : f32
    %149 = vector.broadcast %cst_87 : f32 to vector<1x128xf32>
    %150 = arith.mulf %145, %149 : vector<1x128xf32>
    %cst_88 = arith.constant 3.906250e-03 : f32
    %151 = vector.broadcast %cst_88 : f32 to vector<1x128xf32>
    %152 = arith.mulf %148, %151 : vector<1x128xf32>
    %153 = arith.mulf %150, %150 : vector<1x128xf32>
    %154 = arith.subf %152, %153 : vector<1x128xf32>
    %cst_89 = arith.constant 0.000000e+00 : f32
    %155 = vector.broadcast %cst_89 : f32 to vector<1x128xf32>
    %156 = arith.maximumf %154, %155 : vector<1x128xf32>
    %cst_90 = arith.constant 9.99999974E-6 : f32
    %157 = vector.broadcast %cst_90 : f32 to vector<1x128xf32>
    %158 = arith.addf %156, %157 : vector<1x128xf32>
    %159 = math.rsqrt %158 : vector<1x128xf32>
    %160 = arith.mulf %159, %142 : vector<1x128xf32>
    %161 = vector.broadcast %150 : vector<1x128xf32> to vector<256x128xf32>
    %162 = arith.subf %141, %161 : vector<256x128xf32>
    %163 = vector.broadcast %160 : vector<1x128xf32> to vector<256x128xf32>
    %164 = arith.mulf %162, %163 : vector<256x128xf32>
    %165 = vector.broadcast %143 : vector<1x128xf32> to vector<256x128xf32>
    %166 = arith.addf %164, %165 : vector<256x128xf32>
    %cst_91 = arith.constant 0.000000e+00 : f32
    %167 = vector.broadcast %cst_91 : f32 to vector<256x128xf32>
    %168 = arith.maximumf %166, %167 : vector<256x128xf32>
    %169 = arith.truncf %168 : vector<256x128xf32> to vector<256x128xbf16>
    %c1_i32_92 = arith.constant 1 : i32
    %170 = tpu.dynamic_rotate %168 by %c1_i32_92 dim 0 : vector<256x128xf32>, i32 -> vector<256x128xf32>
    %cst_93 = arith.constant 0.000000e+00 : f32
    %171 = vector.broadcast %cst_93 : f32 to vector<256x128xf32>
    %172 = arith.select %18, %171, %170 : vector<256x128xi1>, vector<256x128xf32>
    %173 = arith.truncf %172 : vector<256x128xf32> to vector<256x128xbf16>
    %c255_i32_94 = arith.constant 255 : i32
    %174 = tpu.dynamic_rotate %168 by %c255_i32_94 dim 0 : vector<256x128xf32>, i32 -> vector<256x128xf32>
    %cst_95 = arith.constant 0.000000e+00 : f32
    %175 = vector.broadcast %cst_95 : f32 to vector<256x128xf32>
    %176 = arith.select %20, %175, %174 : vector<256x128xi1>, vector<256x128xf32>
    %177 = arith.truncf %176 : vector<256x128xf32> to vector<256x128xbf16>
    %c4_96 = arith.constant 4 : index
    %c0_97 = arith.constant 0 : index
    %c0_98 = arith.constant 0 : index
    %178 = vector.load %arg3[%c4_96, %c0_97, %c0_98] : memref<9x128x128xbf16, #tpu.memory_space<vmem>>, vector<1x128x128xbf16>
    %179 = vector.shape_cast %178 : vector<1x128x128xbf16> to vector<128x128xbf16>
    %cst_99 = arith.constant dense<0.000000e+00> : vector<256x128xf32>
    %180 = tpu.matmul %169, %179, %cst_99 {dimension_numbers = #tpu.dot_dimension_numbers<[1], [0], [0], [1], [0, 0, 1, 1], [], []>} : vector<256x128xbf16>, vector<128x128xbf16>, vector<256x128xf32> -> vector<256x128xf32>
    %c3_100 = arith.constant 3 : index
    %c0_101 = arith.constant 0 : index
    %c0_102 = arith.constant 0 : index
    %181 = vector.load %arg3[%c3_100, %c0_101, %c0_102] : memref<9x128x128xbf16, #tpu.memory_space<vmem>>, vector<1x128x128xbf16>
    %182 = vector.shape_cast %181 : vector<1x128x128xbf16> to vector<128x128xbf16>
    %cst_103 = arith.constant dense<0.000000e+00> : vector<256x128xf32>
    %183 = tpu.matmul %173, %182, %cst_103 {dimension_numbers = #tpu.dot_dimension_numbers<[1], [0], [0], [1], [0, 0, 1, 1], [], []>} : vector<256x128xbf16>, vector<128x128xbf16>, vector<256x128xf32> -> vector<256x128xf32>
    %184 = arith.addf %180, %183 : vector<256x128xf32>
    %c5_104 = arith.constant 5 : index
    %c0_105 = arith.constant 0 : index
    %c0_106 = arith.constant 0 : index
    %185 = vector.load %arg3[%c5_104, %c0_105, %c0_106] : memref<9x128x128xbf16, #tpu.memory_space<vmem>>, vector<1x128x128xbf16>
    %186 = vector.shape_cast %185 : vector<1x128x128xbf16> to vector<128x128xbf16>
    %cst_107 = arith.constant dense<0.000000e+00> : vector<256x128xf32>
    %187 = tpu.matmul %177, %186, %cst_107 {dimension_numbers = #tpu.dot_dimension_numbers<[1], [0], [0], [1], [0, 0, 1, 1], [], []>} : vector<256x128xbf16>, vector<128x128xbf16>, vector<256x128xf32> -> vector<256x128xf32>
    %188 = arith.addf %184, %187 : vector<256x128xf32>
    %c0_108 = arith.constant 0 : index
    %c0_109 = arith.constant 0 : index
    %189 = vector.load %arg6[%c0_108, %c0_109] : memref<256x128xf32, #tpu.memory_space<vmem>>, vector<256x128xf32>
    tpu.vector_store %arg6[%c0_108, %c0_109], %188 {strides = array<i32>} : memref<256x128xf32, #tpu.memory_space<vmem>>, vector<256x128xf32>,
    %c16_110 = arith.constant 16 : index
    %c0_111 = arith.constant 0 : index
    %190 = vector.load %arg6[%c16_110, %c0_111] : memref<256x128xf32, #tpu.memory_space<vmem>>, vector<240x128xf32>
    %191 = vector.extract_strided_slice %169 {offsets = [0, 0], sizes = [240, 128], strides = [1, 1]} : vector<256x128xbf16> to vector<240x128xbf16>
    %192 = vector.extract_strided_slice %173 {offsets = [0, 0], sizes = [240, 128], strides = [1, 1]} : vector<256x128xbf16> to vector<240x128xbf16>
    %193 = vector.extract_strided_slice %177 {offsets = [0, 0], sizes = [240, 128], strides = [1, 1]} : vector<256x128xbf16> to vector<240x128xbf16>
    %c1_112 = arith.constant 1 : index
    %c0_113 = arith.constant 0 : index
    %c0_114 = arith.constant 0 : index
    %194 = vector.load %arg3[%c1_112, %c0_113, %c0_114] : memref<9x128x128xbf16, #tpu.memory_space<vmem>>, vector<1x128x128xbf16>
    %195 = vector.shape_cast %194 : vector<1x128x128xbf16> to vector<128x128xbf16>
    %cst_115 = arith.constant dense<0.000000e+00> : vector<240x128xf32>
    %196 = tpu.matmul %191, %195, %cst_115 {dimension_numbers = #tpu.dot_dimension_numbers<[1], [0], [0], [1], [0, 0, 1, 1], [], []>} : vector<240x128xbf16>, vector<128x128xbf16>, vector<240x128xf32> -> vector<240x128xf32>
    %c0_116 = arith.constant 0 : index
    %c0_117 = arith.constant 0 : index
    %c0_118 = arith.constant 0 : index
    %197 = vector.load %arg3[%c0_116, %c0_117, %c0_118] : memref<9x128x128xbf16, #tpu.memory_space<vmem>>, vector<1x128x128xbf16>
    %198 = vector.shape_cast %197 : vector<1x128x128xbf16> to vector<128x128xbf16>
    %cst_119 = arith.constant dense<0.000000e+00> : vector<240x128xf32>
    %199 = tpu.matmul %192, %198, %cst_119 {dimension_numbers = #tpu.dot_dimension_numbers<[1], [0], [0], [1], [0, 0, 1, 1], [], []>} : vector<240x128xbf16>, vector<128x128xbf16>, vector<240x128xf32> -> vector<240x128xf32>
    %200 = arith.addf %196, %199 : vector<240x128xf32>
    %c2_120 = arith.constant 2 : index
    %c0_121 = arith.constant 0 : index
    %c0_122 = arith.constant 0 : index
    %201 = vector.load %arg3[%c2_120, %c0_121, %c0_122] : memref<9x128x128xbf16, #tpu.memory_space<vmem>>, vector<1x128x128xbf16>
    %202 = vector.shape_cast %201 : vector<1x128x128xbf16> to vector<128x128xbf16>
    %cst_123 = arith.constant dense<0.000000e+00> : vector<240x128xf32>
    %203 = tpu.matmul %193, %202, %cst_123 {dimension_numbers = #tpu.dot_dimension_numbers<[1], [0], [0], [1], [0, 0, 1, 1], [], []>} : vector<240x128xbf16>, vector<128x128xbf16>, vector<240x128xf32> -> vector<240x128xf32>
    %204 = arith.addf %200, %203 : vector<240x128xf32>
    %205 = arith.addf %190, %204 : vector<240x128xf32>
    %c16_124 = arith.constant 16 : index
    %c0_125 = arith.constant 0 : index
    %206 = vector.load %arg6[%c16_124, %c0_125] : memref<256x128xf32, #tpu.memory_space<vmem>>, vector<240x128xf32>
    tpu.vector_store %arg6[%c16_124, %c0_125], %205 {strides = array<i32>} : memref<256x128xf32, #tpu.memory_space<vmem>>, vector<240x128xf32>,
    %c0_126 = arith.constant 0 : index
    %c0_127 = arith.constant 0 : index
    %207 = vector.load %arg6[%c0_126, %c0_127] : memref<256x128xf32, #tpu.memory_space<vmem>>, vector<240x128xf32>
    %208 = vector.extract_strided_slice %169 {offsets = [16, 0], sizes = [240, 128], strides = [1, 1]} : vector<256x128xbf16> to vector<240x128xbf16>
    %209 = vector.extract_strided_slice %173 {offsets = [16, 0], sizes = [240, 128], strides = [1, 1]} : vector<256x128xbf16> to vector<240x128xbf16>
    %210 = vector.extract_strided_slice %177 {offsets = [16, 0], sizes = [240, 128], strides = [1, 1]} : vector<256x128xbf16> to vector<240x128xbf16>
    %c7_128 = arith.constant 7 : index
    %c0_129 = arith.constant 0 : index
    %c0_130 = arith.constant 0 : index
    %211 = vector.load %arg3[%c7_128, %c0_129, %c0_130] : memref<9x128x128xbf16, #tpu.memory_space<vmem>>, vector<1x128x128xbf16>
    %212 = vector.shape_cast %211 : vector<1x128x128xbf16> to vector<128x128xbf16>
    %cst_131 = arith.constant dense<0.000000e+00> : vector<240x128xf32>
    %213 = tpu.matmul %208, %212, %cst_131 {dimension_numbers = #tpu.dot_dimension_numbers<[1], [0], [0], [1], [0, 0, 1, 1], [], []>} : vector<240x128xbf16>, vector<128x128xbf16>, vector<240x128xf32> -> vector<240x128xf32>
    %c6_132 = arith.constant 6 : index
    %c0_133 = arith.constant 0 : index
    %c0_134 = arith.constant 0 : index
    %214 = vector.load %arg3[%c6_132, %c0_133, %c0_134] : memref<9x128x128xbf16, #tpu.memory_space<vmem>>, vector<1x128x128xbf16>
    %215 = vector.shape_cast %214 : vector<1x128x128xbf16> to vector<128x128xbf16>
    %cst_135 = arith.constant dense<0.000000e+00> : vector<240x128xf32>
    %216 = tpu.matmul %209, %215, %cst_135 {dimension_numbers = #tpu.dot_dimension_numbers<[1], [0], [0], [1], [0, 0, 1, 1], [], []>} : vector<240x128xbf16>, vector<128x128xbf16>, vector<240x128xf32> -> vector<240x128xf32>
    %217 = arith.addf %213, %216 : vector<240x128xf32>
    %c8_136 = arith.constant 8 : index
    %c0_137 = arith.constant 0 : index
    %c0_138 = arith.constant 0 : index
    %218 = vector.load %arg3[%c8_136, %c0_137, %c0_138] : memref<9x128x128xbf16, #tpu.memory_space<vmem>>, vector<1x128x128xbf16>
    %219 = vector.shape_cast %218 : vector<1x128x128xbf16> to vector<128x128xbf16>
    %cst_139 = arith.constant dense<0.000000e+00> : vector<240x128xf32>
    %220 = tpu.matmul %210, %219, %cst_139 {dimension_numbers = #tpu.dot_dimension_numbers<[1], [0], [0], [1], [0, 0, 1, 1], [], []>} : vector<240x128xbf16>, vector<128x128xbf16>, vector<240x128xf32> -> vector<240x128xf32>
    %221 = arith.addf %217, %220 : vector<240x128xf32>
    %222 = arith.addf %207, %221 : vector<240x128xf32>
    %c0_140 = arith.constant 0 : index
    %c0_141 = arith.constant 0 : index
    %223 = vector.load %arg6[%c0_140, %c0_141] : memref<256x128xf32, #tpu.memory_space<vmem>>, vector<240x128xf32>
    tpu.vector_store %arg6[%c0_140, %c0_141], %222 {strides = array<i32>} : memref<256x128xf32, #tpu.memory_space<vmem>>, vector<240x128xf32>,
    %c0_142 = arith.constant 0 : index
    %c0_143 = arith.constant 0 : index
    %224 = vector.load %arg6[%c0_142, %c0_143] : memref<256x128xf32, #tpu.memory_space<vmem>>, vector<256x128xf32>
    %c2_144 = arith.constant 2 : index
    %c0_145 = arith.constant 0 : index
    %225 = vector.load %arg4[%c2_144, %c0_145] : memref<4x128xf32, #tpu.memory_space<vmem>>, vector<1x128xf32>
    %c3_146 = arith.constant 3 : index
    %c0_147 = arith.constant 0 : index
    %226 = vector.load %arg4[%c3_146, %c0_147] : memref<4x128xf32, #tpu.memory_space<vmem>>, vector<1x128xf32>
    %cst_148 = arith.constant dense<0.000000e+00> : vector<128xf32>
    %227 = vector.multi_reduction <add>, %224, %cst_148 [0] : vector<256x128xf32> to vector<128xf32>
    %228 = vector.shape_cast %227 : vector<128xf32> to vector<1x128xf32>
    %229 = arith.mulf %224, %224 : vector<256x128xf32>
    %cst_149 = arith.constant dense<0.000000e+00> : vector<128xf32>
    %230 = vector.multi_reduction <add>, %229, %cst_149 [0] : vector<256x128xf32> to vector<128xf32>
    %231 = vector.shape_cast %230 : vector<128xf32> to vector<1x128xf32>
    %cst_150 = arith.constant 3.906250e-03 : f32
    %232 = vector.broadcast %cst_150 : f32 to vector<1x128xf32>
    %233 = arith.mulf %228, %232 : vector<1x128xf32>
    %cst_151 = arith.constant 3.906250e-03 : f32
    %234 = vector.broadcast %cst_151 : f32 to vector<1x128xf32>
    %235 = arith.mulf %231, %234 : vector<1x128xf32>
    %236 = arith.mulf %233, %233 : vector<1x128xf32>
    %237 = arith.subf %235, %236 : vector<1x128xf32>
    %cst_152 = arith.constant 0.000000e+00 : f32
    %238 = vector.broadcast %cst_152 : f32 to vector<1x128xf32>
    %239 = arith.maximumf %237, %238 : vector<1x128xf32>
    %cst_153 = arith.constant 9.99999974E-6 : f32
    %240 = vector.broadcast %cst_153 : f32 to vector<1x128xf32>
    %241 = arith.addf %239, %240 : vector<1x128xf32>
    %242 = math.rsqrt %241 : vector<1x128xf32>
    %243 = arith.mulf %242, %225 : vector<1x128xf32>
    %244 = vector.broadcast %233 : vector<1x128xf32> to vector<256x128xf32>
    %245 = arith.subf %224, %244 : vector<256x128xf32>
    %246 = vector.broadcast %243 : vector<1x128xf32> to vector<256x128xf32>
    %247 = arith.mulf %245, %246 : vector<256x128xf32>
    %248 = vector.broadcast %226 : vector<1x128xf32> to vector<256x128xf32>
    %249 = arith.addf %247, %248 : vector<256x128xf32>
    %cst_154 = arith.constant 0.000000e+00 : f32
    %250 = vector.broadcast %cst_154 : f32 to vector<256x128xf32>
    %251 = arith.maximumf %249, %250 : vector<256x128xf32>
    %c1_155 = arith.constant 1 : index
    %c0_156 = arith.constant 0 : index
    %c0_157 = arith.constant 0 : index
    %252 = vector.load %arg5[%c1_155, %c0_156, %c0_157] : memref<2x256x128xf32, #tpu.memory_space<vmem>>, vector<1x256x128xf32>
    %253 = vector.shape_cast %252 : vector<1x256x128xf32> to vector<256x128xf32>
    %254 = vector.shape_cast %251 : vector<256x128xf32> to vector<1x256x128xf32>
    tpu.vector_store %arg5[%c1_155, %c0_156, %c0_157], %254 {strides = array<i32>} : memref<2x256x128xf32, #tpu.memory_space<vmem>>, vector<1x256x128xf32>,
    return
  }
  func.func @transform_0(%arg0: i32) -> (i32, i32, i32) {
    %c0_i32 = arith.constant 0 : i32
    %c0_i32_0 = arith.constant 0 : i32
    %c0_i32_1 = arith.constant 0 : i32
    return %arg0, %c0_i32, %c0_i32_0 : i32, i32, i32
  }
  func.func @transform_1(%arg0: i32) -> (i32, i32) {
    %c0_i32 = arith.constant 0 : i32
    %c0_i32_0 = arith.constant 0 : i32
    %c0_i32_1 = arith.constant 0 : i32
    return %c0_i32, %c0_i32_0 : i32, i32
  }
  func.func @transform_2(%arg0: i32) -> (i32, i32, i32) {
    %c0_i32 = arith.constant 0 : i32
    %c0_i32_0 = arith.constant 0 : i32
    %c0_i32_1 = arith.constant 0 : i32
    %c0_i32_2 = arith.constant 0 : i32
    return %c0_i32, %c0_i32_0, %c0_i32_1 : i32, i32, i32
  }
  func.func @transform_3(%arg0: i32) -> (i32, i32) {
    %c0_i32 = arith.constant 0 : i32
    %c0_i32_0 = arith.constant 0 : i32
    %c0_i32_1 = arith.constant 0 : i32
    return %c0_i32, %c0_i32_0 : i32, i32
  }
  func.func @transform_4(%arg0: i32) -> (i32, i32, i32) {
    %c0_i32 = arith.constant 0 : i32
    %c0_i32_0 = arith.constant 0 : i32
    %c0_i32_1 = arith.constant 0 : i32
    return %arg0, %c0_i32, %c0_i32_0 : i32, i32, i32
  }
}

</mosaic_0001>

<bundles_post_ra>
// kernel: tpu_custom_call.1
= control target key start
LH: loop header
LB: loop body
LE: loop exit
PB: predicated region body
PF: predicated region fallthrough
CT: control target
= control target key end

     0   :  { %9 = vsyncpa [#allocation4], 0  ;;  %s15348_s0 = inlined_call_operand.vmem [shape: bf16[2,256,4], index: 0, kind: input, shape index: {}]   ;;  %s15349_s1 = inlined_call_operand.vmem [shape: bf16[4,128], index: 1, kind: input, shape index: {}]   ;;  %s15350_s2 = inlined_call_operand.hbm [shape: bf16[9,128,128], index: 2, kind: input, shape index: {}]   ;;  %s15351_s3 = inlined_call_operand.vmem [shape: f32[4,128], index: 3, kind: input, shape index: {}]   ;;  %s15352_s4 = inlined_call_operand.hbm [shape: f32[2,256,128], index: 4, kind: output, shape index: {}]  }
   0x1   :  { %10 = vsyncpa [#allocation5], 0  ;;  %s10858_s15 = smov [#allocation3]   ;;  %s10810_s19 = scalar_lea.hbm %s15350_s2, 9216 }
   0x2   :  { %s20_s16 = sshll.u32 %s10858_s15, 4  ;;  %p10811_p0 = scmp.ne.s32.totalorder %s15350_s2, %s10810_s19  ;;  %s21_s16 = int_to_ptr.vmem [resolvable:$true] %s20_s16 }
   0x3   :  { %p10814_p1 = scmp.lt.u32.totalorder %s10810_s19, %s15350_s2 }
   0x5   :  { %p10816_p2 = pnand %p10814_p1, %p10811_p0 }
   0x7   :  { %10819 = shalt.err (!%p10816_p2)
}
   0x8   :  { %s10820_s24 = scalar_lea.vmem %s21_s16, 9216  ;;  %p10825_p4 = scmp.lt.s32.totalorder %s21_s16, %s21_s16 }
   0x9   :  { %p10821_p3 = scmp.ne.s32.totalorder %s21_s16, %s10820_s24  ;;  %p10826_p5 = scmp.lt.s32.totalorder %s10820_s24, %s10820_s24 }
   0xb   :  { %p10827_p6 = por %p10826_p5, %p10825_p4 }
   0xd   :  { %p10828_p7 = pnand %p10827_p6, %p10821_p3 }
   0xf   :  { %10831 = shalt.err (!%p10828_p7)
}
  0x10   :  { %s10859_s25 = smov 64   ;;  %s10860_s26 = smov 4  }
  0x11   :  { %26 = dma.hbm_to_vmem [thread:$0]  %s15350_s2, 9216, %s21_s16, [#allocation4], %s10859_s25, %s10859_s25, %s10860_s26  }
  0x12   :  { %10854 = dma.done.wait [#allocation4], 9216  }
  0x13   :  { %10855 = vsyncadd [#allocation4], 4294958080  ;;  %vm15391_vm0 = vcmask 1041408   ;;  %vm15390_vm1 = vcmask 31744   ;;  %v546_v0 = vld [vmem:[%s15349_s1] sm:$0x3] }
  0x14   :  { %10607 = vmatprep.subr.msk.bf16.mxu0 %vm15391_vm0, %v546_v0  ;;  %v678_v1 = vsel %vm15391_vm0, %v546_v0, 0  ;;  %v10618_v2 = vld [vmem:[%s15348_s0] sm:$0xff]   ;;  %v10619_v3 = vld [vmem:[%s15348_s0 + $0x8] sm:$0xff]   ;;  %v10620_v4 = vld [vmem:[%s15348_s0 + $0x10] sm:$0xff]   ;;  %v15353_v19 = vmov 0.0   ;;  %vm15392_vm2 = vmmov 0  }
  0x15   :  { %8840 = vmatpush3.bf16.msra.mxu0 %v678_v1  ;;  %8841 = vmatprep.mubr.msk.bf16.mxu0 %vm15390_vm1, %v10618_v2  ;;  %v10621_v5 = vld [vmem:[%s15348_s0 + $0x18] sm:$0xff]   ;;  %v10622_v6 = vld [vmem:[%s15348_s0 + $0x20] sm:$0xff]   ;;  %v10623_v7 = vld [vmem:[%s15348_s0 + $0x28] sm:$0xff]   ;;  %vm10863_vm9 = vmmov 1  }
  0x16   :  { %v10624_v8 = vld [vmem:[%s15348_s0 + $0x30] sm:$0xff]   ;;  %v10625_v9 = vld [vmem:[%s15348_s0 + $0x38] sm:$0xff]   ;;  %v10626_v10 = vld [vmem:[%s15348_s0 + $0x40] sm:$0xff]   ;;  %9017 = vmatprep.subr.bf16.mxu0 %v15353_v19 }
  0x17   :  { %v10627_v11 = vld [vmem:[%s15348_s0 + $0x48] sm:$0xff]   ;;  %v10628_v12 = vld [vmem:[%s15348_s0 + $0x50] sm:$0xff]   ;;  %v10629_v13 = vld [vmem:[%s15348_s0 + $0x58] sm:$0xff]  }
  0x18   :  { %8842 = vmatmul.mubr.msk.bf16.vlgmr.msra.gmra.mrb[0].mxu0 %vm15390_vm1, %v10619_v3  ;;  %v10630_v14 = vld [vmem:[%s15348_s0 + $0x60] sm:$0xff]   ;;  %v10631_v15 = vld [vmem:[%s15348_s0 + $0x68] sm:$0xff]   ;;  %v10632_v16 = vld [vmem:[%s15348_s0 + $0x70] sm:$0xff]  }
  0x19   :  { %8845 = vmatprep.mubr.msk.bf16.mxu0 %vm15390_vm1, %v10620_v4  ;;  %v10633_v17 = vld [vmem:[%s15348_s0 + $0x78] sm:$0xff]   ;;  %v10634_v18 = vld [vmem:[#allocation3] sm:$0xff]   ;;  %v10635_v20 = vld [vmem:[#allocation3 + $0x8] sm:$0xff]  }
  0x1a   :  { %9018 = vmatpush3.bf16.msra.mxu0 %v10634_v18  ;;  %v10636_v21 = vld [vmem:[#allocation3 + $0x10] sm:$0xff]   ;;  %v10639_v22 = vld [vmem:[#allocation3 + $0xc0] sm:$0xff]   ;;  %v10640_v23 = vld [vmem:[#allocation3 + $0xc8] sm:$0xff]  }
  0x1b   :  { %9019 = vmatprep.subr.bf16.mxu0 %v15353_v19  ;;  %8873 = vmatprep.subr.bf16.mxu1 %v10639_v22  ;;  %v10637_v24 = vld [vmem:[#allocation3 + $0x18] sm:$0xff]   ;;  %v10642_v25 = vld [vmem:[#allocation3 + $0xd0] sm:$0xff]   ;;  %v10638_v27 = vld [vmem:[#allocation3 + $0x20] sm:$0xff]  }
  0x1c   :  { %8874 = vmatpush3.bf16.msra.mxu1 %v10639_v22  ;;  %v10643_v26 = vld [vmem:[#allocation3 + $0xd8] sm:$0xff]   ;;  %v10645_v28 = vld [vmem:[#allocation3 + $0xe0] sm:$0xff]   ;;  %v10641_v29 = vld [vmem:[#allocation3 + $0x28] sm:$0xff]  }
  0x1d   :  { %8875 = vmatprep.subr.bf16.mxu1 %v10640_v23  ;;  %v10646_v30 = vld [vmem:[#allocation3 + $0xe8] sm:$0xff]   ;;  %v10644_v34 = vld [vmem:[#allocation3 + $0x30] sm:$0xff]   ;;  %v10647_v43 = vld [vmem:[#allocation3 + $0x38] sm:$0xff]  }
  0x1e   :  { %9020 = vmatpush3.bf16.msra.mxu0 %v10635_v20  ;;  %v10648_v35 = vld [vmem:[#allocation3 + $0xf0] sm:$0xff]   ;;  %v10649_v44 = vld [vmem:[#allocation3 + $0xf8] sm:$0xff]  }
  0x1f   :  { %9021 = vmatprep.subr.bf16.mxu0 %v15353_v19 }
  0x20   :  { %8846 = vmatmul.mubr.msk.bf16.gmra.mrb[4].mxu0 %vm15390_vm1, %v10621_v5  ;;  %8876 = vmatpush3.bf16.msra.mxu1 %v10640_v23 }
  0x21   :  { %8849 = vmatprep.mubr.msk.bf16.mxu0 %vm15390_vm1, %v10622_v6  ;;  %8877 = vmatprep.subr.bf16.mxu1 %v10642_v25 }
  0x22   :  { %9022 = vmatpush3.bf16.msra.mxu0 %v10636_v21 }
  0x23   :  { %9023 = vmatprep.subr.bf16.mxu0 %v15353_v19 }
  0x24   :  { %8878 = vmatpush3.bf16.msra.mxu1 %v10642_v25 }
  0x25   :  { %8879 = vmatprep.subr.bf16.mxu1 %v10643_v26 }
  0x26   :  { %9024 = vmatpush3.bf16.msra.mxu0 %v10637_v24 }
  0x27   :  { %9025 = vmatprep.subr.bf16.mxu0 %v15353_v19 }
  0x28   :  { %8850 = vmatmul.mubr.msk.bf16.gmra.mrb[8].mxu0 %vm15390_vm1, %v10623_v7  ;;  %8880 = vmatpush3.bf16.msra.mxu1 %v10643_v26 }
  0x29   :  { %8853 = vmatprep.mubr.msk.bf16.mxu0 %vm15390_vm1, %v10624_v8  ;;  %8881 = vmatprep.subr.bf16.mxu1 %v10645_v28 }
  0x2a   :  { %9026 = vmatpush3.bf16.msra.mxu0 %v10638_v27 }
  0x2b   :  { %9027 = vmatprep.subr.bf16.mxu0 %v15353_v19 }
  0x2c   :  { %8882 = vmatpush3.bf16.msra.mxu1 %v10645_v28 }
  0x2d   :  { %8883 = vmatprep.subr.bf16.mxu1 %v10646_v30 }
  0x2e   :  { %9028 = vmatpush3.bf16.msra.mxu0 %v10641_v29 }
  0x2f   :  { %9029 = vmatprep.subr.bf16.mxu0 %v15353_v19 }
  0x30   :  { %8854 = vmatmul.mubr.msk.bf16.gmra.mrb[12].mxu0 %vm15390_vm1, %v10625_v9  ;;  %8884 = vmatpush3.bf16.msra.mxu1 %v10646_v30 }
  0x31   :  { %8857 = vmatprep.mubr.msk.bf16.mxu0 %vm15390_vm1, %v10626_v10  ;;  %8885 = vmatprep.subr.bf16.mxu1 %v10648_v35 }
  0x32   :  { %9030 = vmatpush3.bf16.msra.mxu0 %v10644_v34 }
  0x33   :  { %9031 = vmatprep.subr.bf16.mxu0 %v15353_v19 }
  0x34   :  { %8886 = vmatpush3.bf16.msra.mxu1 %v10648_v35 }
  0x35   :  { %8887 = vmatprep.subr.bf16.mxu1 %v10649_v44 }
  0x36   :  { %9032 = vmatpush3.bf16.msra.mxu0 %v10647_v43 }
  0x37   :  { %9093 = vmatprep.subr.bf16.mxu0 %v15353_v19 }
  0x38   :  { %8858 = vmatmul.mubr.msk.bf16.gmra.mrb[16].mxu0 %vm15390_vm1, %v10627_v11  ;;  %8888 = vmatpush3.bf16.msra.mxu1 %v10649_v44 }
  0x39   :  { %8861 = vmatprep.mubr.msk.bf16.mxu0 %vm15390_vm1, %v10628_v12 }
  0x40   :  { %8862 = vmatmul.mubr.msk.bf16.gmra.mrb[20].mxu0 %vm15390_vm1, %v10629_v13 }
  0x41   :  { %8865 = vmatprep.mubr.msk.bf16.mxu0 %vm15390_vm1, %v10630_v14 }
  0x48   :  { %8866 = vmatmul.mubr.msk.bf16.gmra.mrb[24].mxu0 %vm15390_vm1, %v10631_v15 }
  0x49   :  { %8869 = vmatprep.mubr.msk.bf16.mxu0 %vm15390_vm1, %v10632_v16 }
  0x50   :  { %8870 = vmatmul.mubr.msk.bf16.gmra.mrb[28].mxu0 %vm15390_vm1, %v10633_v17 }
  0x51   :  { %9033 = vmatprep.mubr.msk.bf16.mxu0 %vm15392_vm2, %v15353_v19 }
  0xeb   :  { %v10979_v31 = vpop.f32.mrb[0].mxu0 }
  0xec   :  { %v10981_v32 = vpop.f32.mrb[1].mxu0  ;;  %v882_v40 = vmul.f32 %v10979_v31, %v10979_v31 }
  0xed   :  { %v10984_v33 = vpop.f32.mrb[2].mxu0  ;;  %v880_v37 = vmul.f32 %v10981_v32, %v10981_v32 }
  0xee   :  { %v10986_v36 = vpop.f32.mrb[3].mxu0  ;;  %v883_v45 = vmul.f32 %v10984_v33, %v10984_v33 }
  0xef   :  { %v843_v38 = vadd.f32 %v10986_v36, %v10981_v32  ;;  %v881_v39 = vmul.f32 %v10986_v36, %v10986_v36 }
  0xf1   :  { %v844_v41 = vadd.f32 %v10979_v31, %v843_v38  ;;  %v912_v42 = vadd.f32 %v881_v39, %v880_v37 }
  0xf3   :  { %v913_v46 = vadd.f32 %v912_v42, %v882_v40  ;;  %v11002_v47 = vpop.f32.mrb[4].mxu0  ;;  %v845_v48 = vadd.f32 %v10984_v33, %v844_v41 }
  0xf4   :  { %v11005_v49 = vpop.f32.mrb[5].mxu0  ;;  %v886_v58 = vmul.f32 %v11002_v47, %v11002_v47 }
  0xf5   :  { %v846_v50 = vadd.f32 %v845_v48, %v11005_v49  ;;  %v884_v51 = vmul.f32 %v11005_v49, %v11005_v49  ;;  %v914_v52 = vadd.f32 %v913_v46, %v883_v45  ;;  %v11011_v53 = vpop.f32.mrb[6].mxu0 }
  0xf6   :  { %v11013_v54 = vpop.f32.mrb[7].mxu0  ;;  %v887_v61 = vmul.f32 %v11011_v53, %v11011_v53 }
  0xf7   :  { %v915_v55 = vadd.f32 %v914_v52, %v884_v51  ;;  %v847_v56 = vadd.f32 %v846_v50, %v11013_v54  ;;  %v885_v57 = vmul.f32 %v11013_v54, %v11013_v54 }
  0xf9   :  { %v848_v59 = vadd.f32 %v11002_v47, %v847_v56  ;;  %v916_v60 = vadd.f32 %v915_v55, %v885_v57 }
  0xfb   :  { %v917_v62 = vadd.f32 %v916_v60, %v886_v58  ;;  %v11023_v63 = vpop.f32.mrb[8].mxu0  ;;  %v849_v0 = vadd.f32 %v11011_v53, %v848_v59 }
  0xfc   :  { %v11026_v1 = vpop.f32.mrb[9].mxu0  ;;  %v890_v10 = vmul.f32 %v11023_v63, %v11023_v63 }
  0xfd   :  { %v850_v2 = vadd.f32 %v849_v0, %v11026_v1  ;;  %v888_v3 = vmul.f32 %v11026_v1, %v11026_v1  ;;  %v918_v4 = vadd.f32 %v917_v62, %v887_v61  ;;  %v11031_v5 = vpop.f32.mrb[10].mxu0 }
  0xfe   :  { %v11033_v6 = vpop.f32.mrb[11].mxu0  ;;  %v891_v13 = vmul.f32 %v11031_v5, %v11031_v5 }
  0xff   :  { %v919_v7 = vadd.f32 %v918_v4, %v888_v3  ;;  %v851_v8 = vadd.f32 %v850_v2, %v11033_v6  ;;  %v889_v9 = vmul.f32 %v11033_v6, %v11033_v6 }
 0x101   :  { %v852_v11 = vadd.f32 %v11023_v63, %v851_v8  ;;  %v920_v12 = vadd.f32 %v919_v7, %v889_v9 }
 0x103   :  { %v921_v14 = vadd.f32 %v920_v12, %v890_v10  ;;  %v11043_v15 = vpop.f32.mrb[12].mxu0  ;;  %v853_v16 = vadd.f32 %v11031_v5, %v852_v11 }
 0x104   :  { %v11046_v17 = vpop.f32.mrb[13].mxu0  ;;  %v894_v27 = vmul.f32 %v11043_v15, %v11043_v15 }
 0x105   :  { %v854_v18 = vadd.f32 %v853_v16, %v11046_v17  ;;  %v892_v20 = vmul.f32 %v11046_v17, %v11046_v17  ;;  %v922_v21 = vadd.f32 %v921_v14, %v891_v13  ;;  %v11051_v22 = vpop.f32.mrb[14].mxu0  ;;  %v11106_v14 = vld [vmem:[#allocation3 + $0x100] sm:$0xff]  }
 0x106   :  { %v11053_v23 = vpop.f32.mrb[15].mxu0  ;;  %v895_v30 = vmul.f32 %v11051_v22, %v11051_v22  ;;  %8921 = vmatprep.subr.bf16.mxu1 %v11106_v14 }
 0x107   :  { %v923_v24 = vadd.f32 %v922_v21, %v892_v20  ;;  %v855_v25 = vadd.f32 %v854_v18, %v11053_v23  ;;  %v893_v26 = vmul.f32 %v11053_v23, %v11053_v23 }
 0x109   :  { %v924_v28 = vadd.f32 %v923_v24, %v893_v26  ;;  %v856_v29 = vadd.f32 %v11043_v15, %v855_v25 }
 0x10b   :  { %v11063_v34 = vpop.f32.mrb[16].mxu0  ;;  %v857_v35 = vadd.f32 %v11051_v22, %v856_v29  ;;  %v925_v37 = vadd.f32 %v924_v28, %v894_v27 }
 0x10c   :  { %v11066_v38 = vpop.f32.mrb[17].mxu0  ;;  %v898_v48 = vmul.f32 %v11063_v34, %v11063_v34 }
 0x10d   :  { %v858_v39 = vadd.f32 %v857_v35, %v11066_v38  ;;  %v896_v40 = vmul.f32 %v11066_v38, %v11066_v38  ;;  %v926_v41 = vadd.f32 %v925_v37, %v895_v30  ;;  %v11071_v42 = vpop.f32.mrb[18].mxu0 }
 0x10e   :  { %v11073_v43 = vpop.f32.mrb[19].mxu0  ;;  %v899_v52 = vmul.f32 %v11071_v42, %v11071_v42 }
 0x10f   :  { %v927_v44 = vadd.f32 %v926_v41, %v896_v40  ;;  %v859_v45 = vadd.f32 %v858_v39, %v11073_v43  ;;  %v897_v46 = vmul.f32 %v11073_v43, %v11073_v43 }
 0x111   :  { %v860_v50 = vadd.f32 %v11063_v34, %v859_v45  ;;  %v928_v51 = vadd.f32 %v927_v44, %v897_v46 }
 0x113   :  { %v929_v55 = vadd.f32 %v928_v51, %v898_v48  ;;  %v11083_v56 = vpop.f32.mrb[20].mxu0  ;;  %v861_v57 = vadd.f32 %v11071_v42, %v860_v50 }
 0x114   :  { %v11086_v58 = vpop.f32.mrb[21].mxu0  ;;  %v902_v7 = vmul.f32 %v11083_v56, %v11083_v56 }
 0x115   :  { %v862_v59 = vadd.f32 %v861_v57, %v11086_v58  ;;  %v900_v60 = vmul.f32 %v11086_v58, %v11086_v58  ;;  %v930_v61 = vadd.f32 %v929_v55, %v899_v52  ;;  %v11091_v62 = vpop.f32.mrb[22].mxu0 }
 0x116   :  { %v11093_v0 = vpop.f32.mrb[23].mxu0  ;;  %v903_v10 = vmul.f32 %v11091_v62, %v11091_v62 }
 0x117   :  { %v931_v2 = vadd.f32 %v930_v61, %v900_v60  ;;  %v863_v3 = vadd.f32 %v862_v59, %v11093_v0  ;;  %v901_v4 = vmul.f32 %v11093_v0, %v11093_v0 }
 0x119   :  { %v864_v8 = vadd.f32 %v11083_v56, %v863_v3  ;;  %v932_v9 = vadd.f32 %v931_v2, %v901_v4 }
 0x11b   :  { %v933_v11 = vadd.f32 %v932_v9, %v902_v7  ;;  %v11103_v12 = vpop.f32.mrb[24].mxu0  ;;  %v865_v13 = vadd.f32 %v11091_v62, %v864_v8 }
 0x11c   :  { %v11108_v16 = vpop.f32.mrb[25].mxu0  ;;  %v906_v29 = vmul.f32 %v11103_v12, %v11103_v12 }
 0x11d   :  { %v866_v18 = vadd.f32 %v865_v13, %v11108_v16  ;;  %v904_v20 = vmul.f32 %v11108_v16, %v11108_v16  ;;  %v934_v21 = vadd.f32 %v933_v11, %v903_v10  ;;  %v11113_v24 = vpop.f32.mrb[26].mxu0 }
 0x11e   :  { %v11116_v25 = vpop.f32.mrb[27].mxu0  ;;  %v907_v37 = vmul.f32 %v11113_v24, %v11113_v24 }
 0x11f   :  { %v935_v26 = vadd.f32 %v934_v21, %v904_v20  ;;  %v867_v27 = vadd.f32 %v866_v18, %v11116_v25  ;;  %v905_v28 = vmul.f32 %v11116_v25, %v11116_v25 }
 0x121   :  { %v868_v30 = vadd.f32 %v11103_v12, %v867_v27  ;;  %v936_v35 = vadd.f32 %v935_v26, %v905_v28 }
 0x123   :  { %v937_v39 = vadd.f32 %v936_v35, %v906_v29  ;;  %v11126_v40 = vpop.f32.mrb[28].mxu0  ;;  %v869_v41 = vadd.f32 %v11113_v24, %v868_v30 }
 0x124   :  { %v11129_v44 = vpop.f32.mrb[29].mxu0  ;;  %v910_v59 = vmul.f32 %v11126_v40, %v11126_v40 }
 0x125   :  { %v870_v45 = vadd.f32 %v869_v41, %v11129_v44  ;;  %v908_v46 = vmul.f32 %v11129_v44, %v11129_v44  ;;  %v938_v48 = vadd.f32 %v937_v39, %v907_v37  ;;  %v11134_v50 = vpop.f32.mrb[30].mxu0 }
 0x126   :  { %v11136_v51 = vpop.f32.mrb[31].mxu0  ;;  %v911_v2 = vmul.f32 %v11134_v50, %v11134_v50 }
 0x127   :  { %v939_v52 = vadd.f32 %v938_v48, %v908_v46  ;;  %v871_v55 = vadd.f32 %v870_v45, %v11136_v51  ;;  %v909_v57 = vmul.f32 %v11136_v51, %v11136_v51 }
 0x129   :  { %v872_v60 = vadd.f32 %v11126_v40, %v871_v55  ;;  %v940_v61 = vadd.f32 %v939_v52, %v909_v57 }
 0x12b   :  { %v873_v3 = vadd.f32 %v11134_v50, %v872_v60  ;;  %v941_v4 = vadd.f32 %v940_v61, %v910_v59 }
 0x12d   :  { %v874_v7 = vrot.slane %v873_v3, 4  ;;  %v942_v8 = vadd.f32 %v941_v4, %v911_v2 }
 0x12f   :  { %v875_v9 = vadd.f32 %v874_v7, %v873_v3  ;;  %v943_v10 = vrot.slane %v942_v8, 4 }
 0x131   :  { %v876_v11 = vrot.slane %v875_v9, 2  ;;  %v944_v13 = vadd.f32 %v943_v10, %v942_v8 }
 0x133   :  { %v877_v18 = vadd.f32 %v876_v11, %v875_v9  ;;  %v945_v20 = vrot.slane %v944_v13, 2 }
 0x135   :  { %v878_v21 = vrot.slane %v877_v18, 1  ;;  %v946_v26 = vadd.f32 %v945_v20, %v944_v13  ;;  %v11246_v13 = vld [vmem:[%s15351_s3 + $0x1] ss:$0 sm:$0xff] }
 0x137   :  { %v879_v27 = vadd.f32 %v878_v21, %v877_v18  ;;  %v947_v28 = vrot.slane %v946_v26, 1 }
 0x139   :  { %v948_v29 = vadd.f32 %v947_v28, %v946_v26  ;;  %v11147_v30 = vmul.f32 0.00390625, %v879_v27 }
 0x13b   :  { %v950_v35 = vmul.f32 0.00390625, %v948_v29  ;;  %v951_v37 = vmul.f32 %v11147_v30, %v11147_v30  ;;  %v986_v39 = vsub.f32 %v11136_v51, %v11147_v30  ;;  %v957_v41 = vsub.f32 %v10981_v32, %v11147_v30 }
 0x13c   :  { %v958_v45 = vsub.f32 %v10986_v36, %v11147_v30  ;;  %v959_v46 = vsub.f32 %v10979_v31, %v11147_v30  ;;  %v960_v48 = vsub.f32 %v10984_v33, %v11147_v30  ;;  %v961_v52 = vsub.f32 %v11005_v49, %v11147_v30 }
 0x13d   :  { %v952_v55 = vsub.f32 %v950_v35, %v951_v37  ;;  %v962_v57 = vsub.f32 %v11013_v54, %v11147_v30  ;;  %v963_v51 = vsub.f32 %v11002_v47, %v11147_v30  ;;  %v964_v32 = vsub.f32 %v11011_v53, %v11147_v30 }
 0x13e   :  { %v965_v36 = vsub.f32 %v11026_v1, %v11147_v30  ;;  %v966_v31 = vsub.f32 %v11033_v6, %v11147_v30  ;;  %v967_v33 = vsub.f32 %v11023_v63, %v11147_v30  ;;  %v968_v49 = vsub.f32 %v11031_v5, %v11147_v30 }
 0x13f   :  { %v953_v59 = vmax.f32 %v952_v55, 0.0  ;;  %v969_v54 = vsub.f32 %v11046_v17, %v11147_v30  ;;  %v970_v47 = vsub.f32 %v11053_v23, %v11147_v30  ;;  %v971_v53 = vsub.f32 %v11043_v15, %v11147_v30 }
 0x140   :  { %v972_v1 = vsub.f32 %v11051_v22, %v11147_v30  ;;  %v973_v6 = vsub.f32 %v11066_v38, %v11147_v30  ;;  %v974_v63 = vsub.f32 %v11073_v43, %v11147_v30  ;;  %v975_v5 = vsub.f32 %v11063_v34, %v11147_v30 }
 0x141   :  { %v954_v60 = vadd.f32 1e-05, %v953_v59  ;;  %v976_v17 = vsub.f32 %v11071_v42, %v11147_v30  ;;  %v977_v23 = vsub.f32 %v11086_v58, %v11147_v30  ;;  %v978_v15 = vsub.f32 %v11093_v0, %v11147_v30 }
 0x142   :  { %v979_v22 = vsub.f32 %v11083_v56, %v11147_v30  ;;  %v980_v38 = vsub.f32 %v11091_v62, %v11147_v30  ;;  %v981_v43 = vsub.f32 %v11108_v16, %v11147_v30  ;;  %v982_v34 = vsub.f32 %v11116_v25, %v11147_v30  ;;  %v841_v25 = vld [vmem:[%s15351_s3] sm:$0x1] }
 0x143   :  { %10794 = vrsqrt.f32 %v954_v60  ;;  %v983_v42 = vsub.f32 %v11103_v12, %v11147_v30  ;;  %v984_v58 = vsub.f32 %v11113_v24, %v11147_v30  ;;  %v985_v0 = vsub.f32 %v11129_v44, %v11147_v30 }
 0x144   :  { %v33_v56 = vlaneseq  ;;  %v987_v62 = vsub.f32 %v11126_v40, %v11147_v30  ;;  %v988_v16 = vsub.f32 %v11134_v50, %v11147_v30 }
 0x146   :  { %v11215_v61 = vshrl.u32 %v33_v56, 7 }
 0x148   :  { %15616 = vst [vmem:[#allocation9_spill] sm:$0xff] %v11215_v61  ;;  %v11221_v12 = vsub.s32 0, %v11215_v61  ;;  %v11225_v3 = vadd.s32 16, %v11215_v61  ;;  %v11228_v40 = vadd.s32 32, %v11215_v61  ;;  %v11231_v50 = vadd.s32 48, %v11215_v61 }
 0x149   :  { %v11234_v4 = vadd.s32 64, %v11215_v61  ;;  %v11237_v7 = vadd.s32 80, %v11215_v61  ;;  %v11249_v30 = vadd.s32 96, %v11215_v61  ;;  %vm15389_vm3 = vcmp.lt.s32.totalorder %v11215_v61, 1 }
 0x14a   :  { %15617 = vst [vmem:[#allocation10_spill] sm:$0xff] %v11221_v12  ;;  %vm15396_vm14 = vcmp.lt.s32.totalorder %v11215_v61, 7 }
 0x14d   :  { %v10795_v24 = vpop.eup %10794 }
 0x14e   :  { %v956_v2 = vmul.f32 %v10795_v24, %v841_v25  ;;  %v11278_v25 = vadd.s32 176, %v11215_v61 }
 0x150   :  { %v992_v44 = vrot.slane %v956_v2, %v11221_v12  ;;  %15620 = vst [vmem:[#allocation13_spill] sm:$0xff] %v11278_v25 }
 0x152   :  { %v1022_v8 = vmul.f32 %v992_v44, %v986_v39  ;;  %v11239_v9 = vmul.f32 %v992_v44, %v957_v41  ;;  %v11241_v10 = vmul.f32 %v992_v44, %v958_v45  ;;  %v995_v11 = vmul.f32 %v992_v44, %v959_v46 }
 0x153   :  { %v996_v18 = vmul.f32 %v992_v44, %v960_v48  ;;  %v997_v20 = vmul.f32 %v992_v44, %v961_v52  ;;  %v998_v21 = vmul.f32 %v992_v44, %v962_v57  ;;  %v999_v26 = vmul.f32 %v992_v44, %v963_v51 }
 0x154   :  { %v1000_v27 = vmul.f32 %v992_v44, %v964_v32  ;;  %v1001_v28 = vmul.f32 %v992_v44, %v965_v36  ;;  %v1002_v29 = vmul.f32 %v992_v44, %v966_v31  ;;  %v1003_v35 = vmul.f32 %v992_v44, %v967_v33 }
 0x155   :  { %v1004_v37 = vmul.f32 %v992_v44, %v968_v49  ;;  %v1005_v39 = vmul.f32 %v992_v44, %v969_v54  ;;  %v1006_v41 = vmul.f32 %v992_v44, %v970_v47  ;;  %v1058_v45 = vadd.f32 %v11246_v13, %v1022_v8 }
 0x156   :  { %v1007_v46 = vmul.f32 %v992_v44, %v971_v53  ;;  %v1008_v55 = vmul.f32 %v992_v44, %v972_v1  ;;  %v1009_v59 = vmul.f32 %v992_v44, %v973_v6  ;;  %v1010_v60 = vmul.f32 %v992_v44, %v974_v63 }
 0x157   :  { %v1011_v48 = vmul.f32 %v992_v44, %v975_v5  ;;  %v1012_v52 = vmul.f32 %v992_v44, %v976_v17  ;;  %v1013_v57 = vmul.f32 %v992_v44, %v977_v23  ;;  %v1014_v51 = vmul.f32 %v992_v44, %v978_v15 }
 0x158   :  { %v1015_v32 = vmul.f32 %v992_v44, %v979_v22  ;;  %v11253_v36 = vadd.s32 112, %v11215_v61  ;;  %v11256_v31 = vadd.s32 128, %v11215_v61  ;;  %v1016_v33 = vmul.f32 %v992_v44, %v980_v38 }
 0x159   :  { %v1017_v49 = vmul.f32 %v992_v44, %v981_v43  ;;  %v1018_v54 = vmul.f32 %v992_v44, %v982_v34  ;;  %v1019_v47 = vmul.f32 %v992_v44, %v983_v42  ;;  %v1020_v56 = vmul.f32 %v992_v44, %v984_v58 }
 0x15a   :  { %15618 = vst [vmem:[#allocation11_spill] sm:$0xff] %v11253_v36  ;;  %15619 = vst [vmem:[#allocation12_spill] sm:$0xff] %v11256_v31  ;;  %v1021_v53 = vmul.f32 %v992_v44, %v985_v0  ;;  %v1023_v1 = vmul.f32 %v992_v44, %v987_v62  ;;  %v1024_v6 = vmul.f32 %v992_v44, %v988_v16  ;;  %v11258_v63 = vmax.f32 %v1058_v45, 0.0 }
 0x15b   :  { %v70_v5 = vand.u32 15, %v11215_v61  ;;  %v84_v17 = vand.u32 15, %v11225_v3  ;;  %v98_v23 = vand.u32 15, %v11228_v40  ;;  %v112_v15 = vand.u32 15, %v11231_v50 }
 0x15c   :  { %v11270_v58 = vadd.s32 144, %v11215_v61  ;;  %v1031_v62 = vadd.f32 %v11246_v13, %v995_v11  ;;  %v11275_v16 = vadd.s32 160, %v11215_v61  ;;  %v1032_v24 = vadd.f32 %v11246_v13, %v996_v18 }
 0x15d   :  { %v1033_v2 = vadd.f32 %v11246_v13, %v997_v20  ;;  %v1034_v44 = vadd.f32 %v11246_v13, %v998_v21  ;;  %v1035_v8 = vadd.f32 %v11246_v13, %v999_v26  ;;  %v1036_v45 = vadd.f32 %v11246_v13, %v1000_v27 }
 0x15e   :  { %v1037_v42 = vadd.f32 %v11246_v13, %v1001_v28  ;;  %v1038_v11 = vadd.f32 %v11246_v13, %v1002_v29  ;;  %v1039_v34 = vadd.f32 %v11246_v13, %v1003_v35  ;;  %v1040_v0 = vadd.f32 %v11246_v13, %v1004_v37 }
 0x15f   :  { %v1041_v43 = vadd.f32 %v11246_v13, %v1005_v39  ;;  %v1042_v18 = vadd.f32 %v11246_v13, %v1006_v41  ;;  %v1043_v20 = vadd.f32 %v11246_v13, %v1007_v46  ;;  %v1044_v21 = vadd.f32 %v11246_v13, %v1008_v55 }
 0x160   :  { %v1045_v26 = vadd.f32 %v11246_v13, %v1009_v59  ;;  %v1046_v27 = vadd.f32 %v11246_v13, %v1010_v60  ;;  %v1047_v28 = vadd.f32 %v11246_v13, %v1011_v48  ;;  %v1048_v29 = vadd.f32 %v11246_v13, %v1012_v52 }
 0x161   :  { %v1049_v35 = vadd.f32 %v11246_v13, %v1013_v57  ;;  %v1050_v37 = vadd.f32 %v11246_v13, %v1014_v51  ;;  %v1051_v39 = vadd.f32 %v11246_v13, %v1015_v32  ;;  %v1052_v41 = vadd.f32 %v11246_v13, %v1016_v33 }
 0x162   :  { %v1053_v46 = vadd.f32 %v11246_v13, %v1017_v49  ;;  %v1054_v55 = vadd.f32 %v11246_v13, %v1018_v54  ;;  %v1055_v59 = vadd.f32 %v11246_v13, %v1019_v47  ;;  %v1056_v60 = vadd.f32 %v11246_v13, %v1020_v56 }
 0x163   :  { %v1057_v48 = vadd.f32 %v11246_v13, %v1021_v53  ;;  %v1059_v52 = vadd.f32 %v11246_v13, %v1023_v1  ;;  %v1060_v57 = vadd.f32 %v11246_v13, %v1024_v6  ;;  %v11308_v38 = vmax.f32 %v1031_v62, 0.0 }
 0x164   :  { %v11310_v51 = vmax.f32 %v1032_v24, 0.0  ;;  %v11312_v32 = vmax.f32 %v1033_v2, 0.0  ;;  %v11314_v33 = vmax.f32 %v1034_v44, 0.0  ;;  %v11316_v49 = vmax.f32 %v1035_v8, 0.0 }
 0x165   :  { %v11318_v54 = vmax.f32 %v1036_v45, 0.0  ;;  %v11320_v47 = vmax.f32 %v1037_v42, 0.0  ;;  %v11322_v56 = vmax.f32 %v1038_v11, 0.0  ;;  %v11324_v53 = vmax.f32 %v1039_v34, 0.0 }
 0x166   :  { %v11326_v1 = vmax.f32 %v1040_v0, 0.0  ;;  %v11328_v6 = vmax.f32 %v1041_v43, 0.0  ;;  %v11330_v62 = vmax.f32 %v1042_v18, 0.0  ;;  %v11333_v24 = vmax.f32 %v1043_v20, 0.0 }
 0x167   :  { %v11335_v2 = vmax.f32 %v1045_v26, 0.0  ;;  %v11337_v44 = vmax.f32 %v1046_v27, 0.0  ;;  %v11339_v42 = vmax.f32 %v1047_v28, 0.0  ;;  %v11341_v8 = vmax.f32 %v1048_v29, 0.0 }
 0x168   :  { %v11343_v34 = vmax.f32 %v1049_v35, 0.0  ;;  %v11345_v0 = vmax.f32 %v1050_v37, 0.0  ;;  %v11347_v43 = vmax.f32 %v1051_v39, 0.0  ;;  %v11349_v45 = vmax.f32 %v1052_v41, 0.0 }
 0x169   :  { %v11351_v11 = vmax.f32 %v1053_v46, 0.0  ;;  %v11353_v18 = vmax.f32 %v1054_v55, 0.0  ;;  %v11355_v20 = vmax.f32 %v1055_v59, 0.0  ;;  %vm11359_vm4 = vcmp.ne.s32.totalorder %v70_v5, 0 }
 0x16a   :  { %v11363_v27 = vmax.f32 %v1044_v21, 0.0  ;;  %v11365_v28 = vmax.f32 %v1056_v60, 0.0  ;;  %v11367_v29 = vmax.f32 %v1057_v48, 0.0  ;;  %v11369_v35 = vmax.f32 %v1060_v57, 0.0  ;;  %vm11452_vm10 = vmpackc.low %vm10863_vm9, %vm11359_vm4 }
 0x16b   :  { %vm11373_vm5 = vcmp.ne.s32.totalorder %v84_v17, 0  ;;  %v11377_v39 = vmax.f32 %v1059_v52, 0.0  ;;  %vm11384_vm6 = vcmp.ne.s32.totalorder %v98_v23, 0  ;;  %v1029_v57 = vadd.f32 %v11246_v13, %v11239_v9 }
 0x16c   :  { %v1030_v17 = vadd.f32 %v11246_v13, %v11241_v10  ;;  %v1111_v59 = vrot.slane %v11308_v38, 7  ;;  %v1112_v60 = vrot.slane %v11310_v51, 7  ;;  %v1113_v48 = vrot.slane %v11312_v32, 7  ;;  %vm11463_vm11 = vmpackc.low %vm10863_vm9, %vm11373_vm5 }
 0x16d   :  { %v1114_v52 = vrot.slane %v11314_v33, 7  ;;  %v11406_v21 = vmax.f32 %v1029_v57, 0.0  ;;  %v1115_v23 = vrot.slane %v11316_v49, 7  ;;  %v1116_v9 = vrot.slane %v11318_v54, 7  ;;  %vm11475_vm12 = vmpackc.low %vm10863_vm9, %vm11384_vm6 }
 0x16e   :  { %v11408_v40 = vmax.f32 %v1030_v17, 0.0  ;;  %v1170_v10 = vsel %vm15389_vm3, %v1111_v59, %v1112_v60  ;;  %v1169_v3 = vsel %vm15389_vm3, %v1112_v60, %v1113_v48  ;;  %v1117_v19 = vrot.slane %v11320_v47, 7 }
 0x16f   :  { %v1168_v13 = vsel %vm15389_vm3, %v1113_v48, %v1114_v52  ;;  %v1109_v57 = vrot.slane %v11406_v21, 7  ;;  %v1166_v41 = vsel %vm15389_vm3, %v1115_v23, %v1116_v9  ;;  %vm11427_vm7 = vcmp.ne.s32.totalorder %v112_v15, 0 }
 0x170   :  { %v1110_v17 = vrot.slane %v11408_v40, 7  ;;  %v11421_v5 = vpack.c.bf16 %v1168_v13, %v1169_v3  ;;  %v1167_v60 = vsel %vm15389_vm3, %v1114_v52, %v1115_v23  ;;  %v1118_v48 = vrot.slane %v11322_v56, 7  ;;  %v10650_v23 = vld [vmem:[#allocation3 + $0x40] sm:$0xff]   ;;  %vm11588_vm4 = vmpackc.low %vm10863_vm9, %vm11427_vm7 }
 0x171   :  { %v1165_v22 = vsel %vm15389_vm3, %v1116_v9, %v1117_v19  ;;  %v15630_v3 = vand.u32 15, %v11234_v4  ;;  %v1119_v50 = vrot.slane %v11324_v53, 7  ;;  %v15633_v12 = vrot.slane %v11369_v35, 7 }
 0x172   :  { %15627 = vst [vmem:[#allocation14_spill] sm:$0xff] %v11421_v5  ;;  %v1172_v15 = vsel %vm15389_vm3, %v1109_v57, %v1110_v17  ;;  %v15634_v4 = vmov 0  ;;  %v1171_v9 = vsel %vm15389_vm3, %v1110_v17, %v1111_v59  ;;  %v1120_v31 = vrot.slane %v11326_v1, 7 }
 0x173   :  { %vm11438_vm8 = vcmp.ne.s32.totalorder %v15630_v3, 0  ;;  %v1173_v52 = vsel %vm15389_vm3, %v15633_v12, %v1109_v57  ;;  %v15635_v4 = vsel %vm11452_vm10, 4294967295, %v15634_v4  ;;  %v11458_v3 = vpack.c.bf16 %v1166_v41, %v1167_v60 }
 0x174   :  { %15636 = vst [vmem:[#allocation15_spill] sm:$0xff] %v15635_v4  ;;  %v7416_v25 = vpack.c.bf16 %v1172_v15, %v1173_v52  ;;  %v15637_v12 = vmov 0  ;;  %v11467_v26 = vpack.c.bf16 %v1170_v10, %v1171_v9  ;;  %v1164_v57 = vsel %vm15389_vm3, %v1117_v19, %v1118_v48  ;;  %v10656_v4 = vld [vmem:[#allocation3 + $0x108] sm:$0xff]   ;;  %vm11616_vm5 = vmpackc.low %vm10863_vm9, %vm11438_vm8 }
 0x175   :  { %v15638_v12 = vsel %vm11463_vm11, 4294967295, %v15637_v12  ;;  %v15641_v41 = vmov 0  ;;  %v11479_v37 = vpack.c.bf16 %v1164_v57, %v1165_v22  ;;  %v1163_v59 = vsel %vm15389_vm3, %v1118_v48, %v1119_v50 }
 0x176   :  { %15639 = vst [vmem:[#allocation16_spill] sm:$0xff] %v15638_v12  ;;  %15640 = vst [vmem:[#allocation17_spill] sm:$0xff] %v11467_v26  ;;  %v15642_v41 = vsel %vm11475_vm12, 4294967295, %v15641_v41  ;;  %v1121_v10 = vrot.slane %v11328_v6, 7  ;;  %v1122_v17 = vrot.slane %v11330_v62, 7  ;;  %8889 = vmatprep.mubr.msk.bf16.mxu1 %vm11452_vm10, %v7416_v25  ;;  %9034 = vmatmul.mubr.msk.bf16.vlgmr.msra.gmra.mrb[32].mxu0 %vm11452_vm10, %v7416_v25  ;;  %v1162_v19 = vsel %vm15389_vm3, %v1119_v50, %v1120_v31  ;;  %v10651_v25 = vld [vmem:[#allocation3 + $0x48] sm:$0xff]  }
 0x177   :  { %15643 = vst [vmem:[#allocation18_spill] sm:$0xff] %v15642_v41  ;;  %v1123_v46 = vrot.slane %v11333_v24, 7  ;;  %v1124_v22 = vrot.slane %v11363_v27, 7  ;;  %v15644_v60 = vrot.slane %v11337_v44, 7  ;;  %v15645_v48 = vrot.slane %v11335_v2, 7  ;;  %9094 = vmatpush3.bf16.msra.mxu0 %v10650_v23  ;;  %8890 = vmatmul.mubr.msk.bf16.vlgmr.msra.gmra.mrb[0].mxu1 %vm11463_vm11, %v11467_v26 }
 0x178   :  { %v1137_v52 = vrot.slane %v11367_v29, 7  ;;  %v11503_v50 = vpack.c.bf16 %v1162_v19, %v1163_v59  ;;  %v1160_v9 = vsel %vm15389_vm3, %v1121_v10, %v1122_v17  ;;  %v1161_v57 = vsel %vm15389_vm3, %v1120_v31, %v1121_v10  ;;  %8893 = vmatprep.mubr.msk.bf16.mxu1 %vm11475_vm12, %v11421_v5  ;;  %8922 = vmatpush3.bf16.msra.mxu1 %v11106_v14 }
 0x179   :  { %v1156_v15 = vsel %vm15389_vm3, %v15645_v48, %v15644_v60  ;;  %v1139_v36 = vrot.slane %v11377_v39, 7  ;;  %v15647_v23 = vmov 0.0   ;;  %v11515_v60 = vpack.c.bf16 %v1160_v9, %v1161_v57  ;;  %8923 = vmatprep.subr.bf16.mxu1 %v10656_v4 }
 0x17a   :  { %15646 = vst [vmem:[#allocation19_spill] sm:$0xff] %v11503_v50  ;;  %9037 = vmatprep.mubr.msk.bf16.mxu0 %vm15392_vm2, %v15647_v23  ;;  %v1158_v59 = vsel %vm15389_vm3, %v1123_v46, %v1124_v22  ;;  %v1159_v19 = vsel %vm15389_vm3, %v1122_v17, %v1123_v46  ;;  %9095 = vmatprep.subr.bf16.mxu0 %v15647_v23  ;;  %v15649_v31 = vand.u32 15, %v11237_v7  ;;  %v15653_v50 = vrot.slane %v11335_v2, 7 }
 0x17b   :  { %15648 = vst [vmem:[#allocation20_spill] sm:$0xff] %v11515_v60  ;;  %v11528_v48 = vpack.c.bf16 %v1158_v59, %v1159_v19  ;;  %v15654_v57 = vrot.slane %v11341_v8, 7  ;;  %v15655_v60 = vrot.slane %v11339_v42, 7  ;;  %v15657_v46 = vrot.slane %v11337_v44, 7  ;;  %9096 = vmatpush3.bf16.msra.mxu0 %v10651_v25 }
 0x17c   :  { %vm11524_vm13 = vcmp.ne.s32.totalorder %v15649_v31, 0  ;;  %v1157_v9 = vsel %vm15389_vm3, %v1124_v22, %v15653_v50  ;;  %v15658_v19 = vand.u32 15, %v11249_v30  ;;  %v15670_v25 = vmov 0  ;;  %9097 = vmatprep.subr.bf16.mxu0 %v15647_v23  ;;  %8924 = vmatpush3.bf16.msra.mxu1 %v10656_v4 }
 0x17d   :  { %15652 = vst [vmem:[#allocation21_spill] sm:$0xff] %v11528_v48  ;;  %v1154_v17 = vsel %vm15389_vm3, %v15655_v60, %v15654_v57  ;;  %v15656_v7 = vmov %v15655_v60  ;;  %v11553_v50 = vpack.c.bf16 %v1156_v15, %v1157_v9  ;;  %v15661_v60 = vrot.slane %v11345_v0, 7  ;;  %vm11729_vm6 = vmpackc.low %vm10863_vm9, %vm11524_vm13 }
 0x17e   :  { %v1155_v59 = vsel %vm15389_vm3, %v15657_v46, %v15656_v7  ;;  %vm11549_vm15 = vcmp.ne.s32.totalorder %v15658_v19, 0  ;;  %v15662_v57 = vrot.slane %v11343_v34, 7  ;;  %v15664_v46 = vrot.slane %v11341_v8, 7  ;;  %9038 = vmatmul.mubr.msk.bf16.gmra.mrb[36].mxu0 %vm11463_vm11, %v11467_v26 }
 0x17f   :  { %v11555_v31 = vpack.c.bf16 %v1154_v17, %v1155_v59  ;;  %v15666_v17 = vrot.slane %v11349_v45, 7  ;;  %v15667_v59 = vrot.slane %v11347_v43, 7  ;;  %v15671_v25 = vsel %vm11588_vm4, 4294967295, %v15670_v25  ;;  %8894 = vmatmul.mubr.msk.bf16.gmra.mrb[4].mxu1 %vm11588_vm4, %v11458_v3  ;;  %9041 = vmatprep.mubr.msk.bf16.mxu0 %vm15392_vm2, %v15647_v23  ;;  %vm11750_vm7 = vmpackc.low %vm10863_vm9, %vm11549_vm15 }
 0x180   :  { %v1152_v48 = vsel %vm15389_vm3, %v15662_v57, %v15661_v60  ;;  %v15663_v7 = vmov %v15662_v57  ;;  %v15669_v57 = vrot.slane %v11345_v0, 7  ;;  %15672 = vst [vmem:[#allocation23_spill] sm:$0xff] %v15671_v25  ;;  %v15677_v55 = vrot.slane %v11349_v45, 7  ;;  %8897 = vmatprep.mubr.msk.bf16.mxu1 %vm11616_vm5, %v11479_v37 }
 0x181   :  { %v1153_v30 = vsel %vm15389_vm3, %v15664_v46, %v15663_v7  ;;  %v1150_v19 = vsel %vm15389_vm3, %v15667_v59, %v15666_v17  ;;  %v15668_v60 = vmov %v15667_v59  ;;  %v15674_v46 = vrot.slane %v11353_v18, 7 }
 0x182   :  { %v11571_v9 = vpack.c.bf16 %v1152_v48, %v1153_v30  ;;  %v1151_v14 = vsel %vm15389_vm3, %v15669_v57, %v15668_v60  ;;  %v10652_v48 = vld [vmem:[#allocation3 + $0x50] sm:$0xff]   ;;  %v15675_v30 = vrot.slane %v11351_v11, 7  ;;  %v15678_v57 = vrot.slane %v11365_v28, 7  ;;  %v15725_v41 = vld [vmem:[#allocation20_spill] sm:$0xff] }
 0x183   :  { %v11593_v7 = vpack.c.bf16 %v1150_v19, %v1151_v14  ;;  %v15679_v15 = vrot.slane %v11355_v20, 7  ;;  %v15680_v14 = vmov 0  ;;  %9098 = vmatpush3.bf16.msra.mxu0 %v10652_v48  ;;  %v11684_v48 = vpack.c.bf16 %v11322_v56, %v11320_v47 }
 0x184   :  { %15665 = vst [vmem:[#allocation22_spill] sm:$0xff] %v11571_v9  ;;  %v1148_v17 = vsel %vm15389_vm3, %v15675_v30, %v15674_v46  ;;  %v15676_v59 = vmov %v15675_v30  ;;  %v15681_v14 = vsel %vm11616_vm5, 4294967295, %v15680_v14  ;;  %v10657_v46 = vld [vmem:[#allocation3 + $0x110] sm:$0xff]   ;;  %v15685_v9 = vrot.slane %v11258_v63, 7  ;;  %9099 = vmatprep.subr.bf16.mxu0 %v15647_v23 }
 0x185   :  { %15673 = vst [vmem:[#allocation24_spill] sm:$0xff] %v11593_v7  ;;  %v1149_v60 = vsel %vm15389_vm3, %v15677_v55, %v15676_v59  ;;  %v1146_v19 = vsel %vm15389_vm3, %v15679_v15, %v15678_v57  ;;  %15682 = vst [vmem:[#allocation25_spill] sm:$0xff] %v15681_v14  ;;  %v15683_v7 = vmov %v15679_v15  ;;  %v15684_v59 = vrot.slane %v11353_v18, 7  ;;  %8925 = vmatprep.subr.bf16.mxu1 %v10657_v46 }
 0x186   :  { %v11620_v30 = vpack.c.bf16 %v1148_v17, %v1149_v60  ;;  %v1144_v13 = vsel %vm15389_vm3, %v1137_v52, %v15685_v9  ;;  %v15686_v15 = vmov %v15678_v57  ;;  %v15688_v4 = vmov %v15685_v9  ;;  %15693 = vst [vmem:[#allocation30_spill] sm:$0xff] %v11684_v48  ;;  %8926 = vmatpush3.bf16.msra.mxu1 %v10657_v46 }
 0x187   :  { %v1147_v55 = vsel %vm15389_vm3, %v15684_v59, %v15683_v7  ;;  %v1145_v57 = vsel %vm15389_vm3, %v15686_v15, %v1137_v52  ;;  %v15687_v7 = vrot.slane %v11369_v35, 7  ;;  %v10658_v52 = vld [vmem:[#allocation3 + $0x118] sm:$0xff]   ;;  %v1223_v15 = vrot.slane %v11408_v40, 1  ;;  %9042 = vmatmul.mubr.msk.bf16.gmra.mrb[40].mxu0 %vm11475_vm12, %v11421_v5 }
 0x188   :  { %v11639_v17 = vpack.c.bf16 %v1146_v19, %v1147_v55  ;;  %v11641_v60 = vpack.c.bf16 %v1144_v13, %v1145_v57  ;;  %v1143_v19 = vsel %vm15389_vm3, %v15688_v4, %v1139_v36  ;;  %v11659_v55 = vpack.c.bf16 %v11408_v40, %v11406_v21  ;;  %v10653_v57 = vld [vmem:[#allocation3 + $0x58] sm:$0xff]   ;;  %8927 = vmatprep.subr.bf16.mxu1 %v10658_v52 }
 0x189   :  { %v1142_v59 = vsel %vm15389_vm3, %v1139_v36, %v15687_v7  ;;  %v11663_v13 = vpack.c.bf16 %v11310_v51, %v11308_v38  ;;  %v11673_v36 = vpack.c.bf16 %v11314_v33, %v11312_v32  ;;  %v11677_v4 = vpack.c.bf16 %v11318_v54, %v11316_v49  ;;  %9100 = vmatpush3.bf16.msra.mxu0 %v10653_v57 }
 0x18a   :  { %v11669_v7 = vpack.c.bf16 %v1142_v59, %v1143_v19  ;;  %v1224_v9 = vrot.slane %v11308_v38, 1  ;;  %v1226_v40 = vrot.slane %v11312_v32, 1  ;;  %v11688_v59 = vpack.c.bf16 %v11326_v1, %v11324_v53  ;;  %9101 = vmatprep.subr.bf16.mxu0 %v15647_v23  ;;  %8928 = vmatpush3.bf16.msra.mxu1 %v10658_v52 }
 0x18b   :  { %15689 = vst [vmem:[#allocation26_spill] sm:$0xff] %v11663_v13  ;;  %15691 = vst [vmem:[#allocation28_spill] sm:$0xff] %v11673_v36  ;;  %v11692_v19 = vpack.c.bf16 %v11330_v62, %v11328_v6  ;;  %v11696_v38 = vpack.c.bf16 %v11363_v27, %v11333_v24  ;;  %v11700_v32 = vpack.c.bf16 %v11337_v44, %v11335_v2  ;;  %v15709_v10 = vrot.slane %v11406_v21, 1 }
 0x18c   :  { %15690 = vst [vmem:[#allocation27_spill] sm:$0xff] %v11669_v7  ;;  %15692 = vst [vmem:[#allocation29_spill] sm:$0xff] %v11677_v4  ;;  %v11704_v12 = vpack.c.bf16 %v11341_v8, %v11339_v42  ;;  %v11708_v26 = vpack.c.bf16 %v11345_v0, %v11343_v34  ;;  %v11712_v46 = vpack.c.bf16 %v11349_v45, %v11347_v43  ;;  %v15710_v57 = vmov 0  ;;  %9045 = vmatprep.mubr.msk.bf16.mxu0 %vm15392_vm2, %v15647_v23 }
 0x18d   :  { %15694 = vst [vmem:[#allocation31_spill] sm:$0xff] %v11688_v59  ;;  %15695 = vst [vmem:[#allocation32_spill] sm:$0xff] %v11692_v19  ;;  %v15708_v19 = vrot.slane %v11310_v51, 1  ;;  %v1285_v59 = vsel %vm15396_vm14, %v15709_v10, %v1223_v15  ;;  %v15711_v57 = vsel %vm11750_vm7, 4294967295, %v15710_v57  ;;  %v210_v22 = vand.u32 15, %v11275_v16  ;;  %v15721_v16 = vld [vmem:[#allocation12_spill] sm:$0xff] }
 0x18e   :  { %15696 = vst [vmem:[#allocation33_spill] sm:$0xff] %v11696_v38  ;;  %15697 = vst [vmem:[#allocation34_spill] sm:$0xff] %v11700_v32  ;;  %v11716_v38 = vpack.c.bf16 %v11353_v18, %v11351_v11  ;;  %v11720_v32 = vpack.c.bf16 %v11365_v28, %v11355_v20  ;;  %v1228_v10 = vrot.slane %v11316_v49, 1  ;;  %v15722_v52 = vand.u32 15, %v15721_v16  ;;  %v10659_v16 = vld [vmem:[#allocation3 + $0x68] sm:$0xff]  }
 0x18f   :  { %15698 = vst [vmem:[#allocation35_spill] sm:$0xff] %v11704_v12  ;;  %15699 = vst [vmem:[#allocation36_spill] sm:$0xff] %v11708_v26  ;;  %v11724_v12 = vpack.c.bf16 %v11258_v63, %v11367_v29  ;;  %v15704_v26 = vmov 0  ;;  %v1229_v49 = vrot.slane %v11318_v54, 1  ;;  %v11794_v5 = vadd.s32 192, %v11215_v61  ;;  %9046 = vmatmul.mubr.msk.bf16.gmra.mrb[44].mxu0 %vm11588_vm4, %v11458_v3 }
 0x190   :  { %15700 = vst [vmem:[#allocation37_spill] sm:$0xff] %v11712_v46  ;;  %15701 = vst [vmem:[#allocation38_spill] sm:$0xff] %v11716_v38  ;;  %v15705_v26 = vsel %vm11729_vm6, 4294967295, %v15704_v26  ;;  %v10655_v46 = vld [vmem:[#allocation3 + $0x60] sm:$0xff]   ;;  %v11735_v38 = vpack.c.bf16 %v11369_v35, %v11377_v39  ;;  %vm11783_vm13 = vcmp.ne.s32.totalorder %v15722_v52, 0  ;;  %v1238_v36 = vrot.slane %v11335_v2, 1  ;;  %9049 = vmatprep.mubr.msk.bf16.mxu0 %vm15392_vm2, %v15647_v23 }
 0x191   :  { %15702 = vst [vmem:[#allocation39_spill] sm:$0xff] %v11720_v32  ;;  %15703 = vst [vmem:[#allocation40_spill] sm:$0xff] %v11724_v12  ;;  %v1283_v32 = vsel %vm15396_vm14, %v1224_v9, %v15708_v19  ;;  %v1284_v12 = vsel %vm15396_vm14, %v1223_v15, %v1224_v9  ;;  %v10660_v19 = vld [vmem:[#allocation3 + $0x120] sm:$0xff]   ;;  %v15714_v9 = vrot.slane %v11310_v51, 1  ;;  %v15717_v51 = vld [vmem:[#allocation11_spill] sm:$0xff]  ;;  %9102 = vmatpush3.bf16.msra.mxu0 %v10655_v46  ;;  %vm11814_vm3 = vcmp.ne.s32.totalorder %v210_v22, 0 }
 0x192   :  { %15706 = vst [vmem:[#allocation41_spill] sm:$0xff] %v15705_v26  ;;  %15707 = vst [vmem:[#allocation42_spill] sm:$0xff] %v11735_v38  ;;  %v196_v38 = vand.u32 15, %v11270_v58  ;;  %v11756_v48 = vpack.c.bf16 %v1284_v12, %v1285_v59  ;;  %v1227_v58 = vrot.slane %v11314_v33, 1  ;;  %v15716_v12 = vld [vmem:[#allocation19_spill] sm:$0xff]  ;;  %v15718_v59 = vand.u32 15, %v15717_v51  ;;  %9103 = vmatprep.subr.bf16.mxu0 %v15647_v23  ;;  %8929 = vmatprep.subr.bf16.mxu1 %v10660_v19 }
 0x193   :  { %15712 = vst [vmem:[#allocation43_spill] sm:$0xff] %v15711_v57  ;;  %v1282_v4 = vsel %vm15396_vm14, %v15714_v9, %v1226_v40  ;;  %8898 = vmatmul.mubr.msk.bf16.gmra.mrb[8].mxu1 %vm11729_vm6, %v15716_v12  ;;  %v10661_v33 = vld [vmem:[#allocation3 + $0x128] sm:$0xff]   ;;  %v15726_v51 = vld [vmem:[#allocation13_spill] sm:$0xff]  ;;  %v1232_v54 = vrot.slane %v11324_v53, 1  ;;  %v1234_v2 = vrot.slane %v11328_v6, 1  ;;  %v1242_v22 = vrot.slane %v11343_v34, 1  ;;  %vm11841_vm0 = vmpackc.low %vm10863_vm9, %vm11783_vm13 }
 0x194   :  { %15713 = vst [vmem:[#allocation44_spill] sm:$0xff] %v11756_v48  ;;  %v11766_v15 = vpack.c.bf16 %v1282_v4, %v1283_v32  ;;  %vm11777_vm8 = vcmp.ne.s32.totalorder %v15718_v59, 0  ;;  %v1230_v32 = vrot.slane %v11320_v47, 1  ;;  %8901 = vmatprep.mubr.msk.bf16.mxu1 %vm11750_vm7, %v15725_v41  ;;  %v1280_v52 = vsel %vm15396_vm14, %v1227_v58, %v1228_v10  ;;  %8930 = vmatpush3.bf16.msra.mxu1 %v10660_v19  ;;  %vm11919_vm13 = vmpackc.low %vm10863_vm9, %vm11814_vm3 }
 0x195   :  { %vm11801_vm15 = vcmp.ne.s32.totalorder %v196_v38, 0  ;;  %v1279_v48 = vsel %vm15396_vm14, %v1228_v10, %v1229_v49  ;;  %8931 = vmatprep.subr.bf16.mxu1 %v10661_v33  ;;  %v1233_v10 = vrot.slane %v11326_v1, 1  ;;  %vm11830_vm1 = vmpackc.low %vm10863_vm9, %vm11777_vm8  ;;  %9104 = vmatpush3.bf16.msra.mxu0 %v10659_v16  ;;  %v1235_v1 = vrot.slane %v11330_v62, 1  ;;  %v15737_v16 = vld [vmem:[#allocation21_spill] sm:$0xff] }
 0x196   :  { %15715 = vst [vmem:[#allocation45_spill] sm:$0xff] %v11766_v15  ;;  %v1281_v15 = vsel %vm15396_vm14, %v1226_v40, %v1227_v58  ;;  %v1278_v59 = vsel %vm15396_vm14, %v1229_v49, %v1230_v32  ;;  %v1239_v40 = vrot.slane %v11337_v44, 1  ;;  %v1241_v44 = vrot.slane %v11341_v8, 1  ;;  %9105 = vmatprep.subr.bf16.mxu0 %v15647_v23  ;;  %v10663_v8 = vld [vmem:[#allocation3 + $0x130] sm:$0xff]   ;;  %vm11906_vm8 = vmpackc.low %vm10863_vm9, %vm11801_vm15 }
 0x197   :  { %v11806_v46 = vpack.c.bf16 %v1280_v52, %v1281_v15  ;;  %v11818_v58 = vpack.c.bf16 %v1278_v59, %v1279_v48  ;;  %v1231_v15 = vrot.slane %v11322_v56, 1  ;;  %v1240_v52 = vrot.slane %v11339_v42, 1  ;;  %v10662_v56 = vld [vmem:[#allocation3 + $0x70] sm:$0xff]   ;;  %9050 = vmatmul.mubr.msk.bf16.gmra.mrb[48].mxu0 %vm11616_vm5, %v11479_v37 }
 0x198   :  { %v15731_v48 = vmov 0  ;;  %v1243_v6 = vrot.slane %v11345_v0, 1  ;;  %v15734_v42 = vmov 0  ;;  %v1274_v19 = vsel %vm15396_vm14, %v1233_v10, %v1234_v2  ;;  %8932 = vmatpush3.bf16.msra.mxu1 %v10661_v33  ;;  %9053 = vmatprep.mubr.msk.bf16.mxu0 %vm15392_vm2, %v15647_v23 }
 0x199   :  { %v15732_v48 = vsel %vm11830_vm1, 4294967295, %v15731_v48  ;;  %v1277_v53 = vsel %vm15396_vm14, %v1230_v32, %v1231_v15  ;;  %v15735_v42 = vsel %vm11841_vm0, 4294967295, %v15734_v42  ;;  %v1276_v34 = vsel %vm15396_vm14, %v1231_v15, %v1232_v54  ;;  %9106 = vmatpush3.bf16.msra.mxu0 %v10662_v56  ;;  %8933 = vmatprep.subr.bf16.mxu1 %v10663_v8 }
 0x19a   :  { %15733 = vst [vmem:[#allocation19_spill] sm:$0xff] %v15732_v48  ;;  %15736 = vst [vmem:[#allocation11_spill] sm:$0xff] %v15735_v42  ;;  %v1275_v62 = vsel %vm15396_vm14, %v1232_v54, %v1233_v10  ;;  %v1244_v0 = vrot.slane %v11347_v43, 1  ;;  %v11856_v9 = vpack.c.bf16 %v1276_v34, %v1277_v53  ;;  %v1236_v49 = vrot.slane %v11333_v24, 1  ;;  %v10664_v43 = vld [vmem:[#allocation3 + $0x138] sm:$0xff]   ;;  %9107 = vmatprep.subr.bf16.mxu0 %v15647_v23 }
 0x19b   :  { %v11858_v4 = vpack.c.bf16 %v1274_v19, %v1275_v62  ;;  %v1245_v32 = vrot.slane %v11349_v45, 1  ;;  %v1246_v59 = vrot.slane %v11351_v11, 1  ;;  %8902 = vmatmul.mubr.msk.bf16.gmra.mrb[12].mxu1 %vm11830_vm1, %v15737_v16  ;;  %v1273_v33 = vsel %vm15396_vm14, %v1234_v2, %v1235_v1  ;;  %v10665_v45 = vld [vmem:[#allocation3 + $0x78] sm:$0xff]  }
 0x19c   :  { %v1237_v54 = vrot.slane %v11363_v27, 1  ;;  %v1247_v15 = vrot.slane %v11353_v18, 1  ;;  %v1248_v24 = vrot.slane %v11355_v20, 1  ;;  %8905 = vmatprep.mubr.msk.bf16.mxu1 %vm11841_vm0, %v11553_v50  ;;  %v1272_v11 = vsel %vm15396_vm14, %v1235_v1, %v1236_v49  ;;  %8934 = vmatpush3.bf16.msra.mxu1 %v10663_v8 }
 0x19d   :  { %v1268_v10 = vsel %vm15396_vm14, %v1239_v40, %v1240_v52  ;;  %v1249_v2 = vrot.slane %v11365_v28, 1  ;;  %v11882_v18 = vpack.c.bf16 %v1272_v11, %v1273_v33  ;;  %v1250_v56 = vrot.slane %v11367_v29, 1  ;;  %8935 = vmatprep.subr.bf16.mxu1 %v10664_v43  ;;  %9108 = vmatpush3.bf16.msra.mxu0 %v10665_v45  ;;  %v15749_v45 = vld [vmem:[#allocation22_spill] sm:$0xff] }
 0x19e   :  { %v1270_v20 = vsel %vm15396_vm14, %v1237_v54, %v1238_v36  ;;  %v1271_v27 = vsel %vm15396_vm14, %v1236_v49, %v1237_v54  ;;  %v1269_v1 = vsel %vm15396_vm14, %v1238_v36, %v1239_v40  ;;  %v1266_v28 = vsel %vm15396_vm14, %v1241_v44, %v1242_v22  ;;  %9169 = vmatprep.subr.bf16.mxu0 %v15647_v23 }
 0x19f   :  { %v11889_v53 = vpack.c.bf16 %v1270_v20, %v1271_v27  ;;  %v1252_v34 = vrot.slane %v11377_v39, 1  ;;  %v11896_v19 = vpack.c.bf16 %v1268_v10, %v1269_v1  ;;  %v1267_v62 = vsel %vm15396_vm14, %v1240_v52, %v1241_v44  ;;  %v10668_v39 = vld [vmem:[#allocation3 + $0x140] sm:$0xff]   ;;  %9054 = vmatmul.mubr.msk.bf16.gmra.mrb[52].mxu0 %vm11729_vm6, %v15716_v12 }
 0x1a0   :  { %v1264_v29 = vsel %vm15396_vm14, %v1243_v6, %v1244_v0  ;;  %v1253_v8 = vrot.slane %v11369_v35, 1  ;;  %v15738_v36 = vmov 0  ;;  %v11910_v40 = vpack.c.bf16 %v1266_v28, %v1267_v62  ;;  %8936 = vmatpush3.bf16.msra.mxu1 %v10664_v43  ;;  %v15761_v62 = vld [vmem:[#allocation24_spill] sm:$0xff] }
 0x1a1   :  { %v15739_v36 = vsel %vm11906_vm8, 4294967295, %v15738_v36  ;;  %v1265_v49 = vsel %vm15396_vm14, %v1242_v22, %v1243_v6  ;;  %v1262_v52 = vsel %vm15396_vm14, %v1245_v32, %v1246_v59  ;;  %v15741_v35 = vmov 0  ;;  %8969 = vmatprep.subr.bf16.mxu1 %v10668_v39 }
 0x1a2   :  { %15740 = vst [vmem:[#allocation12_spill] sm:$0xff] %v15739_v36  ;;  %v15742_v35 = vsel %vm11919_vm13, 4294967295, %v15741_v35  ;;  %v11924_v47 = vpack.c.bf16 %v1264_v29, %v1265_v49  ;;  %v1263_v44 = vsel %vm15396_vm14, %v1244_v0, %v1245_v32  ;;  %v1260_v22 = vsel %vm15396_vm14, %v1247_v15, %v1248_v24  ;;  %v10717_v36 = vld [vmem:[#allocation3 + $0x218] sm:$0xff]  }
 0x1a3   :  { %15743 = vst [vmem:[#allocation20_spill] sm:$0xff] %v15742_v35  ;;  %v1261_v6 = vsel %vm15396_vm14, %v1246_v59, %v1247_v15  ;;  %v238_v38 = vand.u32 15, %v11794_v5  ;;  %v11936_v33 = vpack.c.bf16 %v1262_v52, %v1263_v44  ;;  %v1258_v0 = vsel %vm15396_vm14, %v1249_v2, %v1250_v56  ;;  %8906 = vmatmul.mubr.msk.bf16.gmra.mrb[16].mxu1 %vm11906_vm8, %v11555_v31 }
 0x1a4   :  { %15744 = vst [vmem:[#allocation13_spill] sm:$0xff] %v11924_v47  ;;  %v11938_v54 = vpack.c.bf16 %v1260_v22, %v1261_v6  ;;  %v1259_v32 = vsel %vm15396_vm14, %v1248_v24, %v1249_v2  ;;  %v15747_v5 = vrot.slane %v11258_v63, 1  ;;  %8909 = vmatprep.mubr.msk.bf16.mxu1 %vm11919_vm13, %v15749_v45  ;;  %v1255_v24 = vsel %vm15396_vm14, %v1252_v34, %v1253_v8  ;;  %v10669_v22 = vld [vmem:[#allocation3 + $0x148] sm:$0xff]   ;;  %v15772_v6 = vld [vmem:[#allocation28_spill] sm:$0xff] }
 0x1a5   :  { %15745 = vst [vmem:[#allocation21_spill] sm:$0xff] %v11936_v33  ;;  %v11960_v11 = vpack.c.bf16 %v1258_v0, %v1259_v32  ;;  %v15752_v2 = vand.u32 15, %v15726_v51  ;;  %v60_v63 = vadd.s32 208, %v11215_v61  ;;  %v15753_v20 = vrot.slane %v11406_v21, 1  ;;  %v10666_v0 = vld [vmem:[#allocation3 + $0x80] sm:$0xff]   ;;  %v10672_v32 = vld [vmem:[#allocation3 + $0x158] sm:$0xff]  }
 0x1a6   :  { %15746 = vst [vmem:[#allocation46_spill] sm:$0xff] %v11938_v54  ;;  %v1256_v59 = vsel %vm15396_vm14, %v15747_v5, %v1252_v34  ;;  %v15748_v43 = vmov %v15747_v5  ;;  %vm8365_vm15 = vcmp.ne.s32.totalorder %v238_v38, 0  ;;  %v15755_v28 = vmov 0  ;;  %v10671_v38 = vld [vmem:[#allocation3 + $0x150] sm:$0xff]   ;;  %v15773_v5 = vld [vmem:[#allocation29_spill] sm:$0xff] }
 0x1a7   :  { %v1257_v15 = vsel %vm15396_vm14, %v1250_v56, %v15748_v43  ;;  %15750 = vst [vmem:[#allocation22_spill] sm:$0xff] %v11960_v11  ;;  %vm8364_vm3 = vcmp.ne.s32.totalorder %v15752_v2, 0  ;;  %v1286_v27 = vsel %vm15396_vm14, %v1253_v8, %v15753_v20  ;;  %v62_v56 = vadd.s32 224, %v11215_v61  ;;  %vm11982_vm10 = vmpackc.low %vm10863_vm9, %vm8365_vm15  ;;  %v15774_v43 = vld [vmem:[#allocation30_spill] sm:$0xff]  ;;  %v15776_v2 = vld [vmem:[#allocation32_spill] sm:$0xff] }
 0x1a8   :  { %v11962_v10 = vpack.c.bf16 %v1256_v59, %v1257_v15  ;;  %v11974_v1 = vpack.c.bf16 %v1286_v27, %v1255_v24  ;;  %vm11977_vm2 = vmpackc.low %vm10863_vm9, %vm8364_vm3  ;;  %v15758_v51 = vmov 0  ;;  %v252_v34 = vand.u32 15, %v60_v63  ;;  %v10667_v59 = vld [vmem:[#allocation3 + $0x88] sm:$0xff]   ;;  %v10670_v15 = vld [vmem:[#allocation3 + $0x90] sm:$0xff]  }
 0x1a9   :  { %v15756_v28 = vsel %vm11977_vm2, 4294967295, %v15755_v28  ;;  %v15759_v51 = vsel %vm11982_vm10, 4294967295, %v15758_v51  ;;  %v266_v21 = vand.u32 15, %v62_v56  ;;  %vm15762_vm3 = vmmov 0   ;;  %v15775_v24 = vld [vmem:[#allocation31_spill] sm:$0xff]  ;;  %v10675_v63 = vld [vmem:[#allocation3 + $0x98] sm:$0xff]  }
 0x1aa   :  { %15751 = vst [vmem:[#allocation47_spill] sm:$0xff] %v11962_v10  ;;  %15754 = vst [vmem:[#allocation48_spill] sm:$0xff] %v11974_v1  ;;  %9057 = vmatprep.mubr.msk.bf16.mxu0 %vm15762_vm3, %v15647_v23  ;;  %vm8366_vm15 = vcmp.ne.s32.totalorder %v252_v34, 0  ;;  %v64_v29 = vadd.s32 240, %v11215_v61  ;;  %v15763_v8 = vmov 0  ;;  %v15766_v49 = vmov 0 }
 0x1ab   :  { %15757 = vst [vmem:[#allocation49_spill] sm:$0xff] %v15756_v28  ;;  %15760 = vst [vmem:[#allocation50_spill] sm:$0xff] %v15759_v51  ;;  %8910 = vmatmul.mubr.msk.bf16.gmra.mrb[20].mxu1 %vm11977_vm2, %v15761_v62  ;;  %vm8367_vm14 = vcmp.ne.s32.totalorder %v266_v21, 0  ;;  %9058 = vmatmul.mubr.msk.bf16.gmra.mrb[56].mxu0 %vm11750_vm7, %v15725_v41  ;;  %v15769_v44 = vmov 0  ;;  %v10676_v20 = vld [vmem:[#allocation3 + $0x170] sm:$0xff]   ;;  %v10678_v27 = vld [vmem:[#allocation3 + $0xa0] sm:$0xff]  }
 0x1ac   :  { %8913 = vmatprep.mubr.msk.bf16.mxu1 %vm11982_vm10, %v11620_v30  ;;  %vm11999_vm5 = vmpackc.low %vm10863_vm9, %vm8366_vm15  ;;  %v280_v52 = vand.u32 15, %v64_v29  ;;  %9061 = vmatprep.mubr.msk.bf16.mxu0 %vm15762_vm3, %v15647_v23  ;;  %v10677_v56 = vld [vmem:[#allocation3 + $0x178] sm:$0xff]   ;;  %v15777_v34 = vld [vmem:[#allocation33_spill] sm:$0xff] }
 0x1ad   :  { %v15764_v8 = vsel %vm11999_vm5, 4294967295, %v15763_v8  ;;  %vm12004_vm6 = vmpackc.low %vm10863_vm9, %vm8367_vm14  ;;  %v15778_v21 = vld [vmem:[#allocation34_spill] sm:$0xff]  ;;  %v10713_v28 = vld [vmem:[%s15348_s0 + $0xf8] sm:$0xff]  }
 0x1ae   :  { %15765 = vst [vmem:[#allocation24_spill] sm:$0xff] %v15764_v8  ;;  %v15767_v49 = vsel %vm12004_vm6, 4294967295, %v15766_v49  ;;  %vm8368_vm14 = vcmp.ne.s32.totalorder %v280_v52, 0  ;;  %v10679_v29 = vld [vmem:[#allocation3 + $0xa8] sm:$0xff]   ;;  %v10680_v52 = vld [vmem:[#allocation3 + $0xb0] sm:$0xff]  }
 0x1af   :  { %15768 = vst [vmem:[#allocation51_spill] sm:$0xff] %v15767_v49  ;;  %vm12020_vm15 = vmpackc.low %vm10863_vm9, %vm8368_vm14  ;;  %vm15781_vm14 = vcmask 1041408  }
 0x1b0   :  { %v15770_v44 = vsel %vm12020_vm15, 4294967295, %v15769_v44 }
 0x1b1   :  { %15771 = vst [vmem:[#allocation52_spill] sm:$0xff] %v15770_v44  ;;  %v15813_v44 = vmov 0 }
 0x1b3   :  { %8914 = vmatmul.mubr.msk.bf16.gmra.mrb[24].mxu1 %vm11999_vm5, %v11639_v17  ;;  %9062 = vmatmul.mubr.msk.bf16.gmra.mrb[60].mxu0 %vm11830_vm1, %v15737_v16 }
 0x1b4   :  { %8917 = vmatprep.mubr.msk.bf16.mxu1 %vm12004_vm6, %v11641_v60  ;;  %9065 = vmatprep.mubr.msk.bf16.mxu0 %vm15762_vm3, %v15647_v23 }
 0x1bb   :  { %8918 = vmatmul.mubr.msk.bf16.gmra.mrb[28].mxu1 %vm12020_vm15, %v11669_v7  ;;  %9066 = vmatmul.mubr.msk.bf16.gmra.mrb[64].mxu0 %vm11841_vm0, %v11553_v50  ;;  %v15819_v7 = vmov 0 }
 0x1bc   :  { %8937 = vmatprep.mubr.bf16.mxu1 %v11659_v55  ;;  %9109 = vmatprep.mubr.msk.bf16.mxu0 %vm15762_vm3, %v15647_v23 }
 0x1c3   :  { %8938 = vmatmul.mubr.bf16.vlgmr.msra.gmra.mrb[0].mxu1 %v11663_v13  ;;  %9110 = vmatmul.mubr.bf16.vlgmr.msra.gmra.mrb[32].mxu0 %v11659_v55  ;;  %v10674_v55 = vld [vmem:[#allocation3 + $0x168] sm:$0xff]  }
 0x1c4   :  { %8941 = vmatprep.mubr.bf16.mxu1 %v15772_v6  ;;  %8970 = vmatpush3.bf16.msra.mxu1 %v10668_v39  ;;  %v10673_v39 = vld [vmem:[#allocation3 + $0x160] sm:$0xff]  }
 0x1c5   :  { %8971 = vmatprep.subr.bf16.mxu1 %v10669_v22  ;;  %9170 = vmatpush3.bf16.msra.mxu0 %v10666_v0  ;;  %v10681_v0 = vld [vmem:[#allocation3 + $0xb8] sm:$0xff]  }
 0x1c6   :  { %9113 = vmatprep.mubr.msk.bf16.mxu0 %vm15762_vm3, %v15647_v23  ;;  %9171 = vmatprep.subr.bf16.mxu0 %v15647_v23 }
 0x1c8   :  { %8972 = vmatpush3.bf16.msra.mxu1 %v10669_v22  ;;  %v15779_v22 = vld [vmem:[#allocation35_spill] sm:$0xff] }
 0x1c9   :  { %8973 = vmatprep.subr.bf16.mxu1 %v10671_v38  ;;  %9172 = vmatpush3.bf16.msra.mxu0 %v10667_v59  ;;  %v15782_v59 = vld [vmem:[#allocation37_spill] sm:$0xff] }
 0x1ca   :  { %9173 = vmatprep.subr.bf16.mxu0 %v15647_v23 }
 0x1cb   :  { %8942 = vmatmul.mubr.bf16.gmra.mrb[4].mxu1 %v15773_v5  ;;  %9114 = vmatmul.mubr.bf16.gmra.mrb[36].mxu0 %v11663_v13  ;;  %v15807_v13 = vmov 0 }
 0x1cc   :  { %8945 = vmatprep.mubr.bf16.mxu1 %v15774_v43  ;;  %8974 = vmatpush3.bf16.msra.mxu1 %v10671_v38  ;;  %v15780_v38 = vld [vmem:[#allocation36_spill] sm:$0xff] }
 0x1cd   :  { %8975 = vmatprep.subr.bf16.mxu1 %v10672_v32  ;;  %9117 = vmatprep.mubr.msk.bf16.mxu0 %vm15762_vm3, %v15647_v23 }
 0x1ce   :  { %9174 = vmatpush3.bf16.msra.mxu0 %v10670_v15  ;;  %v35_v15 = vadd.s32 8, %v11215_v61 }
 0x1cf   :  { %9175 = vmatprep.subr.bf16.mxu0 %v15647_v23 }
 0x1d0   :  { %8976 = vmatpush3.bf16.msra.mxu1 %v10672_v32  ;;  %v12071_v32 = vld [vmem:[%s15349_s1] sm:$0x3] }
 0x1d1   :  { %8977 = vmatprep.subr.bf16.mxu1 %v10673_v39 }
 0x1d2   :  { %9176 = vmatpush3.bf16.msra.mxu0 %v10675_v63  ;;  %v15784_v63 = vld [vmem:[#allocation39_spill] sm:$0xff] }
 0x1d3   :  { %8946 = vmatmul.mubr.bf16.gmra.mrb[8].mxu1 %v15775_v24  ;;  %9177 = vmatprep.subr.bf16.mxu0 %v15647_v23 }
 0x1d4   :  { %8949 = vmatprep.mubr.bf16.mxu1 %v15776_v2  ;;  %8978 = vmatpush3.bf16.msra.mxu1 %v10673_v39  ;;  %v15783_v39 = vld [vmem:[#allocation38_spill] sm:$0xff] }
 0x1d5   :  { %8979 = vmatprep.subr.bf16.mxu1 %v10674_v55  ;;  %9118 = vmatmul.mubr.bf16.gmra.mrb[40].mxu0 %v15772_v6  ;;  %v15801_v6 = vmov 0 }
 0x1d6   :  { %9121 = vmatprep.mubr.msk.bf16.mxu0 %vm15762_vm3, %v15647_v23  ;;  %9178 = vmatpush3.bf16.msra.mxu0 %v10678_v27  ;;  %v37_v27 = vadd.s32 24, %v11215_v61 }
 0x1d7   :  { %9179 = vmatprep.subr.bf16.mxu0 %v15647_v23 }
 0x1d8   :  { %8980 = vmatpush3.bf16.msra.mxu1 %v10674_v55  ;;  %v77_v55 = vand.u32 15, %v35_v15  ;;  %v15789_v15 = vld [vmem:[#allocation42_spill] sm:$0xff] }
 0x1d9   :  { %8981 = vmatprep.subr.bf16.mxu1 %v10676_v20 }
 0x1da   :  { %9180 = vmatpush3.bf16.msra.mxu0 %v10679_v29  ;;  %v15786_v29 = vmov 0 }
 0x1db   :  { %8950 = vmatmul.mubr.bf16.gmra.mrb[12].mxu1 %v15777_v34  ;;  %9181 = vmatprep.subr.bf16.mxu0 %v15647_v23 }
 0x1dc   :  { %8953 = vmatprep.mubr.bf16.mxu1 %v15778_v21  ;;  %8982 = vmatpush3.bf16.msra.mxu1 %v10676_v20  ;;  %v15785_v20 = vld [vmem:[#allocation40_spill] sm:$0xff] }
 0x1dd   :  { %8983 = vmatprep.subr.bf16.mxu1 %v10677_v56  ;;  %9122 = vmatmul.mubr.bf16.gmra.mrb[44].mxu0 %v15773_v5  ;;  %v45_v5 = vadd.s32 88, %v11215_v61 }
 0x1de   :  { %9125 = vmatprep.mubr.msk.bf16.mxu0 %vm15762_vm3, %v15647_v23  ;;  %9182 = vmatpush3.bf16.msra.mxu0 %v10680_v52  ;;  %v91_v52 = vand.u32 15, %v37_v27  ;;  %v15791_v27 = vmov 0 }
 0x1df   :  { %9183 = vmatprep.subr.bf16.mxu0 %v15647_v23 }
 0x1e0   :  { %8984 = vmatpush3.bf16.msra.mxu1 %v10677_v56  ;;  %v39_v56 = vadd.s32 40, %v11215_v61  ;;  %vm8370_vm0 = vcmp.ne.s32.totalorder %v91_v52, 15  ;;  %v15797_v52 = vld [vmem:[#allocation45_spill] sm:$0xff] }
 0x1e1   :  { %10107 = vmatprep.subr.bf16.mxu1 %v15647_v23  ;;  %vm12103_vm1 = vmpackc.low %vm8370_vm0, %vm10863_vm9 }
 0x1e2   :  { %9184 = vmatpush3.bf16.msra.mxu0 %v10681_v0  ;;  %v105_v0 = vand.u32 15, %v39_v56  ;;  %v15792_v27 = vsel %vm12103_vm1, 4294967295, %v15791_v27  ;;  %v15794_v56 = vmov 0 }
 0x1e3   :  { %8954 = vmatmul.mubr.bf16.gmra.mrb[16].mxu1 %v15779_v22  ;;  %10608 = vmatprep.subr.msk.bf16.mxu0 %vm15781_vm14, %v12071_v32  ;;  %vm8369_vm14 = vcmp.ne.s32.totalorder %v77_v55, 15  ;;  %v41_v55 = vadd.s32 56, %v11215_v61  ;;  %15793 = vst [vmem:[#allocation39_spill] sm:$0xff] %v15792_v27 }
 0x1e4   :  { %8957 = vmatprep.mubr.bf16.mxu1 %v15780_v38  ;;  %vm12089_vm15 = vmpackc.low %vm8369_vm14, %vm10863_vm9  ;;  %vm8371_vm14 = vcmp.ne.s32.totalorder %v105_v0, 15  ;;  %v10802_v0 = vld [vmem:[#allocation3] sm:$0xff]  }
 0x1e5   :  { %9126 = vmatmul.mubr.bf16.gmra.mrb[48].mxu0 %v15774_v43  ;;  %v15787_v29 = vsel %vm12089_vm15, 4294967295, %v15786_v29  ;;  %v43_v43 = vadd.s32 72, %v11215_v61  ;;  %vm12108_vm7 = vmpackc.low %vm8371_vm14, %vm10863_vm9 }
 0x1e6   :  { %9129 = vmatprep.mubr.msk.bf16.mxu0 %vm15762_vm3, %v15647_v23  ;;  %15788 = vst [vmem:[#allocation38_spill] sm:$0xff] %v15787_v29  ;;  %v15795_v56 = vsel %vm12108_vm7, 4294967295, %v15794_v56  ;;  %v15847_v29 = vld [vmem:[#allocation14_spill] sm:$0xff] }
 0x1e7   :  { %15796 = vst [vmem:[#allocation40_spill] sm:$0xff] %v15795_v56 }
 0x1eb   :  { %8958 = vmatmul.mubr.bf16.gmra.mrb[20].mxu1 %v15782_v59 }
 0x1ec   :  { %8961 = vmatprep.mubr.bf16.mxu1 %v15783_v39 }
 0x1ed   :  { %9130 = vmatmul.mubr.bf16.gmra.mrb[52].mxu0 %v15775_v24  ;;  %v15790_v24 = vld [vmem:[#allocation44_spill] sm:$0xff] }
 0x1ee   :  { %9133 = vmatprep.mubr.msk.bf16.mxu0 %vm15762_vm3, %v15647_v23 }
 0x1f3   :  { %8962 = vmatmul.mubr.bf16.gmra.mrb[24].mxu1 %v15784_v63 }
 0x1f4   :  { %8965 = vmatprep.mubr.bf16.mxu1 %v15785_v20 }
 0x1f5   :  { %9134 = vmatmul.mubr.bf16.gmra.mrb[56].mxu0 %v15776_v2  ;;  %v133_v2 = vand.u32 15, %v43_v43  ;;  %v47_v43 = vadd.s32 104, %v11215_v61 }
 0x1f6   :  { %9137 = vmatprep.mubr.msk.bf16.mxu0 %vm15762_vm3, %v15647_v23 }
 0x1f7   :  { %vm8373_vm14 = vcmp.ne.s32.totalorder %v133_v2, 15  ;;  %v161_v2 = vand.u32 15, %v47_v43  ;;  %v15804_v43 = vmov 0 }
 0x1f8   :  { %vm12130_vm12 = vmpackc.low %vm8373_vm14, %vm10863_vm9 }
 0x1f9   :  { %v15802_v6 = vsel %vm12130_vm12, 4294967295, %v15801_v6  ;;  %vm8375_vm14 = vcmp.ne.s32.totalorder %v161_v2, 15 }
 0x1fa   :  { %15803 = vst [vmem:[#allocation45_spill] sm:$0xff] %v15802_v6  ;;  %vm12153_vm6 = vmpackc.low %vm8375_vm14, %vm10863_vm9 }
 0x1fb   :  { %8966 = vmatmul.mubr.bf16.gmra.mrb[28].mxu1 %v15789_v15  ;;  %v119_v15 = vand.u32 15, %v41_v55  ;;  %v15798_v55 = vmov 0  ;;  %v15808_v13 = vsel %vm12153_vm6, 4294967295, %v15807_v13 }
 0x1fc   :  { %8985 = vmatprep.mubr.msk.bf16.mxu1 %vm12089_vm15, %v15790_v24  ;;  %15809 = vst [vmem:[#allocation54_spill] sm:$0xff] %v15808_v13 }
 0x1fd   :  { %9138 = vmatmul.mubr.bf16.gmra.mrb[60].mxu0 %v15777_v34  ;;  %vm8372_vm0 = vcmp.ne.s32.totalorder %v119_v15, 15  ;;  %v10803_v34 = vld [vmem:[#allocation3 + $0x8] sm:$0xff]   ;;  %v147_v15 = vand.u32 15, %v45_v5  ;;  %v49_v5 = vadd.s32 120, %v11215_v61 }
 0x1fe   :  { %9141 = vmatprep.mubr.msk.bf16.mxu0 %vm15762_vm3, %v15647_v23  ;;  %vm12125_vm4 = vmpackc.low %vm8372_vm0, %vm10863_vm9 }
 0x1ff   :  { %v15799_v55 = vsel %vm12125_vm4, 4294967295, %v15798_v55  ;;  %vm8374_vm0 = vcmp.ne.s32.totalorder %v147_v15, 15  ;;  %v175_v15 = vand.u32 15, %v49_v5  ;;  %v55_v5 = vadd.s32 168, %v11215_v61 }
 0x200   :  { %15800 = vst [vmem:[#allocation44_spill] sm:$0xff] %v15799_v55  ;;  %vm12148_vm11 = vmpackc.low %vm8374_vm0, %vm10863_vm9  ;;  %v15929_v55 = vld [vmem:[#allocation21_spill] sm:$0xff] }
 0x201   :  { %v15805_v43 = vsel %vm12148_vm11, 4294967295, %v15804_v43  ;;  %vm8376_vm0 = vcmp.ne.s32.totalorder %v175_v15, 15 }
 0x202   :  { %15806 = vst [vmem:[#allocation53_spill] sm:$0xff] %v15805_v43  ;;  %vm12171_vm5 = vmpackc.low %vm8376_vm0, %vm10863_vm9 }
 0x203   :  { %8986 = vmatmul.mubr.msk.bf16.vlgmr.msra.gmra.mrb[0].mxu1 %vm12103_vm1, %v15797_v52 }
 0x204   :  { %8989 = vmatprep.mubr.msk.bf16.mxu1 %vm12108_vm7, %v11806_v46  ;;  %10115 = vmatpush3.bf16.msra.mxu1 %v10802_v0  ;;  %v51_v0 = vadd.s32 136, %v11215_v61 }
 0x205   :  { %10108 = vmatprep.subr.bf16.mxu1 %v15647_v23  ;;  %9142 = vmatmul.mubr.bf16.gmra.mrb[64].mxu0 %v15778_v21  ;;  %v10805_v21 = vld [vmem:[#allocation3 + $0x18] sm:$0xff]  }
 0x206   :  { %9145 = vmatprep.mubr.msk.bf16.mxu0 %vm15762_vm3, %v15647_v23  ;;  %v189_v2 = vand.u32 15, %v51_v0  ;;  %v15810_v0 = vmov 0 }
 0x207   :  { %v15811_v0 = vsel %vm12171_vm5, 4294967295, %v15810_v0 }
 0x208   :  { %10116 = vmatpush3.bf16.msra.mxu1 %v10803_v34  ;;  %v10804_v34 = vld [vmem:[#allocation3 + $0x10] sm:$0xff]   ;;  %vm8377_vm14 = vcmp.ne.s32.totalorder %v189_v2, 15  ;;  %15812 = vst [vmem:[#allocation55_spill] sm:$0xff] %v15811_v0  ;;  %v217_v2 = vand.u32 15, %v55_v5  ;;  %v15816_v5 = vmov 0 }
 0x209   :  { %10109 = vmatprep.subr.bf16.mxu1 %v15647_v23 }
 0x20b   :  { %8990 = vmatmul.mubr.msk.bf16.gmra.mrb[4].mxu1 %vm12125_vm4, %v11818_v58 }
 0x20c   :  { %8993 = vmatprep.mubr.msk.bf16.mxu1 %vm12130_vm12, %v11856_v9  ;;  %10117 = vmatpush3.bf16.msra.mxu1 %v10804_v34  ;;  %v53_v34 = vadd.s32 152, %v11215_v61 }
 0x20d   :  { %10110 = vmatprep.subr.bf16.mxu1 %v15647_v23  ;;  %9146 = vmatmul.mubr.bf16.gmra.mrb[68].mxu0 %v15779_v22  ;;  %v10807_v22 = vld [vmem:[#allocation3 + $0x28] sm:$0xff]  }
 0x20e   :  { %9149 = vmatprep.mubr.msk.bf16.mxu0 %vm15762_vm3, %v15647_v23  ;;  %v203_v15 = vand.u32 15, %v53_v34  ;;  %v59_v34 = vadd.s32 200, %v11215_v61 }
 0x210   :  { %10118 = vmatpush3.bf16.msra.mxu1 %v10805_v21  ;;  %v10806_v21 = vld [vmem:[#allocation3 + $0x20] sm:$0xff]   ;;  %vm8378_vm0 = vcmp.ne.s32.totalorder %v203_v15, 15 }
 0x211   :  { %10111 = vmatprep.subr.bf16.mxu1 %v15647_v23 }
 0x213   :  { %8994 = vmatmul.mubr.msk.bf16.gmra.mrb[8].mxu1 %vm12148_vm11, %v11858_v4  ;;  %vm12176_vm11 = vmpackc.low %vm8377_vm14, %vm10863_vm9  ;;  %vm8379_vm14 = vcmp.ne.s32.totalorder %v217_v2, 15  ;;  %v245_v2 = vand.u32 15, %v59_v34  ;;  %v15825_v34 = vmov 0 }
 0x214   :  { %8997 = vmatprep.mubr.msk.bf16.mxu1 %vm12153_vm6, %v11882_v18  ;;  %10119 = vmatpush3.bf16.msra.mxu1 %v10806_v21  ;;  %v15814_v44 = vsel %vm12176_vm11, 4294967295, %v15813_v44  ;;  %v57_v21 = vadd.s32 184, %v11215_v61  ;;  %vm12194_vm6 = vmpackc.low %vm8378_vm0, %vm10863_vm9 }
 0x215   :  { %10112 = vmatprep.subr.bf16.mxu1 %v15647_v23  ;;  %15815 = vst [vmem:[#allocation56_spill] sm:$0xff] %v15814_v44  ;;  %9150 = vmatmul.mubr.bf16.gmra.mrb[72].mxu0 %v15780_v38  ;;  %v15817_v5 = vsel %vm12194_vm6, 4294967295, %v15816_v5  ;;  %v10809_v38 = vld [vmem:[#allocation3 + $0x38] sm:$0xff]  }
 0x216   :  { %9153 = vmatprep.mubr.msk.bf16.mxu0 %vm15762_vm3, %v15647_v23  ;;  %15818 = vst [vmem:[#allocation57_spill] sm:$0xff] %v15817_v5  ;;  %v231_v15 = vand.u32 15, %v57_v21  ;;  %v15822_v21 = vmov 0 }
 0x218   :  { %10120 = vmatpush3.bf16.msra.mxu1 %v10807_v22  ;;  %v10808_v22 = vld [vmem:[#allocation3 + $0x30] sm:$0xff]   ;;  %vm8380_vm0 = vcmp.ne.s32.totalorder %v231_v15, 15  ;;  %v65_v15 = vadd.s32 248, %v11215_v61 }
 0x219   :  { %10113 = vmatprep.subr.bf16.mxu1 %v15647_v23 }
 0x21b   :  { %8998 = vmatmul.mubr.msk.bf16.gmra.mrb[12].mxu1 %vm12171_vm5, %v11889_v53  ;;  %vm12199_vm5 = vmpackc.low %vm8379_vm14, %vm10863_vm9  ;;  %vm8381_vm14 = vcmp.ne.s32.totalorder %v245_v2, 15  ;;  %v15828_v2 = vmov 0 }
 0x21c   :  { %9001 = vmatprep.mubr.msk.bf16.mxu1 %vm12176_vm11, %v11896_v19  ;;  %10121 = vmatpush3.bf16.msra.mxu1 %v10808_v22  ;;  %v15820_v7 = vsel %vm12199_vm5, 4294967295, %v15819_v7  ;;  %v63_v22 = vadd.s32 232, %v11215_v61  ;;  %vm12216_vm11 = vmpackc.low %vm8380_vm0, %vm10863_vm9 }
 0x21d   :  { %10114 = vmatprep.subr.bf16.mxu1 %v15647_v23  ;;  %15821 = vst [vmem:[#allocation58_spill] sm:$0xff] %v15820_v7  ;;  %9154 = vmatmul.mubr.bf16.gmra.mrb[76].mxu0 %v15782_v59  ;;  %v15823_v21 = vsel %vm12216_vm11, 4294967295, %v15822_v21 }
 0x21e   :  { %9157 = vmatprep.mubr.msk.bf16.mxu0 %vm15762_vm3, %v15647_v23  ;;  %15824 = vst [vmem:[#allocation59_spill] sm:$0xff] %v15823_v21  ;;  %v273_v42 = vand.u32 15, %v63_v22  ;;  %v287_v22 = vand.u32 15, %v65_v15  ;;  %v10682_v15 = vld [vmem:[#allocation3 + $0x180] sm:$0xff]  }
 0x220   :  { %10122 = vmatpush3.bf16.msra.mxu1 %v10809_v38  ;;  %v61_v38 = vadd.s32 216, %v11215_v61  ;;  %v15881_v61 = vld [vmem:[#allocation31_spill] sm:$0xff] }
 0x221   :  { %9245 = vmatprep.subr.bf16.mxu1 %v15647_v23 }
 0x222   :  { %v259_v59 = vand.u32 15, %v61_v38  ;;  %v15831_v38 = vmov 0 }
 0x223   :  { %9002 = vmatmul.mubr.msk.bf16.gmra.mrb[16].mxu1 %vm12194_vm6, %v11910_v40  ;;  %vm12221_vm6 = vmpackc.low %vm8381_vm14, %vm10863_vm9  ;;  %vm8383_vm14 = vcmp.ne.s32.totalorder %v273_v42, 15  ;;  %v15834_v42 = vmov 0 }
 0x224   :  { %9005 = vmatprep.mubr.msk.bf16.mxu1 %vm12199_vm5, %v11924_v47  ;;  %v15826_v34 = vsel %vm12221_vm6, 4294967295, %v15825_v34  ;;  %vm8382_vm0 = vcmp.ne.s32.totalorder %v259_v59, 15  ;;  %vm12241_vm12 = vmpackc.low %vm8383_vm14, %vm10863_vm9 }
 0x225   :  { %15827 = vst [vmem:[#allocation60_spill] sm:$0xff] %v15826_v34  ;;  %9158 = vmatmul.mubr.bf16.gmra.mrb[80].mxu0 %v15783_v39  ;;  %vm12236_vm5 = vmpackc.low %vm8382_vm0, %vm10863_vm9  ;;  %v15832_v38 = vsel %vm12241_vm12, 4294967295, %v15831_v38  ;;  %vm8384_vm0 = vcmp.ne.s32.totalorder %v287_v22, 15  ;;  %v10683_v22 = vld [vmem:[#allocation3 + $0x188] sm:$0xff]  }
 0x226   :  { %9161 = vmatprep.mubr.msk.bf16.mxu0 %vm15762_vm3, %v15647_v23  ;;  %v15829_v2 = vsel %vm12236_vm5, 4294967295, %v15828_v2  ;;  %15833 = vst [vmem:[#allocation62_spill] sm:$0xff] %v15832_v38  ;;  %vm12255_vm14 = vmpackc.low %vm8384_vm0, %vm10863_vm9  ;;  %vm15838_vm9 = vnez %v15802_v6  ;;  %vm15840_vm0 = vnez %v15805_v43 }
 0x227   :  { %15830 = vst [vmem:[#allocation61_spill] sm:$0xff] %v15829_v2  ;;  %v15835_v42 = vsel %vm12255_vm14, 4294967295, %v15834_v42 }
 0x228   :  { %15836 = vst [vmem:[#allocation63_spill] sm:$0xff] %v15835_v42 }
 0x22b   :  { %9006 = vmatmul.mubr.msk.bf16.gmra.mrb[20].mxu1 %vm12216_vm11, %v11936_v33 }
 0x22c   :  { %9009 = vmatprep.mubr.msk.bf16.mxu1 %vm12221_vm6, %v11938_v54 }
 0x22d   :  { %9162 = vmatmul.mubr.bf16.gmra.mrb[84].mxu0 %v15784_v63 }
 0x22e   :  { %9165 = vmatprep.mubr.msk.bf16.mxu0 %vm15762_vm3, %v15647_v23 }
 0x233   :  { %9010 = vmatmul.mubr.msk.bf16.gmra.mrb[24].mxu1 %vm12236_vm5, %v11960_v11 }
 0x234   :  { %9013 = vmatprep.mubr.msk.bf16.mxu1 %vm12241_vm12, %v11962_v10  ;;  %vm15837_vm12 = vcmask 1041408  }
 0x235   :  { %9166 = vmatmul.mubr.bf16.gmra.mrb[88].mxu0 %v15785_v20  ;;  %v4103_v59 = vsel %vm15837_vm12, %v12071_v32, 0  ;;  %v10684_v32 = vld [vmem:[#allocation3 + $0x190] sm:$0xff]   ;;  %vm15839_vm12 = vnez %v15764_v8  ;;  %v10715_v8 = vld [vmem:[#allocation3 + $0x208] sm:$0xff]  }
 0x236   :  { %9185 = vmatprep.mubr.msk.bf16.mxu0 %vm15762_vm3, %v15647_v23 }
 0x23b   :  { %9014 = vmatmul.mubr.msk.bf16.gmra.mrb[28].mxu1 %vm12255_vm14, %v11974_v1  ;;  %vm15842_vm14 = vnez %v15808_v13 }
 0x23c   :  { %9069 = vmatprep.mubr.msk.bf16.mxu1 %vm15762_vm3, %v15647_v23 }
 0x23d   :  { %9186 = vmatmul.mubr.msk.bf16.vlgmr.msra.gmra.mrb[32].mxu0 %vm12089_vm15, %v15790_v24  ;;  %v10685_v24 = vld [vmem:[#allocation3 + $0x198] sm:$0xff]   ;;  %vm15841_vm15 = vnez %v15767_v49 }
 0x23e   :  { %9474 = vmatpush3.bf16.msra.mxu0 %v4103_v59  ;;  %9189 = vmatprep.mubr.msk.bf16.mxu0 %vm15762_vm3, %v15647_v23  ;;  %v10686_v59 = vld [vmem:[#allocation3 + $0x1a0] sm:$0xff]  }
 0x243   :  { %9070 = vmatmul.mubr.msk.bf16.vlgmr.msra.gmra.mrb[32].mxu1 %vm11906_vm8, %v11555_v31 }
 0x244   :  { %9073 = vmatprep.mubr.msk.bf16.mxu1 %vm15762_vm3, %v15647_v23  ;;  %9246 = vmatpush3.bf16.msra.mxu1 %v10682_v15  ;;  %v10687_v15 = vld [vmem:[#allocation3 + $0x1a8] sm:$0xff]  }
 0x245   :  { %9247 = vmatprep.subr.bf16.mxu1 %v15647_v23  ;;  %9190 = vmatmul.mubr.msk.bf16.gmra.mrb[36].mxu0 %vm12103_vm1, %v15797_v52 }
 0x246   :  { %9193 = vmatprep.mubr.msk.bf16.mxu0 %vm15762_vm3, %v15647_v23 }
 0x248   :  { %9248 = vmatpush3.bf16.msra.mxu1 %v10683_v22  ;;  %v10688_v22 = vld [vmem:[#allocation3 + $0x1b0] sm:$0xff]  }
 0x249   :  { %9249 = vmatprep.subr.bf16.mxu1 %v15647_v23 }
 0x24b   :  { %9074 = vmatmul.mubr.msk.bf16.gmra.mrb[36].mxu1 %vm11919_vm13, %v15749_v45 }
 0x24c   :  { %9077 = vmatprep.mubr.msk.bf16.mxu1 %vm15762_vm3, %v15647_v23  ;;  %9250 = vmatpush3.bf16.msra.mxu1 %v10684_v32  ;;  %v10689_v32 = vld [vmem:[#allocation3 + $0x1b8] sm:$0xff]  }
 0x24d   :  { %9251 = vmatprep.subr.bf16.mxu1 %v15647_v23  ;;  %9194 = vmatmul.mubr.msk.bf16.gmra.mrb[40].mxu0 %vm12108_vm7, %v11806_v46 }
 0x24e   :  { %9197 = vmatprep.mubr.msk.bf16.mxu0 %vm15762_vm3, %v15647_v23 }
 0x250   :  { %9252 = vmatpush3.bf16.msra.mxu1 %v10685_v24  ;;  %v10696_v24 = vld [vmem:[#allocation3 + $0x1c0] sm:$0xff]  }
 0x251   :  { %9253 = vmatprep.subr.bf16.mxu1 %v15647_v23 }
 0x253   :  { %9078 = vmatmul.mubr.msk.bf16.gmra.mrb[40].mxu1 %vm11977_vm2, %v15761_v62 }
 0x254   :  { %9081 = vmatprep.mubr.msk.bf16.mxu1 %vm15762_vm3, %v15647_v23  ;;  %9254 = vmatpush3.bf16.msra.mxu1 %v10686_v59  ;;  %v15843_v59 = vld [vmem:[#allocation17_spill] sm:$0xff] }
 0x255   :  { %9255 = vmatprep.subr.bf16.mxu1 %v15647_v23  ;;  %9198 = vmatmul.mubr.msk.bf16.gmra.mrb[44].mxu0 %vm12125_vm4, %v11818_v58 }
 0x256   :  { %9201 = vmatprep.mubr.msk.bf16.mxu0 %vm15762_vm3, %v15647_v23 }
 0x258   :  { %9256 = vmatpush3.bf16.msra.mxu1 %v10687_v15  ;;  %v15844_v15 = vld [vmem:[#allocation16_spill] sm:$0xff] }
 0x259   :  { %9257 = vmatprep.subr.bf16.mxu1 %v15647_v23 }
 0x25b   :  { %9082 = vmatmul.mubr.msk.bf16.gmra.mrb[44].mxu1 %vm11982_vm10, %v11620_v30 }
 0x25c   :  { %9085 = vmatprep.mubr.msk.bf16.mxu1 %vm15762_vm3, %v15647_v23  ;;  %9258 = vmatpush3.bf16.msra.mxu1 %v10688_v22  ;;  %v10697_v22 = vld [vmem:[#allocation3 + $0x1c8] sm:$0xff]  }
 0x25d   :  { %9259 = vmatprep.subr.bf16.mxu1 %v15647_v23  ;;  %9202 = vmatmul.mubr.msk.bf16.gmra.mrb[48].mxu0 %vm15838_vm9, %v11856_v9  ;;  %vm15845_vm9 = vnez %v15844_v15 }
 0x25e   :  { %9205 = vmatprep.mubr.msk.bf16.mxu0 %vm15762_vm3, %v15647_v23 }
 0x260   :  { %9260 = vmatpush3.bf16.msra.mxu1 %v10689_v32  ;;  %v10700_v32 = vld [vmem:[#allocation3 + $0x1d0] sm:$0xff]  }
 0x261   :  { %9321 = vmatprep.subr.bf16.mxu1 %v15647_v23 }
 0x263   :  { %9086 = vmatmul.mubr.msk.bf16.gmra.mrb[48].mxu1 %vm15839_vm12, %v11639_v17 }
 0x264   :  { %9089 = vmatprep.mubr.msk.bf16.mxu1 %vm15762_vm3, %v15647_v23 }
 0x265   :  { %9206 = vmatmul.mubr.msk.bf16.gmra.mrb[52].mxu0 %vm15840_vm0, %v11858_v4  ;;  %vm15856_vm0 = vnez %v15711_v57 }
 0x266   :  { %9209 = vmatprep.mubr.msk.bf16.mxu0 %vm15762_vm3, %v15647_v23 }
 0x26b   :  { %9090 = vmatmul.mubr.msk.bf16.gmra.mrb[52].mxu1 %vm15841_vm15, %v11641_v60 }
 0x26c   :  { %9261 = vmatprep.mubr.msk.bf16.mxu1 %vm15762_vm3, %v15647_v23 }
 0x26d   :  { %9210 = vmatmul.mubr.msk.bf16.gmra.mrb[56].mxu0 %vm15842_vm14, %v11882_v18  ;;  %vm15846_vm14 = vnez %v15811_v0 }
 0x26e   :  { %9213 = vmatprep.mubr.msk.bf16.mxu0 %vm15762_vm3, %v15647_v23 }
 0x273   :  { %9262 = vmatmul.mubr.msk.bf16.vlgmr.msra.gmra.mrb[56].mxu1 %vm15845_vm9, %v15843_v59  ;;  %v15848_v59 = vld [vmem:[#allocation18_spill] sm:$0xff] }
 0x274   :  { %9265 = vmatprep.mubr.msk.bf16.mxu1 %vm15762_vm3, %v15647_v23  ;;  %9322 = vmatpush3.bf16.msra.mxu1 %v10696_v24  ;;  %vm15849_vm9 = vnez %v15848_v59  ;;  %v10701_v24 = vld [vmem:[#allocation3 + $0x1d8] sm:$0xff]  }
 0x275   :  { %9323 = vmatprep.subr.bf16.mxu1 %v15647_v23  ;;  %9214 = vmatmul.mubr.msk.bf16.gmra.mrb[60].mxu0 %vm15846_vm14, %v11889_v53  ;;  %vm15850_vm14 = vnez %v15814_v44 }
 0x276   :  { %9217 = vmatprep.mubr.msk.bf16.mxu0 %vm15762_vm3, %v15647_v23 }
 0x278   :  { %9324 = vmatpush3.bf16.msra.mxu1 %v10697_v22  ;;  %v10704_v22 = vld [vmem:[#allocation3 + $0x1e0] sm:$0xff]  }
 0x279   :  { %9325 = vmatprep.subr.bf16.mxu1 %v15647_v23 }
 0x27b   :  { %9266 = vmatmul.mubr.msk.bf16.gmra.mrb[60].mxu1 %vm15849_vm9, %v15847_v29  ;;  %vm15851_vm9 = vnez %v15671_v25  ;;  %v10705_v29 = vld [vmem:[#allocation3 + $0x1e8] sm:$0xff]  }
 0x27c   :  { %9269 = vmatprep.mubr.msk.bf16.mxu1 %vm15762_vm3, %v15647_v23  ;;  %9326 = vmatpush3.bf16.msra.mxu1 %v10700_v32  ;;  %v10708_v32 = vld [vmem:[#allocation3 + $0x1f0] sm:$0xff]  }
 0x27d   :  { %9327 = vmatprep.subr.bf16.mxu1 %v15647_v23  ;;  %9218 = vmatmul.mubr.msk.bf16.gmra.mrb[64].mxu0 %vm15850_vm14, %v11896_v19  ;;  %vm15852_vm14 = vnez %v15817_v5 }
 0x27e   :  { %9221 = vmatprep.mubr.msk.bf16.mxu0 %vm15762_vm3, %v15647_v23 }
 0x280   :  { %9328 = vmatpush3.bf16.msra.mxu1 %v10701_v24  ;;  %v10698_v24 = vld [vmem:[%s15348_s0 + $0xb0] sm:$0xff]  }
 0x281   :  { %9329 = vmatprep.subr.bf16.mxu1 %v15647_v23 }
 0x283   :  { %9270 = vmatmul.mubr.msk.bf16.gmra.mrb[64].mxu1 %vm15851_vm9, %v11458_v3  ;;  %vm15853_vm9 = vnez %v15681_v14  ;;  %v10709_v3 = vld [vmem:[#allocation3 + $0x1f8] sm:$0xff]  }
 0x284   :  { %9273 = vmatprep.mubr.msk.bf16.mxu1 %vm15762_vm3, %v15647_v23  ;;  %9330 = vmatpush3.bf16.msra.mxu1 %v10704_v22  ;;  %v10702_v22 = vld [vmem:[%s15348_s0 + $0xc0] sm:$0xff]  }
 0x285   :  { %9331 = vmatprep.subr.bf16.mxu1 %v15647_v23  ;;  %9222 = vmatmul.mubr.msk.bf16.gmra.mrb[68].mxu0 %vm15852_vm14, %v11910_v40  ;;  %vm15854_vm14 = vnez %v15820_v7 }
 0x286   :  { %9225 = vmatprep.mubr.msk.bf16.mxu0 %vm15762_vm3, %v15647_v23 }
 0x288   :  { %9332 = vmatpush3.bf16.msra.mxu1 %v10705_v29  ;;  %v10703_v29 = vld [vmem:[%s15348_s0 + $0xc8] sm:$0xff]  }
 0x289   :  { %9333 = vmatprep.subr.bf16.mxu1 %v15647_v23 }
 0x28b   :  { %9274 = vmatmul.mubr.msk.bf16.gmra.mrb[68].mxu1 %vm15853_vm9, %v11479_v37  ;;  %vm15855_vm9 = vnez %v15705_v26  ;;  %v10690_v37 = vld [vmem:[%s15348_s0 + $0x80] sm:$0xff]  }
 0x28c   :  { %9277 = vmatprep.mubr.msk.bf16.mxu1 %vm15762_vm3, %v15647_v23  ;;  %9334 = vmatpush3.bf16.msra.mxu1 %v10708_v32 }
 0x28d   :  { %9335 = vmatprep.subr.bf16.mxu1 %v15647_v23  ;;  %9226 = vmatmul.mubr.msk.bf16.gmra.mrb[72].mxu0 %vm15854_vm14, %v11924_v47 }
 0x28e   :  { %9229 = vmatprep.mubr.msk.bf16.mxu0 %vm15762_vm3, %v15647_v23 }
 0x290   :  { %9336 = vmatpush3.bf16.msra.mxu1 %v10709_v3  ;;  %v10706_v3 = vld [vmem:[%s15348_s0 + $0xd0] sm:$0xff]  }
 0x291   :  { %9397 = vmatprep.subr.bf16.mxu1 %v15647_v23 }
 0x293   :  { %9278 = vmatmul.mubr.msk.bf16.gmra.mrb[72].mxu1 %vm15855_vm9, %v15716_v12  ;;  %vm15857_vm9 = vnez %v15732_v48  ;;  %v10692_v12 = vld [vmem:[%s15348_s0 + $0x90] sm:$0xff]   ;;  %v10718_v48 = vld [vmem:[#allocation3 + $0x220] sm:$0xff]  }
 0x294   :  { %9281 = vmatprep.mubr.msk.bf16.mxu1 %vm15762_vm3, %v15647_v23 }
 0x295   :  { %9230 = vmatmul.mubr.msk.bf16.gmra.mrb[76].mxu0 %vm12216_vm11, %v11936_v33 }
 0x296   :  { %9233 = vmatprep.mubr.msk.bf16.mxu0 %vm15762_vm3, %v15647_v23 }
 0x29b   :  { %9282 = vmatmul.mubr.msk.bf16.gmra.mrb[76].mxu1 %vm15856_vm0, %v15725_v41  ;;  %v15858_v41 = vld [vmem:[#allocation11_spill] sm:$0xff] }
 0x29c   :  { %9285 = vmatprep.mubr.msk.bf16.mxu1 %vm15762_vm3, %v15647_v23  ;;  %vm15859_vm0 = vnez %v15858_v41 }
 0x29d   :  { %9234 = vmatmul.mubr.msk.bf16.gmra.mrb[80].mxu0 %vm12221_vm6, %v11938_v54 }
 0x29e   :  { %9237 = vmatprep.mubr.msk.bf16.mxu0 %vm15762_vm3, %v15647_v23 }
 0x2a3   :  { %9286 = vmatmul.mubr.msk.bf16.gmra.mrb[80].mxu1 %vm15857_vm9, %v15737_v16  ;;  %vm15860_vm9 = vnez %v15832_v38  ;;  %v10694_v16 = vld [vmem:[%s15348_s0 + $0xa0] sm:$0xff]   ;;  %v15882_v38 = vld [vmem:[#allocation32_spill] sm:$0xff] }
 0x2a4   :  { %9289 = vmatprep.mubr.msk.bf16.mxu1 %vm15762_vm3, %v15647_v23 }
 0x2a5   :  { %9238 = vmatmul.mubr.msk.bf16.gmra.mrb[84].mxu0 %vm12236_vm5, %v11960_v11  ;;  %vm15861_vm5 = vcmask 31744  }
 0x2a6   :  { %9241 = vmatprep.mubr.msk.bf16.mxu0 %vm15762_vm3, %v15647_v23 }
 0x2ab   :  { %9290 = vmatmul.mubr.msk.bf16.gmra.mrb[84].mxu1 %vm15859_vm0, %v11553_v50  ;;  %v10691_v50 = vld [vmem:[%s15348_s0 + $0x88] sm:$0xff]   ;;  %vm15862_vm0 = vmmov %vm15861_vm5 }
 0x2ac   :  { %9293 = vmatprep.mubr.msk.bf16.mxu1 %vm15762_vm3, %v15647_v23 }
 0x2ad   :  { %9242 = vmatmul.mubr.msk.bf16.gmra.mrb[88].mxu0 %vm15860_vm9, %v11962_v10 }
 0x2ae   :  { %9475 = vmatprep.mubr.msk.bf16.mxu0 %vm15861_vm5, %v10690_v37  ;;  %vm15864_vm5 = vmmov %vm15862_vm0 }
 0x2b3   :  { %9294 = vmatmul.mubr.msk.bf16.gmra.mrb[88].mxu1 %vm11906_vm8, %v11555_v31  ;;  %vm15863_vm8 = vmmov %vm15862_vm0  ;;  %v10693_v31 = vld [vmem:[%s15348_s0 + $0x98] sm:$0xff]  }
 0x2b4   :  { %9297 = vmatprep.mubr.msk.bf16.mxu1 %vm15762_vm3, %v15647_v23 }
 0x2b5   :  { %9476 = vmatmul.mubr.msk.bf16.vlgmr.msra.gmra.mrb[92].mxu0 %vm15862_vm0, %v10691_v50 }
 0x2b6   :  { %9479 = vmatprep.mubr.msk.bf16.mxu0 %vm15863_vm8, %v10692_v12  ;;  %vm15865_vm8 = vmmov %vm15862_vm0  ;;  %v10707_v12 = vld [vmem:[%s15348_s0 + $0xd8] sm:$0xff]  }
 0x2bb   :  { %9298 = vmatmul.mubr.msk.bf16.gmra.mrb[92].mxu1 %vm11919_vm13, %v15749_v45  ;;  %v10695_v45 = vld [vmem:[%s15348_s0 + $0xa8] sm:$0xff]  }
 0x2bc   :  { %9301 = vmatprep.mubr.msk.bf16.mxu1 %vm15762_vm3, %v15647_v23 }
 0x2bd   :  { %9480 = vmatmul.mubr.msk.bf16.gmra.mrb[96].mxu0 %vm15864_vm5, %v10693_v31  ;;  %vm15866_vm5 = vmmov %vm15862_vm0 }
 0x2be   :  { %9483 = vmatprep.mubr.msk.bf16.mxu0 %vm15862_vm0, %v10694_v16  ;;  %v10710_v16 = vld [vmem:[%s15348_s0 + $0xe0] sm:$0xff]  }
 0x2c3   :  { %9302 = vmatmul.mubr.msk.bf16.gmra.mrb[96].mxu1 %vm11977_vm2, %v15761_v62  ;;  %v10699_v62 = vld [vmem:[%s15348_s0 + $0xb8] sm:$0xff]  }
 0x2c4   :  { %9305 = vmatprep.mubr.msk.bf16.mxu1 %vm15762_vm3, %v15647_v23 }
 0x2c5   :  { %9484 = vmatmul.mubr.msk.bf16.gmra.mrb[100].mxu0 %vm15865_vm8, %v10695_v45  ;;  %vm15867_vm8 = vmmov %vm15862_vm0 }
 0x2c6   :  { %9487 = vmatprep.mubr.msk.bf16.mxu0 %vm15866_vm5, %v10698_v24  ;;  %vm15870_vm5 = vmmov %vm15862_vm0  ;;  %v15872_v24 = vld [vmem:[#allocation27_spill] sm:$0xff] }
 0x2cb   :  { %9306 = vmatmul.mubr.msk.bf16.gmra.mrb[100].mxu1 %vm11982_vm10, %v11620_v30 }
 0x2cc   :  { %9309 = vmatprep.mubr.msk.bf16.mxu1 %vm15762_vm3, %v15647_v23 }
 0x2cd   :  { %9488 = vmatmul.mubr.msk.bf16.gmra.mrb[104].mxu0 %vm15862_vm0, %v10699_v62  ;;  %v15873_v62 = vld [vmem:[#allocation52_spill] sm:$0xff] }
 0x2ce   :  { %9491 = vmatprep.mubr.msk.bf16.mxu0 %vm15867_vm8, %v10702_v22  ;;  %vm15871_vm8 = vmmov %vm15862_vm0 }
 0x2d3   :  { %9310 = vmatmul.mubr.msk.bf16.gmra.mrb[104].mxu1 %vm15839_vm12, %v11639_v17 }
 0x2d4   :  { %9313 = vmatprep.mubr.msk.bf16.mxu1 %vm15762_vm3, %v15647_v23 }
 0x2d5   :  { %9492 = vmatmul.mubr.msk.bf16.gmra.mrb[108].mxu0 %vm15870_vm5, %v10703_v29  ;;  %vm15874_vm5 = vnez %v15873_v62  ;;  %v10711_v29 = vld [vmem:[%s15348_s0 + $0xe8] sm:$0xff]  }
 0x2d6   :  { %v12489_v30 = vpop.f32.mrb[0].mxu1  ;;  %9495 = vmatprep.mubr.msk.bf16.mxu0 %vm15862_vm0, %v10706_v3 }
 0x2d7   :  { %v12494_v32 = vpop.f32.mrb[1].mxu1 }
 0x2d8   :  { %15868 = vst [vmem:[#allocation17_spill] sm:$0xff] %v12494_v32  ;;  %v12499_v37 = vpop.f32.mrb[2].mxu1 }
 0x2d9   :  { %v12501_v17 = vpop.f32.mrb[3].mxu1 }
 0x2da   :  { %15869 = vst [vmem:[#allocation14_spill] sm:$0xff] %v12501_v17 }
 0x2db   :  { %9314 = vmatmul.mubr.msk.bf16.gmra.mrb[108].mxu1 %vm15841_vm15, %v11641_v60 }
 0x2dc   :  { %9317 = vmatprep.mubr.msk.bf16.mxu1 %vm15762_vm3, %v15647_v23 }
 0x2dd   :  { %9496 = vmatmul.mubr.msk.bf16.gmra.mrb[112].mxu0 %vm15871_vm8, %v10707_v12  ;;  %v10712_v12 = vld [vmem:[%s15348_s0 + $0xf0] sm:$0xff]   ;;  %vm15875_vm8 = vmmov %vm15862_vm0 }
 0x2de   :  { %v12510_v50 = vpop.f32.mrb[4].mxu1  ;;  %9499 = vmatprep.mubr.msk.bf16.mxu0 %vm15862_vm0, %v10710_v16  ;;  %v15876_v16 = vld [vmem:[#allocation26_spill] sm:$0xff] }
 0x2df   :  { %v12515_v31 = vpop.f32.mrb[5].mxu1 }
 0x2e0   :  { %v12520_v45 = vpop.f32.mrb[6].mxu1 }
 0x2e1   :  { %v12522_v60 = vpop.f32.mrb[7].mxu1 }
 0x2e3   :  { %9318 = vmatmul.mubr.msk.bf16.gmra.mrb[112].mxu1 %vm15874_vm5, %v15872_v24  ;;  %v10714_v24 = vld [vmem:[#allocation3 + $0x200] sm:$0xff]  }
 0x2e4   :  { %9337 = vmatprep.mubr.msk.bf16.mxu1 %vm15762_vm3, %v15647_v23 }
 0x2e5   :  { %9500 = vmatmul.mubr.msk.bf16.gmra.mrb[116].mxu0 %vm15875_vm8, %v10711_v29  ;;  %vm15877_vm8 = vmmov %vm15862_vm0 }
 0x2e6   :  { %v12531_v22 = vpop.f32.mrb[8].mxu1  ;;  %9503 = vmatprep.mubr.msk.bf16.mxu0 %vm15862_vm0, %v10712_v12  ;;  %vm15915_vm0 = vnez %v15802_v6 }
 0x2e7   :  { %v12536_v3 = vpop.f32.mrb[9].mxu1 }
 0x2e8   :  { %v12541_v49 = vpop.f32.mrb[10].mxu1 }
 0x2e9   :  { %v12543_v62 = vpop.f32.mrb[11].mxu1 }
 0x2eb   :  { %9338 = vmatmul.mubr.bf16.vlgmr.msra.gmra.mrb[56].mxu1 %v15876_v16  ;;  %v10716_v16 = vld [vmem:[#allocation3 + $0x210] sm:$0xff]  }
 0x2ec   :  { %9341 = vmatprep.mubr.msk.bf16.mxu1 %vm15762_vm3, %v15647_v23  ;;  %9398 = vmatpush3.bf16.msra.mxu1 %v10714_v24  ;;  %v15878_v24 = vld [vmem:[#allocation28_spill] sm:$0xff] }
 0x2ed   :  { %9399 = vmatprep.subr.bf16.mxu1 %v15647_v23  ;;  %9504 = vmatmul.mubr.msk.bf16.gmra.mrb[120].mxu0 %vm15877_vm8, %v10713_v28  ;;  %v15879_v28 = vld [vmem:[#allocation29_spill] sm:$0xff]  ;;  %vm15918_vm8 = vnez %v15805_v43 }
 0x2ee   :  { %v12551_v51 = vpop.f32.mrb[12].mxu1 }
 0x2ef   :  { %v12556_v35 = vpop.f32.mrb[13].mxu1 }
 0x2f0   :  { %v12558_v29 = vpop.f32.mrb[14].mxu1  ;;  %9400 = vmatpush3.bf16.msra.mxu1 %v10715_v8 }
 0x2f1   :  { %v12560_v12 = vpop.f32.mrb[15].mxu1  ;;  %9401 = vmatprep.subr.bf16.mxu1 %v15647_v23 }
 0x2f3   :  { %9342 = vmatmul.mubr.bf16.gmra.mrb[60].mxu1 %v15878_v24 }
 0x2f4   :  { %9345 = vmatprep.mubr.msk.bf16.mxu1 %vm15762_vm3, %v15647_v23  ;;  %9402 = vmatpush3.bf16.msra.mxu1 %v10716_v16  ;;  %v10719_v16 = vld [vmem:[#allocation3 + $0x228] sm:$0xff]  }
 0x2f5   :  { %9403 = vmatprep.subr.bf16.mxu1 %v15647_v23 }
 0x2f6   :  { %v12568_v41 = vpop.f32.mrb[16].mxu1 }
 0x2f7   :  { %v12570_v17 = vpop.f32.mrb[17].mxu1 }
 0x2f8   :  { %v12572_v8 = vpop.f32.mrb[18].mxu1  ;;  %9404 = vmatpush3.bf16.msra.mxu1 %v10717_v36  ;;  %v10720_v36 = vld [vmem:[#allocation3 + $0x230] sm:$0xff]  }
 0x2f9   :  { %v12574_v32 = vpop.f32.mrb[19].mxu1  ;;  %9405 = vmatprep.subr.bf16.mxu1 %v15647_v23 }
 0x2fb   :  { %9346 = vmatmul.mubr.bf16.gmra.mrb[116].mxu1 %v15879_v28  ;;  %v15880_v28 = vld [vmem:[#allocation30_spill] sm:$0xff] }
 0x2fc   :  { %9349 = vmatprep.mubr.msk.bf16.mxu1 %vm15762_vm3, %v15647_v23  ;;  %9406 = vmatpush3.bf16.msra.mxu1 %v10718_v48  ;;  %v10721_v48 = vld [vmem:[#allocation3 + $0x238] sm:$0xff]  }
 0x2fd   :  { %9407 = vmatprep.subr.bf16.mxu1 %v15647_v23 }
 0x2fe   :  { %v12581_v24 = vpop.f32.mrb[20].mxu1 }
 0x2ff   :  { %v12583_v57 = vpop.f32.mrb[21].mxu1 }
 0x300   :  { %v12585_v26 = vpop.f32.mrb[22].mxu1  ;;  %9408 = vmatpush3.bf16.msra.mxu1 %v10719_v16 }
 0x301   :  { %v12587_v14 = vpop.f32.mrb[23].mxu1  ;;  %9409 = vmatprep.subr.bf16.mxu1 %v15647_v23 }
 0x303   :  { %9350 = vmatmul.mubr.bf16.gmra.mrb[68].mxu1 %v15880_v28 }
 0x304   :  { %9353 = vmatprep.mubr.msk.bf16.mxu1 %vm15762_vm3, %v15647_v23  ;;  %9410 = vmatpush3.bf16.msra.mxu1 %v10720_v36 }
 0x305   :  { %9411 = vmatprep.subr.bf16.mxu1 %v15647_v23 }
 0x306   :  { %v12594_v25 = vpop.f32.mrb[24].mxu1 }
 0x307   :  { %v12596_v59 = vpop.f32.mrb[25].mxu1 }
 0x308   :  { %v12598_v15 = vpop.f32.mrb[26].mxu1  ;;  %9412 = vmatpush3.bf16.msra.mxu1 %v10721_v48 }
 0x309   :  { %v12600_v16 = vpop.f32.mrb[27].mxu1  ;;  %9651 = vmatprep.subr.bf16.mxu1 %v15647_v23 }
 0x30b   :  { %9354 = vmatmul.mubr.bf16.gmra.mrb[120].mxu1 %v15881_v61 }
 0x30c   :  { %9357 = vmatprep.mubr.msk.bf16.mxu1 %vm15762_vm3, %v15647_v23 }
 0x30e   :  { %v12606_v36 = vpop.f32.mrb[28].mxu1 }
 0x30f   :  { %v12608_v28 = vpop.f32.mrb[29].mxu1 }
 0x310   :  { %v12610_v42 = vpop.f32.mrb[30].mxu1  ;;  %v2641_v48 = vpop.f32.mrb[32].mxu0 }
 0x311   :  { %v12612_v1 = vpop.f32.mrb[31].mxu1  ;;  %v12618_v10 = vadd.f32 %v12489_v30, %v2641_v48  ;;  %v9187_v2 = vpop.f32.mrb[33].mxu0 }
 0x312   :  { %v2644_v34 = vpop.f32.mrb[34].mxu0 }
 0x313   :  { %9358 = vmatmul.mubr.bf16.gmra.mrb[76].mxu1 %v15882_v38  ;;  %15883 = vst [vmem:[#allocation27_spill] sm:$0xff] %v12618_v10  ;;  %v12623_v54 = vadd.f32 %v12499_v37, %v2644_v34  ;;  %v9188_v33 = vpop.f32.mrb[35].mxu0  ;;  %v15885_v38 = vld [vmem:[#allocation33_spill] sm:$0xff] }
 0x314   :  { %9361 = vmatprep.mubr.msk.bf16.mxu1 %vm15762_vm3, %v15647_v23 }
 0x315   :  { %15884 = vst [vmem:[#allocation26_spill] sm:$0xff] %v12623_v54 }
 0x316   :  { %v12620_v61 = vpop.f32.mrb[32].mxu1 }
 0x317   :  { %v9071_v11 = vpop.f32.mrb[33].mxu1 }
 0x318   :  { %v12625_v21 = vpop.f32.mrb[34].mxu1  ;;  %v2649_v47 = vpop.f32.mrb[36].mxu0 }
 0x319   :  { %v9072_v7 = vpop.f32.mrb[35].mxu1  ;;  %v12631_v30 = vadd.f32 %v2649_v47, %v12515_v31  ;;  %v9191_v11 = vpop.f32.mrb[37].mxu0 }
 0x31a   :  { %v2652_v10 = vpop.f32.mrb[38].mxu0 }
 0x31b   :  { %9362 = vmatmul.mubr.bf16.gmra.mrb[124].mxu1 %v15885_v38  ;;  %15886 = vst [vmem:[#allocation28_spill] sm:$0xff] %v12631_v30  ;;  %v12636_v34 = vadd.f32 %v2652_v10, %v12522_v60  ;;  %v9192_v7 = vpop.f32.mrb[39].mxu0  ;;  %v15888_v38 = vld [vmem:[#allocation34_spill] sm:$0xff] }
 0x31c   :  { %9365 = vmatprep.mubr.msk.bf16.mxu1 %vm15762_vm3, %v15647_v23 }
 0x31d   :  { %15887 = vst [vmem:[#allocation29_spill] sm:$0xff] %v12636_v34 }
 0x31e   :  { %v12633_v48 = vpop.f32.mrb[36].mxu1 }
 0x31f   :  { %v9075_v2 = vpop.f32.mrb[37].mxu1 }
 0x320   :  { %v12638_v37 = vpop.f32.mrb[38].mxu1  ;;  %v2657_v54 = vpop.f32.mrb[40].mxu0 }
 0x321   :  { %v9076_v33 = vpop.f32.mrb[39].mxu1  ;;  %v12644_v47 = vadd.f32 %v12510_v50, %v2657_v54  ;;  %v9195_v11 = vpop.f32.mrb[41].mxu0 }
 0x322   :  { %v2660_v30 = vpop.f32.mrb[42].mxu0 }
 0x323   :  { %9366 = vmatmul.mubr.bf16.gmra.mrb[84].mxu1 %v15888_v38  ;;  %15889 = vst [vmem:[#allocation30_spill] sm:$0xff] %v12644_v47  ;;  %v12649_v10 = vadd.f32 %v12520_v45, %v2660_v30  ;;  %v9196_v7 = vpop.f32.mrb[43].mxu0  ;;  %v15891_v38 = vld [vmem:[#allocation35_spill] sm:$0xff] }
 0x324   :  { %9369 = vmatprep.mubr.msk.bf16.mxu1 %vm15762_vm3, %v15647_v23 }
 0x325   :  { %15890 = vst [vmem:[#allocation31_spill] sm:$0xff] %v12649_v10 }
 0x326   :  { %v12646_v31 = vpop.f32.mrb[40].mxu1 }
 0x327   :  { %v9079_v2 = vpop.f32.mrb[41].mxu1 }
 0x328   :  { %v12651_v60 = vpop.f32.mrb[42].mxu1  ;;  %v2665_v34 = vpop.f32.mrb[44].mxu0 }
 0x329   :  { %v9080_v33 = vpop.f32.mrb[43].mxu1  ;;  %v12657_v54 = vadd.f32 %v2665_v34, %v12536_v3  ;;  %v9199_v11 = vpop.f32.mrb[45].mxu0 }
 0x32a   :  { %v2668_v47 = vpop.f32.mrb[46].mxu0 }
 0x32b   :  { %9370 = vmatmul.mubr.bf16.gmra.mrb[128].mxu1 %v15891_v38  ;;  %15892 = vst [vmem:[#allocation32_spill] sm:$0xff] %v12657_v54  ;;  %v12662_v45 = vadd.f32 %v2668_v47, %v12543_v62  ;;  %v9200_v7 = vpop.f32.mrb[47].mxu0  ;;  %v15894_v38 = vld [vmem:[#allocation36_spill] sm:$0xff] }
 0x32c   :  { %9373 = vmatprep.mubr.msk.bf16.mxu1 %vm15762_vm3, %v15647_v23 }
 0x32d   :  { %15893 = vst [vmem:[#allocation33_spill] sm:$0xff] %v12662_v45 }
 0x32e   :  { %v12659_v50 = vpop.f32.mrb[44].mxu1 }
 0x32f   :  { %v9083_v2 = vpop.f32.mrb[45].mxu1 }
 0x330   :  { %v12664_v30 = vpop.f32.mrb[46].mxu1  ;;  %v2673_v10 = vpop.f32.mrb[48].mxu0 }
 0x331   :  { %v9084_v33 = vpop.f32.mrb[47].mxu1  ;;  %v12670_v3 = vadd.f32 %v12531_v22, %v2673_v10  ;;  %v9203_v11 = vpop.f32.mrb[49].mxu0 }
 0x332   :  { %v2676_v54 = vpop.f32.mrb[50].mxu0 }
 0x333   :  { %9374 = vmatmul.mubr.bf16.gmra.mrb[92].mxu1 %v15894_v38  ;;  %15895 = vst [vmem:[#allocation34_spill] sm:$0xff] %v12670_v3  ;;  %v12675_v62 = vadd.f32 %v12541_v49, %v2676_v54  ;;  %v9204_v7 = vpop.f32.mrb[51].mxu0  ;;  %v15897_v38 = vld [vmem:[#allocation37_spill] sm:$0xff] }
 0x334   :  { %9377 = vmatprep.mubr.msk.bf16.mxu1 %vm15762_vm3, %v15647_v23 }
 0x335   :  { %15896 = vst [vmem:[#allocation35_spill] sm:$0xff] %v12675_v62 }
 0x336   :  { %v12672_v34 = vpop.f32.mrb[48].mxu1 }
 0x337   :  { %v9087_v2 = vpop.f32.mrb[49].mxu1 }
 0x338   :  { %v12677_v47 = vpop.f32.mrb[50].mxu1  ;;  %v2681_v45 = vpop.f32.mrb[52].mxu0 }
 0x339   :  { %v9088_v33 = vpop.f32.mrb[51].mxu1  ;;  %v12683_v22 = vadd.f32 %v2681_v45, %v12556_v35  ;;  %v9207_v11 = vpop.f32.mrb[53].mxu0 }
 0x33a   :  { %v2684_v3 = vpop.f32.mrb[54].mxu0 }
 0x33b   :  { %9378 = vmatmul.mubr.bf16.gmra.mrb[132].mxu1 %v15897_v38  ;;  %15898 = vst [vmem:[#allocation36_spill] sm:$0xff] %v12683_v22  ;;  %v12688_v49 = vadd.f32 %v2684_v3, %v12560_v12  ;;  %v9208_v7 = vpop.f32.mrb[55].mxu0  ;;  %v10722_v38 = vld [vmem:[#allocation3 + $0xc0] sm:$0xff]  }
 0x33c   :  { %9381 = vmatprep.mubr.msk.bf16.mxu1 %vm15762_vm3, %v15647_v23  ;;  %9507 = vmatprep.subr.bf16.mxu0 %v10722_v38  ;;  %v10723_v7 = vld [vmem:[#allocation3 + $0xc8] sm:$0xff]  }
 0x33d   :  { %15899 = vst [vmem:[#allocation37_spill] sm:$0xff] %v12688_v49  ;;  %9508 = vmatpush3.bf16.msra.mxu0 %v10722_v38 }
 0x33e   :  { %v12685_v10 = vpop.f32.mrb[52].mxu1  ;;  %9509 = vmatprep.subr.bf16.mxu0 %v10723_v7 }
 0x33f   :  { %v9091_v2 = vpop.f32.mrb[53].mxu1 }
 0x340   :  { %v12690_v54 = vpop.f32.mrb[54].mxu1  ;;  %v2689_v35 = vpop.f32.mrb[56].mxu0 }
 0x341   :  { %v9092_v33 = vpop.f32.mrb[55].mxu1  ;;  %v12696_v45 = vadd.f32 %v12551_v51, %v2689_v35  ;;  %v9211_v11 = vpop.f32.mrb[57].mxu0  ;;  %9510 = vmatpush3.bf16.msra.mxu0 %v10723_v7 }
 0x342   :  { %v2692_v2 = vpop.f32.mrb[58].mxu0 }
 0x343   :  { %9382 = vmatmul.mubr.bf16.gmra.mrb[100].mxu1 %v15783_v39  ;;  %15900 = vst [vmem:[#allocation64_spill] sm:$0xff] %v12696_v45  ;;  %v12699_v12 = vadd.f32 %v12558_v29, %v2692_v2  ;;  %v9212_v3 = vpop.f32.mrb[59].mxu0 }
 0x344   :  { %9385 = vmatprep.mubr.msk.bf16.mxu1 %vm15762_vm3, %v15647_v23 }
 0x345   :  { %15901 = vst [vmem:[#allocation65_spill] sm:$0xff] %v12699_v12  ;;  %v15938_v12 = vld [vmem:[#allocation47_spill] sm:$0xff] }
 0x348   :  { %v2697_v39 = vpop.f32.mrb[60].mxu0 }
 0x349   :  { %v12705_v33 = vadd.f32 %v2697_v39, %v12570_v17  ;;  %v9215_v51 = vpop.f32.mrb[61].mxu0 }
 0x34a   :  { %v2700_v38 = vpop.f32.mrb[62].mxu0 }
 0x34b   :  { %9386 = vmatmul.mubr.bf16.gmra.mrb[136].mxu1 %v15784_v63  ;;  %15902 = vst [vmem:[#allocation66_spill] sm:$0xff] %v12705_v33  ;;  %v12708_v35 = vadd.f32 %v2700_v38, %v12574_v32  ;;  %v9216_v29 = vpop.f32.mrb[63].mxu0 }
 0x34c   :  { %9389 = vmatprep.mubr.msk.bf16.mxu1 %vm15762_vm3, %v15647_v23 }
 0x34d   :  { %15903 = vst [vmem:[#allocation67_spill] sm:$0xff] %v12708_v35 }
 0x350   :  { %v2705_v63 = vpop.f32.mrb[64].mxu0 }
 0x351   :  { %v12714_v11 = vadd.f32 %v12568_v41, %v2705_v63  ;;  %v9219_v2 = vpop.f32.mrb[65].mxu0 }
 0x352   :  { %v2708_v17 = vpop.f32.mrb[66].mxu0 }
 0x353   :  { %9390 = vmatmul.mubr.bf16.gmra.mrb[108].mxu1 %v15785_v20  ;;  %15904 = vst [vmem:[#allocation68_spill] sm:$0xff] %v12714_v11  ;;  %v12719_v39 = vadd.f32 %v12572_v8, %v2708_v17  ;;  %v9220_v32 = vpop.f32.mrb[67].mxu0  ;;  %v15906_v20 = vld [vmem:[#allocation42_spill] sm:$0xff] }
 0x354   :  { %9393 = vmatprep.mubr.msk.bf16.mxu1 %vm15762_vm3, %v15647_v23 }
 0x355   :  { %15905 = vst [vmem:[#allocation69_spill] sm:$0xff] %v12719_v39  ;;  %v15936_v39 = vld [vmem:[#allocation61_spill] sm:$0xff] }
 0x356   :  { %v12716_v3 = vpop.f32.mrb[64].mxu1 }
 0x357   :  { %v9271_v7 = vpop.f32.mrb[65].mxu1 }
 0x358   :  { %v12721_v51 = vpop.f32.mrb[66].mxu1  ;;  %v2713_v29 = vpop.f32.mrb[68].mxu0 }
 0x359   :  { %v9272_v38 = vpop.f32.mrb[67].mxu1  ;;  %v10123_v41 = vadd.f32 %v2713_v29, %v12620_v61  ;;  %v9223_v63 = vpop.f32.mrb[69].mxu0 }
 0x35a   :  { %v2716_v2 = vpop.f32.mrb[70].mxu0 }
 0x35b   :  { %9394 = vmatmul.mubr.bf16.gmra.mrb[140].mxu1 %v15906_v20  ;;  %v12728_v11 = vadd.f32 %v10123_v41, %v12583_v57  ;;  %v10124_v8 = vadd.f32 %v2716_v2, %v12625_v21  ;;  %v9224_v17 = vpop.f32.mrb[71].mxu0 }
 0x35c   :  { %9413 = vmatprep.mubr.msk.bf16.mxu1 %vm15762_vm3, %v15647_v23 }
 0x35d   :  { %15907 = vst [vmem:[#allocation42_spill] sm:$0xff] %v12728_v11  ;;  %v12732_v7 = vadd.f32 %v10124_v8, %v12587_v14  ;;  %v15935_v11 = vld [vmem:[#allocation22_spill] sm:$0xff] }
 0x35f   :  { %15908 = vst [vmem:[#allocation70_spill] sm:$0xff] %v12732_v7 }
 0x360   :  { %v2721_v32 = vpop.f32.mrb[72].mxu0 }
 0x361   :  { %v10125_v61 = vadd.f32 %v2721_v32, %v12633_v48  ;;  %v9227_v38 = vpop.f32.mrb[73].mxu0 }
 0x362   :  { %v2724_v57 = vpop.f32.mrb[74].mxu0 }
 0x363   :  { %9414 = vmatmul.mubr.msk.bf16.vlgmr.msra.gmra.mrb[56].mxu1 %vm12103_vm1, %v15797_v52  ;;  %v10126_v21 = vadd.f32 %v2724_v57, %v12638_v37  ;;  %v9228_v41 = vpop.f32.mrb[75].mxu0  ;;  %v12746_v63 = vadd.f32 %v10125_v61, %v12581_v24 }
 0x364   :  { %9417 = vmatprep.mubr.msk.bf16.mxu1 %vm15762_vm3, %v15647_v23 }
 0x365   :  { %15909 = vst [vmem:[#allocation71_spill] sm:$0xff] %v12746_v63  ;;  %v12749_v2 = vadd.f32 %v10126_v21, %v12585_v26 }
 0x366   :  { %v12740_v20 = vpop.f32.mrb[72].mxu1 }
 0x367   :  { %v9279_v29 = vpop.f32.mrb[73].mxu1  ;;  %15910 = vst [vmem:[#allocation72_spill] sm:$0xff] %v12749_v2 }
 0x368   :  { %v12743_v14 = vpop.f32.mrb[74].mxu1  ;;  %v2729_v48 = vpop.f32.mrb[76].mxu0 }
 0x369   :  { %v9280_v52 = vpop.f32.mrb[75].mxu1  ;;  %v10127_v37 = vadd.f32 %v2729_v48, %v12646_v31  ;;  %v9231_v8 = vpop.f32.mrb[77].mxu0 }
 0x36a   :  { %v2732_v17 = vpop.f32.mrb[78].mxu0 }
 0x36b   :  { %9418 = vmatmul.mubr.msk.bf16.gmra.mrb[60].mxu1 %vm12108_vm7, %v11806_v46  ;;  %v12758_v32 = vadd.f32 %v10127_v37, %v12596_v59  ;;  %v10128_v24 = vadd.f32 %v2732_v17, %v12651_v60  ;;  %v9232_v61 = vpop.f32.mrb[79].mxu0 }
 0x36c   :  { %9421 = vmatprep.mubr.msk.bf16.mxu1 %vm15762_vm3, %v15647_v23 }
 0x36d   :  { %15911 = vst [vmem:[#allocation73_spill] sm:$0xff] %v12758_v32  ;;  %v12762_v26 = vadd.f32 %v10128_v24, %v12600_v16 }
 0x36f   :  { %15912 = vst [vmem:[#allocation74_spill] sm:$0xff] %v12762_v26 }
 0x370   :  { %v2737_v46 = vpop.f32.mrb[80].mxu0 }
 0x371   :  { %v10129_v31 = vadd.f32 %v2737_v46, %v12659_v50  ;;  %v9235_v38 = vpop.f32.mrb[81].mxu0 }
 0x372   :  { %v2740_v59 = vpop.f32.mrb[82].mxu0 }
 0x373   :  { %9422 = vmatmul.mubr.msk.bf16.gmra.mrb[144].mxu1 %vm12125_vm4, %v11818_v58  ;;  %v10130_v60 = vadd.f32 %v2740_v59, %v12664_v30  ;;  %v9236_v21 = vpop.f32.mrb[83].mxu0  ;;  %v12776_v41 = vadd.f32 %v10129_v31, %v12594_v25  ;;  %v10728_v59 = vld [vmem:[#allocation3 + $0x8] sm:$0xff]  }
 0x374   :  { %9425 = vmatprep.mubr.msk.bf16.mxu1 %vm15762_vm3, %v15647_v23 }
 0x375   :  { %15913 = vst [vmem:[#allocation75_spill] sm:$0xff] %v12776_v41  ;;  %v12779_v52 = vadd.f32 %v10130_v60, %v12598_v15 }
 0x376   :  { %v12770_v57 = vpop.f32.mrb[80].mxu1 }
 0x377   :  { %v9287_v29 = vpop.f32.mrb[81].mxu1  ;;  %15914 = vst [vmem:[#allocation76_spill] sm:$0xff] %v12779_v52 }
 0x378   :  { %v12773_v16 = vpop.f32.mrb[82].mxu1  ;;  %v2745_v50 = vpop.f32.mrb[84].mxu0 }
 0x379   :  { %v9288_v58 = vpop.f32.mrb[83].mxu1  ;;  %v10131_v30 = vadd.f32 %v2745_v50, %v12672_v34  ;;  %v9239_v48 = vpop.f32.mrb[85].mxu0  ;;  %v10731_v50 = vld [vmem:[#allocation3 + $0x18] sm:$0xff]  }
 0x37a   :  { %v2748_v37 = vpop.f32.mrb[86].mxu0 }
 0x37b   :  { %9426 = vmatmul.mubr.msk.bf16.gmra.mrb[68].mxu1 %vm15915_vm0, %v11856_v9  ;;  %v12788_v8 = vadd.f32 %v10131_v30, %v12608_v28  ;;  %v10132_v25 = vadd.f32 %v2748_v37, %v12677_v47  ;;  %v9240_v17 = vpop.f32.mrb[87].mxu0  ;;  %v10727_v9 = vld [vmem:[#allocation3] sm:$0xff]  }
 0x37c   :  { %9429 = vmatprep.mubr.msk.bf16.mxu1 %vm15762_vm3, %v15647_v23  ;;  %9652 = vmatpush3.bf16.msra.mxu1 %v10727_v9 }
 0x37d   :  { %15916 = vst [vmem:[#allocation77_spill] sm:$0xff] %v12788_v8  ;;  %v12792_v15 = vadd.f32 %v10132_v25, %v12612_v1  ;;  %9653 = vmatprep.subr.bf16.mxu1 %v15647_v23 }
 0x37f   :  { %15917 = vst [vmem:[#allocation78_spill] sm:$0xff] %v12792_v15 }
 0x380   :  { %v2753_v34 = vpop.f32.mrb[88].mxu0  ;;  %9654 = vmatpush3.bf16.msra.mxu1 %v10728_v59 }
 0x381   :  { %v10133_v24 = vadd.f32 %v2753_v34, %v12685_v10  ;;  %v9243_v61 = vpop.f32.mrb[89].mxu0  ;;  %9655 = vmatprep.subr.bf16.mxu1 %v15647_v23  ;;  %v10726_v34 = vld [vmem:[#allocation3 + $0xe0] sm:$0xff]  }
 0x382   :  { %v2756_v47 = vpop.f32.mrb[90].mxu0 }
 0x383   :  { %9430 = vmatmul.mubr.msk.bf16.gmra.mrb[148].mxu1 %vm15918_vm8, %v11858_v4  ;;  %v12804_v1 = vadd.f32 %v10133_v24, %v12606_v36  ;;  %v10134_v4 = vadd.f32 %v2756_v47, %v12690_v54  ;;  %v9244_v31 = vpop.f32.mrb[91].mxu0  ;;  %vm15921_vm8 = vnez %v15808_v13  ;;  %v10724_v36 = vld [vmem:[#allocation3 + $0xd0] sm:$0xff]   ;;  %v10733_v24 = vld [vmem:[#allocation3 + $0x20] sm:$0xff]  }
 0x384   :  { %9433 = vmatprep.mubr.msk.bf16.mxu1 %vm15762_vm3, %v15647_v23  ;;  %v10730_v54 = vld [vmem:[#allocation3 + $0x10] sm:$0xff]   ;;  %9511 = vmatprep.subr.bf16.mxu0 %v10724_v36 }
 0x385   :  { %15919 = vst [vmem:[#allocation79_spill] sm:$0xff] %v12804_v1  ;;  %v12810_v10 = vadd.f32 %v10134_v4, %v12610_v42  ;;  %9656 = vmatpush3.bf16.msra.mxu1 %v10730_v54  ;;  %9512 = vmatpush3.bf16.msra.mxu0 %v10724_v36 }
 0x386   :  { %v12800_v28 = vpop.f32.mrb[88].mxu1  ;;  %9657 = vmatprep.subr.bf16.mxu1 %v15647_v23 }
 0x387   :  { %v9295_v46 = vpop.f32.mrb[89].mxu1  ;;  %15920 = vst [vmem:[#allocation80_spill] sm:$0xff] %v12810_v10 }
 0x388   :  { %v12807_v38 = vpop.f32.mrb[90].mxu1  ;;  %v12818_v60 = vpop.f32.mrb[92].mxu0 }
 0x389   :  { %v9296_v29 = vpop.f32.mrb[91].mxu1  ;;  %v12820_v21 = vpop.f32.mrb[93].mxu0  ;;  %9658 = vmatpush3.bf16.msra.mxu1 %v10731_v50  ;;  %v4307_v25 = vmul.f32 %v12818_v60, %v12818_v60 }
 0x38a   :  { %v12822_v42 = vpop.f32.mrb[94].mxu0  ;;  %v4305_v30 = vmul.f32 %v12820_v21, %v12820_v21  ;;  %9659 = vmatprep.subr.bf16.mxu1 %v15647_v23 }
 0x38b   :  { %9434 = vmatmul.mubr.msk.bf16.gmra.mrb[76].mxu1 %vm15921_vm8, %v11882_v18  ;;  %v12825_v58 = vpop.f32.mrb[95].mxu0  ;;  %v10725_v18 = vld [vmem:[#allocation3 + $0xd8] sm:$0xff]   ;;  %vm15922_vm8 = vnez %v15811_v0  ;;  %v4308_v61 = vmul.f32 %v12822_v42, %v12822_v42 }
 0x38c   :  { %9437 = vmatprep.mubr.msk.bf16.mxu1 %vm15762_vm3, %v15647_v23  ;;  %v4268_v48 = vadd.f32 %v12825_v58, %v12820_v21  ;;  %v4306_v37 = vmul.f32 %v12825_v58, %v12825_v58  ;;  %9513 = vmatprep.subr.bf16.mxu0 %v10725_v18 }
 0x38d   :  { %9514 = vmatpush3.bf16.msra.mxu0 %v10725_v18  ;;  %9660 = vmatpush3.bf16.msra.mxu1 %v10733_v24 }
 0x38e   :  { %v4269_v17 = vadd.f32 %v12818_v60, %v4268_v48  ;;  %v4337_v9 = vadd.f32 %v4306_v37, %v4305_v30  ;;  %9515 = vmatprep.subr.bf16.mxu0 %v10726_v34  ;;  %9661 = vmatprep.subr.bf16.mxu1 %v15647_v23  ;;  %v10729_v48 = vld [vmem:[#allocation3 + $0xe8] sm:$0xff]  }
 0x38f   :  { %v10734_v37 = vld [vmem:[#allocation3 + $0x28] sm:$0xff]  }
 0x390   :  { %v4338_v47 = vadd.f32 %v4337_v9, %v4307_v25  ;;  %v12844_v46 = vpop.f32.mrb[96].mxu0  ;;  %v4270_v4 = vadd.f32 %v12822_v42, %v4269_v17 }
 0x391   :  { %v12849_v59 = vpop.f32.mrb[97].mxu0  ;;  %9516 = vmatpush3.bf16.msra.mxu0 %v10726_v34  ;;  %9662 = vmatpush3.bf16.msra.mxu1 %v10734_v37  ;;  %v4311_v34 = vmul.f32 %v12844_v46, %v12844_v46 }
 0x392   :  { %v4309_v29 = vmul.f32 %v12849_v59, %v12849_v59  ;;  %v4339_v36 = vadd.f32 %v4338_v47, %v4308_v61  ;;  %v12854_v18 = vpop.f32.mrb[98].mxu0  ;;  %9517 = vmatprep.subr.bf16.mxu0 %v10729_v48  ;;  %9663 = vmatprep.subr.bf16.mxu1 %v15647_v23 }
 0x393   :  { %9438 = vmatmul.mubr.msk.bf16.gmra.mrb[152].mxu1 %vm15922_vm8, %v11889_v53  ;;  %v4271_v53 = vadd.f32 %v4270_v4, %v12849_v59  ;;  %v12859_v30 = vpop.f32.mrb[99].mxu0  ;;  %vm15923_vm8 = vnez %v15814_v44  ;;  %v10732_v4 = vld [vmem:[#allocation3 + $0xf0] sm:$0xff]  }
 0x394   :  { %9441 = vmatprep.mubr.msk.bf16.mxu1 %vm15762_vm3, %v15647_v23  ;;  %v4340_v25 = vadd.f32 %v4339_v36, %v4309_v29  ;;  %v4310_v9 = vmul.f32 %v12859_v30, %v12859_v30  ;;  %v10736_v29 = vld [vmem:[#allocation3 + $0x30] sm:$0xff]   ;;  %v4312_v36 = vmul.f32 %v12854_v18, %v12854_v18 }
 0x395   :  { %v4272_v17 = vadd.f32 %v4271_v53, %v12859_v30  ;;  %9518 = vmatpush3.bf16.msra.mxu0 %v10729_v48  ;;  %v10735_v53 = vld [vmem:[#allocation3 + $0xf8] sm:$0xff]   ;;  %9664 = vmatpush3.bf16.msra.mxu1 %v10736_v29 }
 0x396   :  { %v12847_v31 = vpop.f32.mrb[96].mxu1  ;;  %v4341_v47 = vadd.f32 %v4340_v25, %v4310_v9  ;;  %9519 = vmatprep.subr.bf16.mxu0 %v10732_v4  ;;  %9665 = vmatprep.subr.bf16.mxu1 %v15647_v23 }
 0x397   :  { %v9303_v54 = vpop.f32.mrb[97].mxu1  ;;  %v4273_v61 = vadd.f32 %v12844_v46, %v4272_v17 }
 0x398   :  { %v12857_v50 = vpop.f32.mrb[98].mxu1  ;;  %v4342_v54 = vadd.f32 %v4341_v47, %v4311_v34  ;;  %v12875_v37 = vpop.f32.mrb[100].mxu0 }
 0x399   :  { %v9304_v24 = vpop.f32.mrb[99].mxu1  ;;  %v4274_v25 = vadd.f32 %v12854_v18, %v4273_v61  ;;  %v12878_v17 = vpop.f32.mrb[101].mxu0  ;;  %9520 = vmatpush3.bf16.msra.mxu0 %v10732_v4  ;;  %v12888_v61 = vld [vmem:[#allocation3 + $0x100] sm:$0xff]  }
 0x39a   :  { %v4313_v9 = vmul.f32 %v12878_v17, %v12878_v17  ;;  %v4343_v24 = vadd.f32 %v4342_v54, %v4312_v36  ;;  %v12883_v44 = vpop.f32.mrb[102].mxu0  ;;  %9521 = vmatprep.subr.bf16.mxu0 %v10735_v53  ;;  %v4315_v36 = vmul.f32 %v12875_v37, %v12875_v37 }
 0x39b   :  { %9442 = vmatmul.mubr.msk.bf16.gmra.mrb[84].mxu1 %vm15923_vm8, %v11896_v19  ;;  %v10737_v19 = vld [vmem:[#allocation3 + $0x38] sm:$0xff]   ;;  %v4275_v48 = vadd.f32 %v4274_v25, %v12878_v17  ;;  %v12886_v34 = vpop.f32.mrb[103].mxu0  ;;  %vm15924_vm8 = vnez %v15817_v5 }
 0x39c   :  { %9445 = vmatprep.mubr.msk.bf16.mxu1 %vm15762_vm3, %v15647_v23  ;;  %v4344_v47 = vadd.f32 %v4343_v24, %v4313_v9  ;;  %v4314_v25 = vmul.f32 %v12886_v34, %v12886_v34  ;;  %9666 = vmatpush3.bf16.msra.mxu1 %v10737_v19 }
 0x39d   :  { %v4276_v29 = vadd.f32 %v4275_v48, %v12886_v34  ;;  %9522 = vmatpush3.bf16.msra.mxu0 %v10735_v53  ;;  %v4316_v48 = vmul.f32 %v12883_v44, %v12883_v44  ;;  %9727 = vmatprep.subr.bf16.mxu1 %v15647_v23 }
 0x39e   :  { %v4345_v4 = vadd.f32 %v4344_v47, %v4314_v25  ;;  %9555 = vmatprep.subr.bf16.mxu0 %v12888_v61 }
 0x39f   :  { %v4277_v54 = vadd.f32 %v12875_v37, %v4276_v29 }
 0x3a0   :  { %v4346_v19 = vadd.f32 %v4345_v4, %v4315_v36  ;;  %v12904_v9 = vpop.f32.mrb[104].mxu0 }
 0x3a1   :  { %v4278_v24 = vadd.f32 %v12883_v44, %v4277_v54  ;;  %v12910_v29 = vpop.f32.mrb[105].mxu0 }
 0x3a2   :  { %v4317_v53 = vmul.f32 %v12910_v29, %v12910_v29  ;;  %v4347_v25 = vadd.f32 %v4346_v19, %v4316_v48  ;;  %v12915_v0 = vpop.f32.mrb[106].mxu0 }
 0x3a3   :  { %9446 = vmatmul.mubr.msk.bf16.gmra.mrb[156].mxu1 %vm15924_vm8, %v11910_v40  ;;  %v4279_v40 = vadd.f32 %v4278_v24, %v12910_v29  ;;  %v12919_v4 = vpop.f32.mrb[107].mxu0  ;;  %v4319_v24 = vmul.f32 %v12904_v9, %v12904_v9 }
 0x3a4   :  { %9449 = vmatprep.mubr.msk.bf16.mxu1 %vm15762_vm3, %v15647_v23  ;;  %v4348_v54 = vadd.f32 %v4347_v25, %v4317_v53  ;;  %v4318_v43 = vmul.f32 %v12919_v4, %v12919_v4 }
 0x3a5   :  { %v4280_v13 = vadd.f32 %v4279_v40, %v12919_v4  ;;  %v4320_v40 = vmul.f32 %v12915_v0, %v12915_v0 }
 0x3a6   :  { %v12908_v47 = vpop.f32.mrb[104].mxu1  ;;  %v4349_v48 = vadd.f32 %v4348_v54, %v4318_v43 }
 0x3a7   :  { %15925 = vst [vmem:[#allocation81_spill] sm:$0xff] %v12908_v47  ;;  %v9311_v5 = vpop.f32.mrb[105].mxu1  ;;  %v4281_v1 = vadd.f32 %v12904_v9, %v4280_v13  ;;  %v15942_v47 = vld [vmem:[#allocation63_spill] sm:$0xff] }
 0x3a8   :  { %v12917_v36 = vpop.f32.mrb[106].mxu1  ;;  %v15927_v5 = vld [vmem:[#allocation13_spill] sm:$0xff]  ;;  %v4350_v53 = vadd.f32 %v4349_v48, %v4319_v24  ;;  %v12934_v25 = vpop.f32.mrb[108].mxu0 }
 0x3a9   :  { %15926 = vst [vmem:[#allocation82_spill] sm:$0xff] %v12917_v36  ;;  %v9312_v10 = vpop.f32.mrb[107].mxu1  ;;  %v12937_v15 = vpop.f32.mrb[109].mxu0  ;;  %v15941_v36 = vld [vmem:[#allocation48_spill] sm:$0xff] }
 0x3aa   :  { %v4282_v10 = vadd.f32 %v12915_v0, %v4281_v1  ;;  %v4321_v43 = vmul.f32 %v12937_v15, %v12937_v15  ;;  %v4351_v54 = vadd.f32 %v4350_v53, %v4320_v40  ;;  %v4323_v1 = vmul.f32 %v12934_v25, %v12934_v25 }
 0x3ab   :  { %9450 = vmatmul.mubr.msk.bf16.gmra.mrb[92].mxu1 %vm15854_vm14, %v15927_v5  ;;  %v12942_v5 = vpop.f32.mrb[110].mxu0 }
 0x3ac   :  { %9453 = vmatprep.mubr.msk.bf16.mxu1 %vm15762_vm3, %v15647_v23  ;;  %v4283_v13 = vadd.f32 %v4282_v10, %v12937_v15  ;;  %v12944_v19 = vpop.f32.mrb[111].mxu0  ;;  %v4352_v6 = vadd.f32 %v4351_v54, %v4321_v43  ;;  %v4324_v40 = vmul.f32 %v12942_v5, %v12942_v5 }
 0x3ad   :  { %v4322_v24 = vmul.f32 %v12944_v19, %v12944_v19 }
 0x3ae   :  { %v4284_v8 = vadd.f32 %v4283_v13, %v12944_v19 }
 0x3af   :  { %v4353_v10 = vadd.f32 %v4352_v6, %v4322_v24 }
 0x3b0   :  { %v4285_v48 = vadd.f32 %v12934_v25, %v4284_v8  ;;  %v12959_v13 = vpop.f32.mrb[112].mxu0 }
 0x3b1   :  { %v4354_v53 = vadd.f32 %v4353_v10, %v4323_v1  ;;  %v12964_v52 = vpop.f32.mrb[113].mxu0 }
 0x3b2   :  { %v4286_v43 = vadd.f32 %v12942_v5, %v4285_v48  ;;  %v12969_v56 = vpop.f32.mrb[114].mxu0 }
 0x3b3   :  { %9454 = vmatmul.mubr.msk.bf16.gmra.mrb[160].mxu1 %vm12216_vm11, %v15929_v55  ;;  %v4325_v55 = vmul.f32 %v12964_v52, %v12964_v52  ;;  %v4355_v8 = vadd.f32 %v4354_v53, %v4324_v40  ;;  %v12973_v1 = vpop.f32.mrb[115].mxu0  ;;  %v15933_v53 = vld [vmem:[#allocation46_spill] sm:$0xff] }
 0x3b4   :  { %9457 = vmatprep.mubr.msk.bf16.mxu1 %vm15762_vm3, %v15647_v23  ;;  %v4287_v6 = vadd.f32 %v4286_v43, %v12964_v52  ;;  %v4326_v41 = vmul.f32 %v12973_v1, %v12973_v1  ;;  %v4327_v43 = vmul.f32 %v12959_v13, %v12959_v13 }
 0x3b5   :  { %v4356_v10 = vadd.f32 %v4355_v8, %v4325_v55 }
 0x3b6   :  { %v12962_v54 = vpop.f32.mrb[112].mxu1  ;;  %v4288_v48 = vadd.f32 %v4287_v6, %v12973_v1  ;;  %v4328_v6 = vmul.f32 %v12969_v56, %v12969_v56 }
 0x3b7   :  { %15931 = vst [vmem:[#allocation13_spill] sm:$0xff] %v12962_v54  ;;  %v9319_v24 = vpop.f32.mrb[113].mxu1  ;;  %v4357_v40 = vadd.f32 %v4356_v10, %v4326_v41 }
 0x3b8   :  { %v12971_v27 = vpop.f32.mrb[114].mxu1  ;;  %v4289_v32 = vadd.f32 %v12959_v13, %v4288_v48  ;;  %v12988_v8 = vpop.f32.mrb[116].mxu0 }
 0x3b9   :  { %15932 = vst [vmem:[#allocation21_spill] sm:$0xff] %v12971_v27  ;;  %v9320_v26 = vpop.f32.mrb[115].mxu1  ;;  %v4358_v55 = vadd.f32 %v4357_v40, %v4327_v43  ;;  %v12991_v2 = vpop.f32.mrb[117].mxu0 }
 0x3ba   :  { %v4290_v26 = vadd.f32 %v12969_v56, %v4289_v32  ;;  %v4329_v41 = vmul.f32 %v12991_v2, %v12991_v2  ;;  %v4331_v32 = vmul.f32 %v12988_v8, %v12988_v8 }
 0x3bb   :  { %9458 = vmatmul.mubr.msk.bf16.gmra.mrb[100].mxu1 %vm12221_vm6, %v15933_v53  ;;  %v4359_v10 = vadd.f32 %v4358_v55, %v4328_v6  ;;  %v12996_v53 = vpop.f32.mrb[118].mxu0  ;;  %vm15937_vm6 = vnez %v15936_v39 }
 0x3bc   :  { %9461 = vmatprep.mubr.msk.bf16.mxu1 %vm15762_vm3, %v15647_v23  ;;  %v4291_v48 = vadd.f32 %v4290_v26, %v12991_v2  ;;  %v12998_v24 = vpop.f32.mrb[119].mxu0  ;;  %v4332_v6 = vmul.f32 %v12996_v53, %v12996_v53 }
 0x3bd   :  { %v4360_v63 = vadd.f32 %v4359_v10, %v4329_v41  ;;  %v4330_v43 = vmul.f32 %v12998_v24, %v12998_v24 }
 0x3be   :  { %v4292_v7 = vadd.f32 %v4291_v48, %v12998_v24 }
 0x3bf   :  { %v4361_v26 = vadd.f32 %v4360_v63, %v4330_v43 }
 0x3c0   :  { %v4293_v40 = vadd.f32 %v12988_v8, %v4292_v7  ;;  %v13013_v48 = vpop.f32.mrb[120].mxu0 }
 0x3c1   :  { %v4362_v55 = vadd.f32 %v4361_v26, %v4331_v32  ;;  %v13016_v10 = vpop.f32.mrb[121].mxu0 }
 0x3c2   :  { %v4294_v41 = vadd.f32 %v12996_v53, %v4293_v40  ;;  %v4333_v63 = vmul.f32 %v13016_v10, %v13016_v10  ;;  %v4335_v40 = vmul.f32 %v13013_v48, %v13013_v48 }
 0x3c3   :  { %9462 = vmatmul.mubr.msk.bf16.gmra.mrb[164].mxu1 %vm15937_vm6, %v15935_v11  ;;  %v4363_v43 = vadd.f32 %v4362_v55, %v4332_v6  ;;  %v13021_v11 = vpop.f32.mrb[122].mxu0 }
 0x3c4   :  { %9465 = vmatprep.mubr.msk.bf16.mxu1 %vm15762_vm3, %v15647_v23  ;;  %v4295_v7 = vadd.f32 %v4294_v41, %v13016_v10  ;;  %v13023_v39 = vpop.f32.mrb[123].mxu0  ;;  %v4336_v6 = vmul.f32 %v13021_v11, %v13021_v11 }
 0x3c5   :  { %v4364_v35 = vadd.f32 %v4363_v43, %v4333_v63  ;;  %v4334_v32 = vmul.f32 %v13023_v39, %v13023_v39 }
 0x3c6   :  { %v4296_v33 = vadd.f32 %v4295_v7, %v13023_v39 }
 0x3c7   :  { %v4365_v41 = vadd.f32 %v4364_v35, %v4334_v32 }
 0x3c8   :  { %v4297_v26 = vadd.f32 %v13013_v48, %v4296_v33 }
 0x3c9   :  { %v4366_v7 = vadd.f32 %v4365_v41, %v4335_v40 }
 0x3ca   :  { %v4298_v55 = vadd.f32 %v13021_v11, %v4297_v26 }
 0x3cb   :  { %9466 = vmatmul.mubr.msk.bf16.gmra.mrb[108].mxu1 %vm15860_vm9, %v15938_v12  ;;  %v4367_v49 = vadd.f32 %v4366_v7, %v4336_v6  ;;  %vm15943_vm9 = vnez %v15942_v47 }
 0x3cc   :  { %9469 = vmatprep.mubr.msk.bf16.mxu1 %vm15762_vm3, %v15647_v23  ;;  %v4299_v43 = vrot.slane %v4298_v55, 4 }
 0x3cd   :  { %v4368_v45 = vrot.slane %v4367_v49, 4 }
 0x3ce   :  { %v3213_v63 = vpop.f32.mrb[116].mxu1  ;;  %v4300_v32 = vadd.f32 %v4299_v43, %v4298_v55 }
 0x3cf   :  { %v13040_v22 = vadd.f32 %v3213_v63, %v12716_v3  ;;  %v9347_v33 = vpop.f32.mrb[117].mxu1  ;;  %v4369_v54 = vadd.f32 %v4368_v45, %v4367_v49 }
 0x3d0   :  { %v3216_v35 = vpop.f32.mrb[118].mxu1  ;;  %v4301_v27 = vrot.slane %v4300_v32, 2 }
 0x3d1   :  { %v13043_v12 = vadd.f32 %v3216_v35, %v12721_v51  ;;  %v9348_v62 = vpop.f32.mrb[119].mxu1  ;;  %v4370_v3 = vrot.slane %v4369_v54, 2 }
 0x3d2   :  { %v4302_v40 = vadd.f32 %v4301_v27, %v4300_v32 }
 0x3d3   :  { %15940 = vst [vmem:[#allocation46_spill] sm:$0xff] %v13043_v12  ;;  %9470 = vmatmul.mubr.msk.bf16.gmra.mrb[168].mxu1 %vm15943_vm9, %v15941_v36  ;;  %v4371_v41 = vadd.f32 %v4370_v3, %v4369_v54 }
 0x3d4   :  { %9667 = vmatprep.mubr.msk.bf16.mxu1 %vm15762_vm3, %v15647_v23  ;;  %v4303_v26 = vrot.slane %v4302_v40, 1 }
 0x3d5   :  { %v4372_v55 = vrot.slane %v4371_v41, 1 }
 0x3d6   :  { %v4304_v6 = vadd.f32 %v4303_v26, %v4302_v40 }
 0x3d7   :  { %v4373_v7 = vadd.f32 %v4372_v55, %v4371_v41 }
 0x3d8   :  { %v13050_v63 = vmul.f32 0.00390625, %v4304_v6 }
 0x3d9   :  { %v4375_v51 = vmul.f32 0.00390625, %v4373_v7 }
 0x3da   :  { %v4376_v62 = vmul.f32 %v13050_v63, %v13050_v63  ;;  %v4411_v49 = vsub.f32 %v13023_v39, %v13050_v63  ;;  %v4382_v45 = vsub.f32 %v12820_v21, %v13050_v63  ;;  %v4383_v27 = vsub.f32 %v12825_v58, %v13050_v63 }
 0x3db   :  { %v4384_v36 = vsub.f32 %v12818_v60, %v13050_v63  ;;  %v4385_v54 = vsub.f32 %v12822_v42, %v13050_v63  ;;  %v4386_v43 = vsub.f32 %v12849_v59, %v13050_v63  ;;  %v4387_v39 = vsub.f32 %v12859_v30, %v13050_v63 }
 0x3dc   :  { %v4377_v35 = vsub.f32 %v4375_v51, %v4376_v62  ;;  %v4388_v21 = vsub.f32 %v12844_v46, %v13050_v63  ;;  %v4389_v58 = vsub.f32 %v12854_v18, %v13050_v63  ;;  %v4390_v60 = vsub.f32 %v12878_v17, %v13050_v63 }
 0x3dd   :  { %v4391_v42 = vsub.f32 %v12886_v34, %v13050_v63  ;;  %v4392_v59 = vsub.f32 %v12875_v37, %v13050_v63  ;;  %v4393_v40 = vsub.f32 %v12883_v44, %v13050_v63  ;;  %v4394_v46 = vsub.f32 %v12910_v29, %v13050_v63 }
 0x3de   :  { %v3229_v33 = vpop.f32.mrb[120].mxu1  ;;  %v4378_v3 = vmax.f32 %v4377_v35, 0.0  ;;  %v4395_v18 = vsub.f32 %v12919_v4, %v13050_v63  ;;  %v4396_v17 = vsub.f32 %v12904_v9, %v13050_v63  ;;  %v4397_v34 = vsub.f32 %v12915_v0, %v13050_v63 }
 0x3df   :  { %v9355_v32 = vpop.f32.mrb[121].mxu1  ;;  %v4398_v37 = vsub.f32 %v12937_v15, %v13050_v63  ;;  %v4399_v44 = vsub.f32 %v12944_v19, %v13050_v63  ;;  %v4400_v41 = vsub.f32 %v12934_v25, %v13050_v63  ;;  %v4401_v4 = vsub.f32 %v12942_v5, %v13050_v63 }
 0x3e0   :  { %v3232_v30 = vpop.f32.mrb[122].mxu1  ;;  %v4379_v29 = vadd.f32 1e-05, %v4378_v3  ;;  %v4402_v9 = vsub.f32 %v12964_v52, %v13050_v63  ;;  %v4403_v6 = vsub.f32 %v12973_v1, %v13050_v63  ;;  %v4404_v0 = vsub.f32 %v12959_v13, %v13050_v63 }
 0x3e1   :  { %v9356_v26 = vpop.f32.mrb[123].mxu1  ;;  %v4405_v15 = vsub.f32 %v12969_v56, %v13050_v63  ;;  %v4406_v19 = vsub.f32 %v12991_v2, %v13050_v63  ;;  %v4407_v25 = vsub.f32 %v12998_v24, %v13050_v63  ;;  %v4408_v5 = vsub.f32 %v12988_v8, %v13050_v63  ;;  %v4266_v8 = vld [vmem:[%s15351_s3] sm:$0x1] }
 0x3e2   :  { %10796 = vrsqrt.f32 %v4379_v29  ;;  %v4409_v52 = vsub.f32 %v12996_v53, %v13050_v63  ;;  %v4410_v1 = vsub.f32 %v13016_v10, %v13050_v63  ;;  %v4412_v13 = vsub.f32 %v13013_v48, %v13050_v63 }
 0x3e3   :  { %v4413_v56 = vsub.f32 %v13021_v11, %v13050_v63  ;;  %v13119_v2 = vadd.f32 %v3229_v33, %v12740_v20  ;;  %v13122_v24 = vadd.f32 %v3232_v30, %v12743_v14  ;;  %v15948_v63 = vld [vmem:[#allocation10_spill] sm:$0xff]  ;;  %v13137_v14 = vld [vmem:[%s15351_s3 + $0x1] ss:$0 sm:$0xff] }
 0x3e5   :  { %15944 = vst [vmem:[#allocation22_spill] sm:$0xff] %v13119_v2  ;;  %15945 = vst [vmem:[#allocation47_spill] sm:$0xff] %v13122_v24  ;;  %v16010_v24 = vld [vmem:[#allocation81_spill] sm:$0xff] }
 0x3ec   :  { %v10797_v55 = vpop.eup %10796 }
 0x3ed   :  { %v4381_v48 = vmul.f32 %v10797_v55, %v4266_v8 }
 0x3ee   :  { %v3245_v53 = vpop.f32.mrb[124].mxu1 }
 0x3ef   :  { %v13128_v10 = vadd.f32 %v3245_v53, %v12770_v57  ;;  %v9363_v7 = vpop.f32.mrb[125].mxu1  ;;  %v4417_v62 = vrot.slane %v4381_v48, %v15948_v63 }
 0x3f0   :  { %v3248_v51 = vpop.f32.mrb[126].mxu1 }
 0x3f1   :  { %15946 = vst [vmem:[#allocation48_spill] sm:$0xff] %v13128_v10  ;;  %v13131_v11 = vadd.f32 %v3248_v51, %v12773_v16  ;;  %v9364_v20 = vpop.f32.mrb[127].mxu1  ;;  %v4447_v33 = vmul.f32 %v4417_v62, %v4411_v49  ;;  %v4418_v35 = vmul.f32 %v4417_v62, %v4382_v45  ;;  %v4419_v32 = vmul.f32 %v4417_v62, %v4383_v27 }
 0x3f2   :  { %v4420_v30 = vmul.f32 %v4417_v62, %v4384_v36  ;;  %v4421_v57 = vmul.f32 %v4417_v62, %v4385_v54  ;;  %v4422_v3 = vmul.f32 %v4417_v62, %v4386_v43  ;;  %v4423_v26 = vmul.f32 %v4417_v62, %v4387_v39 }
 0x3f3   :  { %15947 = vst [vmem:[#allocation83_spill] sm:$0xff] %v13131_v11  ;;  %v4424_v29 = vmul.f32 %v4417_v62, %v4388_v21  ;;  %v4483_v8 = vadd.f32 %v13137_v14, %v4447_v33  ;;  %v4425_v16 = vmul.f32 %v4417_v62, %v4389_v58  ;;  %v4426_v53 = vmul.f32 %v4417_v62, %v4390_v60 }
 0x3f4   :  { %v4427_v55 = vmul.f32 %v4417_v62, %v4391_v42  ;;  %v4428_v7 = vmul.f32 %v4417_v62, %v4392_v59  ;;  %v4429_v48 = vmul.f32 %v4417_v62, %v4393_v40  ;;  %v4430_v51 = vmul.f32 %v4417_v62, %v4394_v46 }
 0x3f5   :  { %v4431_v20 = vmul.f32 %v4417_v62, %v4395_v18  ;;  %v4432_v47 = vmul.f32 %v4417_v62, %v4396_v17  ;;  %v4433_v63 = vmul.f32 %v4417_v62, %v4397_v34  ;;  %v4434_v11 = vmul.f32 %v4417_v62, %v4398_v37 }
 0x3f6   :  { %v4435_v49 = vmul.f32 %v4417_v62, %v4399_v44  ;;  %v4436_v45 = vmul.f32 %v4417_v62, %v4400_v41  ;;  %v4437_v27 = vmul.f32 %v4417_v62, %v4401_v4  ;;  %v4438_v36 = vmul.f32 %v4417_v62, %v4402_v9 }
 0x3f7   :  { %v13140_v54 = vmax.f32 %v4483_v8, 0.0  ;;  %v4439_v43 = vmul.f32 %v4417_v62, %v4403_v6  ;;  %v4440_v39 = vmul.f32 %v4417_v62, %v4404_v0  ;;  %v4441_v21 = vmul.f32 %v4417_v62, %v4405_v15 }
 0x3f8   :  { %v4442_v33 = vmul.f32 %v4417_v62, %v4406_v19  ;;  %v4443_v58 = vmul.f32 %v4417_v62, %v4407_v25  ;;  %v4444_v60 = vmul.f32 %v4417_v62, %v4408_v5  ;;  %v4445_v42 = vmul.f32 %v4417_v62, %v4409_v52 }
 0x3f9   :  { %v4446_v59 = vmul.f32 %v4417_v62, %v4410_v1  ;;  %v4448_v40 = vmul.f32 %v4417_v62, %v4412_v13  ;;  %v4449_v46 = vmul.f32 %v4417_v62, %v4413_v56  ;;  %v4454_v37 = vadd.f32 %v13137_v14, %v4418_v35 }
 0x3fa   :  { %v4455_v41 = vadd.f32 %v13137_v14, %v4419_v32  ;;  %v4456_v4 = vadd.f32 %v13137_v14, %v4420_v30  ;;  %v4457_v9 = vadd.f32 %v13137_v14, %v4421_v57  ;;  %v4458_v6 = vadd.f32 %v13137_v14, %v4422_v3 }
 0x3fb   :  { %v4459_v15 = vadd.f32 %v13137_v14, %v4423_v26  ;;  %v4460_v19 = vadd.f32 %v13137_v14, %v4424_v29  ;;  %v4461_v25 = vadd.f32 %v13137_v14, %v4425_v16  ;;  %v4462_v5 = vadd.f32 %v13137_v14, %v4426_v53 }
 0x3fc   :  { %v4463_v1 = vadd.f32 %v13137_v14, %v4427_v55  ;;  %v4464_v13 = vadd.f32 %v13137_v14, %v4428_v7  ;;  %v4465_v56 = vadd.f32 %v13137_v14, %v4429_v48  ;;  %v4466_v62 = vadd.f32 %v13137_v14, %v4430_v51 }
 0x3fd   :  { %v4467_v35 = vadd.f32 %v13137_v14, %v4431_v20  ;;  %v4468_v32 = vadd.f32 %v13137_v14, %v4432_v47  ;;  %v4469_v30 = vadd.f32 %v13137_v14, %v4433_v63  ;;  %v4470_v57 = vadd.f32 %v13137_v14, %v4434_v11 }
 0x3fe   :  { %v13142_v18 = vpop.f32.mrb[128].mxu1  ;;  %v4471_v3 = vadd.f32 %v13137_v14, %v4435_v49  ;;  %v4472_v26 = vadd.f32 %v13137_v14, %v4436_v45  ;;  %v4473_v29 = vadd.f32 %v13137_v14, %v4437_v27  ;;  %v4474_v8 = vadd.f32 %v13137_v14, %v4438_v36 }
 0x3ff   :  { %v9371_v44 = vpop.f32.mrb[129].mxu1  ;;  %v4475_v16 = vadd.f32 %v13137_v14, %v4439_v43  ;;  %v4476_v53 = vadd.f32 %v13137_v14, %v4440_v39  ;;  %v4477_v55 = vadd.f32 %v13137_v14, %v4441_v21  ;;  %v4478_v47 = vadd.f32 %v13137_v14, %v4442_v33 }
 0x400   :  { %v13151_v0 = vpop.f32.mrb[130].mxu1  ;;  %v4479_v63 = vadd.f32 %v13137_v14, %v4443_v58  ;;  %v4480_v11 = vadd.f32 %v13137_v14, %v4444_v60  ;;  %v4481_v7 = vadd.f32 %v13137_v14, %v4445_v42  ;;  %v4482_v48 = vadd.f32 %v13137_v14, %v4446_v59 }
 0x401   :  { %v9372_v52 = vpop.f32.mrb[131].mxu1  ;;  %v4484_v51 = vadd.f32 %v13137_v14, %v4448_v40  ;;  %v4485_v20 = vadd.f32 %v13137_v14, %v4449_v46  ;;  %v13179_v49 = vmax.f32 %v4454_v37, 0.0  ;;  %v13181_v45 = vmax.f32 %v4455_v41, 0.0 }
 0x402   :  { %v13183_v27 = vmax.f32 %v4456_v4, 0.0  ;;  %v13185_v36 = vmax.f32 %v4457_v9, 0.0  ;;  %v13187_v43 = vmax.f32 %v4458_v6, 0.0  ;;  %v13189_v39 = vmax.f32 %v4459_v15, 0.0 }
 0x403   :  { %v13191_v21 = vmax.f32 %v4460_v19, 0.0  ;;  %v13193_v33 = vmax.f32 %v4461_v25, 0.0  ;;  %v13195_v58 = vmax.f32 %v4462_v5, 0.0  ;;  %v13197_v60 = vmax.f32 %v4463_v1, 0.0 }
 0x404   :  { %v13199_v14 = vmax.f32 %v4464_v13, 0.0  ;;  %v13201_v42 = vmax.f32 %v4465_v56, 0.0  ;;  %v13203_v59 = vmax.f32 %v4466_v62, 0.0  ;;  %v13205_v40 = vmax.f32 %v4467_v35, 0.0 }
 0x405   :  { %v13207_v46 = vmax.f32 %v4468_v32, 0.0  ;;  %v13209_v37 = vmax.f32 %v4469_v30, 0.0  ;;  %v13211_v44 = vmax.f32 %v4470_v57, 0.0  ;;  %v13213_v41 = vmax.f32 %v4471_v3, 0.0 }
 0x406   :  { %v13215_v4 = vmax.f32 %v4472_v26, 0.0  ;;  %v13217_v9 = vmax.f32 %v4473_v29, 0.0  ;;  %v13219_v6 = vmax.f32 %v4474_v8, 0.0  ;;  %v13221_v15 = vmax.f32 %v4475_v16, 0.0 }
 0x407   :  { %v13223_v19 = vmax.f32 %v4476_v53, 0.0  ;;  %v13225_v25 = vmax.f32 %v4477_v55, 0.0  ;;  %v13227_v5 = vmax.f32 %v4478_v47, 0.0  ;;  %v13229_v52 = vmax.f32 %v4479_v63, 0.0 }
 0x408   :  { %v13231_v1 = vmax.f32 %v4480_v11, 0.0  ;;  %v13233_v13 = vmax.f32 %v4481_v7, 0.0  ;;  %v13235_v56 = vmax.f32 %v4482_v48, 0.0  ;;  %v13237_v62 = vmax.f32 %v4484_v51, 0.0  ;;  %v15949_v7 = vld [vmem:[#allocation9_spill] sm:$0xff] }
 0x409   :  { %v13241_v32 = vmax.f32 %v4485_v20, 0.0  ;;  %v4534_v30 = vrot.slane %v13179_v49, 7  ;;  %v4535_v57 = vrot.slane %v13181_v45, 7  ;;  %v4536_v3 = vrot.slane %v13183_v27, 7 }
 0x40a   :  { %v4537_v29 = vrot.slane %v13185_v36, 7  ;;  %v4538_v8 = vrot.slane %v13187_v43, 7  ;;  %vm15950_vm9 = vcmp.lt.s32.totalorder %v15949_v7, 1  ;;  %v4649_v47 = vrot.slane %v13185_v36, 1 }
 0x40b   :  { %vm15951_vm6 = vmmov %vm15950_vm9  ;;  %v15952_v34 = vrot.slane %v13187_v43, 1  ;;  %v15954_v10 = vrot.slane %v13183_v27, 1  ;;  %v13314_v11 = vadd.f32 %v13142_v18, %v12800_v28  ;;  %vm15957_vm11 = vcmp.lt.s32.totalorder %v15949_v7, 1 }
 0x40c   :  { %v4594_v51 = vsel %vm15950_vm9, %v4536_v3, %v4537_v29  ;;  %v4595_v20 = vsel %vm15951_vm6, %v4535_v57, %v4536_v3  ;;  %vm15953_vm6 = vcmp.lt.s32.totalorder %v15949_v7, 7  ;;  %v15958_v3 = vrot.slane %v13241_v32, 7  ;;  %vm15959_vm14 = vmmov %vm15957_vm11 }
 0x40d   :  { %v13304_v17 = vsel %vm15953_vm6, %v4649_v47, %v15952_v34  ;;  %vm15955_vm9 = vmmov %vm15953_vm6  ;;  %15956 = vst [vmem:[#allocation9_spill] sm:$0xff] %v13314_v11  ;;  %v13324_v34 = vadd.f32 %v13151_v0, %v12807_v38  ;;  %v13326_v53 = vpack.c.bf16 %v4594_v51, %v4595_v20  ;;  %v10739_v11 = vld [vmem:[#allocation3 + $0x108] sm:$0xff]   ;;  %v15967_v38 = vrot.slane %v13191_v21, 7 }
 0x40e   :  { %v13239_v35 = vpop.f32.mrb[132].mxu1  ;;  %v13310_v63 = vsel %vm15955_vm9, %v15954_v10, %v4649_v47  ;;  %v4597_v16 = vsel %vm15959_vm14, %v15958_v3, %v4534_v30  ;;  %v15962_v10 = vrot.slane %v13189_v39, 7  ;;  %vm15963_vm6 = vmmov %vm15957_vm11 }
 0x40f   :  { %v9379_v26 = vpop.f32.mrb[133].mxu1  ;;  %15960 = vst [vmem:[#allocation84_spill] sm:$0xff] %v13324_v34  ;;  %15961 = vst [vmem:[#allocation85_spill] sm:$0xff] %v13326_v53  ;;  %v16003_v34 = vrot.slane %v13205_v40, 7 }
 0x410   :  { %v13250_v55 = vpop.f32.mrb[134].mxu1  ;;  %v4596_v26 = vsel %vm15957_vm11, %v4534_v30, %v4535_v57  ;;  %v4592_v28 = vsel %vm15963_vm6, %v4538_v8, %v15962_v10  ;;  %vm15964_vm9 = vmmov %vm15963_vm6  ;;  %v15966_v30 = vrot.slane %v13193_v33, 7  ;;  %v15970_v51 = vmov %v15962_v10  ;;  %v10740_v10 = vld [vmem:[#allocation3 + $0x110] sm:$0xff]  }
 0x411   :  { %v9380_v48 = vpop.f32.mrb[135].mxu1  ;;  %v4593_v18 = vsel %vm15964_vm9, %v4537_v29, %v4538_v8  ;;  %vm15968_vm11 = vmmov %vm15963_vm6  ;;  %v15972_v29 = vrot.slane %v13197_v60, 7  ;;  %v15973_v8 = vrot.slane %v13195_v58, 7 }
 0x412   :  { %v7922_v48 = vpack.c.bf16 %v4596_v26, %v4597_v16  ;;  %v13334_v47 = vpack.c.bf16 %v4592_v28, %v4593_v18  ;;  %v4590_v0 = vsel %vm15968_vm11, %v15967_v38, %v15966_v30  ;;  %v15969_v16 = vmov %v15967_v38  ;;  %vm15971_vm14 = vmmov %vm15963_vm6  ;;  %v15974_v28 = vld [vmem:[#allocation15_spill] sm:$0xff] }
 0x413   :  { %v4591_v20 = vsel %vm15971_vm14, %v15970_v51, %v15969_v16  ;;  %v4588_v26 = vsel %vm15963_vm6, %v15973_v8, %v15972_v29  ;;  %vm15975_vm9 = vnez %v15974_v28  ;;  %v15977_v30 = vmov %v15973_v8  ;;  %vm15979_vm11 = vmmov %vm15963_vm6  ;;  %v10750_v8 = vld [vmem:[#allocation3 + $0x40] sm:$0xff]   ;;  %v15981_v28 = vld [vmem:[#allocation16_spill] sm:$0xff] }
 0x414   :  { %15965 = vst [vmem:[#allocation86_spill] sm:$0xff] %v13334_v47  ;;  %9523 = vmatprep.mubr.msk.bf16.mxu0 %vm15975_vm9, %v7922_v48  ;;  %9668 = vmatmul.mubr.msk.bf16.vlgmr.msra.gmra.mrb[172].mxu1 %vm15975_vm9, %v7922_v48  ;;  %v13359_v18 = vpack.c.bf16 %v4590_v0, %v4591_v20  ;;  %v15978_v38 = vrot.slane %v13193_v33, 7  ;;  %v13369_v51 = vadd.f32 %v13239_v35, %v12847_v31  ;;  %vm15982_vm14 = vnez %v15981_v28  ;;  %vm15996_vm8 = vmmov %vm15963_vm6  ;;  %v10742_v28 = vld [vmem:[#allocation3 + $0x120] sm:$0xff]  }
 0x415   :  { %9524 = vmatmul.mubr.msk.bf16.vlgmr.msra.gmra.mrb[124].mxu0 %vm15982_vm14, %v13326_v53  ;;  %9671 = vmatprep.mubr.msk.bf16.mxu1 %vm15762_vm3, %v15647_v23  ;;  %v13381_v0 = vadd.f32 %v13250_v55, %v12857_v50  ;;  %v15985_v31 = vrot.slane %v13201_v42, 7  ;;  %v15986_v35 = vrot.slane %v13199_v14, 7  ;;  %v15990_v50 = vrot.slane %v13197_v60, 7 }
 0x416   :  { %15976 = vst [vmem:[#allocation15_spill] sm:$0xff] %v13359_v18  ;;  %v4589_v16 = vsel %vm15979_vm11, %v15978_v38, %v15977_v30  ;;  %15980 = vst [vmem:[#allocation87_spill] sm:$0xff] %v13369_v51  ;;  %9556 = vmatpush3.bf16.msra.mxu0 %v12888_v61  ;;  %9728 = vmatpush3.bf16.msra.mxu1 %v10750_v8  ;;  %v16022_v8 = vrot.slane %v13219_v6, 7 }
 0x417   :  { %v13377_v48 = vpack.c.bf16 %v4588_v26, %v4589_v16  ;;  %15984 = vst [vmem:[#allocation89_spill] sm:$0xff] %v13381_v0  ;;  %v4586_v20 = vsel %vm15963_vm6, %v15986_v35, %v15985_v31  ;;  %v15989_v26 = vmov %v15986_v35  ;;  %vm15991_vm11 = vmmov %vm15963_vm6  ;;  %v15992_v16 = vrot.slane %v13205_v40, 7  ;;  %9557 = vmatprep.subr.bf16.mxu0 %v10739_v11  ;;  %9729 = vmatprep.subr.bf16.mxu1 %v15647_v23 }
 0x418   :  { %v4587_v55 = vsel %vm15991_vm11, %v15990_v50, %v15989_v26  ;;  %v15993_v31 = vrot.slane %v13203_v59, 7  ;;  %v15999_v26 = vrot.slane %v13209_v37, 7  ;;  %v16000_v50 = vrot.slane %v13207_v46, 7  ;;  %vm16001_vm11 = vmmov %vm15963_vm6 }
 0x419   :  { %15983 = vst [vmem:[#allocation88_spill] sm:$0xff] %v13377_v48  ;;  %v13412_v0 = vpack.c.bf16 %v4586_v20, %v4587_v55  ;;  %v16005_v20 = vrot.slane %v13213_v41, 7 }
 0x41a   :  { %v4584_v35 = vsel %vm15963_vm6, %v15993_v31, %v15992_v16  ;;  %v15994_v61 = vmov %v15993_v31  ;;  %v4582_v16 = vsel %vm16001_vm11, %v16000_v50, %v15999_v26  ;;  %v16002_v31 = vmov %v16000_v50  ;;  %vm16009_vm11 = vmmov %vm15963_vm6  ;;  %9558 = vmatpush3.bf16.msra.mxu0 %v10739_v11 }
 0x41b   :  { %15997 = vst [vmem:[#allocation90_spill] sm:$0xff] %v13412_v0  ;;  %v16027_v11 = vrot.slane %v13223_v19, 7  ;;  %9559 = vmatprep.subr.bf16.mxu0 %v10740_v10 }
 0x41c   :  { %9672 = vmatmul.mubr.msk.bf16.gmra.mrb[176].mxu1 %vm15982_vm14, %v13326_v53  ;;  %v16053_v53 = vld [vmem:[#allocation25_spill] sm:$0xff] }
 0x41d   :  { %9675 = vmatprep.mubr.msk.bf16.mxu1 %vm15762_vm3, %v15647_v23  ;;  %vm16054_vm14 = vnez %v16053_v53 }
 0x41e   :  { %v3293_v57 = vpop.f32.mrb[136].mxu1  ;;  %9560 = vmatpush3.bf16.msra.mxu0 %v10740_v10  ;;  %v13564_v10 = vpack.c.bf16 %v13181_v45, %v13179_v49 }
 0x41f   :  { %v9387_v3 = vpop.f32.mrb[137].mxu1  ;;  %v13443_v2 = vadd.f32 %v3293_v57, %v16010_v24 }
 0x420   :  { %v3296_v29 = vpop.f32.mrb[138].mxu1  ;;  %v15987_v3 = vld [vmem:[#allocation18_spill] sm:$0xff]  ;;  %16062 = vst [vmem:[#allocation101_spill] sm:$0xff] %v13564_v10  ;;  %v16083_v10 = vrot.slane %v13179_v49, 1 }
 0x421   :  { %v9388_v30 = vpop.f32.mrb[139].mxu1  ;;  %vm15988_vm9 = vnez %v15987_v3  ;;  %16011 = vst [vmem:[#allocation81_spill] sm:$0xff] %v13443_v2  ;;  %v16044_v2 = vrot.slane %v13229_v52, 7 }
 0x422   :  { %9527 = vmatprep.mubr.msk.bf16.mxu0 %vm15988_vm9, %v13334_v47  ;;  %v15995_v30 = vrot.slane %v13201_v42, 7 }
 0x424   :  { %v4585_v38 = vsel %vm15996_vm8, %v15995_v30, %v15994_v61  ;;  %v4583_v61 = vsel %vm15963_vm6, %v16003_v34, %v16002_v31  ;;  %vm16007_vm8 = vmmov %vm15963_vm6  ;;  %9676 = vmatmul.mubr.msk.bf16.gmra.mrb[180].mxu1 %vm15988_vm9, %v13334_v47 }
 0x425   :  { %v13414_v51 = vpack.c.bf16 %v4584_v35, %v4585_v38  ;;  %v13428_v30 = vpack.c.bf16 %v4582_v16, %v4583_v61  ;;  %v16006_v38 = vrot.slane %v13211_v44, 7  ;;  %v16013_v16 = vld [vmem:[#allocation82_spill] sm:$0xff]  ;;  %v16015_v61 = vrot.slane %v13217_v9, 7  ;;  %9679 = vmatprep.mubr.msk.bf16.mxu1 %vm15762_vm3, %v15647_v23 }
 0x426   :  { %v13448_v31 = vadd.f32 %v3296_v29, %v16013_v16  ;;  %v16021_v29 = vrot.slane %v13221_v15, 7 }
 0x427   :  { %15998 = vst [vmem:[#allocation91_spill] sm:$0xff] %v13414_v51  ;;  %16004 = vst [vmem:[#allocation92_spill] sm:$0xff] %v13428_v30  ;;  %v4580_v55 = vsel %vm16007_vm8, %v16006_v38, %v16005_v20  ;;  %v16008_v35 = vmov %v16006_v38  ;;  %v16016_v20 = vrot.slane %v13215_v4, 7 }
 0x428   :  { %v4581_v50 = vsel %vm16009_vm11, %v15999_v26, %v16008_v35  ;;  %16014 = vst [vmem:[#allocation82_spill] sm:$0xff] %v13448_v31  ;;  %v16018_v35 = vrot.slane %v13213_v41, 7  ;;  %vm16019_vm8 = vmmov %vm15963_vm6  ;;  %v16024_v26 = vmov %v16022_v8  ;;  %v16041_v31 = vrot.slane %v13231_v1, 7 }
 0x429   :  { %v13445_v34 = vpack.c.bf16 %v4580_v55, %v4581_v50  ;;  %v4578_v38 = vsel %vm15963_vm6, %v16016_v20, %v16015_v61  ;;  %v16017_v12 = vmov %v16016_v20  ;;  %vm16023_vm11 = vmmov %vm15963_vm6  ;;  %v16025_v50 = vmov %v16015_v61  ;;  %v10741_v20 = vld [vmem:[#allocation3 + $0x118] sm:$0xff]  }
 0x42a   :  { %v4579_v24 = vsel %vm16019_vm8, %v16018_v35, %v16017_v12  ;;  %v4576_v55 = vsel %vm16023_vm11, %v16022_v8, %v16021_v29  ;;  %v4577_v16 = vsel %vm15963_vm6, %v16025_v50, %v16024_v26  ;;  %v16026_v12 = vrot.slane %v13225_v25, 7  ;;  %vm16028_vm8 = vmmov %vm15963_vm6  ;;  %9561 = vmatprep.subr.bf16.mxu0 %v10741_v20 }
 0x42b   :  { %16012 = vst [vmem:[#allocation93_spill] sm:$0xff] %v13445_v34  ;;  %v13463_v57 = vpack.c.bf16 %v4578_v38, %v4579_v24  ;;  %v13483_v38 = vpack.c.bf16 %v4576_v55, %v4577_v16  ;;  %v16030_v35 = vmov %v16027_v11  ;;  %v16031_v24 = vmov %v16021_v29  ;;  %vm16032_vm11 = vmmov %vm15963_vm6  ;;  %9562 = vmatpush3.bf16.msra.mxu0 %v10741_v20  ;;  %v16077_v20 = vld [vmem:[#allocation13_spill] sm:$0xff] }
 0x42c   :  { %v4574_v61 = vsel %vm16028_vm8, %v16027_v11, %v16026_v12  ;;  %v4575_v29 = vsel %vm16032_vm11, %v16031_v24, %v16030_v35  ;;  %v16033_v8 = vrot.slane %v13229_v52, 7  ;;  %v16034_v26 = vrot.slane %v13227_v5, 7  ;;  %vm16037_vm8 = vmmov %vm15963_vm6  ;;  %9563 = vmatprep.subr.bf16.mxu0 %v10742_v28 }
 0x42d   :  { %16020 = vst [vmem:[#allocation94_spill] sm:$0xff] %v13463_v57  ;;  %16029 = vst [vmem:[#allocation95_spill] sm:$0xff] %v13483_v38  ;;  %v16036_v11 = vrot.slane %v13225_v25, 7  ;;  %v13506_v16 = vpack.c.bf16 %v4574_v61, %v4575_v29  ;;  %v16040_v24 = vrot.slane %v13233_v13, 7  ;;  %v16045_v29 = vld [vmem:[#allocation23_spill] sm:$0xff] }
 0x42e   :  { %v4572_v50 = vsel %vm15963_vm6, %v16034_v26, %v16033_v8  ;;  %v16035_v12 = vmov %v16034_v26  ;;  %vm16042_vm11 = vmmov %vm15963_vm6  ;;  %v16043_v26 = vmov %v16041_v31 }
 0x42f   :  { %v4573_v55 = vsel %vm16037_vm8, %v16036_v11, %v16035_v12  ;;  %16038 = vst [vmem:[#allocation96_spill] sm:$0xff] %v13506_v16  ;;  %v4570_v8 = vsel %vm16042_vm11, %v16041_v31, %v16040_v24  ;;  %v4571_v12 = vsel %vm15963_vm6, %v16044_v2, %v16043_v26  ;;  %v10751_v11 = vld [vmem:[#allocation3 + $0x48] sm:$0xff]   ;;  %vm16046_vm8 = vnez %v16045_v29  ;;  %vm16050_vm11 = vmmov %vm15963_vm6 }
 0x430   :  { %v13508_v35 = vpack.c.bf16 %v4572_v50, %v4573_v55  ;;  %9528 = vmatmul.mubr.msk.bf16.gmra.mrb[128].mxu0 %vm16046_vm8, %v13359_v18  ;;  %v13528_v50 = vpack.c.bf16 %v4570_v8, %v4571_v12  ;;  %v16048_v31 = vrot.slane %v13140_v54, 7  ;;  %v16049_v55 = vrot.slane %v13235_v56, 7  ;;  %9730 = vmatpush3.bf16.msra.mxu1 %v10751_v11  ;;  %v3309_v11 = vpop.f32.mrb[140].mxu1 }
 0x431   :  { %v16052_v26 = vrot.slane %v13233_v13, 7  ;;  %9531 = vmatprep.mubr.msk.bf16.mxu0 %vm16054_vm14, %v13377_v48  ;;  %v16056_v12 = vrot.slane %v13241_v32, 7  ;;  %9731 = vmatprep.subr.bf16.mxu1 %v15647_v23 }
 0x432   :  { %16039 = vst [vmem:[#allocation97_spill] sm:$0xff] %v13508_v35  ;;  %16047 = vst [vmem:[#allocation98_spill] sm:$0xff] %v13528_v50  ;;  %v4568_v24 = vsel %vm16050_vm11, %v16049_v55, %v16048_v31  ;;  %v16051_v2 = vmov %v16049_v55  ;;  %v16057_v31 = vrot.slane %v13237_v62, 7  ;;  %9564 = vmatpush3.bf16.msra.mxu0 %v10742_v28  ;;  %9680 = vmatmul.mubr.msk.bf16.gmra.mrb[184].mxu1 %vm16046_vm8, %v13359_v18 }
 0x433   :  { %v4569_v61 = vsel %vm15963_vm6, %v16052_v26, %v16051_v2  ;;  %vm16058_vm11 = vmmov %vm15963_vm6  ;;  %v16060_v2 = vrot.slane %v13140_v54, 7  ;;  %9683 = vmatprep.mubr.msk.bf16.mxu1 %vm15762_vm3, %v15647_v23 }
 0x434   :  { %v13546_v8 = vpack.c.bf16 %v4568_v24, %v4569_v61  ;;  %v4566_v55 = vsel %vm16058_vm11, %v16057_v31, %v16056_v12  ;;  %v16059_v50 = vmov %v16057_v31  ;;  %v13568_v61 = vpack.c.bf16 %v13185_v36, %v13183_v27 }
 0x435   :  { %v4567_v26 = vsel %vm15963_vm6, %v16060_v2, %v16059_v50  ;;  %v13572_v24 = vpack.c.bf16 %v13189_v39, %v13187_v43  ;;  %v13576_v12 = vpack.c.bf16 %v13193_v33, %v13191_v21  ;;  %v13580_v50 = vpack.c.bf16 %v13197_v60, %v13195_v58 }
 0x436   :  { %16055 = vst [vmem:[#allocation99_spill] sm:$0xff] %v13546_v8  ;;  %v13560_v35 = vpack.c.bf16 %v4566_v55, %v4567_v26  ;;  %16063 = vst [vmem:[#allocation102_spill] sm:$0xff] %v13568_v61  ;;  %v13584_v31 = vpack.c.bf16 %v13201_v42, %v13199_v14  ;;  %v13588_v36 = vpack.c.bf16 %v13205_v40, %v13203_v59  ;;  %v16080_v61 = vrot.slane %v13181_v45, 1 }
 0x437   :  { %16064 = vst [vmem:[#allocation103_spill] sm:$0xff] %v13572_v24  ;;  %16065 = vst [vmem:[#allocation104_spill] sm:$0xff] %v13576_v12  ;;  %v13592_v55 = vpack.c.bf16 %v13209_v37, %v13207_v46  ;;  %v13596_v2 = vpack.c.bf16 %v13213_v41, %v13211_v44  ;;  %v13601_v26 = vpack.c.bf16 %v13217_v9, %v13215_v4  ;;  %v9395_v12 = vpop.f32.mrb[141].mxu1  ;;  %v10753_v24 = vld [vmem:[#allocation3 + $0x50] sm:$0xff]   ;;  %vm16081_vm11 = vcmp.lt.s32.totalorder %v15949_v7, 7  ;;  %v16176_v7 = vld [vmem:[#allocation26_spill] sm:$0xff] }
 0x438   :  { %16061 = vst [vmem:[#allocation100_spill] sm:$0xff] %v13560_v35  ;;  %16066 = vst [vmem:[#allocation105_spill] sm:$0xff] %v13580_v50  ;;  %v13624_v50 = vadd.f32 %v3309_v11, %v16077_v20  ;;  %v3312_v12 = vpop.f32.mrb[142].mxu1  ;;  %v16086_v45 = vrot.slane %v13189_v39, 1  ;;  %v16095_v39 = vrot.slane %v13193_v33, 1  ;;  %v4673_v33 = vrot.slane %v13233_v13, 1  ;;  %9732 = vmatpush3.bf16.msra.mxu1 %v10753_v24 }
 0x439   :  { %16067 = vst [vmem:[#allocation106_spill] sm:$0xff] %v13584_v31  ;;  %16068 = vst [vmem:[#allocation107_spill] sm:$0xff] %v13588_v36  ;;  %v13605_v31 = vpack.c.bf16 %v13221_v15, %v13219_v6  ;;  %v13609_v36 = vpack.c.bf16 %v13225_v25, %v13223_v19  ;;  %9733 = vmatprep.subr.bf16.mxu1 %v15647_v23 }
 0x43a   :  { %16069 = vst [vmem:[#allocation108_spill] sm:$0xff] %v13592_v55  ;;  %16070 = vst [vmem:[#allocation109_spill] sm:$0xff] %v13596_v2  ;;  %v13613_v55 = vpack.c.bf16 %v13229_v52, %v13227_v5  ;;  %v13617_v2 = vpack.c.bf16 %v13233_v13, %v13231_v1  ;;  %v16113_v13 = vrot.slane %v13199_v14, 1  ;;  %9684 = vmatmul.mubr.msk.bf16.gmra.mrb[188].mxu1 %vm16054_vm14, %v13377_v48 }
 0x43b   :  { %16071 = vst [vmem:[#allocation110_spill] sm:$0xff] %v13601_v26  ;;  %16072 = vst [vmem:[#allocation111_spill] sm:$0xff] %v13605_v31  ;;  %v13621_v26 = vpack.c.bf16 %v13140_v54, %v13235_v56  ;;  %v10743_v31 = vld [vmem:[#allocation3 + $0x128] sm:$0xff]   ;;  %9687 = vmatprep.mubr.msk.bf16.mxu1 %vm15762_vm3, %v15647_v23 }
 0x43c   :  { %16073 = vst [vmem:[#allocation112_spill] sm:$0xff] %v13609_v36  ;;  %16074 = vst [vmem:[#allocation113_spill] sm:$0xff] %v13613_v55  ;;  %v13628_v36 = vpack.c.bf16 %v13241_v32, %v13237_v62  ;;  %v16079_v55 = vrot.slane %v13183_v27, 1  ;;  %v13649_v27 = vpack.c.bf16 %v13304_v17, %v13310_v63  ;;  %v16092_v17 = vld [vmem:[#allocation21_spill] sm:$0xff]  ;;  %9565 = vmatprep.subr.bf16.mxu0 %v10743_v31 }
 0x43d   :  { %16075 = vst [vmem:[#allocation114_spill] sm:$0xff] %v13617_v2  ;;  %16076 = vst [vmem:[#allocation115_spill] sm:$0xff] %v13621_v26  ;;  %v16082_v26 = vmov %v16080_v61  ;;  %v13670_v63 = vadd.f32 %v3312_v12, %v16092_v17  ;;  %v16099_v12 = vmov %v16095_v39  ;;  %v16100_v17 = vrot.slane %v13191_v21, 1  ;;  %9566 = vmatpush3.bf16.msra.mxu0 %v10743_v31 }
 0x43e   :  { %16078 = vst [vmem:[#allocation13_spill] sm:$0xff] %v13628_v36  ;;  %v4707_v2 = vsel %vm16081_vm11, %v16080_v61, %v16079_v55  ;;  %vm16084_vm6 = vmmov %vm16081_vm11  ;;  %v16085_v61 = vrot.slane %v13191_v21, 1  ;;  %v10744_v21 = vld [vmem:[#allocation3 + $0x130] sm:$0xff]  }
 0x43f   :  { %v4708_v11 = vsel %vm16084_vm6, %v16083_v10, %v16082_v26  ;;  %vm16087_vm11 = vmmov %vm16084_vm6  ;;  %v16088_v10 = vmov %v16086_v45  ;;  %v16089_v26 = vrot.slane %v13187_v43, 1  ;;  %16093 = vst [vmem:[#allocation21_spill] sm:$0xff] %v13670_v63  ;;  %v16094_v43 = vrot.slane %v13195_v58, 1  ;;  %9567 = vmatprep.subr.bf16.mxu0 %v10744_v21 }
 0x440   :  { %v13645_v20 = vpack.c.bf16 %v4707_v2, %v4708_v11  ;;  %v4703_v55 = vsel %vm16087_vm11, %v16086_v45, %v16085_v61  ;;  %v16090_v11 = vld [vmem:[#allocation41_spill] sm:$0xff]  ;;  %v9396_v61 = vpop.f32.mrb[143].mxu1  ;;  %vm16096_vm11 = vmmov %vm16084_vm6  ;;  %v16097_v2 = vld [vmem:[#allocation43_spill] sm:$0xff]  ;;  %v16110_v63 = vrot.slane %v13203_v59, 1 }
 0x441   :  { %v4704_v3 = vsel %vm16084_vm6, %v16089_v26, %v16088_v10  ;;  %vm16091_vm9 = vnez %v16090_v11  ;;  %v4701_v10 = vsel %vm16096_vm11, %v16095_v39, %v16094_v43  ;;  %vm16098_vm6 = vnez %v16097_v2  ;;  %vm16101_vm0 = vmmov %vm16096_vm11  ;;  %9568 = vmatpush3.bf16.msra.mxu0 %v10744_v21 }
 0x442   :  { %9532 = vmatmul.mubr.msk.bf16.gmra.mrb[132].mxu0 %vm16091_vm9, %v13412_v0  ;;  %v13672_v45 = vpack.c.bf16 %v4703_v55, %v4704_v3  ;;  %v4702_v3 = vsel %vm16101_vm0, %v16100_v17, %v16099_v12  ;;  %v16102_v55 = vrot.slane %v13199_v14, 1  ;;  %v16103_v61 = vrot.slane %v13197_v60, 1  ;;  %vm16104_vm11 = vmmov %vm16101_vm0  ;;  %v10754_v12 = vld [vmem:[#allocation3 + $0x58] sm:$0xff]   ;;  %9688 = vmatmul.mubr.msk.bf16.gmra.mrb[192].mxu1 %vm16091_vm9, %v13412_v0  ;;  %v16195_v0 = vld [vmem:[#allocation33_spill] sm:$0xff] }
 0x443   :  { %9535 = vmatprep.mubr.msk.bf16.mxu0 %vm16098_vm6, %v13414_v51  ;;  %v16106_v26 = vrot.slane %v13195_v58, 1  ;;  %vm16107_vm4 = vmmov %vm16101_vm0  ;;  %v13703_v17 = vpack.c.bf16 %v4701_v10, %v4702_v3  ;;  %v16115_v10 = vrot.slane %v13207_v46, 1  ;;  %v16120_v14 = vrot.slane %v13209_v37, 1  ;;  %9734 = vmatpush3.bf16.msra.mxu1 %v10754_v12 }
 0x444   :  { %v4699_v43 = vsel %vm16104_vm11, %v16103_v61, %v16102_v55  ;;  %v16105_v39 = vmov %v16103_v61  ;;  %v16111_v55 = vrot.slane %v13201_v42, 1  ;;  %vm16117_vm11 = vmmov %vm16101_vm0  ;;  %v16119_v42 = vrot.slane %v13211_v44, 1  ;;  %v16136_v44 = vld [vmem:[#allocation17_spill] sm:$0xff]  ;;  %9735 = vmatprep.subr.bf16.mxu1 %v15647_v23  ;;  %9691 = vmatprep.mubr.msk.bf16.mxu1 %vm15762_vm3, %v15647_v23 }
 0x445   :  { %v4700_v28 = vsel %vm16107_vm4, %v16106_v26, %v16105_v39  ;;  %16108 = vst [vmem:[#allocation116_spill] sm:$0xff] %v13703_v17  ;;  %vm16114_vm4 = vmmov %vm16101_vm0  ;;  %v16116_v26 = vrot.slane %v13205_v40, 1  ;;  %v16124_v40 = vmov %v16115_v10 }
 0x446   :  { %v13705_v47 = vpack.c.bf16 %v4699_v43, %v4700_v28  ;;  %v4697_v58 = vsel %vm16101_vm0, %v16111_v55, %v16110_v63  ;;  %v16112_v60 = vmov %v16111_v55  ;;  %v16129_v37 = vmov %v16119_v42  ;;  %vm16158_vm7 = vmmov %vm16101_vm0 }
 0x447   :  { %v4698_v24 = vsel %vm16114_vm4, %v16113_v13, %v16112_v60  ;;  %v4695_v3 = vsel %vm16117_vm11, %v16116_v26, %v16115_v10  ;;  %v16118_v61 = vmov %v16116_v26  ;;  %vm16121_vm4 = vmmov %vm16101_vm0  ;;  %v16123_v60 = vmov %v16120_v14 }
 0x448   :  { %16109 = vst [vmem:[#allocation117_spill] sm:$0xff] %v13705_v47  ;;  %v4696_v43 = vsel %vm16101_vm0, %v16110_v63, %v16118_v61  ;;  %v4693_v39 = vsel %vm16121_vm4, %v16120_v14, %v16119_v42  ;;  %v13738_v28 = vpack.c.bf16 %v4697_v58, %v4698_v24  ;;  %vm16125_vm11 = vmmov %vm16101_vm0  ;;  %v16126_v13 = vrot.slane %v13215_v4, 1  ;;  %v3415_v61 = vpop.f32.mrb[56].mxu1 }
 0x449   :  { %v13740_v55 = vpack.c.bf16 %v4695_v3, %v4696_v43  ;;  %v4694_v59 = vsel %vm16125_vm11, %v16124_v40, %v16123_v60  ;;  %v16127_v10 = vrot.slane %v13213_v41, 1  ;;  %vm16130_vm4 = vmmov %vm16101_vm0  ;;  %v16131_v3 = vrot.slane %v13219_v6, 1  ;;  %v9415_v60 = vpop.f32.mrb[57].mxu1  ;;  %v10745_v40 = vld [vmem:[#allocation3 + $0x138] sm:$0xff]   ;;  %v16147_v6 = vld [vmem:[#allocation14_spill] sm:$0xff] }
 0x44a   :  { %16122 = vst [vmem:[#allocation118_spill] sm:$0xff] %v13738_v28  ;;  %v13754_v58 = vpack.c.bf16 %v4693_v39, %v4694_v59  ;;  %v16132_v63 = vrot.slane %v13217_v9, 1  ;;  %vm16133_vm11 = vmmov %vm16101_vm0  ;;  %v16135_v31 = vmov %v16126_v13  ;;  %v4674_v41 = vrot.slane %v13235_v56, 1  ;;  %v10756_v59 = vld [vmem:[#allocation3 + $0x60] sm:$0xff]   ;;  %v3418_v4 = vpop.f32.mrb[58].mxu1  ;;  %9569 = vmatprep.subr.bf16.mxu0 %v10745_v40  ;;  %9692 = vmatmul.mubr.msk.bf16.gmra.mrb[196].mxu1 %vm16098_vm6, %v13414_v51 }
 0x44b   :  { %v4691_v26 = vsel %vm16101_vm0, %v16127_v10, %v16126_v13  ;;  %v16128_v24 = vmov %v16127_v10  ;;  %v13776_v39 = vadd.f32 %v3415_v61, %v16136_v44  ;;  %v4676_v9 = vrot.slane %v13237_v62, 1  ;;  %9736 = vmatpush3.bf16.msra.mxu1 %v10756_v59  ;;  %vm16167_vm1 = vmmov %vm16101_vm0  ;;  %9570 = vmatpush3.bf16.msra.mxu0 %v10745_v40 }
 0x44c   :  { %v4692_v46 = vsel %vm16130_vm4, %v16129_v37, %v16128_v24  ;;  %v4689_v43 = vsel %vm16133_vm11, %v16132_v63, %v16131_v3  ;;  %v16134_v42 = vmov %v16132_v63  ;;  %v16137_v56 = vrot.slane %v13223_v19, 1  ;;  %vm16139_vm4 = vmmov %vm16101_vm0  ;;  %v10757_v19 = vld [vmem:[#allocation3 + $0x68] sm:$0xff]   ;;  %9737 = vmatprep.subr.bf16.mxu1 %v15647_v23  ;;  %9695 = vmatprep.mubr.msk.bf16.mxu1 %vm15762_vm3, %v15647_v23 }
 0x44d   :  { %v4690_v14 = vsel %vm16101_vm0, %v16135_v31, %v16134_v42  ;;  %v13778_v13 = vpack.c.bf16 %v4691_v26, %v4692_v46  ;;  %v16138_v61 = vrot.slane %v13221_v15, 1  ;;  %v16141_v24 = vmov %v16131_v3  ;;  %vm16142_vm11 = vmmov %vm16101_vm0  ;;  %v9416_v42 = vpop.f32.mrb[59].mxu1 }
 0x44e   :  { %v13780_v10 = vpack.c.bf16 %v4689_v43, %v4690_v14  ;;  %v16143_v37 = vrot.slane %v13227_v5, 1  ;;  %v16144_v46 = vrot.slane %v13225_v25, 1  ;;  %v4677_v63 = vrot.slane %v13241_v32, 1  ;;  %v16145_v43 = vld [vmem:[#allocation19_spill] sm:$0xff]  ;;  %v13837_v25 = vld [vmem:[#allocation3 + $0x140] sm:$0xff]  }
 0x44f   :  { %v4687_v12 = vsel %vm16139_vm4, %v16138_v61, %v16137_v56  ;;  %v16140_v26 = vmov %v16138_v61  ;;  %vm16146_vm8 = vnez %v16145_v43  ;;  %v13812_v15 = vadd.f32 %v3418_v4, %v16147_v6  ;;  %v16149_v14 = vld [vmem:[#allocation11_spill] sm:$0xff]  ;;  %9603 = vmatprep.subr.bf16.mxu0 %v13837_v25  ;;  %9738 = vmatpush3.bf16.msra.mxu1 %v10757_v19 }
 0x450   :  { %v4688_v62 = vsel %vm16142_vm11, %v16141_v24, %v16140_v26  ;;  %v4685_v3 = vsel %vm16101_vm0, %v16144_v46, %v16143_v37  ;;  %9536 = vmatmul.mubr.msk.bf16.gmra.mrb[136].mxu0 %vm16146_vm8, %v13428_v30  ;;  %vm16150_vm4 = vnez %v16149_v14  ;;  %v16151_v32 = vmov %v16144_v46  ;;  %vm16153_vm11 = vmmov %vm16101_vm0  ;;  %9739 = vmatprep.subr.bf16.mxu1 %v15647_v23 }
 0x451   :  { %v13814_v31 = vpack.c.bf16 %v4687_v12, %v4688_v62  ;;  %9539 = vmatprep.mubr.msk.bf16.mxu0 %vm16150_vm4, %v13445_v34  ;;  %v16152_v44 = vmov %v16137_v56  ;;  %v16154_v56 = vrot.slane %v13231_v1, 1  ;;  %v16155_v4 = vrot.slane %v13229_v52, 1  ;;  %vm16168_vm4 = vmmov %vm16101_vm0  ;;  %v3423_v1 = vpop.f32.mrb[60].mxu1 }
 0x452   :  { %v4686_v60 = vsel %vm16153_vm11, %v16152_v44, %v16151_v32  ;;  %v16157_v26 = vmov %v16143_v37  ;;  %vm16161_vm11 = vmmov %vm16101_vm0  ;;  %v16163_v46 = vrot.slane %v13140_v54, 1  ;;  %v4678_v32 = vsel %vm16168_vm4, %v4676_v9, %v4677_v63  ;;  %v10759_v54 = vld [vmem:[#allocation3 + $0x70] sm:$0xff]   ;;  %9696 = vmatmul.mubr.msk.bf16.gmra.mrb[200].mxu1 %vm16146_vm8, %v13428_v30 }
 0x453   :  { %16148 = vst [vmem:[#allocation17_spill] sm:$0xff] %v13814_v31  ;;  %v4683_v61 = vsel %vm16101_vm0, %v16155_v4, %v16154_v56  ;;  %v16156_v12 = vmov %v16155_v4  ;;  %v13839_v24 = vpack.c.bf16 %v4685_v3, %v4686_v60  ;;  %v4681_v37 = vsel %vm16161_vm11, %v4673_v33, %v4674_v41  ;;  %vm16171_vm11 = vmmov %vm16101_vm0  ;;  %9740 = vmatpush3.bf16.msra.mxu1 %v10759_v54 }
 0x454   :  { %v4684_v21 = vsel %vm16158_vm7, %v16157_v26, %v16156_v12  ;;  %v16162_v52 = vmov %v16154_v56  ;;  %vm16164_vm7 = vmmov %vm16101_vm0  ;;  %v16166_v3 = vmov %v16163_v46  ;;  %v16172_v56 = vld [vmem:[#allocation27_spill] sm:$0xff]  ;;  %v10760_v26 = vld [vmem:[#allocation3 + $0x78] sm:$0xff]   ;;  %9741 = vmatprep.subr.bf16.mxu1 %v15647_v23  ;;  %9699 = vmatprep.mubr.msk.bf16.mxu1 %vm15762_vm3, %v15647_v23  ;;  %vm16197_vm4 = vnez %v16149_v14 }
 0x455   :  { %16159 = vst [vmem:[#allocation14_spill] sm:$0xff] %v13839_v24  ;;  %v13842_v62 = vpack.c.bf16 %v4683_v61, %v4684_v21  ;;  %v4682_v5 = vsel %vm16101_vm0, %v16162_v52, %v4673_v33  ;;  %v4679_v59 = vsel %vm16164_vm7, %v16163_v46, %v4676_v9  ;;  %v4680_v42 = vsel %vm16167_vm1, %v4674_v41, %v16166_v3  ;;  %v9419_v61 = vpop.f32.mrb[61].mxu1  ;;  %v16179_v46 = vld [vmem:[#allocation28_spill] sm:$0xff] }
 0x456   :  { %v13854_v6 = vpack.c.bf16 %v4681_v37, %v4682_v5  ;;  %v13862_v44 = vpack.c.bf16 %v4679_v59, %v4680_v42  ;;  %v16170_v33 = vrot.slane %v13179_v49, 1  ;;  %v13869_v4 = vadd.f32 %v3423_v1, %v16172_v56  ;;  %v3426_v40 = vpop.f32.mrb[62].mxu1  ;;  %v16174_v49 = vld [vmem:[#allocation12_spill] sm:$0xff]  ;;  %v16184_v61 = vld [vmem:[#allocation30_spill] sm:$0xff] }
 0x457   :  { %16160 = vst [vmem:[#allocation119_spill] sm:$0xff] %v13842_v62  ;;  %vm16175_vm1 = vnez %v16174_v49  ;;  %v13884_v9 = vadd.f32 %v3426_v40, %v16176_v7  ;;  %9742 = vmatpush3.bf16.msra.mxu1 %v10760_v26  ;;  %v3696_v7 = vmul.f32 %v13812_v15, %v13812_v15  ;;  %v16185_v26 = vld [vmem:[#allocation98_spill] sm:$0xff]  ;;  %v16207_v49 = vld [vmem:[#allocation37_spill] sm:$0xff] }
 0x458   :  { %16165 = vst [vmem:[#allocation120_spill] sm:$0xff] %v13854_v6  ;;  %16169 = vst [vmem:[#allocation121_spill] sm:$0xff] %v13862_v44  ;;  %v4709_v60 = vsel %vm16171_vm11, %v4677_v63, %v16170_v33  ;;  %9540 = vmatmul.mubr.msk.bf16.gmra.mrb[140].mxu0 %vm16175_vm1, %v13463_v57  ;;  %v9420_v63 = vpop.f32.mrb[63].mxu1  ;;  %9803 = vmatprep.subr.bf16.mxu1 %v15647_v23  ;;  %v16183_v33 = vld [vmem:[#allocation29_spill] sm:$0xff] }
 0x459   :  { %v13872_v41 = vpack.c.bf16 %v4709_v60, %v4678_v32  ;;  %9543 = vmatprep.mubr.msk.bf16.mxu0 %vm11919_vm13, %v13483_v38  ;;  %v3431_v21 = vpop.f32.mrb[144].mxu1  ;;  %v16181_v32 = vld [vmem:[#allocation97_spill] sm:$0xff] }
 0x45a   :  { %v3538_v19 = vadd.f32 %v3431_v21, %v13040_v22  ;;  %v9423_v37 = vpop.f32.mrb[145].mxu1  ;;  %v16180_v22 = vld [vmem:[#allocation46_spill] sm:$0xff]  ;;  %9700 = vmatmul.mubr.msk.bf16.gmra.mrb[204].mxu1 %vm16197_vm4, %v13445_v34 }
 0x45b   :  { %16173 = vst [vmem:[#allocation27_spill] sm:$0xff] %v13872_v41  ;;  %v3434_v52 = vpop.f32.mrb[146].mxu1  ;;  %9703 = vmatprep.mubr.msk.bf16.mxu1 %vm15762_vm3, %v15647_v23 }
 0x45c   :  { %v13901_v59 = vadd.f32 %v3538_v19, %v16179_v46  ;;  %v3539_v3 = vadd.f32 %v3434_v52, %v16180_v22  ;;  %v9424_v42 = vpop.f32.mrb[147].mxu1  ;;  %v16187_v19 = vld [vmem:[#allocation31_spill] sm:$0xff]  ;;  %v3695_v22 = vmul.f32 %v13776_v39, %v13776_v39 }
 0x45d   :  { %v3439_v56 = vpop.f32.mrb[68].mxu1  ;;  %v3658_v42 = vadd.f32 %v13812_v15, %v13776_v39 }
 0x45e   :  { %v13908_v60 = vadd.f32 %v3539_v3, %v16183_v33  ;;  %v13911_v54 = vadd.f32 %v3439_v56, %v16184_v61  ;;  %v9427_v40 = vpop.f32.mrb[69].mxu1  ;;  %v3697_v3 = vmul.f32 %v13869_v4, %v13869_v4  ;;  %v3727_v33 = vadd.f32 %v3696_v7, %v3695_v22 }
 0x45f   :  { %v3442_v63 = vpop.f32.mrb[70].mxu1  ;;  %v3659_v56 = vadd.f32 %v3658_v42, %v13869_v4  ;;  %v3698_v40 = vmul.f32 %v13884_v9, %v13884_v9  ;;  %v3699_v51 = vmul.f32 %v13901_v59, %v13901_v59 }
 0x460   :  { %9544 = vmatmul.mubr.msk.bf16.gmra.mrb[144].mxu0 %vm11977_vm2, %v13506_v16  ;;  %v13924_v37 = vadd.f32 %v3442_v63, %v16187_v19  ;;  %v9428_v52 = vpop.f32.mrb[71].mxu1  ;;  %v3728_v61 = vadd.f32 %v3727_v33, %v3697_v3  ;;  %v16189_v19 = vld [vmem:[#allocation22_spill] sm:$0xff]  ;;  %v16191_v3 = vld [vmem:[#allocation32_spill] sm:$0xff] }
 0x461   :  { %9547 = vmatprep.mubr.msk.bf16.mxu0 %vm11982_vm10, %v16181_v32  ;;  %v3447_v63 = vpop.f32.mrb[148].mxu1  ;;  %v3660_v22 = vadd.f32 %v3659_v56, %v13884_v9  ;;  %v3701_v56 = vmul.f32 %v13911_v54, %v13911_v54 }
 0x462   :  { %v3542_v52 = vadd.f32 %v3447_v63, %v16189_v19  ;;  %v9431_v2 = vpop.f32.mrb[149].mxu1  ;;  %v16194_v19 = vld [vmem:[#allocation101_spill] sm:$0xff]  ;;  %v3729_v43 = vadd.f32 %v3728_v61, %v3698_v40  ;;  %9704 = vmatmul.mubr.msk.bf16.gmra.mrb[208].mxu1 %vm16175_vm1, %v13463_v57 }
 0x463   :  { %v3450_v11 = vpop.f32.mrb[150].mxu1  ;;  %v16193_v2 = vld [vmem:[#allocation47_spill] sm:$0xff]  ;;  %v3661_v30 = vadd.f32 %v3660_v22, %v13901_v59  ;;  %9707 = vmatprep.mubr.msk.bf16.mxu1 %vm15762_vm3, %v15647_v23 }
 0x464   :  { %v13951_v42 = vadd.f32 %v3542_v52, %v16191_v3  ;;  %v3543_v33 = vadd.f32 %v3450_v11, %v16193_v2  ;;  %v9432_v63 = vpop.f32.mrb[151].mxu1  ;;  %v3730_v7 = vadd.f32 %v3729_v43, %v3699_v51  ;;  %v10747_v3 = vld [vmem:[#allocation3 + $0x148] sm:$0xff]   ;;  %v16199_v22 = vld [vmem:[#allocation35_spill] sm:$0xff] }
 0x465   :  { %v3455_v52 = vpop.f32.mrb[76].mxu1  ;;  %v3662_v11 = vadd.f32 %v3661_v30, %v13908_v60  ;;  %v16196_v2 = vld [vmem:[#allocation34_spill] sm:$0xff] }
 0x466   :  { %16192 = vst [vmem:[#allocation26_spill] sm:$0xff] %v13951_v42  ;;  %v13957_v53 = vadd.f32 %v3543_v33, %v16195_v0  ;;  %v13965_v63 = vadd.f32 %v3455_v52, %v16196_v2  ;;  %v9435_v61 = vpop.f32.mrb[77].mxu1  ;;  %v16198_v43 = vld [vmem:[#allocation102_spill] sm:$0xff]  ;;  %v16200_v52 = vld [vmem:[#allocation103_spill] sm:$0xff] }
 0x467   :  { %v3458_v51 = vpop.f32.mrb[78].mxu1  ;;  %v3663_v40 = vadd.f32 %v3662_v11, %v13911_v54  ;;  %v3703_v61 = vmul.f32 %v13951_v42, %v13951_v42 }
 0x468   :  { %9548 = vmatmul.mubr.msk.bf16.gmra.mrb[148].mxu0 %vm15839_vm12, %v16185_v26  ;;  %v13975_v33 = vadd.f32 %v3458_v51, %v16199_v22  ;;  %v9436_v30 = vpop.f32.mrb[79].mxu1  ;;  %v3704_v48 = vmul.f32 %v13957_v53, %v13957_v53 }
 0x469   :  { %9551 = vmatprep.mubr.msk.bf16.mxu0 %vm15841_vm15, %v13546_v8  ;;  %v3664_v14 = vadd.f32 %v3663_v40, %v13924_v37  ;;  %v3463_v51 = vpop.f32.mrb[152].mxu1  ;;  %v16201_v30 = vld [vmem:[#allocation48_spill] sm:$0xff] }
 0x46a   :  { %v3546_v34 = vadd.f32 %v3463_v51, %v16201_v30  ;;  %v16202_v40 = vld [vmem:[#allocation104_spill] sm:$0xff]  ;;  %v16206_v30 = vld [vmem:[#allocation105_spill] sm:$0xff]  ;;  %9708 = vmatmul.mubr.msk.bf16.gmra.mrb[212].mxu1 %vm11919_vm13, %v13483_v38 }
 0x46b   :  { %v3665_v22 = vadd.f32 %v3664_v14, %v13951_v42  ;;  %9711 = vmatprep.mubr.msk.bf16.mxu1 %vm15762_vm3, %v15647_v23 }
 0x470   :  { %9552 = vmatmul.mubr.msk.bf16.gmra.mrb[152].mxu0 %vm15874_vm5, %v13560_v35  ;;  %v3700_v35 = vmul.f32 %v13908_v60, %v13908_v60 }
 0x471   :  { %9571 = vmatprep.mubr.bf16.mxu0 %v16194_v19 }
 0x472   :  { %v3731_v0 = vadd.f32 %v3730_v7, %v3700_v35  ;;  %v3702_v35 = vmul.f32 %v13924_v37, %v13924_v37  ;;  %v10748_v7 = vld [vmem:[#allocation3 + $0x150] sm:$0xff]   ;;  %9712 = vmatmul.mubr.msk.bf16.gmra.mrb[216].mxu1 %vm11977_vm2, %v13506_v16 }
 0x473   :  { %9715 = vmatprep.mubr.msk.bf16.mxu1 %vm15762_vm3, %v15647_v23 }
 0x474   :  { %v3732_v2 = vadd.f32 %v3731_v0, %v3701_v56  ;;  %v9439_v56 = vpop.f32.mrb[153].mxu1 }
 0x475   :  { %v3466_v29 = vpop.f32.mrb[154].mxu1  ;;  %v10752_v56 = vld [vmem:[#allocation3 + $0x160] sm:$0xff]  }
 0x476   :  { %v3733_v11 = vadd.f32 %v3732_v2, %v3702_v35  ;;  %v16205_v2 = vld [vmem:[#allocation83_spill] sm:$0xff]  ;;  %v9440_v51 = vpop.f32.mrb[155].mxu1 }
 0x477   :  { %v3547_v35 = vadd.f32 %v3466_v29, %v16205_v2  ;;  %v3706_v29 = vmul.f32 %v13975_v33, %v13975_v33  ;;  %v3471_v2 = vpop.f32.mrb[84].mxu1  ;;  %v16209_v51 = vld [vmem:[#allocation64_spill] sm:$0xff] }
 0x478   :  { %9572 = vmatmul.mubr.bf16.vlgmr.msra.gmra.mrb[124].mxu0 %v16198_v43  ;;  %v3734_v0 = vadd.f32 %v3733_v11, %v3703_v61  ;;  %v3705_v61 = vmul.f32 %v13965_v63, %v13965_v63  ;;  %v3666_v11 = vadd.f32 %v3665_v22, %v13957_v53  ;;  %v14009_v41 = vadd.f32 %v3471_v2, %v16209_v51  ;;  %v9443_v42 = vpop.f32.mrb[85].mxu1  ;;  %v16210_v22 = vld [vmem:[#allocation106_spill] sm:$0xff]  ;;  %v10758_v2 = vld [vmem:[#allocation3 + $0x170] sm:$0xff]  }
 0x479   :  { %9604 = vmatpush3.bf16.msra.mxu0 %v13837_v25  ;;  %9575 = vmatprep.mubr.bf16.mxu0 %v16200_v52  ;;  %v10749_v25 = vld [vmem:[#allocation3 + $0x158] sm:$0xff]   ;;  %v14003_v57 = vadd.f32 %v3547_v35, %v16207_v49  ;;  %v3474_v49 = vpop.f32.mrb[86].mxu1  ;;  %v16212_v42 = vld [vmem:[#allocation107_spill] sm:$0xff] }
 0x47a   :  { %9605 = vmatprep.subr.bf16.mxu0 %v10747_v3  ;;  %v3735_v18 = vadd.f32 %v3734_v0, %v3704_v48  ;;  %v9444_v35 = vpop.f32.mrb[87].mxu1  ;;  %9716 = vmatmul.mubr.msk.bf16.gmra.mrb[220].mxu1 %vm11982_vm10, %v16181_v32 }
 0x47b   :  { %16208 = vst [vmem:[#allocation46_spill] sm:$0xff] %v14003_v57  ;;  %v3708_v12 = vmul.f32 %v14003_v57, %v14003_v57  ;;  %v3479_v38 = vpop.f32.mrb[156].mxu1  ;;  %9719 = vmatprep.mubr.msk.bf16.mxu1 %vm15762_vm3, %v15647_v23 }
 0x47d   :  { %9606 = vmatpush3.bf16.msra.mxu0 %v10747_v3  ;;  %v16203_v3 = vld [vmem:[#allocation36_spill] sm:$0xff] }
 0x47e   :  { %9607 = vmatprep.subr.bf16.mxu0 %v10748_v7  ;;  %v13995_v14 = vadd.f32 %v3546_v34, %v16203_v3  ;;  %v3667_v34 = vadd.f32 %v3666_v11, %v13965_v63  ;;  %v3736_v3 = vadd.f32 %v3735_v18, %v3705_v61 }
 0x480   :  { %9576 = vmatmul.mubr.bf16.gmra.mrb[128].mxu0 %v16202_v40  ;;  %16204 = vst [vmem:[#allocation28_spill] sm:$0xff] %v13995_v14  ;;  %v3707_v48 = vmul.f32 %v13995_v14, %v13995_v14  ;;  %v3668_v18 = vadd.f32 %v3667_v34, %v13975_v33  ;;  %v3737_v61 = vadd.f32 %v3736_v3, %v3706_v29  ;;  %v9447_v3 = vpop.f32.mrb[157].mxu1 }
 0x481   :  { %9579 = vmatprep.mubr.bf16.mxu0 %v16206_v30  ;;  %9608 = vmatpush3.bf16.msra.mxu0 %v10748_v7  ;;  %v10755_v7 = vld [vmem:[#allocation3 + $0x168] sm:$0xff]   ;;  %v16217_v3 = vld [vmem:[#allocation109_spill] sm:$0xff] }
 0x482   :  { %9609 = vmatprep.subr.bf16.mxu0 %v10749_v25  ;;  %v3669_v11 = vadd.f32 %v3668_v18, %v13995_v14  ;;  %v3738_v51 = vadd.f32 %v3737_v61, %v3707_v48  ;;  %v3482_v48 = vpop.f32.mrb[158].mxu1  ;;  %v16214_v18 = vld [vmem:[#allocation108_spill] sm:$0xff]  ;;  %v16215_v61 = vld [vmem:[#allocation66_spill] sm:$0xff]  ;;  %9720 = vmatmul.mubr.msk.bf16.gmra.mrb[224].mxu1 %vm15839_vm12, %v16185_v26 }
 0x483   :  { %9723 = vmatprep.mubr.msk.bf16.mxu1 %vm15762_vm3, %v15647_v23  ;;  %v16228_v26 = vld [vmem:[#allocation70_spill] sm:$0xff] }
 0x484   :  { %v3670_v34 = vadd.f32 %v3669_v11, %v14003_v57  ;;  %v3739_v29 = vadd.f32 %v3738_v51, %v3708_v12  ;;  %v16216_v57 = vld [vmem:[#allocation84_spill] sm:$0xff]  ;;  %v16218_v51 = vld [vmem:[#allocation67_spill] sm:$0xff] }
 0x485   :  { %9610 = vmatpush3.bf16.msra.mxu0 %v10749_v25  ;;  %v16211_v25 = vld [vmem:[#allocation65_spill] sm:$0xff] }
 0x486   :  { %9611 = vmatprep.subr.bf16.mxu0 %v10752_v56  ;;  %v14021_v0 = vadd.f32 %v3474_v49, %v16211_v25  ;;  %v3709_v49 = vmul.f32 %v14009_v41, %v14009_v41  ;;  %v16213_v25 = vld [vmem:[#allocation9_spill] sm:$0xff] }
 0x487   :  { %v3550_v35 = vadd.f32 %v3479_v38, %v16213_v25  ;;  %v3551_v38 = vadd.f32 %v3482_v48, %v16216_v57  ;;  %v9448_v25 = vpop.f32.mrb[159].mxu1 }
 0x488   :  { %9580 = vmatmul.mubr.bf16.gmra.mrb[132].mxu0 %v16210_v22  ;;  %v3740_v5 = vadd.f32 %v3739_v29, %v3709_v49  ;;  %v3710_v12 = vmul.f32 %v14021_v0, %v14021_v0 }
 0x489   :  { %9583 = vmatprep.mubr.bf16.mxu0 %v16212_v42  ;;  %9612 = vmatpush3.bf16.msra.mxu0 %v10752_v56  ;;  %v10761_v56 = vld [vmem:[#allocation3 + $0x178] sm:$0xff]   ;;  %v14039_v11 = vadd.f32 %v3550_v35, %v16215_v61  ;;  %v14046_v16 = vadd.f32 %v3551_v38, %v16218_v51  ;;  %v3487_v35 = vpop.f32.mrb[92].mxu1 }
 0x48a   :  { %9613 = vmatprep.subr.bf16.mxu0 %v10755_v7  ;;  %v3741_v57 = vadd.f32 %v3740_v5, %v3710_v12  ;;  %v16219_v61 = vld [vmem:[#allocation68_spill] sm:$0xff]  ;;  %v9451_v49 = vpop.f32.mrb[93].mxu1  ;;  %v16222_v12 = vld [vmem:[#allocation111_spill] sm:$0xff]  ;;  %9724 = vmatmul.mubr.msk.bf16.gmra.mrb[228].mxu1 %vm15841_vm15, %v13546_v8  ;;  %v10772_v8 = vld [vmem:[#allocation3 + $0x80] sm:$0xff]  }
 0x48b   :  { %v3490_v29 = vpop.f32.mrb[94].mxu1  ;;  %v3712_v5 = vmul.f32 %v14046_v16, %v14046_v16  ;;  %9743 = vmatprep.mubr.msk.bf16.mxu1 %vm15762_vm3, %v15647_v23 }
 0x48c   :  { %v9452_v25 = vpop.f32.mrb[95].mxu1 }
 0x48d   :  { %9614 = vmatpush3.bf16.msra.mxu0 %v10755_v7  ;;  %v3671_v7 = vadd.f32 %v3670_v34, %v14009_v41  ;;  %v3711_v34 = vmul.f32 %v14039_v11, %v14039_v11  ;;  %v3495_v1 = vpop.f32.mrb[160].mxu1 }
 0x48e   :  { %9615 = vmatprep.subr.bf16.mxu0 %v10758_v2 }
 0x48f   :  { %v3672_v14 = vadd.f32 %v3671_v7, %v14021_v0  ;;  %v16220_v7 = vld [vmem:[#allocation110_spill] sm:$0xff] }
 0x490   :  { %9584 = vmatmul.mubr.bf16.gmra.mrb[136].mxu0 %v16214_v18 }
 0x491   :  { %9587 = vmatprep.mubr.bf16.mxu0 %v16217_v3  ;;  %9616 = vmatpush3.bf16.msra.mxu0 %v10758_v2  ;;  %v3673_v48 = vadd.f32 %v3672_v14, %v14039_v11  ;;  %v14053_v2 = vadd.f32 %v3487_v35, %v16219_v61  ;;  %v16221_v14 = vld [vmem:[#allocation69_spill] sm:$0xff] }
 0x492   :  { %9617 = vmatprep.subr.bf16.mxu0 %v10761_v56  ;;  %v14065_v38 = vadd.f32 %v3490_v29, %v16221_v14  ;;  %v9455_v29 = vpop.f32.mrb[161].mxu1  ;;  %9744 = vmatmul.mubr.bf16.vlgmr.msra.gmra.mrb[172].mxu1 %v16194_v19 }
 0x493   :  { %v3674_v51 = vadd.f32 %v3673_v48, %v14046_v16  ;;  %v3713_v35 = vmul.f32 %v14053_v2, %v14053_v2  ;;  %v3498_v14 = vpop.f32.mrb[162].mxu1  ;;  %v16224_v48 = vld [vmem:[#allocation112_spill] sm:$0xff]  ;;  %9747 = vmatprep.mubr.msk.bf16.mxu1 %vm15762_vm3, %v15647_v23  ;;  %9804 = vmatpush3.bf16.msra.mxu1 %v10772_v8  ;;  %v16239_v8 = vld [vmem:[#allocation75_spill] sm:$0xff] }
 0x494   :  { %9805 = vmatprep.subr.bf16.mxu1 %v15647_v23 }
 0x495   :  { %9618 = vmatpush3.bf16.msra.mxu0 %v10761_v56  ;;  %v3742_v56 = vadd.f32 %v3741_v57, %v3711_v34  ;;  %v3675_v61 = vadd.f32 %v3674_v51, %v14053_v2  ;;  %v3714_v34 = vmul.f32 %v14065_v38, %v14065_v38  ;;  %v16223_v57 = vld [vmem:[#allocation87_spill] sm:$0xff]  ;;  %v16226_v51 = vld [vmem:[#allocation89_spill] sm:$0xff] }
 0x496   :  { %9879 = vmatprep.subr.bf16.mxu0 %v15647_v23 }
 0x497   :  { %v3743_v49 = vadd.f32 %v3742_v56, %v3712_v5  ;;  %v3676_v56 = vadd.f32 %v3675_v61, %v14065_v38  ;;  %v16225_v5 = vld [vmem:[#allocation42_spill] sm:$0xff] }
 0x498   :  { %9588 = vmatmul.mubr.bf16.gmra.mrb[140].mxu0 %v16220_v7  ;;  %v3554_v7 = vadd.f32 %v3495_v1, %v16223_v57  ;;  %v16227_v1 = vld [vmem:[#allocation113_spill] sm:$0xff] }
 0x499   :  { %9591 = vmatprep.mubr.bf16.mxu0 %v16222_v12  ;;  %v3744_v32 = vadd.f32 %v3743_v49, %v3713_v35  ;;  %v3555_v35 = vadd.f32 %v3498_v14, %v16226_v51  ;;  %v9456_v49 = vpop.f32.mrb[163].mxu1  ;;  %v16229_v14 = vld [vmem:[#allocation71_spill] sm:$0xff] }
 0x49a   :  { %v14083_v25 = vadd.f32 %v3554_v7, %v16225_v5  ;;  %v3503_v5 = vpop.f32.mrb[100].mxu1  ;;  %9748 = vmatmul.mubr.bf16.gmra.mrb[176].mxu1 %v16198_v43 }
 0x49b   :  { %v3745_v57 = vadd.f32 %v3744_v32, %v3714_v34  ;;  %v14097_v51 = vadd.f32 %v3503_v5, %v16229_v14  ;;  %v9459_v32 = vpop.f32.mrb[101].mxu1  ;;  %9751 = vmatprep.mubr.msk.bf16.mxu1 %vm15762_vm3, %v15647_v23 }
 0x49c   :  { %v3677_v29 = vadd.f32 %v3676_v56, %v14083_v25  ;;  %v3715_v21 = vmul.f32 %v14083_v25, %v14083_v25  ;;  %v3506_v34 = vpop.f32.mrb[102].mxu1  ;;  %v16230_v56 = vld [vmem:[#allocation114_spill] sm:$0xff] }
 0x49e   :  { %v3746_v12 = vadd.f32 %v3745_v57, %v3715_v21  ;;  %v3717_v21 = vmul.f32 %v14097_v51, %v14097_v51 }
 0x4a0   :  { %9592 = vmatmul.mubr.bf16.gmra.mrb[144].mxu0 %v16224_v48  ;;  %v14091_v48 = vadd.f32 %v3555_v35, %v16228_v26  ;;  %v16231_v35 = vld [vmem:[#allocation72_spill] sm:$0xff] }
 0x4a1   :  { %9595 = vmatprep.mubr.bf16.mxu0 %v16227_v1  ;;  %v14109_v57 = vadd.f32 %v3506_v34, %v16231_v35 }
 0x4a2   :  { %v3716_v61 = vmul.f32 %v14091_v48, %v14091_v48  ;;  %v3678_v7 = vadd.f32 %v3677_v29, %v14091_v48  ;;  %v16232_v29 = vld [vmem:[#allocation115_spill] sm:$0xff]  ;;  %9752 = vmatmul.mubr.bf16.gmra.mrb[180].mxu1 %v16200_v52 }
 0x4a3   :  { %v3718_v14 = vmul.f32 %v14109_v57, %v14109_v57  ;;  %9755 = vmatprep.mubr.msk.bf16.mxu1 %vm15762_vm3, %v15647_v23 }
 0x4a4   :  { %v3747_v49 = vadd.f32 %v3746_v12, %v3716_v61  ;;  %v3679_v26 = vadd.f32 %v3678_v7, %v14097_v51  ;;  %v9460_v12 = vpop.f32.mrb[103].mxu1 }
 0x4a5   :  { %v3511_v46 = vpop.f32.mrb[164].mxu1  ;;  %v16236_v12 = vld [vmem:[#allocation38_spill] sm:$0xff] }
 0x4a6   :  { %v3748_v61 = vadd.f32 %v3747_v49, %v3717_v21  ;;  %v3680_v5 = vadd.f32 %v3679_v26, %v14109_v57  ;;  %v9463_v1 = vpop.f32.mrb[165].mxu1  ;;  %v16234_v49 = vld [vmem:[#allocation73_spill] sm:$0xff]  ;;  %v16235_v26 = vld [vmem:[#allocation82_spill] sm:$0xff]  ;;  %vm16237_vm0 = vnez %v16236_v12 }
 0x4a7   :  { %v3514_v3 = vpop.f32.mrb[166].mxu1  ;;  %v16319_v12 = vld [vmem:[#allocation94_spill] sm:$0xff] }
 0x4a8   :  { %9596 = vmatmul.mubr.bf16.gmra.mrb[148].mxu0 %v16230_v56  ;;  %v3749_v32 = vadd.f32 %v3748_v61, %v3718_v14  ;;  %v16233_v56 = vld [vmem:[#allocation81_spill] sm:$0xff]  ;;  %v3559_v21 = vadd.f32 %v3514_v3, %v16235_v26  ;;  %v9464_v35 = vpop.f32.mrb[167].mxu1 }
 0x4a9   :  { %9599 = vmatprep.mubr.bf16.mxu0 %v16232_v29  ;;  %v3558_v7 = vadd.f32 %v3511_v46, %v16233_v56  ;;  %v10773_v46 = vld [vmem:[#allocation3 + $0x88] sm:$0xff]   ;;  %v3519_v26 = vpop.f32.mrb[108].mxu1 }
 0x4aa   :  { %v16238_v56 = vld [vmem:[#allocation74_spill] sm:$0xff]  ;;  %9806 = vmatpush3.bf16.msra.mxu1 %v10773_v46  ;;  %v14138_v35 = vadd.f32 %v3519_v26, %v16239_v8 }
 0x4ab   :  { %v14121_v34 = vadd.f32 %v3558_v7, %v16234_v49  ;;  %v14131_v61 = vadd.f32 %v3559_v21, %v16238_v56  ;;  %v10762_v49 = vld [vmem:[#allocation3 + $0x180] sm:$0xff]   ;;  %9807 = vmatprep.subr.bf16.mxu1 %v15647_v23  ;;  %v10774_v21 = vld [vmem:[#allocation3 + $0x90] sm:$0xff]   ;;  %v10763_v26 = vld [vmem:[#allocation3 + $0x188] sm:$0xff]   ;;  %9756 = vmatmul.mubr.bf16.gmra.mrb[184].mxu1 %v16202_v40 }
 0x4ac   :  { %9759 = vmatprep.mubr.msk.bf16.mxu1 %vm15762_vm3, %v15647_v23 }
 0x4ad   :  { %v3681_v19 = vadd.f32 %v3680_v5, %v14121_v34  ;;  %v3719_v1 = vmul.f32 %v14121_v34, %v14121_v34  ;;  %v3720_v3 = vmul.f32 %v14131_v61, %v14131_v61 }
 0x4ae   :  { %9808 = vmatpush3.bf16.msra.mxu1 %v10774_v21  ;;  %v16245_v21 = vld [vmem:[#allocation44_spill] sm:$0xff] }
 0x4af   :  { %v3750_v14 = vadd.f32 %v3749_v32, %v3719_v1  ;;  %v3682_v7 = vadd.f32 %v3681_v19, %v14131_v61  ;;  %v16240_v32 = vld [vmem:[#allocation39_spill] sm:$0xff]  ;;  %v3721_v19 = vmul.f32 %v14138_v35, %v14138_v35  ;;  %v16242_v1 = vld [vmem:[#allocation76_spill] sm:$0xff]  ;;  %9809 = vmatprep.subr.bf16.mxu1 %v15647_v23  ;;  %vm16246_vm5 = vnez %v16245_v21  ;;  %v16251_v21 = vld [vmem:[#allocation78_spill] sm:$0xff] }
 0x4b0   :  { %9600 = vmatmul.mubr.bf16.gmra.mrb[152].mxu0 %v13628_v36  ;;  %v9467_v36 = vpop.f32.mrb[109].mxu1  ;;  %vm16241_vm7 = vnez %v16240_v32  ;;  %v10775_v32 = vld [vmem:[#allocation3 + $0x98] sm:$0xff]  }
 0x4b1   :  { %9619 = vmatprep.mubr.msk.bf16.mxu0 %vm16237_vm0, %v13645_v20  ;;  %v3751_v5 = vadd.f32 %v3750_v14, %v3720_v3  ;;  %v3522_v56 = vpop.f32.mrb[110].mxu1  ;;  %v3683_v46 = vadd.f32 %v3682_v7, %v14138_v35  ;;  %v16243_v3 = vld [vmem:[#allocation40_spill] sm:$0xff] }
 0x4b2   :  { %v14151_v36 = vadd.f32 %v3522_v56, %v16242_v1  ;;  %v9468_v14 = vpop.f32.mrb[111].mxu1  ;;  %vm16244_vm11 = vnez %v16243_v3  ;;  %9810 = vmatpush3.bf16.msra.mxu1 %v10775_v32  ;;  %v16249_v32 = vld [vmem:[#allocation45_spill] sm:$0xff] }
 0x4b3   :  { %v3752_v8 = vadd.f32 %v3751_v5, %v3721_v19  ;;  %v3527_v1 = vpop.f32.mrb[168].mxu1  ;;  %v10777_v5 = vld [vmem:[#allocation3 + $0xa0] sm:$0xff]   ;;  %9811 = vmatprep.subr.bf16.mxu1 %v15647_v23  ;;  %vm16250_vm15 = vnez %v16249_v32  ;;  %v10780_v32 = vld [vmem:[#allocation3 + $0xb8] sm:$0xff]   ;;  %9760 = vmatmul.mubr.bf16.gmra.mrb[188].mxu1 %v16206_v30 }
 0x4b4   :  { %v3684_v43 = vadd.f32 %v3683_v46, %v14151_v36  ;;  %v3722_v7 = vmul.f32 %v14151_v36, %v14151_v36  ;;  %v3562_v14 = vadd.f32 %v3527_v1, %v13624_v50  ;;  %v9471_v3 = vpop.f32.mrb[169].mxu1  ;;  %v16247_v19 = vld [vmem:[#allocation77_spill] sm:$0xff]  ;;  %9763 = vmatprep.mubr.msk.bf16.mxu1 %vm15762_vm3, %v15647_v23 }
 0x4b5   :  { %v3530_v46 = vpop.f32.mrb[170].mxu1  ;;  %v16278_v30 = vld [vmem:[#allocation109_spill] sm:$0xff] }
 0x4b6   :  { %v3753_v56 = vadd.f32 %v3752_v8, %v3722_v7  ;;  %v16248_v8 = vld [vmem:[#allocation21_spill] sm:$0xff]  ;;  %v9472_v3 = vpop.f32.mrb[171].mxu1  ;;  %v10765_v7 = vld [vmem:[#allocation3 + $0x198] sm:$0xff]   ;;  %9812 = vmatpush3.bf16.msra.mxu1 %v10777_v5  ;;  %v10779_v5 = vld [vmem:[#allocation3 + $0xb0] sm:$0xff]  }
 0x4b7   :  { %v3563_v50 = vadd.f32 %v3530_v46, %v16248_v8  ;;  %9813 = vmatprep.subr.bf16.mxu1 %v15647_v23  ;;  %v10766_v8 = vld [vmem:[#allocation3 + $0x1a0] sm:$0xff]   ;;  %v16252_v3 = vld [vmem:[#allocation79_spill] sm:$0xff] }
 0x4b8   :  { %9620 = vmatmul.mubr.msk.bf16.vlgmr.msra.gmra.mrb[124].mxu0 %vm16241_vm7, %v13649_v27 }
 0x4b9   :  { %9880 = vmatpush3.bf16.msra.mxu0 %v10762_v49  ;;  %9623 = vmatprep.mubr.msk.bf16.mxu0 %vm16244_vm11, %v13672_v45  ;;  %v10764_v49 = vld [vmem:[#allocation3 + $0x190] sm:$0xff]  }
 0x4ba   :  { %9881 = vmatprep.subr.bf16.mxu0 %v15647_v23 }
 0x4bb   :  { %9764 = vmatmul.mubr.bf16.gmra.mrb[192].mxu1 %v16210_v22 }
 0x4bc   :  { %9767 = vmatprep.mubr.msk.bf16.mxu1 %vm15762_vm3, %v15647_v23 }
 0x4bd   :  { %9882 = vmatpush3.bf16.msra.mxu0 %v10763_v26  ;;  %v14171_v26 = vadd.f32 %v3562_v14, %v16247_v19  ;;  %v10778_v14 = vld [vmem:[#allocation3 + $0xa8] sm:$0xff]  }
 0x4be   :  { %9883 = vmatprep.subr.bf16.mxu0 %v15647_v23  ;;  %9814 = vmatpush3.bf16.msra.mxu1 %v10778_v14  ;;  %v16256_v14 = vld [vmem:[#allocation54_spill] sm:$0xff] }
 0x4bf   :  { %v3685_v1 = vadd.f32 %v3684_v43, %v14171_v26  ;;  %v3723_v52 = vmul.f32 %v14171_v26, %v14171_v26  ;;  %v3725_v43 = vmul.f32 %v16252_v3, %v16252_v3  ;;  %9815 = vmatprep.subr.bf16.mxu1 %v15647_v23  ;;  %vm16257_vm10 = vnez %v16256_v14 }
 0x4c0   :  { %9624 = vmatmul.mubr.msk.bf16.gmra.mrb[128].mxu0 %vm16246_vm5, %v13703_v17  ;;  %v14182_v17 = vadd.f32 %v3563_v50, %v16251_v21 }
 0x4c1   :  { %9627 = vmatprep.mubr.msk.bf16.mxu0 %vm16250_vm15, %v13705_v47  ;;  %9884 = vmatpush3.bf16.msra.mxu0 %v10764_v49  ;;  %v3754_v46 = vadd.f32 %v3753_v56, %v3723_v52  ;;  %v16253_v52 = vld [vmem:[#allocation80_spill] sm:$0xff]  ;;  %v10768_v47 = vld [vmem:[#allocation3 + $0x1b0] sm:$0xff]  }
 0x4c2   :  { %9885 = vmatprep.subr.bf16.mxu0 %v15647_v23  ;;  %v3686_v19 = vadd.f32 %v3685_v1, %v14182_v17  ;;  %v3724_v49 = vmul.f32 %v14182_v17, %v14182_v17  ;;  %v3726_v56 = vmul.f32 %v16253_v52, %v16253_v52  ;;  %9816 = vmatpush3.bf16.msra.mxu1 %v10779_v5 }
 0x4c3   :  { %9817 = vmatprep.subr.bf16.mxu1 %v15647_v23  ;;  %9768 = vmatmul.mubr.bf16.gmra.mrb[196].mxu1 %v16212_v42 }
 0x4c4   :  { %v3687_v21 = vadd.f32 %v3686_v19, %v16252_v3  ;;  %v3755_v50 = vadd.f32 %v3754_v46, %v3724_v49  ;;  %v10767_v46 = vld [vmem:[#allocation3 + $0x1a8] sm:$0xff]   ;;  %9771 = vmatprep.mubr.msk.bf16.mxu1 %vm15762_vm3, %v15647_v23 }
 0x4c5   :  { %9886 = vmatpush3.bf16.msra.mxu0 %v10765_v7  ;;  %v16254_v7 = vld [vmem:[#allocation53_spill] sm:$0xff] }
 0x4c6   :  { %9887 = vmatprep.subr.bf16.mxu0 %v15647_v23  ;;  %vm16255_vm12 = vnez %v16254_v7  ;;  %v3688_v1 = vadd.f32 %v3687_v21, %v16253_v52  ;;  %v3756_v19 = vadd.f32 %v3755_v50, %v3725_v43  ;;  %9818 = vmatpush3.bf16.msra.mxu1 %v10780_v32 }
 0x4c8   :  { %9628 = vmatmul.mubr.msk.bf16.gmra.mrb[132].mxu0 %vm16255_vm12, %v13738_v28  ;;  %v3689_v49 = vrot.slane %v3688_v1, 4  ;;  %v3757_v40 = vadd.f32 %v3756_v19, %v3726_v56  ;;  %v16260_v56 = vld [vmem:[#allocation56_spill] sm:$0xff] }
 0x4c9   :  { %9631 = vmatprep.mubr.msk.bf16.mxu0 %vm16257_vm10, %v13740_v55  ;;  %9888 = vmatpush3.bf16.msra.mxu0 %v10766_v8  ;;  %v16258_v8 = vld [vmem:[#allocation55_spill] sm:$0xff]  ;;  %vm16261_vm12 = vnez %v16260_v56 }
 0x4ca   :  { %9889 = vmatprep.subr.bf16.mxu0 %v15647_v23  ;;  %v3690_v7 = vadd.f32 %v3689_v49, %v3688_v1  ;;  %v3758_v28 = vrot.slane %v3757_v40, 4  ;;  %vm16259_vm10 = vnez %v16258_v8 }
 0x4cb   :  { %9772 = vmatmul.mubr.bf16.gmra.mrb[200].mxu1 %v16214_v18 }
 0x4cc   :  { %v3691_v21 = vrot.slane %v3690_v7, 2  ;;  %v3759_v43 = vadd.f32 %v3758_v28, %v3757_v40  ;;  %v10769_v28 = vld [vmem:[#allocation3 + $0x1b8] sm:$0xff]   ;;  %9775 = vmatprep.mubr.msk.bf16.mxu1 %vm15762_vm3, %v15647_v23 }
 0x4cd   :  { %9890 = vmatpush3.bf16.msra.mxu0 %v10767_v46 }
 0x4ce   :  { %9891 = vmatprep.subr.bf16.mxu0 %v15647_v23  ;;  %v3692_v50 = vadd.f32 %v3691_v21, %v3690_v7  ;;  %v3760_v5 = vrot.slane %v3759_v43, 2  ;;  %v16262_v7 = vld [vmem:[#allocation57_spill] sm:$0xff] }
 0x4d0   :  { %9632 = vmatmul.mubr.msk.bf16.gmra.mrb[136].mxu0 %vm16259_vm10, %v13754_v58  ;;  %v3693_v40 = vrot.slane %v3692_v50, 1  ;;  %v3761_v1 = vadd.f32 %v3760_v5, %v3759_v43  ;;  %vm16263_vm10 = vnez %v16262_v7 }
 0x4d1   :  { %9635 = vmatprep.mubr.msk.bf16.mxu0 %vm16261_vm12, %v13778_v13  ;;  %9892 = vmatpush3.bf16.msra.mxu0 %v10768_v47 }
 0x4d2   :  { %9893 = vmatprep.subr.bf16.mxu0 %v15647_v23  ;;  %v3694_v32 = vadd.f32 %v3693_v40, %v3692_v50  ;;  %v3762_v19 = vrot.slane %v3761_v1, 1  ;;  %v16264_v50 = vld [vmem:[#allocation58_spill] sm:$0xff] }
 0x4d3   :  { %vm16265_vm12 = vnez %v16264_v50  ;;  %9776 = vmatmul.mubr.bf16.gmra.mrb[204].mxu1 %v16278_v30  ;;  %v16280_v50 = vld [vmem:[#allocation63_spill] sm:$0xff] }
 0x4d4   :  { %v3763_v46 = vadd.f32 %v3762_v19, %v3761_v1  ;;  %v14218_v49 = vmul.f32 0.00390625, %v3694_v32  ;;  %v16266_v19 = vld [vmem:[#allocation59_spill] sm:$0xff]  ;;  %9779 = vmatprep.mubr.msk.bf16.mxu1 %vm15762_vm3, %v15647_v23 }
 0x4d5   :  { %9894 = vmatpush3.bf16.msra.mxu0 %v10769_v28 }
 0x4d6   :  { %9955 = vmatprep.subr.bf16.mxu0 %v15647_v23  ;;  %v3765_v47 = vmul.f32 0.00390625, %v3763_v46  ;;  %v3766_v21 = vmul.f32 %v14218_v49, %v14218_v49  ;;  %v3801_v43 = vsub.f32 %v14182_v17, %v14218_v49  ;;  %v16272_v46 = vld [vmem:[#allocation62_spill] sm:$0xff]  ;;  %v3774_v32 = vsub.f32 %v13869_v4, %v14218_v49 }
 0x4d7   :  { %v3775_v1 = vsub.f32 %v13884_v9, %v14218_v49  ;;  %v3776_v18 = vsub.f32 %v13901_v59, %v14218_v49  ;;  %v3781_v4 = vsub.f32 %v13957_v53, %v14218_v49  ;;  %v3782_v9 = vsub.f32 %v13965_v63, %v14218_v49  ;;  %v14313_v63 = vld [vmem:[%s15351_s3 + $0x3] ss:$0 sm:$0xff] }
 0x4d8   :  { %9636 = vmatmul.mubr.msk.bf16.gmra.mrb[140].mxu0 %vm16263_vm10, %v13780_v10  ;;  %v3767_v5 = vsub.f32 %v3765_v47, %v3766_v21  ;;  %v16268_v21 = vld [vmem:[#allocation60_spill] sm:$0xff]  ;;  %v3773_v47 = vsub.f32 %v13812_v15, %v14218_v49  ;;  %v3778_v15 = vsub.f32 %v13911_v54, %v14218_v49  ;;  %v3783_v59 = vsub.f32 %v13975_v33, %v14218_v49 }
 0x4d9   :  { %9639 = vmatprep.mubr.msk.bf16.mxu0 %vm16265_vm12, %v13814_v31  ;;  %vm16267_vm12 = vnez %v16266_v19  ;;  %vm16269_vm10 = vnez %v16268_v21  ;;  %v3787_v53 = vsub.f32 %v14021_v0, %v14218_v49  ;;  %v3788_v33 = vsub.f32 %v14039_v11, %v14218_v49  ;;  %v16279_v11 = vld [vmem:[#allocation27_spill] sm:$0xff] }
 0x4da   :  { %v3768_v28 = vmax.f32 %v3767_v5, 0.0  ;;  %v16270_v5 = vld [vmem:[#allocation61_spill] sm:$0xff] }
 0x4dc   :  { %v3769_v40 = vadd.f32 1e-05, %v3768_v28  ;;  %v3656_v28 = vld [vmem:[%s15351_s3 + $0x2] sm:$0x1] }
 0x4de   :  { %10798 = vrsqrt.f32 %v3769_v40  ;;  %v3772_v40 = vsub.f32 %v13776_v39, %v14218_v49  ;;  %v3777_v39 = vsub.f32 %v13908_v60, %v14218_v49  ;;  %v16275_v60 = vld [vmem:[#allocation28_spill] sm:$0xff] }
 0x4e0   :  { %9640 = vmatmul.mubr.msk.bf16.gmra.mrb[144].mxu0 %vm16267_vm12, %v13839_v24  ;;  %vm16271_vm12 = vnez %v16270_v5  ;;  %v16277_v5 = vld [vmem:[#allocation46_spill] sm:$0xff] }
 0x4e1   :  { %9643 = vmatprep.mubr.msk.bf16.mxu0 %vm16269_vm10, %v13842_v62  ;;  %vm16273_vm10 = vnez %v16272_v46  ;;  %v3779_v46 = vsub.f32 %v13924_v37, %v14218_v49  ;;  %v3785_v37 = vsub.f32 %v16277_v5, %v14218_v49  ;;  %v3790_v5 = vsub.f32 %v14053_v2, %v14218_v49 }
 0x4e8   :  { %9644 = vmatmul.mubr.msk.bf16.gmra.mrb[148].mxu0 %vm16271_vm12, %v13854_v6  ;;  %v10799_v17 = vpop.eup %10798 }
 0x4e9   :  { %9647 = vmatprep.mubr.msk.bf16.mxu0 %vm16273_vm10, %v13862_v44  ;;  %v3771_v42 = vmul.f32 %v10799_v17, %v3656_v28  ;;  %v16274_v44 = vld [vmem:[#allocation26_spill] sm:$0xff]  ;;  %v3784_v17 = vsub.f32 %v16275_v60, %v14218_v49  ;;  %vm16281_vm10 = vnez %v16280_v50 }
 0x4ea   :  { %v3780_v22 = vsub.f32 %v16274_v44, %v14218_v49  ;;  %v16276_v28 = vld [vmem:[#allocation10_spill] sm:$0xff]  ;;  %v3786_v44 = vsub.f32 %v14009_v41, %v14218_v49  ;;  %v3791_v41 = vsub.f32 %v14065_v38, %v14218_v49 }
 0x4eb   :  { %v3807_v54 = vrot.slane %v3771_v42, %v16276_v28  ;;  %v3789_v42 = vsub.f32 %v14046_v16, %v14218_v49 }
 0x4ed   :  { %v3837_v60 = vmul.f32 %v3807_v54, %v3801_v43  ;;  %v3808_v28 = vmul.f32 %v3807_v54, %v3772_v40  ;;  %v3809_v0 = vmul.f32 %v3807_v54, %v3773_v47  ;;  %v3810_v6 = vmul.f32 %v3807_v54, %v3774_v32 }
 0x4ee   :  { %v3811_v21 = vmul.f32 %v3807_v54, %v3775_v1  ;;  %v3812_v62 = vmul.f32 %v3807_v54, %v3776_v18  ;;  %v3813_v19 = vmul.f32 %v3807_v54, %v3777_v39  ;;  %v3814_v24 = vmul.f32 %v3807_v54, %v3778_v15 }
 0x4ef   :  { %v3873_v16 = vadd.f32 %v14313_v63, %v3837_v60  ;;  %v3815_v2 = vmul.f32 %v3807_v54, %v3779_v46  ;;  %v3816_v31 = vmul.f32 %v3807_v54, %v3780_v22  ;;  %v3817_v7 = vmul.f32 %v3807_v54, %v3781_v4 }
 0x4f0   :  { %9648 = vmatmul.mubr.msk.bf16.gmra.mrb[152].mxu0 %vm16281_vm10, %v16279_v11  ;;  %v3818_v38 = vmul.f32 %v3807_v54, %v3782_v9  ;;  %v3819_v43 = vmul.f32 %v3807_v54, %v3783_v59  ;;  %v3820_v32 = vmul.f32 %v3807_v54, %v3784_v17  ;;  %v3821_v47 = vmul.f32 %v3807_v54, %v3785_v37 }
 0x4f1   :  { %9895 = vmatprep.mubr.msk.bf16.mxu0 %vm15762_vm3, %v15647_v23  ;;  %v3905_v18 = vmax.f32 %v3873_v16, 0.0  ;;  %v3822_v1 = vmul.f32 %v3807_v54, %v3786_v44  ;;  %v3823_v40 = vmul.f32 %v3807_v54, %v3787_v53  ;;  %v3824_v39 = vmul.f32 %v3807_v54, %v3788_v33 }
 0x4f2   :  { %v3825_v15 = vmul.f32 %v3807_v54, %v3789_v42  ;;  %v3826_v50 = vmul.f32 %v3807_v54, %v3790_v5  ;;  %v3827_v60 = vmul.f32 %v3807_v54, %v3791_v41  ;;  %v16282_v22 = vsub.f32 %v14083_v25, %v14218_v49  ;;  %v10770_v42 = vld [vmem:[#allocation3 + $0x1c0] sm:$0xff]  }
 0x4f3   :  { %3937 = vst [vmem:[#allocation6 + $0xe8] sm:$0xff] %v3905_v18  ;;  %v16283_v4 = vsub.f32 %v14091_v48, %v14218_v49  ;;  %v16284_v59 = vsub.f32 %v14097_v51, %v14218_v49  ;;  %v16285_v37 = vsub.f32 %v14109_v57, %v14218_v49  ;;  %v16286_v53 = vsub.f32 %v14121_v34, %v14218_v49 }
 0x4f4   :  { %v3828_v46 = vmul.f32 %v3807_v54, %v16282_v22  ;;  %v16287_v25 = vsub.f32 %v14131_v61, %v14218_v49  ;;  %v16288_v48 = vsub.f32 %v14138_v35, %v14218_v49  ;;  %v16289_v51 = vsub.f32 %v14151_v36, %v14218_v49 }
 0x4f5   :  { %v3829_v9 = vmul.f32 %v3807_v54, %v16283_v4  ;;  %v3830_v17 = vmul.f32 %v3807_v54, %v16284_v59  ;;  %v3831_v44 = vmul.f32 %v3807_v54, %v16285_v37  ;;  %v3832_v33 = vmul.f32 %v3807_v54, %v16286_v53  ;;  %v16293_v37 = vld [vmem:[#allocation110_spill] sm:$0xff] }
 0x4f6   :  { %v3833_v5 = vmul.f32 %v3807_v54, %v16287_v25  ;;  %v3834_v41 = vmul.f32 %v3807_v54, %v16288_v48  ;;  %v3835_v16 = vmul.f32 %v3807_v54, %v16289_v51  ;;  %v16290_v57 = vsub.f32 %v14171_v26, %v14218_v49  ;;  %9780 = vmatmul.mubr.bf16.gmra.mrb[208].mxu1 %v16293_v37  ;;  %v16295_v48 = vld [vmem:[#allocation16_spill] sm:$0xff]  ;;  %v16297_v51 = vld [vmem:[#allocation111_spill] sm:$0xff] }
 0x4f7   :  { %v16291_v34 = vsub.f32 %v16252_v3, %v14218_v49  ;;  %v16292_v61 = vsub.f32 %v16253_v52, %v14218_v49  ;;  %v3844_v59 = vadd.f32 %v14313_v63, %v3808_v28  ;;  %v3845_v35 = vadd.f32 %v14313_v63, %v3809_v0  ;;  %v16294_v3 = vld [vmem:[#allocation85_spill] sm:$0xff]  ;;  %9783 = vmatprep.mubr.msk.bf16.mxu1 %vm15762_vm3, %v15647_v23 }
 0x4f8   :  { %v3836_v18 = vmul.f32 %v3807_v54, %v16290_v57  ;;  %v3846_v36 = vadd.f32 %v14313_v63, %v3810_v6  ;;  %v3847_v53 = vadd.f32 %v14313_v63, %v3811_v21  ;;  %v3848_v26 = vadd.f32 %v14313_v63, %v3812_v62  ;;  %v10771_v21 = vld [vmem:[#allocation3 + $0x1c8] sm:$0xff]  }
 0x4f9   :  { %v3838_v22 = vmul.f32 %v3807_v54, %v16291_v34  ;;  %v3839_v4 = vmul.f32 %v3807_v54, %v16292_v61  ;;  %v3849_v25 = vadd.f32 %v14313_v63, %v3813_v19  ;;  %vm16296_vm10 = vnez %v16295_v48  ;;  %v16298_v61 = vld [vmem:[#allocation86_spill] sm:$0xff] }
 0x4fa   :  { %9896 = vmatmul.mubr.msk.bf16.vlgmr.msra.gmra.mrb[156].mxu0 %vm16296_vm10, %v16294_v3  ;;  %v3850_v52 = vadd.f32 %v14313_v63, %v3814_v24  ;;  %v14377_v49 = vadd.f32 %v14313_v63, %v3815_v2  ;;  %v14380_v28 = vadd.f32 %v14313_v63, %v3816_v31  ;;  %v14383_v6 = vadd.f32 %v14313_v63, %v3817_v7 }
 0x4fb   :  { %9956 = vmatpush3.bf16.msra.mxu0 %v10770_v42  ;;  %v14386_v62 = vadd.f32 %v14313_v63, %v3818_v38  ;;  %v14389_v19 = vadd.f32 %v14313_v63, %v3819_v43  ;;  %v14392_v54 = vadd.f32 %v14313_v63, %v3820_v32  ;;  %v14395_v24 = vadd.f32 %v14313_v63, %v3821_v47 }
 0x4fc   :  { %v14400_v31 = vadd.f32 %v14313_v63, %v3822_v1  ;;  %v14403_v7 = vadd.f32 %v14313_v63, %v3823_v40  ;;  %v14406_v0 = vadd.f32 %v14313_v63, %v3824_v39  ;;  %v14409_v2 = vadd.f32 %v14313_v63, %v3825_v15  ;;  %9899 = vmatprep.mubr.msk.bf16.mxu0 %vm15762_vm3, %v15647_v23  ;;  %v10776_v15 = vld [vmem:[#allocation3 + $0x1d0] sm:$0xff]  }
 0x4fd   :  { %v14414_v38 = vadd.f32 %v14313_v63, %v3826_v50  ;;  %v14417_v43 = vadd.f32 %v14313_v63, %v3827_v60  ;;  %v14420_v32 = vadd.f32 %v14313_v63, %v3828_v46  ;;  %v14423_v47 = vadd.f32 %v14313_v63, %v3829_v9  ;;  %9957 = vmatprep.subr.bf16.mxu0 %v15647_v23 }
 0x4fe   :  { %v14427_v1 = vadd.f32 %v14313_v63, %v3830_v17  ;;  %v14430_v40 = vadd.f32 %v14313_v63, %v3831_v44  ;;  %v14433_v50 = vadd.f32 %v14313_v63, %v3832_v33  ;;  %v14436_v39 = vadd.f32 %v14313_v63, %v3833_v5  ;;  %9784 = vmatmul.mubr.bf16.gmra.mrb[212].mxu1 %v16297_v51 }
 0x4ff   :  { %9958 = vmatpush3.bf16.msra.mxu0 %v10771_v21  ;;  %v14439_v60 = vadd.f32 %v14313_v63, %v3834_v41  ;;  %v14442_v46 = vadd.f32 %v14313_v63, %v3835_v16  ;;  %v14445_v9 = vadd.f32 %v14313_v63, %v3836_v18  ;;  %v14448_v17 = vadd.f32 %v14313_v63, %v3838_v22  ;;  %v16299_v18 = vld [vmem:[#allocation18_spill] sm:$0xff] }
 0x500   :  { %9959 = vmatprep.subr.bf16.mxu0 %v15647_v23  ;;  %v14452_v44 = vadd.f32 %v14313_v63, %v3839_v4  ;;  %v3876_v33 = vmax.f32 %v3844_v59, 0.0  ;;  %v3877_v42 = vmax.f32 %v3845_v35, 0.0  ;;  %v3878_v5 = vmax.f32 %v3846_v36, 0.0  ;;  %9787 = vmatprep.mubr.msk.bf16.mxu1 %vm15762_vm3, %v15647_v23  ;;  %v10781_v35 = vld [vmem:[#allocation3 + $0x1d8] sm:$0xff]  }
 0x501   :  { %v3879_v41 = vmax.f32 %v3847_v53, 0.0  ;;  %v3880_v57 = vmax.f32 %v3848_v26, 0.0  ;;  %v3881_v16 = vmax.f32 %v3849_v25, 0.0  ;;  %v3882_v34 = vmax.f32 %v3850_v52, 0.0 }
 0x502   :  { %vm16300_vm10 = vnez %v16299_v18  ;;  %v3883_v22 = vmax.f32 %v14377_v49, 0.0  ;;  %v3884_v63 = vmax.f32 %v14380_v28, 0.0  ;;  %v3885_v4 = vmax.f32 %v14383_v6, 0.0  ;;  %3908 = vst [vmem:[#allocation6] sm:$0xff] %v3876_v33  ;;  %3909 = vst [vmem:[#allocation6 + $0x8] sm:$0xff] %v3877_v42  ;;  %v16311_v33 = vld [vmem:[#allocation91_spill] sm:$0xff] }
 0x503   :  { %9900 = vmatmul.mubr.msk.bf16.gmra.mrb[160].mxu0 %vm16300_vm10, %v16298_v61  ;;  %v3886_v59 = vmax.f32 %v14386_v62, 0.0  ;;  %3910 = vst [vmem:[#allocation6 + $0x10] sm:$0xff] %v3878_v5  ;;  %v3887_v36 = vmax.f32 %v14389_v19, 0.0  ;;  %v3888_v53 = vmax.f32 %v14392_v54, 0.0  ;;  %v3889_v26 = vmax.f32 %v14395_v24, 0.0  ;;  %3911 = vst [vmem:[#allocation6 + $0x18] sm:$0xff] %v3879_v41 }
 0x504   :  { %9903 = vmatprep.mubr.msk.bf16.mxu0 %vm15762_vm3, %v15647_v23  ;;  %9960 = vmatpush3.bf16.msra.mxu0 %v10776_v15  ;;  %v3890_v25 = vmax.f32 %v14400_v31, 0.0  ;;  %3912 = vst [vmem:[#allocation6 + $0x20] sm:$0xff] %v3880_v57  ;;  %3913 = vst [vmem:[#allocation6 + $0x28] sm:$0xff] %v3881_v16  ;;  %v3891_v3 = vmax.f32 %v14403_v7, 0.0  ;;  %v3892_v48 = vmax.f32 %v14406_v0, 0.0  ;;  %v3893_v52 = vmax.f32 %v14409_v2, 0.0 }
 0x505   :  { %3914 = vst [vmem:[#allocation6 + $0x30] sm:$0xff] %v3882_v34  ;;  %9961 = vmatprep.subr.bf16.mxu0 %v15647_v23  ;;  %v3894_v49 = vmax.f32 %v14414_v38, 0.0  ;;  %3915 = vst [vmem:[#allocation6 + $0x38] sm:$0xff] %v3883_v22  ;;  %v3895_v28 = vmax.f32 %v14417_v43, 0.0  ;;  %v3896_v6 = vmax.f32 %v14420_v32, 0.0  ;;  %v3897_v21 = vmax.f32 %v14423_v47, 0.0 }
 0x506   :  { %3916 = vst [vmem:[#allocation6 + $0x40] sm:$0xff] %v3884_v63  ;;  %3917 = vst [vmem:[#allocation6 + $0x48] sm:$0xff] %v3885_v4  ;;  %v3898_v62 = vmax.f32 %v14427_v1, 0.0  ;;  %v3899_v19 = vmax.f32 %v14430_v40, 0.0  ;;  %v3900_v54 = vmax.f32 %v14433_v50, 0.0  ;;  %v3901_v24 = vmax.f32 %v14436_v39, 0.0 }
 0x507   :  { %3918 = vst [vmem:[#allocation6 + $0x50] sm:$0xff] %v3886_v59  ;;  %3919 = vst [vmem:[#allocation6 + $0x58] sm:$0xff] %v3887_v36  ;;  %v3902_v31 = vmax.f32 %v14439_v60, 0.0  ;;  %v10782_v7 = vld [vmem:[#allocation3 + $0x1e0] sm:$0xff]   ;;  %v3903_v0 = vmax.f32 %v14442_v46, 0.0  ;;  %v3904_v2 = vmax.f32 %v14445_v9, 0.0 }
 0x508   :  { %3920 = vst [vmem:[#allocation6 + $0x60] sm:$0xff] %v3888_v53  ;;  %3921 = vst [vmem:[#allocation6 + $0x68] sm:$0xff] %v3889_v26  ;;  %9962 = vmatpush3.bf16.msra.mxu0 %v10781_v35  ;;  %v3906_v38 = vmax.f32 %v14448_v17, 0.0  ;;  %v3907_v43 = vmax.f32 %v14452_v44, 0.0  ;;  %v16301_v32 = vld [vmem:[#allocation112_spill] sm:$0xff]  ;;  %v16302_v47 = vld [vmem:[#allocation15_spill] sm:$0xff] }
 0x509   :  { %3922 = vst [vmem:[#allocation6 + $0x70] sm:$0xff] %v3890_v25  ;;  %3923 = vst [vmem:[#allocation6 + $0x78] sm:$0xff] %v3891_v3  ;;  %9963 = vmatprep.subr.bf16.mxu0 %v15647_v23  ;;  %9788 = vmatmul.mubr.bf16.gmra.mrb[216].mxu1 %v16301_v32  ;;  %v16303_v1 = vld [vmem:[#allocation23_spill] sm:$0xff]  ;;  %v10783_v40 = vld [vmem:[#allocation3 + $0x1e8] sm:$0xff]  }
 0x50a   :  { %3924 = vst [vmem:[#allocation6 + $0x80] sm:$0xff] %v3892_v48  ;;  %3925 = vst [vmem:[#allocation6 + $0x88] sm:$0xff] %v3893_v52  ;;  %vm16304_vm10 = vnez %v16303_v1  ;;  %9791 = vmatprep.mubr.msk.bf16.mxu1 %vm15762_vm3, %v15647_v23  ;;  %v10784_v50 = vld [vmem:[#allocation3 + $0x1f0] sm:$0xff]   ;;  %v16305_v39 = vld [vmem:[#allocation113_spill] sm:$0xff] }
 0x50b   :  { %3926 = vst [vmem:[#allocation6 + $0x90] sm:$0xff] %v3894_v49  ;;  %3927 = vst [vmem:[#allocation6 + $0x98] sm:$0xff] %v3895_v28  ;;  %9904 = vmatmul.mubr.msk.bf16.gmra.mrb[164].mxu0 %vm16304_vm10, %v16302_v47  ;;  %v16306_v15 = vld [vmem:[#allocation88_spill] sm:$0xff]  ;;  %v16308_v9 = vld [vmem:[#allocation114_spill] sm:$0xff] }
 0x50c   :  { %3928 = vst [vmem:[#allocation6 + $0xa0] sm:$0xff] %v3896_v6  ;;  %3929 = vst [vmem:[#allocation6 + $0xa8] sm:$0xff] %v3897_v21  ;;  %9907 = vmatprep.mubr.msk.bf16.mxu0 %vm15762_vm3, %v15647_v23  ;;  %9964 = vmatpush3.bf16.msra.mxu0 %v10782_v7  ;;  %v10785_v46 = vld [vmem:[#allocation3 + $0x1f8] sm:$0xff]   ;;  %v16309_v17 = vld [vmem:[#allocation90_spill] sm:$0xff] }
 0x50d   :  { %3930 = vst [vmem:[#allocation6 + $0xb0] sm:$0xff] %v3898_v62  ;;  %3931 = vst [vmem:[#allocation6 + $0xb8] sm:$0xff] %v3899_v19  ;;  %9965 = vmatprep.subr.bf16.mxu0 %v15647_v23  ;;  %v16313_v5 = vld [vmem:[#allocation92_spill] sm:$0xff]  ;;  %v16316_v16 = vld [vmem:[#allocation93_spill] sm:$0xff] }
 0x50e   :  { %3932 = vst [vmem:[#allocation6 + $0xc0] sm:$0xff] %v3900_v54  ;;  %3933 = vst [vmem:[#allocation6 + $0xc8] sm:$0xff] %v3901_v24  ;;  %v16321_v18 = vld [vmem:[#allocation116_spill] sm:$0xff]  ;;  %v16323_v63 = vld [vmem:[#allocation95_spill] sm:$0xff] }
 0x50f   :  { %3934 = vst [vmem:[#allocation6 + $0xd0] sm:$0xff] %v3902_v31  ;;  %3935 = vst [vmem:[#allocation6 + $0xd8] sm:$0xff] %v3903_v0  ;;  %v16325_v59 = vld [vmem:[#allocation117_spill] sm:$0xff]  ;;  %v16327_v36 = vld [vmem:[#allocation96_spill] sm:$0xff] }
 0x510   :  { %3936 = vst [vmem:[#allocation6 + $0xe0] sm:$0xff] %v3904_v2  ;;  %3938 = vst [vmem:[#allocation6 + $0xf0] sm:$0xff] %v3906_v38  ;;  %9966 = vmatpush3.bf16.msra.mxu0 %v10783_v40  ;;  %v16329_v26 = vld [vmem:[#allocation118_spill] sm:$0xff]  ;;  %v16330_v25 = vld [vmem:[#allocation53_spill] sm:$0xff] }
 0x511   :  { %3939 = vst [vmem:[#allocation6 + $0xf8] sm:$0xff] %v3907_v43  ;;  %9967 = vmatprep.subr.bf16.mxu0 %v15647_v23  ;;  %9792 = vmatmul.mubr.bf16.gmra.mrb[220].mxu1 %v16305_v39  ;;  %v16332_v3 = vld [vmem:[#allocation97_spill] sm:$0xff]  ;;  %v16333_v48 = vld [vmem:[#allocation50_spill] sm:$0xff]  ;;  %v16337_v49 = vld [vmem:[#allocation24_spill] sm:$0xff] }
 0x512   :  { %9795 = vmatprep.mubr.msk.bf16.mxu1 %vm15762_vm3, %v15647_v23  ;;  %v16336_v52 = vld [vmem:[#allocation98_spill] sm:$0xff]  ;;  %v16340_v28 = vld [vmem:[#allocation99_spill] sm:$0xff]  ;;  %v16344_v21 = vld [vmem:[#allocation100_spill] sm:$0xff] }
 0x513   :  { %9908 = vmatmul.mubr.msk.bf16.gmra.mrb[168].mxu0 %vm16054_vm14, %v16306_v15  ;;  %vm16334_vm14 = vnez %v16333_v48  ;;  %v16341_v6 = vld [vmem:[#allocation51_spill] sm:$0xff]  ;;  %v16345_v62 = vld [vmem:[#allocation52_spill] sm:$0xff]  ;;  %v10786_v19 = vld [vmem:[#allocation3 + $0x200] sm:$0xff]  }
 0x514   :  { %9911 = vmatprep.mubr.msk.bf16.mxu0 %vm15762_vm3, %v15647_v23  ;;  %9968 = vmatpush3.bf16.msra.mxu0 %v10784_v50  ;;  %v16347_v54 = vld [vmem:[#allocation57_spill] sm:$0xff]  ;;  %v16349_v24 = vld [vmem:[#allocation102_spill] sm:$0xff]  ;;  %v10788_v7 = vld [vmem:[#allocation3 + $0x210] sm:$0xff]  }
 0x515   :  { %9969 = vmatprep.subr.bf16.mxu0 %v15647_v23  ;;  %v10787_v31 = vld [vmem:[#allocation3 + $0x208] sm:$0xff]   ;;  %v16350_v0 = vld [vmem:[#allocation17_spill] sm:$0xff]  ;;  %v16353_v38 = vld [vmem:[#allocation103_spill] sm:$0xff] }
 0x516   :  { %v16351_v2 = vld [vmem:[#allocation58_spill] sm:$0xff]  ;;  %v10789_v43 = vld [vmem:[#allocation3 + $0x218] sm:$0xff]   ;;  %v10790_v47 = vld [vmem:[#allocation3 + $0x220] sm:$0xff]  }
 0x517   :  { %vm16352_vm10 = vnez %v16351_v2  ;;  %v16354_v1 = vld [vmem:[#allocation14_spill] sm:$0xff]  ;;  %v16355_v40 = vld [vmem:[#allocation59_spill] sm:$0xff]  ;;  %v16357_v50 = vld [vmem:[#allocation104_spill] sm:$0xff] }
 0x518   :  { %9970 = vmatpush3.bf16.msra.mxu0 %v10785_v46  ;;  %v10791_v15 = vld [vmem:[#allocation3 + $0x228] sm:$0xff]   ;;  %v10792_v60 = vld [vmem:[#allocation3 + $0x230] sm:$0xff]   ;;  %v16361_v44 = vld [vmem:[#allocation105_spill] sm:$0xff] }
 0x519   :  { %10031 = vmatprep.subr.bf16.mxu0 %v15647_v23  ;;  %9796 = vmatmul.mubr.bf16.gmra.mrb[224].mxu1 %v16308_v9  ;;  %v16358_v46 = vld [vmem:[#allocation119_spill] sm:$0xff]  ;;  %v16364_v34 = vld [vmem:[#allocation120_spill] sm:$0xff]  ;;  %v16366_v61 = vld [vmem:[#allocation106_spill] sm:$0xff] }
 0x51a   :  { %9799 = vmatprep.mubr.msk.bf16.mxu1 %vm15762_vm3, %v15647_v23  ;;  %v16368_v48 = vld [vmem:[#allocation62_spill] sm:$0xff] }
 0x51b   :  { %9912 = vmatmul.mubr.msk.bf16.gmra.mrb[172].mxu0 %vm16091_vm9, %v16309_v17  ;;  %vm16338_vm9 = vnez %v16337_v49  ;;  %v16359_v17 = vld [vmem:[#allocation60_spill] sm:$0xff] }
 0x51c   :  { %9915 = vmatprep.mubr.msk.bf16.mxu0 %vm15762_vm3, %v15647_v23 }
 0x521   :  { %9800 = vmatmul.mubr.bf16.gmra.mrb[228].mxu1 %v16232_v29 }
 0x522   :  { %9819 = vmatprep.mubr.msk.bf16.mxu1 %vm15762_vm3, %v15647_v23 }
 0x523   :  { %9916 = vmatmul.mubr.msk.bf16.gmra.mrb[176].mxu0 %vm16098_vm6, %v16311_v33  ;;  %vm16342_vm6 = vnez %v16341_v6  ;;  %v10793_v33 = vld [vmem:[#allocation3 + $0x238] sm:$0xff]  }
 0x524   :  { %9919 = vmatprep.mubr.msk.bf16.mxu0 %vm15762_vm3, %v15647_v23 }
 0x529   :  { %9820 = vmatmul.mubr.msk.bf16.vlgmr.msra.gmra.mrb[172].mxu1 %vm16237_vm0, %v13645_v20  ;;  %vm16348_vm0 = vnez %v16347_v54 }
 0x52a   :  { %9823 = vmatprep.mubr.msk.bf16.mxu1 %vm15762_vm3, %v15647_v23 }
 0x52b   :  { %9920 = vmatmul.mubr.msk.bf16.gmra.mrb[180].mxu0 %vm16146_vm8, %v16313_v5  ;;  %vm16339_vm8 = vnez %v16258_v8 }
 0x52c   :  { %9923 = vmatprep.mubr.msk.bf16.mxu0 %vm15762_vm3, %v15647_v23 }
 0x531   :  { %9824 = vmatmul.mubr.msk.bf16.gmra.mrb[176].mxu1 %vm16241_vm7, %v13649_v27 }
 0x532   :  { %9827 = vmatprep.mubr.msk.bf16.mxu1 %vm15762_vm3, %v15647_v23 }
 0x533   :  { %9924 = vmatmul.mubr.msk.bf16.gmra.mrb[184].mxu0 %vm16197_vm4, %v16316_v16  ;;  %vm16346_vm4 = vnez %v16345_v62  ;;  %v16371_v62 = vld [vmem:[#allocation108_spill] sm:$0xff] }
 0x534   :  { %9927 = vmatprep.mubr.msk.bf16.mxu0 %vm15762_vm3, %v15647_v23 }
 0x539   :  { %9828 = vmatmul.mubr.msk.bf16.gmra.mrb[180].mxu1 %vm16244_vm11, %v13672_v45 }
 0x53a   :  { %9831 = vmatprep.mubr.msk.bf16.mxu1 %vm15762_vm3, %v15647_v23 }
 0x53b   :  { %9928 = vmatmul.mubr.msk.bf16.gmra.mrb[188].mxu0 %vm16175_vm1, %v16319_v12  ;;  %vm16343_vm1 = vnez %v16260_v56 }
 0x53c   :  { %9931 = vmatprep.mubr.msk.bf16.mxu0 %vm15762_vm3, %v15647_v23 }
 0x541   :  { %9832 = vmatmul.mubr.msk.bf16.gmra.mrb[184].mxu1 %vm16246_vm5, %v16321_v18 }
 0x542   :  { %9835 = vmatprep.mubr.msk.bf16.mxu1 %vm15762_vm3, %v15647_v23 }
 0x543   :  { %9932 = vmatmul.mubr.msk.bf16.gmra.mrb[192].mxu0 %vm11919_vm13, %v16323_v63  ;;  %vm16331_vm13 = vnez %v16330_v25 }
 0x544   :  { %9935 = vmatprep.mubr.msk.bf16.mxu0 %vm15762_vm3, %v15647_v23 }
 0x549   :  { %9836 = vmatmul.mubr.msk.bf16.gmra.mrb[188].mxu1 %vm16250_vm15, %v16325_v59 }
 0x54a   :  { %9839 = vmatprep.mubr.msk.bf16.mxu1 %vm15762_vm3, %v15647_v23 }
 0x54b   :  { %9936 = vmatmul.mubr.msk.bf16.gmra.mrb[196].mxu0 %vm11977_vm2, %v16327_v36  ;;  %vm16335_vm2 = vnez %v16256_v14 }
 0x54c   :  { %9939 = vmatprep.mubr.msk.bf16.mxu0 %vm15762_vm3, %v15647_v23 }
 0x551   :  { %9840 = vmatmul.mubr.msk.bf16.gmra.mrb[192].mxu1 %vm16331_vm13, %v16329_v26 }
 0x552   :  { %9843 = vmatprep.mubr.msk.bf16.mxu1 %vm15762_vm3, %v15647_v23 }
 0x553   :  { %9940 = vmatmul.mubr.msk.bf16.gmra.mrb[200].mxu0 %vm16334_vm14, %v16332_v3  ;;  %vm16356_vm14 = vnez %v16355_v40  ;;  %v16367_v3 = vld [vmem:[#allocation121_spill] sm:$0xff] }
 0x554   :  { %9943 = vmatprep.mubr.msk.bf16.mxu0 %vm15762_vm3, %v15647_v23 }
 0x559   :  { %9844 = vmatmul.mubr.msk.bf16.gmra.mrb[196].mxu1 %vm16335_vm2, %v13740_v55 }
 0x55a   :  { %9847 = vmatprep.mubr.msk.bf16.mxu1 %vm15762_vm3, %v15647_v23 }
 0x55b   :  { %9944 = vmatmul.mubr.msk.bf16.gmra.mrb[204].mxu0 %vm16338_vm9, %v16336_v52  ;;  %vm16360_vm9 = vnez %v16359_v17  ;;  %v16370_v52 = vld [vmem:[#allocation107_spill] sm:$0xff] }
 0x55c   :  { %9947 = vmatprep.mubr.msk.bf16.mxu0 %vm15762_vm3, %v15647_v23 }
 0x561   :  { %9848 = vmatmul.mubr.msk.bf16.gmra.mrb[200].mxu1 %vm16339_vm8, %v13754_v58 }
 0x562   :  { %9851 = vmatprep.mubr.msk.bf16.mxu1 %vm15762_vm3, %v15647_v23 }
 0x563   :  { %9948 = vmatmul.mubr.msk.bf16.gmra.mrb[208].mxu0 %vm16342_vm6, %v16340_v28  ;;  %vm16369_vm6 = vnez %v16368_v48 }
 0x564   :  { %9951 = vmatprep.mubr.msk.bf16.mxu0 %vm15762_vm3, %v15647_v23 }
 0x569   :  { %9852 = vmatmul.mubr.msk.bf16.gmra.mrb[204].mxu1 %vm16343_vm1, %v13778_v13 }
 0x56a   :  { %9855 = vmatprep.mubr.msk.bf16.mxu1 %vm15762_vm3, %v15647_v23 }
 0x56b   :  { %9952 = vmatmul.mubr.msk.bf16.gmra.mrb[212].mxu0 %vm16346_vm4, %v16344_v21 }
 0x56c   :  { %9971 = vmatprep.mubr.msk.bf16.mxu0 %vm15762_vm3, %v15647_v23 }
 0x571   :  { %9856 = vmatmul.mubr.msk.bf16.gmra.mrb[208].mxu1 %vm16348_vm0, %v13780_v10 }
 0x572   :  { %9859 = vmatprep.mubr.msk.bf16.mxu1 %vm15762_vm3, %v15647_v23 }
 0x573   :  { %9972 = vmatmul.mubr.bf16.vlgmr.msra.gmra.mrb[156].mxu0 %v16349_v24 }
 0x574   :  { %10032 = vmatpush3.bf16.msra.mxu0 %v10786_v19  ;;  %9975 = vmatprep.mubr.msk.bf16.mxu0 %vm15762_vm3, %v15647_v23 }
 0x575   :  { %10033 = vmatprep.subr.bf16.mxu0 %v15647_v23 }
 0x578   :  { %10034 = vmatpush3.bf16.msra.mxu0 %v10787_v31 }
 0x579   :  { %10035 = vmatprep.subr.bf16.mxu0 %v15647_v23  ;;  %9860 = vmatmul.mubr.msk.bf16.gmra.mrb[212].mxu1 %vm16352_vm10, %v16350_v0 }
 0x57a   :  { %9863 = vmatprep.mubr.msk.bf16.mxu1 %vm15762_vm3, %v15647_v23 }
 0x57b   :  { %9976 = vmatmul.mubr.bf16.gmra.mrb[160].mxu0 %v16353_v38 }
 0x57c   :  { %9979 = vmatprep.mubr.msk.bf16.mxu0 %vm15762_vm3, %v15647_v23  ;;  %10036 = vmatpush3.bf16.msra.mxu0 %v10788_v7 }
 0x57d   :  { %10037 = vmatprep.subr.bf16.mxu0 %v15647_v23 }
 0x580   :  { %10038 = vmatpush3.bf16.msra.mxu0 %v10789_v43 }
 0x581   :  { %10039 = vmatprep.subr.bf16.mxu0 %v15647_v23  ;;  %9864 = vmatmul.mubr.msk.bf16.gmra.mrb[216].mxu1 %vm16356_vm14, %v16354_v1 }
 0x582   :  { %9867 = vmatprep.mubr.msk.bf16.mxu1 %vm15762_vm3, %v15647_v23 }
 0x583   :  { %9980 = vmatmul.mubr.bf16.gmra.mrb[216].mxu0 %v16357_v50 }
 0x584   :  { %9983 = vmatprep.mubr.msk.bf16.mxu0 %vm15762_vm3, %v15647_v23  ;;  %10040 = vmatpush3.bf16.msra.mxu0 %v10790_v47 }
 0x585   :  { %10041 = vmatprep.subr.bf16.mxu0 %v15647_v23 }
 0x588   :  { %10042 = vmatpush3.bf16.msra.mxu0 %v10791_v15 }
 0x589   :  { %10043 = vmatprep.subr.bf16.mxu0 %v15647_v23  ;;  %9868 = vmatmul.mubr.msk.bf16.gmra.mrb[220].mxu1 %vm16360_vm9, %v16358_v46 }
 0x58a   :  { %9871 = vmatprep.mubr.msk.bf16.mxu1 %vm15762_vm3, %v15647_v23 }
 0x58b   :  { %9984 = vmatmul.mubr.bf16.gmra.mrb[168].mxu0 %v16361_v44  ;;  %v14653_v42 = vpop.f32.mrb[124].mxu0 }
 0x58c   :  { %9987 = vmatprep.mubr.msk.bf16.mxu0 %vm15762_vm3, %v15647_v23  ;;  %10044 = vmatpush3.bf16.msra.mxu0 %v10792_v60  ;;  %v14655_v5 = vpop.f32.mrb[125].mxu0 }
 0x58d   :  { %10045 = vmatprep.subr.bf16.mxu0 %v15647_v23  ;;  %16362 = vst [vmem:[#allocation29_spill] sm:$0xff] %v14655_v5  ;;  %v14657_v41 = vpop.f32.mrb[126].mxu0 }
 0x58e   :  { %v14659_v16 = vpop.f32.mrb[127].mxu0 }
 0x58f   :  { %16363 = vst [vmem:[#allocation30_spill] sm:$0xff] %v14659_v16 }
 0x590   :  { %10046 = vmatpush3.bf16.msra.mxu0 %v10793_v33 }
 0x591   :  { %9872 = vmatmul.mubr.msk.bf16.gmra.mrb[224].mxu1 %vm16271_vm12, %v16364_v34 }
 0x592   :  { %9875 = vmatprep.mubr.msk.bf16.mxu1 %vm15762_vm3, %v15647_v23 }
 0x593   :  { %9988 = vmatmul.mubr.bf16.gmra.mrb[220].mxu0 %v16366_v61  ;;  %v14669_v63 = vpop.f32.mrb[128].mxu0 }
 0x594   :  { %9991 = vmatprep.mubr.msk.bf16.mxu0 %vm15762_vm3, %v15647_v23  ;;  %v14671_v4 = vpop.f32.mrb[129].mxu0 }
 0x595   :  { %v14673_v36 = vpop.f32.mrb[130].mxu0 }
 0x596   :  { %v14675_v53 = vpop.f32.mrb[131].mxu0 }
 0x599   :  { %9876 = vmatmul.mubr.msk.bf16.gmra.mrb[228].mxu1 %vm16369_vm6, %v16367_v3 }
 0x59b   :  { %9992 = vmatmul.mubr.bf16.gmra.mrb[176].mxu0 %v16370_v52  ;;  %v14683_v49 = vpop.f32.mrb[132].mxu0 }
 0x59c   :  { %9995 = vmatprep.mubr.msk.bf16.mxu0 %vm15762_vm3, %v15647_v23  ;;  %v14685_v28 = vpop.f32.mrb[133].mxu0 }
 0x59d   :  { %v14687_v6 = vpop.f32.mrb[134].mxu0 }
 0x59e   :  { %v14689_v21 = vpop.f32.mrb[135].mxu0 }
 0x5a3   :  { %9996 = vmatmul.mubr.bf16.gmra.mrb[224].mxu0 %v16371_v62  ;;  %v14694_v19 = vpop.f32.mrb[136].mxu0 }
 0x5a4   :  { %9999 = vmatprep.mubr.msk.bf16.mxu0 %vm15762_vm3, %v15647_v23  ;;  %v14696_v24 = vpop.f32.mrb[137].mxu0 }
 0x5a5   :  { %v14698_v31 = vpop.f32.mrb[138].mxu0 }
 0x5a6   :  { %v14700_v7 = vpop.f32.mrb[139].mxu0 }
 0x5ab   :  { %10000 = vmatmul.mubr.bf16.gmra.mrb[184].mxu0 %v16278_v30  ;;  %v14705_v38 = vpop.f32.mrb[140].mxu0 }
 0x5ac   :  { %10003 = vmatprep.mubr.msk.bf16.mxu0 %vm15762_vm3, %v15647_v23  ;;  %v14707_v43 = vpop.f32.mrb[141].mxu0 }
 0x5ad   :  { %v14709_v47 = vpop.f32.mrb[142].mxu0 }
 0x5ae   :  { %v14711_v50 = vpop.f32.mrb[143].mxu0 }
 0x5b3   :  { %10004 = vmatmul.mubr.bf16.gmra.mrb[228].mxu0 %v16293_v37  ;;  %v14716_v15 = vpop.f32.mrb[144].mxu0 }
 0x5b4   :  { %10007 = vmatprep.mubr.msk.bf16.mxu0 %vm15762_vm3, %v15647_v23  ;;  %v14718_v60 = vpop.f32.mrb[145].mxu0 }
 0x5b5   :  { %v14720_v30 = vpop.f32.mrb[146].mxu0 }
 0x5b6   :  { %v14722_v44 = vpop.f32.mrb[147].mxu0 }
 0x5bb   :  { %10008 = vmatmul.mubr.bf16.gmra.mrb[192].mxu0 %v16297_v51  ;;  %v14727_v33 = vpop.f32.mrb[148].mxu0 }
 0x5bc   :  { %10011 = vmatprep.mubr.msk.bf16.mxu0 %vm15762_vm3, %v15647_v23  ;;  %v14729_v61 = vpop.f32.mrb[149].mxu0 }
 0x5bd   :  { %v14731_v37 = vpop.f32.mrb[150].mxu0 }
 0x5be   :  { %v14733_v52 = vpop.f32.mrb[151].mxu0 }
 0x5c3   :  { %10012 = vmatmul.mubr.bf16.gmra.mrb[232].mxu0 %v16301_v32  ;;  %v14738_v62 = vpop.f32.mrb[152].mxu0 }
 0x5c4   :  { %10015 = vmatprep.mubr.msk.bf16.mxu0 %vm15762_vm3, %v15647_v23  ;;  %16372 = vst [vmem:[#allocation31_spill] sm:$0xff] %v14738_v62  ;;  %v14740_v16 = vpop.f32.mrb[153].mxu0 }
 0x5c5   :  { %16373 = vst [vmem:[#allocation22_spill] sm:$0xff] %v14740_v16  ;;  %v14742_v51 = vpop.f32.mrb[154].mxu0 }
 0x5c6   :  { %16374 = vst [vmem:[#allocation32_spill] sm:$0xff] %v14742_v51  ;;  %v14744_v5 = vpop.f32.mrb[155].mxu0 }
 0x5c7   :  { %16375 = vst [vmem:[#allocation47_spill] sm:$0xff] %v14744_v5 }
 0x5cb   :  { %10016 = vmatmul.mubr.bf16.gmra.mrb[200].mxu0 %v16305_v39  ;;  %v16376_v39 = vld [vmem:[#allocation13_spill] sm:$0xff] }
 0x5cc   :  { %10019 = vmatprep.mubr.msk.bf16.mxu0 %vm15762_vm3, %v15647_v23 }
 0x5d3   :  { %10020 = vmatmul.mubr.bf16.gmra.mrb[236].mxu0 %v16308_v9 }
 0x5d4   :  { %10023 = vmatprep.mubr.msk.bf16.mxu0 %vm15762_vm3, %v15647_v23 }
 0x5db   :  { %10024 = vmatmul.mubr.bf16.gmra.mrb[208].mxu0 %v16232_v29 }
 0x5dc   :  { %10027 = vmatprep.mubr.msk.bf16.mxu0 %vm15762_vm3, %v15647_v23 }
 0x5de   :  { %v14755_v32 = vpop.f32.mrb[164].mxu0 }
 0x5df   :  { %v9905_v51 = vpop.f32.mrb[165].mxu0 }
 0x5e0   :  { %v14757_v62 = vpop.f32.mrb[166].mxu0 }
 0x5e1   :  { %v9906_v5 = vpop.f32.mrb[167].mxu0 }
 0x5e3   :  { %10028 = vmatmul.mubr.bf16.gmra.mrb[240].mxu0 %v16376_v39 }
 0x5e4   :  { %10047 = vmatprep.mubr.msk.bf16.mxu0 %vm15762_vm3, %v15647_v23 }
 0x5eb   :  { %10048 = vmatmul.mubr.msk.bf16.vlgmr.msra.gmra.mrb[156].mxu0 %vm16241_vm7, %v13649_v27 }
 0x5ec   :  { %10051 = vmatprep.mubr.msk.bf16.mxu0 %vm15762_vm3, %v15647_v23 }
 0x5ee   :  { %v14767_v29 = vpop.f32.mrb[172].mxu0 }
 0x5ef   :  { %v9913_v9 = vpop.f32.mrb[173].mxu0 }
 0x5f0   :  { %v14769_v16 = vpop.f32.mrb[174].mxu0 }
 0x5f1   :  { %16377 = vst [vmem:[#allocation101_spill] sm:$0xff] %v14769_v16  ;;  %v9914_v51 = vpop.f32.mrb[175].mxu0 }
 0x5f3   :  { %10052 = vmatmul.mubr.msk.bf16.gmra.mrb[160].mxu0 %vm16244_vm11, %v13672_v45 }
 0x5f4   :  { %10055 = vmatprep.mubr.msk.bf16.mxu0 %vm15762_vm3, %v15647_v23 }
 0x5fb   :  { %10056 = vmatmul.mubr.msk.bf16.gmra.mrb[244].mxu0 %vm16246_vm5, %v16321_v18 }
 0x5fc   :  { %10059 = vmatprep.mubr.msk.bf16.mxu0 %vm15762_vm3, %v15647_v23  ;;  %v6059_v27 = vpop.f32.mrb[172].mxu1 }
 0x5fd   :  { %v14782_v57 = vadd.f32 %v14653_v42, %v6059_v27  ;;  %v9821_v5 = vpop.f32.mrb[173].mxu1 }
 0x5fe   :  { %v14784_v39 = vpop.f32.mrb[180].mxu0  ;;  %v6062_v9 = vpop.f32.mrb[174].mxu1 }
 0x5ff   :  { %v9921_v20 = vpop.f32.mrb[181].mxu0  ;;  %v14787_v45 = vadd.f32 %v14657_v41, %v6062_v9  ;;  %v9822_v51 = vpop.f32.mrb[175].mxu1 }
 0x600   :  { %v14789_v16 = vpop.f32.mrb[182].mxu0 }
 0x601   :  { %v9922_v22 = vpop.f32.mrb[183].mxu0 }
 0x603   :  { %10060 = vmatmul.mubr.msk.bf16.gmra.mrb[168].mxu0 %vm16250_vm15, %v16325_v59 }
 0x604   :  { %10063 = vmatprep.mubr.msk.bf16.mxu0 %vm15762_vm3, %v15647_v23  ;;  %v6067_v18 = vpop.f32.mrb[176].mxu1 }
 0x605   :  { %v14797_v42 = vadd.f32 %v6067_v18, %v14671_v4  ;;  %v9825_v27 = vpop.f32.mrb[177].mxu1 }
 0x606   :  { %v6070_v5 = vpop.f32.mrb[178].mxu1 }
 0x607   :  { %v14800_v41 = vadd.f32 %v6070_v5, %v14675_v53  ;;  %v9826_v9 = vpop.f32.mrb[179].mxu1 }
 0x60b   :  { %10064 = vmatmul.mubr.msk.bf16.gmra.mrb[248].mxu0 %vm16331_vm13, %v16329_v26 }
 0x60c   :  { %10067 = vmatprep.mubr.msk.bf16.mxu0 %vm15762_vm3, %v15647_v23  ;;  %v6075_v59 = vpop.f32.mrb[180].mxu1 }
 0x60d   :  { %v14808_v35 = vadd.f32 %v14669_v63, %v6075_v59  ;;  %v9829_v20 = vpop.f32.mrb[181].mxu1 }
 0x60e   :  { %v14810_v4 = vpop.f32.mrb[188].mxu0  ;;  %v6078_v51 = vpop.f32.mrb[182].mxu1 }
 0x60f   :  { %v9929_v22 = vpop.f32.mrb[189].mxu0  ;;  %v14813_v53 = vadd.f32 %v14673_v36, %v6078_v51  ;;  %v9830_v18 = vpop.f32.mrb[183].mxu1 }
 0x610   :  { %v14815_v27 = vpop.f32.mrb[190].mxu0 }
 0x611   :  { %v9930_v25 = vpop.f32.mrb[191].mxu0 }
 0x613   :  { %10068 = vmatmul.mubr.msk.bf16.gmra.mrb[176].mxu0 %vm16335_vm2, %v13740_v55 }
 0x614   :  { %10071 = vmatprep.mubr.msk.bf16.mxu0 %vm15762_vm3, %v15647_v23  ;;  %v6083_v26 = vpop.f32.mrb[184].mxu1 }
 0x615   :  { %v14823_v63 = vadd.f32 %v6083_v26, %v14685_v28  ;;  %v9833_v5 = vpop.f32.mrb[185].mxu1 }
 0x616   :  { %v6086_v9 = vpop.f32.mrb[186].mxu1 }
 0x617   :  { %v14826_v36 = vadd.f32 %v6086_v9, %v14689_v21  ;;  %v9834_v59 = vpop.f32.mrb[187].mxu1 }
 0x61b   :  { %10072 = vmatmul.mubr.msk.bf16.gmra.mrb[252].mxu0 %vm16339_vm8, %v13754_v58 }
 0x61c   :  { %10075 = vmatprep.mubr.msk.bf16.mxu0 %vm15762_vm3, %v15647_v23  ;;  %v6091_v55 = vpop.f32.mrb[188].mxu1 }
 0x61d   :  { %v14834_v14 = vadd.f32 %v14683_v49, %v6091_v55  ;;  %v9837_v20 = vpop.f32.mrb[189].mxu1 }
 0x61e   :  { %v14836_v28 = vpop.f32.mrb[196].mxu0  ;;  %v6094_v51 = vpop.f32.mrb[190].mxu1 }
 0x61f   :  { %v9937_v22 = vpop.f32.mrb[197].mxu0  ;;  %v14839_v21 = vadd.f32 %v14687_v6, %v6094_v51  ;;  %v9838_v18 = vpop.f32.mrb[191].mxu1 }
 0x620   :  { %v14841_v25 = vpop.f32.mrb[198].mxu0 }
 0x621   :  { %v9938_v8 = vpop.f32.mrb[199].mxu0 }
 0x623   :  { %10076 = vmatmul.mubr.msk.bf16.gmra.mrb[184].mxu0 %vm16343_vm1, %v13778_v13 }
 0x624   :  { %10079 = vmatprep.mubr.msk.bf16.mxu0 %vm15762_vm3, %v15647_v23  ;;  %v6099_v58 = vpop.f32.mrb[192].mxu1 }
 0x625   :  { %v14849_v49 = vadd.f32 %v6099_v58, %v14696_v24  ;;  %v9841_v26 = vpop.f32.mrb[193].mxu1 }
 0x626   :  { %v6102_v5 = vpop.f32.mrb[194].mxu1 }
 0x627   :  { %v14852_v6 = vadd.f32 %v6102_v5, %v14700_v7  ;;  %v9842_v9 = vpop.f32.mrb[195].mxu1 }
 0x62b   :  { %10080 = vmatmul.mubr.msk.bf16.gmra.mrb[0].mxu0 %vm16348_vm0, %v13780_v10 }
 0x62c   :  { %10083 = vmatprep.mubr.msk.bf16.mxu0 %vm15762_vm3, %v15647_v23  ;;  %v6107_v13 = vpop.f32.mrb[196].mxu1 }
 0x62d   :  { %v14860_v56 = vadd.f32 %v14694_v19, %v6107_v13  ;;  %v9845_v59 = vpop.f32.mrb[197].mxu1 }
 0x62e   :  { %v14862_v24 = vpop.f32.mrb[204].mxu0  ;;  %v6110_v55 = vpop.f32.mrb[198].mxu1 }
 0x62f   :  { %v9945_v20 = vpop.f32.mrb[205].mxu0  ;;  %v14865_v7 = vadd.f32 %v14698_v31, %v6110_v55  ;;  %v9846_v51 = vpop.f32.mrb[199].mxu1 }
 0x630   :  { %v14867_v22 = vpop.f32.mrb[206].mxu0 }
 0x631   :  { %v9946_v54 = vpop.f32.mrb[207].mxu0 }
 0x633   :  { %10084 = vmatmul.mubr.msk.bf16.gmra.mrb[192].mxu0 %vm16352_vm10, %v16350_v0 }
 0x634   :  { %10087 = vmatprep.mubr.msk.bf16.mxu0 %vm15762_vm3, %v15647_v23  ;;  %v6115_v10 = vpop.f32.mrb[200].mxu1 }
 0x635   :  { %v14875_v19 = vadd.f32 %v6115_v10, %v14707_v43  ;;  %v9849_v18 = vpop.f32.mrb[201].mxu1 }
 0x636   :  { %v6118_v8 = vpop.f32.mrb[202].mxu1 }
 0x637   :  { %v14878_v31 = vadd.f32 %v6118_v8, %v14711_v50  ;;  %v9850_v58 = vpop.f32.mrb[203].mxu1 }
 0x63b   :  { %10088 = vmatmul.mubr.msk.bf16.gmra.mrb[4].mxu0 %vm16356_vm14, %v16354_v1 }
 0x63c   :  { %10091 = vmatprep.mubr.msk.bf16.mxu0 %vm15762_vm3, %v15647_v23  ;;  %v6123_v0 = vpop.f32.mrb[204].mxu1 }
 0x63d   :  { %v14886_v2 = vadd.f32 %v14705_v38, %v6123_v0  ;;  %v9853_v26 = vpop.f32.mrb[205].mxu1 }
 0x63e   :  { %v14888_v43 = vpop.f32.mrb[212].mxu0  ;;  %v6126_v5 = vpop.f32.mrb[206].mxu1 }
 0x63f   :  { %v9953_v9 = vpop.f32.mrb[213].mxu0  ;;  %v14891_v50 = vadd.f32 %v14709_v47, %v6126_v5  ;;  %v9854_v13 = vpop.f32.mrb[207].mxu1  ;;  %v16378_v5 = vld [vmem:[#allocation63_spill] sm:$0xff] }
 0x640   :  { %v14893_v59 = vpop.f32.mrb[214].mxu0 }
 0x641   :  { %v9954_v40 = vpop.f32.mrb[215].mxu0 }
 0x643   :  { %10092 = vmatmul.mubr.msk.bf16.gmra.mrb[200].mxu0 %vm16360_vm9, %v16358_v46 }
 0x644   :  { %10095 = vmatprep.mubr.msk.bf16.mxu0 %vm15762_vm3, %v15647_v23  ;;  %v6131_v1 = vpop.f32.mrb[208].mxu1 }
 0x645   :  { %v14901_v38 = vadd.f32 %v6131_v1, %v14718_v60  ;;  %v9857_v55 = vpop.f32.mrb[209].mxu1 }
 0x646   :  { %v6134_v20 = vpop.f32.mrb[210].mxu1  ;;  %v16380_v55 = vld [vmem:[#allocation22_spill] sm:$0xff] }
 0x647   :  { %v14904_v47 = vadd.f32 %v6134_v20, %v14722_v44  ;;  %v9858_v51 = vpop.f32.mrb[211].mxu1 }
 0x64b   :  { %10096 = vmatmul.mubr.msk.bf16.gmra.mrb[8].mxu0 %vm16271_vm12, %v16364_v34 }
 0x64c   :  { %10099 = vmatprep.mubr.msk.bf16.mxu0 %vm15762_vm3, %v15647_v23  ;;  %v6139_v46 = vpop.f32.mrb[212].mxu1 }
 0x64d   :  { %v14912_v17 = vadd.f32 %v14716_v15, %v6139_v46  ;;  %v9861_v54 = vpop.f32.mrb[213].mxu1 }
 0x64e   :  { %v6142_v60 = vpop.f32.mrb[214].mxu1 }
 0x64f   :  { %v14915_v10 = vadd.f32 %v14720_v30, %v6142_v60  ;;  %v9862_v18 = vpop.f32.mrb[215].mxu1  ;;  %v16381_v60 = vld [vmem:[#allocation47_spill] sm:$0xff] }
 0x653   :  { %10100 = vmatmul.mubr.msk.bf16.gmra.mrb[208].mxu0 %vm16369_vm6, %v16367_v3 }
 0x654   :  { %10103 = vmatprep.mubr.msk.bf16.mxu0 %vm15762_vm3, %v15647_v23  ;;  %v6147_v34 = vpop.f32.mrb[216].mxu1  ;;  %vm16379_vm3 = vnez %v16378_v5  ;;  %v16384_v5 = vld [vmem:[#allocation32_spill] sm:$0xff] }
 0x655   :  { %v14923_v12 = vadd.f32 %v6147_v34, %v14729_v61  ;;  %v9865_v44 = vpop.f32.mrb[217].mxu1 }
 0x656   :  { %v6629_v15 = vpop.f32.mrb[216].mxu0  ;;  %v6150_v58 = vpop.f32.mrb[218].mxu1  ;;  %v16382_v44 = vld [vmem:[#allocation101_spill] sm:$0xff] }
 0x657   :  { %v14926_v8 = vadd.f32 %v6629_v15, %v14755_v32  ;;  %v9981_v30 = vpop.f32.mrb[217].mxu0  ;;  %v14929_v0 = vadd.f32 %v6150_v58, %v14733_v52  ;;  %v9866_v26 = vpop.f32.mrb[219].mxu1 }
 0x658   :  { %v6632_v48 = vpop.f32.mrb[218].mxu0  ;;  %v16383_v30 = vld [vmem:[#allocation31_spill] sm:$0xff] }
 0x659   :  { %v14932_v3 = vadd.f32 %v6632_v48, %v14757_v62  ;;  %v9982_v23 = vpop.f32.mrb[219].mxu0 }
 0x65b   :  { %10104 = vmatmul.mubr.msk.bf16.gmra.mrb[12].mxu0 %vm16379_vm3, %v16279_v11 }
 0x65c   :  { %v6155_v61 = vpop.f32.mrb[220].mxu1 }
 0x65d   :  { %v14938_v9 = vadd.f32 %v14727_v33, %v6155_v61  ;;  %v9869_v32 = vpop.f32.mrb[221].mxu1 }
 0x65e   :  { %v6158_v13 = vpop.f32.mrb[222].mxu1 }
 0x65f   :  { %v14941_v40 = vadd.f32 %v14731_v37, %v6158_v13  ;;  %v9870_v52 = vpop.f32.mrb[223].mxu1 }
 0x664   :  { %v6163_v1 = vpop.f32.mrb[224].mxu1 }
 0x665   :  { %v14944_v20 = vadd.f32 %v6163_v1, %v16380_v55  ;;  %v9873_v62 = vpop.f32.mrb[225].mxu1 }
 0x666   :  { %v6645_v51 = vpop.f32.mrb[220].mxu0  ;;  %v6166_v11 = vpop.f32.mrb[226].mxu1 }
 0x667   :  { %v14947_v46 = vadd.f32 %v6645_v51, %v14767_v29  ;;  %v9989_v54 = vpop.f32.mrb[221].mxu0  ;;  %v14950_v33 = vadd.f32 %v6166_v11, %v16381_v60  ;;  %v9874_v18 = vpop.f32.mrb[227].mxu1 }
 0x668   :  { %v6648_v34 = vpop.f32.mrb[222].mxu0 }
 0x669   :  { %v14953_v37 = vadd.f32 %v6648_v34, %v16382_v44  ;;  %v9990_v15 = vpop.f32.mrb[223].mxu0 }
 0x66c   :  { %v6171_v58 = vpop.f32.mrb[228].mxu1 }
 0x66d   :  { %v14956_v26 = vadd.f32 %v16383_v30, %v6171_v58  ;;  %v9877_v48 = vpop.f32.mrb[229].mxu1 }
 0x66e   :  { %v6174_v23 = vpop.f32.mrb[230].mxu1 }
 0x66f   :  { %v14959_v29 = vadd.f32 %v16384_v5, %v6174_v23  ;;  %v9878_v61 = vpop.f32.mrb[231].mxu1 }
 0x676   :  { %v6661_v32 = vpop.f32.mrb[224].mxu0 }
 0x677   :  { %v14962_v13 = vadd.f32 %v6661_v32, %v14784_v39  ;;  %v9997_v52 = vpop.f32.mrb[225].mxu0 }
 0x678   :  { %v6664_v1 = vpop.f32.mrb[226].mxu0 }
 0x679   :  { %v14965_v55 = vadd.f32 %v6664_v1, %v14789_v16  ;;  %v9998_v62 = vpop.f32.mrb[227].mxu0 }
 0x686   :  { %v6677_v51 = vpop.f32.mrb[228].mxu0 }
 0x687   :  { %v14968_v11 = vadd.f32 %v6677_v51, %v14810_v4  ;;  %v10005_v54 = vpop.f32.mrb[229].mxu0 }
 0x688   :  { %v6680_v60 = vpop.f32.mrb[230].mxu0  ;;  %v16385_v54 = vld [vmem:[#allocation29_spill] sm:$0xff] }
 0x689   :  { %v14971_v18 = vadd.f32 %v6680_v60, %v14815_v27  ;;  %v10006_v34 = vpop.f32.mrb[231].mxu0 }
 0x696   :  { %v6693_v44 = vpop.f32.mrb[232].mxu0 }
 0x697   :  { %v14974_v39 = vadd.f32 %v6693_v44, %v14836_v28  ;;  %v10013_v15 = vpop.f32.mrb[233].mxu0  ;;  %v16386_v44 = vld [vmem:[#allocation30_spill] sm:$0xff] }
 0x698   :  { %v6696_v58 = vpop.f32.mrb[234].mxu0 }
 0x699   :  { %v14977_v16 = vadd.f32 %v6696_v58, %v14841_v25  ;;  %v10014_v30 = vpop.f32.mrb[235].mxu0 }
 0x6a6   :  { %v6709_v48 = vpop.f32.mrb[236].mxu0 }
 0x6a7   :  { %v14980_v4 = vadd.f32 %v6709_v48, %v14862_v24  ;;  %v10021_v23 = vpop.f32.mrb[237].mxu0 }
 0x6a8   :  { %v6712_v5 = vpop.f32.mrb[238].mxu0 }
 0x6a9   :  { %v14983_v27 = vadd.f32 %v6712_v5, %v14867_v22  ;;  %v10022_v61 = vpop.f32.mrb[239].mxu0 }
 0x6b6   :  { %v6725_v32 = vpop.f32.mrb[240].mxu0 }
 0x6b7   :  { %v14986_v28 = vadd.f32 %v6725_v32, %v14888_v43  ;;  %v10029_v52 = vpop.f32.mrb[241].mxu0 }
 0x6b8   :  { %v6728_v1 = vpop.f32.mrb[242].mxu0 }
 0x6b9   :  { %v14989_v25 = vadd.f32 %v6728_v1, %v14893_v59  ;;  %v10030_v62 = vpop.f32.mrb[243].mxu0 }
 0x6be   :  { %v6830_v51 = vpop.f32.mrb[156].mxu0 }
 0x6bf   :  { %v14992_v24 = vadd.f32 %v6830_v51, %v16385_v54  ;;  %v10049_v60 = vpop.f32.mrb[157].mxu0 }
 0x6c0   :  { %v6833_v34 = vpop.f32.mrb[158].mxu0 }
 0x6c1   :  { %v14995_v22 = vadd.f32 %v6833_v34, %v16386_v44  ;;  %v10050_v15 = vpop.f32.mrb[159].mxu0 }
 0x6c6   :  { %v6838_v58 = vpop.f32.mrb[160].mxu0 }
 0x6c7   :  { %v14998_v43 = vadd.f32 %v6838_v58, %v14782_v57  ;;  %v10053_v30 = vpop.f32.mrb[161].mxu0 }
 0x6c8   :  { %v6841_v48 = vpop.f32.mrb[162].mxu0 }
 0x6c9   :  { %v15001_v59 = vadd.f32 %v6841_v48, %v14787_v45  ;;  %v10054_v23 = vpop.f32.mrb[163].mxu0  ;;  %v7112_v15 = vmul.f32 %v14998_v43, %v14998_v43 }
 0x6cb   :  { %v7113_v23 = vmul.f32 %v15001_v59, %v15001_v59 }
 0x6ce   :  { %v6846_v5 = vpop.f32.mrb[244].mxu0 }
 0x6cf   :  { %v6953_v61 = vadd.f32 %v6846_v5, %v14926_v8  ;;  %v10057_v32 = vpop.f32.mrb[245].mxu0  ;;  %v7111_v8 = vmul.f32 %v14995_v22, %v14995_v22 }
 0x6d0   :  { %v6849_v52 = vpop.f32.mrb[246].mxu0 }
 0x6d1   :  { %v15005_v1 = vadd.f32 %v6953_v61, %v14797_v42  ;;  %v6954_v62 = vadd.f32 %v6849_v52, %v14932_v3  ;;  %v10058_v51 = vpop.f32.mrb[247].mxu0  ;;  %v7110_v3 = vmul.f32 %v14992_v24, %v14992_v24 }
 0x6d3   :  { %v15009_v57 = vadd.f32 %v6954_v62, %v14800_v41  ;;  %v7073_v41 = vadd.f32 %v14995_v22, %v14992_v24  ;;  %v7114_v52 = vmul.f32 %v15005_v1, %v15005_v1 }
 0x6d5   :  { %v7074_v58 = vadd.f32 %v7073_v41, %v14998_v43 }
 0x6d6   :  { %v6854_v54 = vpop.f32.mrb[168].mxu0 }
 0x6d7   :  { %v15012_v60 = vadd.f32 %v6854_v54, %v14808_v35  ;;  %v10061_v45 = vpop.f32.mrb[169].mxu0  ;;  %v7142_v35 = vadd.f32 %v7111_v8, %v7110_v3  ;;  %v7075_v32 = vadd.f32 %v7074_v58, %v15001_v59 }
 0x6d8   :  { %v6857_v34 = vpop.f32.mrb[170].mxu0 }
 0x6d9   :  { %v15017_v44 = vadd.f32 %v6857_v34, %v14813_v53  ;;  %v10062_v42 = vpop.f32.mrb[171].mxu0  ;;  %v7143_v48 = vadd.f32 %v7142_v35, %v7112_v15  ;;  %v7076_v34 = vadd.f32 %v7075_v32, %v15005_v1 }
 0x6da   :  { %v7115_v42 = vmul.f32 %v15009_v57, %v15009_v57 }
 0x6db   :  { %v7144_v45 = vadd.f32 %v7143_v48, %v7113_v23  ;;  %v7077_v41 = vadd.f32 %v7076_v34, %v15009_v57 }
 0x6dd   :  { %v7078_v58 = vadd.f32 %v7077_v41, %v15012_v60 }
 0x6de   :  { %v6862_v30 = vpop.f32.mrb[248].mxu0 }
 0x6df   :  { %v6957_v53 = vadd.f32 %v6862_v30, %v14947_v46  ;;  %v10065_v5 = vpop.f32.mrb[249].mxu0  ;;  %v7145_v46 = vadd.f32 %v7144_v45, %v7114_v52 }
 0x6e0   :  { %v6865_v61 = vpop.f32.mrb[250].mxu0  ;;  %v7079_v5 = vadd.f32 %v7078_v58, %v15017_v44 }
 0x6e1   :  { %v15033_v62 = vadd.f32 %v6957_v53, %v14823_v63  ;;  %v6958_v51 = vadd.f32 %v6865_v61, %v14953_v37  ;;  %v10066_v54 = vpop.f32.mrb[251].mxu0  ;;  %v7116_v63 = vmul.f32 %v15012_v60, %v15012_v60  ;;  %v7146_v30 = vadd.f32 %v7145_v46, %v7115_v42 }
 0x6e2   :  { %v7117_v53 = vmul.f32 %v15017_v44, %v15017_v44 }
 0x6e3   :  { %v15038_v8 = vadd.f32 %v6958_v51, %v14826_v36  ;;  %v7147_v23 = vadd.f32 %v7146_v30, %v7116_v63  ;;  %v7118_v61 = vmul.f32 %v15033_v62, %v15033_v62  ;;  %v7080_v52 = vadd.f32 %v7079_v5, %v15033_v62 }
 0x6e5   :  { %v7148_v32 = vadd.f32 %v7147_v23, %v7117_v53  ;;  %v7119_v34 = vmul.f32 %v15038_v8, %v15038_v8  ;;  %v7081_v41 = vadd.f32 %v7080_v52, %v15038_v8 }
 0x6e6   :  { %v6870_v3 = vpop.f32.mrb[176].mxu0 }
 0x6e7   :  { %v15046_v15 = vadd.f32 %v6870_v3, %v14834_v14  ;;  %v10069_v37 = vpop.f32.mrb[177].mxu0 }
 0x6e8   :  { %v6873_v35 = vpop.f32.mrb[178].mxu0 }
 0x6e9   :  { %v15050_v36 = vadd.f32 %v6873_v35, %v14839_v21  ;;  %v10070_v48 = vpop.f32.mrb[179].mxu0  ;;  %v7149_v21 = vadd.f32 %v7148_v32, %v7118_v61  ;;  %v7120_v63 = vmul.f32 %v15046_v15, %v15046_v15 }
 0x6eb   :  { %v7150_v35 = vadd.f32 %v7149_v21, %v7119_v34 }
 0x6ed   :  { %v7151_v30 = vadd.f32 %v7150_v35, %v7120_v63 }
 0x6ee   :  { %v6878_v14 = vpop.f32.mrb[252].mxu0 }
 0x6ef   :  { %v6961_v51 = vadd.f32 %v6878_v14, %v14962_v13  ;;  %v10073_v54 = vpop.f32.mrb[253].mxu0  ;;  %v7082_v13 = vadd.f32 %v7081_v41, %v15046_v15 }
 0x6f0   :  { %v6881_v45 = vpop.f32.mrb[254].mxu0 }
 0x6f1   :  { %v15062_v46 = vadd.f32 %v6961_v51, %v14849_v49  ;;  %v6962_v42 = vadd.f32 %v6881_v45, %v14965_v55  ;;  %v10074_v3 = vpop.f32.mrb[255].mxu0  ;;  %v7121_v49 = vmul.f32 %v15050_v36, %v15050_v36  ;;  %v7083_v53 = vadd.f32 %v7082_v13, %v15050_v36 }
 0x6f3   :  { %v15069_v37 = vadd.f32 %v6962_v42, %v14852_v6  ;;  %v7122_v5 = vmul.f32 %v15062_v46, %v15062_v46  ;;  %v7152_v14 = vadd.f32 %v7151_v30, %v7121_v49  ;;  %v7084_v32 = vadd.f32 %v7083_v53, %v15062_v46 }
 0x6f5   :  { %v7153_v52 = vadd.f32 %v7152_v14, %v7122_v5  ;;  %v7123_v51 = vmul.f32 %v15069_v37, %v15069_v37  ;;  %v7085_v54 = vadd.f32 %v7084_v32, %v15069_v37 }
 0x6f6   :  { %v6886_v58 = vpop.f32.mrb[184].mxu0 }
 0x6f7   :  { %v15075_v48 = vadd.f32 %v6886_v58, %v14860_v56  ;;  %v10077_v55 = vpop.f32.mrb[185].mxu0  ;;  %v7154_v3 = vadd.f32 %v7153_v52, %v7123_v51 }
 0x6f8   :  { %v6889_v23 = vpop.f32.mrb[186].mxu0 }
 0x6f9   :  { %v15081_v6 = vadd.f32 %v6889_v23, %v14865_v7  ;;  %v10078_v61 = vpop.f32.mrb[187].mxu0  ;;  %v7124_v45 = vmul.f32 %v15075_v48, %v15075_v48  ;;  %v7086_v7 = vadd.f32 %v7085_v54, %v15075_v48 }
 0x6fb   :  { %v7155_v35 = vadd.f32 %v7154_v3, %v7124_v45  ;;  %v7125_v58 = vmul.f32 %v15081_v6, %v15081_v6 }
 0x6fd   :  { %v7156_v23 = vadd.f32 %v7155_v35, %v7125_v58 }
 0x6fe   :  { %v6894_v56 = vpop.f32.mrb[0].mxu0 }
 0x6ff   :  { %v6965_v21 = vadd.f32 %v6894_v56, %v14968_v11  ;;  %v10081_v34 = vpop.f32.mrb[1].mxu0  ;;  %v7087_v11 = vadd.f32 %v7086_v7, %v15081_v6 }
 0x700   :  { %v6897_v42 = vpop.f32.mrb[2].mxu0 }
 0x701   :  { %v15092_v41 = vadd.f32 %v6965_v21, %v14875_v19  ;;  %v6966_v63 = vadd.f32 %v6897_v42, %v14971_v18  ;;  %v10082_v13 = vpop.f32.mrb[3].mxu0 }
 0x703   :  { %v15098_v30 = vadd.f32 %v6966_v63, %v14878_v31  ;;  %v7126_v49 = vmul.f32 %v15092_v41, %v15092_v41  ;;  %v7088_v19 = vadd.f32 %v7087_v11, %v15092_v41 }
 0x705   :  { %v7157_v61 = vadd.f32 %v7156_v23, %v7126_v49  ;;  %v7127_v14 = vmul.f32 %v15098_v30, %v15098_v30  ;;  %v7089_v52 = vadd.f32 %v7088_v19, %v15098_v30 }
 0x706   :  { %v6902_v55 = vpop.f32.mrb[192].mxu0 }
 0x707   :  { %v15105_v53 = vadd.f32 %v6902_v55, %v14886_v2  ;;  %v10085_v18 = vpop.f32.mrb[193].mxu0  ;;  %v7158_v54 = vadd.f32 %v7157_v61, %v7127_v14 }
 0x708   :  { %v6905_v5 = vpop.f32.mrb[194].mxu0 }
 0x709   :  { %v15110_v31 = vadd.f32 %v6905_v5, %v14891_v50  ;;  %v10086_v32 = vpop.f32.mrb[195].mxu0  ;;  %v7128_v51 = vmul.f32 %v15105_v53, %v15105_v53  ;;  %v7090_v56 = vadd.f32 %v7089_v52, %v15105_v53 }
 0x70b   :  { %v7159_v45 = vadd.f32 %v7158_v54, %v7128_v51  ;;  %v7129_v21 = vmul.f32 %v15110_v31, %v15110_v31  ;;  %v7091_v50 = vadd.f32 %v7090_v56, %v15110_v31 }
 0x70d   :  { %v7160_v35 = vadd.f32 %v7159_v45, %v7129_v21 }
 0x70e   :  { %v6910_v2 = vpop.f32.mrb[4].mxu0 }
 0x70f   :  { %v6969_v34 = vadd.f32 %v6910_v2, %v14974_v39  ;;  %v10089_v42 = vpop.f32.mrb[5].mxu0 }
 0x710   :  { %v6913_v7 = vpop.f32.mrb[6].mxu0 }
 0x711   :  { %v15121_v3 = vadd.f32 %v6969_v34, %v14901_v38  ;;  %v6970_v63 = vadd.f32 %v6913_v7, %v14977_v16  ;;  %v10090_v13 = vpop.f32.mrb[7].mxu0 }
 0x713   :  { %v7092_v58 = vadd.f32 %v7091_v50, %v15121_v3  ;;  %v7130_v11 = vmul.f32 %v15121_v3, %v15121_v3  ;;  %v15128_v49 = vadd.f32 %v6970_v63, %v14904_v47 }
 0x715   :  { %v7161_v39 = vadd.f32 %v7160_v35, %v7130_v11  ;;  %v7131_v55 = vmul.f32 %v15128_v49, %v15128_v49  ;;  %v7093_v23 = vadd.f32 %v7092_v58, %v15128_v49 }
 0x716   :  { %v6918_v38 = vpop.f32.mrb[200].mxu0 }
 0x717   :  { %v15134_v19 = vadd.f32 %v6918_v38, %v14912_v17  ;;  %v7162_v16 = vadd.f32 %v7161_v39, %v7131_v55  ;;  %v10093_v18 = vpop.f32.mrb[201].mxu0 }
 0x718   :  { %v6921_v5 = vpop.f32.mrb[202].mxu0 }
 0x719   :  { %v7094_v61 = vadd.f32 %v7093_v23, %v15134_v19  ;;  %v7132_v14 = vmul.f32 %v15134_v19, %v15134_v19  ;;  %v15140_v47 = vadd.f32 %v6921_v5, %v14915_v10  ;;  %v10094_v32 = vpop.f32.mrb[203].mxu0 }
 0x71b   :  { %v7163_v52 = vadd.f32 %v7162_v16, %v7132_v14  ;;  %v7095_v51 = vadd.f32 %v7094_v61, %v15140_v47  ;;  %v7133_v56 = vmul.f32 %v15140_v47, %v15140_v47 }
 0x71d   :  { %v7164_v17 = vadd.f32 %v7163_v52, %v7133_v56 }
 0x71e   :  { %v6926_v54 = vpop.f32.mrb[8].mxu0 }
 0x71f   :  { %v6973_v2 = vadd.f32 %v6926_v54, %v14980_v4  ;;  %v10097_v45 = vpop.f32.mrb[9].mxu0 }
 0x720   :  { %v6929_v21 = vpop.f32.mrb[10].mxu0 }
 0x721   :  { %v15147_v34 = vadd.f32 %v6973_v2, %v14923_v12  ;;  %v6974_v42 = vadd.f32 %v6929_v21, %v14983_v27  ;;  %v10098_v10 = vpop.f32.mrb[11].mxu0 }
 0x722   :  { %v7141_v10 = vmul.f32 %v14959_v29, %v14959_v29 }
 0x723   :  { %v7096_v7 = vadd.f32 %v7095_v51, %v15147_v34  ;;  %v7134_v50 = vmul.f32 %v15147_v34, %v15147_v34  ;;  %v15154_v63 = vadd.f32 %v6974_v42, %v14929_v0 }
 0x725   :  { %v7165_v13 = vadd.f32 %v7164_v17, %v7134_v50  ;;  %v7135_v4 = vmul.f32 %v15154_v63, %v15154_v63  ;;  %v7097_v35 = vadd.f32 %v7096_v7, %v15154_v63 }
 0x726   :  { %v6934_v58 = vpop.f32.mrb[208].mxu0 }
 0x727   :  { %v15160_v12 = vadd.f32 %v6934_v58, %v14938_v9  ;;  %v7166_v27 = vadd.f32 %v7165_v13, %v7135_v4  ;;  %v10101_v11 = vpop.f32.mrb[209].mxu0 }
 0x728   :  { %v6937_v39 = vpop.f32.mrb[210].mxu0 }
 0x729   :  { %v7098_v55 = vadd.f32 %v7097_v35, %v15160_v12  ;;  %v7136_v23 = vmul.f32 %v15160_v12, %v15160_v12  ;;  %v15166_v0 = vadd.f32 %v6937_v39, %v14941_v40  ;;  %v10102_v38 = vpop.f32.mrb[211].mxu0 }
 0x72b   :  { %v7167_v16 = vadd.f32 %v7166_v27, %v7136_v23  ;;  %v7099_v18 = vadd.f32 %v7098_v55, %v15166_v0  ;;  %v7137_v5 = vmul.f32 %v15166_v0, %v15166_v0 }
 0x72d   :  { %v7168_v9 = vadd.f32 %v7167_v16, %v7137_v5 }
 0x72e   :  { %v6942_v61 = vpop.f32.mrb[12].mxu0 }
 0x72f   :  { %v6977_v14 = vadd.f32 %v6942_v61, %v14986_v28  ;;  %v10105_v32 = vpop.f32.mrb[13].mxu0 }
 0x730   :  { %v6945_v52 = vpop.f32.mrb[14].mxu0 }
 0x731   :  { %v15173_v51 = vadd.f32 %v6977_v14, %v14944_v20  ;;  %v6978_v56 = vadd.f32 %v6945_v52, %v14989_v25  ;;  %v10106_v40 = vpop.f32.mrb[15].mxu0  ;;  %v7140_v20 = vmul.f32 %v14956_v26, %v14956_v26 }
 0x733   :  { %v7100_v17 = vadd.f32 %v7099_v18, %v15173_v51  ;;  %v7138_v54 = vmul.f32 %v15173_v51, %v15173_v51  ;;  %v15180_v2 = vadd.f32 %v6978_v56, %v14950_v33 }
 0x735   :  { %v7169_v45 = vadd.f32 %v7168_v9, %v7138_v54  ;;  %v7101_v21 = vadd.f32 %v7100_v17, %v15180_v2  ;;  %v7139_v28 = vmul.f32 %v15180_v2, %v15180_v2 }
 0x737   :  { %v7102_v25 = vadd.f32 %v7101_v21, %v14956_v26  ;;  %v7170_v42 = vadd.f32 %v7169_v45, %v7139_v28 }
 0x739   :  { %v7103_v7 = vadd.f32 %v7102_v25, %v14959_v29  ;;  %v7171_v50 = vadd.f32 %v7170_v42, %v7140_v20 }
 0x73b   :  { %v7104_v33 = vrot.slane %v7103_v7, 4  ;;  %v7172_v13 = vadd.f32 %v7171_v50, %v7141_v10  ;;  %v16387_v10 = vld [vmem:[#allocation10_spill] sm:$0xff] }
 0x73d   :  { %v7105_v4 = vadd.f32 %v7104_v33, %v7103_v7  ;;  %v7173_v35 = vrot.slane %v7172_v13, 4 }
 0x73f   :  { %v7106_v58 = vrot.slane %v7105_v4, 2  ;;  %v7174_v27 = vadd.f32 %v7173_v35, %v7172_v13 }
 0x741   :  { %v7107_v11 = vadd.f32 %v7106_v58, %v7105_v4  ;;  %v7175_v39 = vrot.slane %v7174_v27, 2 }
 0x743   :  { %v7108_v55 = vrot.slane %v7107_v11, 1  ;;  %v7176_v23 = vadd.f32 %v7175_v39, %v7174_v27 }
 0x745   :  { %v7109_v38 = vadd.f32 %v7108_v55, %v7107_v11  ;;  %v7177_v16 = vrot.slane %v7176_v23, 1 }
 0x747   :  { %v7178_v18 = vadd.f32 %v7177_v16, %v7176_v23  ;;  %v15191_v5 = vmul.f32 0.00390625, %v7109_v38 }
 0x749   :  { %v7180_v9 = vmul.f32 0.00390625, %v7178_v18  ;;  %v7181_v61 = vmul.f32 %v15191_v5, %v15191_v5  ;;  %v7216_v14 = vsub.f32 %v15180_v2, %v15191_v5  ;;  %v7207_v40 = vsub.f32 %v15121_v3, %v15191_v5 }
 0x74a   :  { %v7208_v17 = vsub.f32 %v15128_v49, %v15191_v5  ;;  %v7209_v54 = vsub.f32 %v15134_v19, %v15191_v5  ;;  %v7210_v45 = vsub.f32 %v15140_v47, %v15191_v5  ;;  %v7211_v21 = vsub.f32 %v15147_v34, %v15191_v5  ;;  %v7071_v34 = vld [vmem:[%s15351_s3 + $0x2] sm:$0x1] }
 0x74b   :  { %v7182_v32 = vsub.f32 %v7180_v9, %v7181_v61  ;;  %v7212_v2 = vsub.f32 %v15154_v63, %v15191_v5  ;;  %v7213_v28 = vsub.f32 %v15160_v12, %v15191_v5  ;;  %v7214_v3 = vsub.f32 %v15166_v0, %v15191_v5 }
 0x74c   :  { %v7215_v49 = vsub.f32 %v15173_v51, %v15191_v5  ;;  %v7217_v19 = vsub.f32 %v14956_v26, %v15191_v5  ;;  %v7218_v47 = vsub.f32 %v14959_v29, %v15191_v5  ;;  %v7187_v63 = vsub.f32 %v14992_v24, %v15191_v5 }
 0x74d   :  { %v7183_v52 = vmax.f32 %v7182_v32, 0.0  ;;  %v7188_v12 = vsub.f32 %v14995_v22, %v15191_v5  ;;  %v7189_v51 = vsub.f32 %v14998_v43, %v15191_v5  ;;  %v7190_v26 = vsub.f32 %v15001_v59, %v15191_v5 }
 0x74e   :  { %v7191_v29 = vsub.f32 %v15005_v1, %v15191_v5  ;;  %v7192_v20 = vsub.f32 %v15009_v57, %v15191_v5  ;;  %v7193_v24 = vsub.f32 %v15012_v60, %v15191_v5  ;;  %v7194_v22 = vsub.f32 %v15017_v44, %v15191_v5 }
 0x74f   :  { %v7184_v56 = vadd.f32 1e-05, %v7183_v52  ;;  %v7195_v42 = vsub.f32 %v15033_v62, %v15191_v5  ;;  %v7196_v43 = vsub.f32 %v15038_v8, %v15191_v5  ;;  %v7197_v59 = vsub.f32 %v15046_v15, %v15191_v5  ;;  %v15258_v15 = vld [vmem:[%s15351_s3 + $0x3] ss:$0 sm:$0xff]  ;;  %s10864_s3 = smov [#allocation6]  }
 0x750   :  { %v7198_v1 = vsub.f32 %v15050_v36, %v15191_v5  ;;  %v7199_v57 = vsub.f32 %v15062_v46, %v15191_v5  ;;  %v7200_v44 = vsub.f32 %v15069_v37, %v15191_v5  ;;  %v7201_v62 = vsub.f32 %v15075_v48, %v15191_v5  ;;  %s7361_s29 = sshll.u32 %s10864_s3, 4  ;;  %s7362_s29 = int_to_ptr.vmem [resolvable:$true] %s7361_s29 }
 0x751   :  { %10800 = vrsqrt.f32 %v7184_v56  ;;  %v7202_v8 = vsub.f32 %v15081_v6, %v15191_v5  ;;  %v7203_v36 = vsub.f32 %v15092_v41, %v15191_v5  ;;  %v7204_v46 = vsub.f32 %v15098_v30, %v15191_v5  ;;  %s10832_s30 = scalar_lea.vmem %s7362_s29, 8192  ;;  %p10837_p9 = scmp.lt.s32.totalorder %s7362_s29, %s7362_s29 }
 0x752   :  { %v7205_v37 = vsub.f32 %v15105_v53, %v15191_v5  ;;  %v7206_v48 = vsub.f32 %v15110_v31, %v15191_v5  ;;  %p10833_p8 = scmp.ne.s32.totalorder %s7362_s29, %s10832_s30  ;;  %p10838_p10 = scmp.lt.s32.totalorder %s10832_s30, %s10832_s30 }
 0x754   :  { %p10839_p11 = por %p10838_p10, %p10837_p9 }
 0x756   :  { %p10840_p12 = pnand %p10839_p11, %p10833_p8 }
 0x75b   :  { %v10801_v0 = vpop.eup %10800 }
 0x75c   :  { %v7186_v25 = vmul.f32 %v10801_v0, %v7071_v34 }
 0x75e   :  { %v7222_v60 = vrot.slane %v7186_v25, %v16387_v10 }
 0x760   :  { %v7252_v7 = vmul.f32 %v7222_v60, %v7216_v14  ;;  %v7223_v50 = vmul.f32 %v7222_v60, %v7187_v63  ;;  %v7224_v6 = vmul.f32 %v7222_v60, %v7188_v12  ;;  %v7225_v33 = vmul.f32 %v7222_v60, %v7189_v51 }
 0x761   :  { %v7226_v13 = vmul.f32 %v7222_v60, %v7190_v26  ;;  %v7227_v4 = vmul.f32 %v7222_v60, %v7191_v29  ;;  %v7228_v35 = vmul.f32 %v7222_v60, %v7192_v20  ;;  %v7229_v58 = vmul.f32 %v7222_v60, %v7193_v24 }
 0x762   :  { %v7288_v27 = vadd.f32 %v15258_v15, %v7252_v7  ;;  %v7230_v41 = vmul.f32 %v7222_v60, %v7194_v22  ;;  %v7231_v11 = vmul.f32 %v7222_v60, %v7195_v42  ;;  %v7232_v39 = vmul.f32 %v7222_v60, %v7196_v43 }
 0x763   :  { %v7233_v30 = vmul.f32 %v7222_v60, %v7197_v59  ;;  %v7234_v55 = vmul.f32 %v7222_v60, %v7198_v1  ;;  %v7235_v23 = vmul.f32 %v7222_v60, %v7199_v57  ;;  %v7236_v53 = vmul.f32 %v7222_v60, %v7200_v44 }
 0x764   :  { %v7320_v38 = vmax.f32 %v7288_v27, 0.0  ;;  %v7237_v16 = vmul.f32 %v7222_v60, %v7201_v62  ;;  %v7238_v31 = vmul.f32 %v7222_v60, %v7202_v8  ;;  %v7239_v18 = vmul.f32 %v7222_v60, %v7203_v36 }
 0x765   :  { %v7240_v5 = vmul.f32 %v7222_v60, %v7204_v46  ;;  %v7241_v9 = vmul.f32 %v7222_v60, %v7205_v37  ;;  %v7242_v61 = vmul.f32 %v7222_v60, %v7206_v48  ;;  %v7243_v14 = vmul.f32 %v7222_v60, %v7207_v40 }
 0x766   :  { %7353 = vst [vmem:[#allocation6 + $0x1e8] sm:$0xff] %v7320_v38  ;;  %v7244_v32 = vmul.f32 %v7222_v60, %v7208_v17  ;;  %v7245_v52 = vmul.f32 %v7222_v60, %v7209_v54  ;;  %v7246_v56 = vmul.f32 %v7222_v60, %v7210_v45  ;;  %v7247_v34 = vmul.f32 %v7222_v60, %v7211_v21 }
 0x767   :  { %v7248_v63 = vmul.f32 %v7222_v60, %v7212_v2  ;;  %v7249_v12 = vmul.f32 %v7222_v60, %v7213_v28  ;;  %v7250_v0 = vmul.f32 %v7222_v60, %v7214_v3  ;;  %v7251_v51 = vmul.f32 %v7222_v60, %v7215_v49 }
 0x768   :  { %v7253_v26 = vmul.f32 %v7222_v60, %v7217_v19  ;;  %v7254_v29 = vmul.f32 %v7222_v60, %v7218_v47  ;;  %v7259_v20 = vadd.f32 %v15258_v15, %v7223_v50  ;;  %v7260_v25 = vadd.f32 %v15258_v15, %v7224_v6 }
 0x769   :  { %v7261_v24 = vadd.f32 %v15258_v15, %v7225_v33  ;;  %v7262_v22 = vadd.f32 %v15258_v15, %v7226_v13  ;;  %v7263_v40 = vadd.f32 %v15258_v15, %v7227_v4  ;;  %v7264_v17 = vadd.f32 %v15258_v15, %v7228_v35 }
 0x76a   :  { %v7265_v54 = vadd.f32 %v15258_v15, %v7229_v58  ;;  %v7266_v45 = vadd.f32 %v15258_v15, %v7230_v41  ;;  %v7267_v21 = vadd.f32 %v15258_v15, %v7231_v11  ;;  %v7268_v2 = vadd.f32 %v15258_v15, %v7232_v39 }
 0x76b   :  { %v7269_v28 = vadd.f32 %v15258_v15, %v7233_v30  ;;  %v7270_v3 = vadd.f32 %v15258_v15, %v7234_v55  ;;  %v7271_v49 = vadd.f32 %v15258_v15, %v7235_v23  ;;  %v7272_v19 = vadd.f32 %v15258_v15, %v7236_v53 }
 0x76c   :  { %v7273_v47 = vadd.f32 %v15258_v15, %v7237_v16  ;;  %v7274_v42 = vadd.f32 %v15258_v15, %v7238_v31  ;;  %v7275_v43 = vadd.f32 %v15258_v15, %v7239_v18  ;;  %v7276_v59 = vadd.f32 %v15258_v15, %v7240_v5 }
 0x76d   :  { %v7277_v1 = vadd.f32 %v15258_v15, %v7241_v9  ;;  %v15289_v57 = vadd.f32 %v15258_v15, %v7242_v61  ;;  %v15292_v10 = vadd.f32 %v15258_v15, %v7243_v14  ;;  %v15295_v60 = vadd.f32 %v15258_v15, %v7244_v32 }
 0x76e   :  { %v15298_v44 = vadd.f32 %v15258_v15, %v7245_v52  ;;  %v15301_v62 = vadd.f32 %v15258_v15, %v7246_v56  ;;  %v15304_v8 = vadd.f32 %v15258_v15, %v7247_v34  ;;  %v15307_v36 = vadd.f32 %v15258_v15, %v7248_v63 }
 0x76f   :  { %v15310_v46 = vadd.f32 %v15258_v15, %v7249_v12  ;;  %v15313_v37 = vadd.f32 %v15258_v15, %v7250_v0  ;;  %v15316_v48 = vadd.f32 %v15258_v15, %v7251_v51  ;;  %v15319_v7 = vadd.f32 %v15258_v15, %v7253_v26 }
 0x770   :  { %v15322_v50 = vadd.f32 %v15258_v15, %v7254_v29  ;;  %v7291_v6 = vmax.f32 %v7259_v20, 0.0  ;;  %v7292_v33 = vmax.f32 %v7260_v25, 0.0  ;;  %v7293_v13 = vmax.f32 %v7261_v24, 0.0 }
 0x771   :  { %v7294_v4 = vmax.f32 %v7262_v22, 0.0  ;;  %v7295_v35 = vmax.f32 %v7263_v40, 0.0  ;;  %v7296_v58 = vmax.f32 %v7264_v17, 0.0  ;;  %v7297_v27 = vmax.f32 %v7265_v54, 0.0 }
 0x772   :  { %v7298_v41 = vmax.f32 %v7266_v45, 0.0  ;;  %v7299_v11 = vmax.f32 %v7267_v21, 0.0  ;;  %v7300_v39 = vmax.f32 %v7268_v2, 0.0  ;;  %v7301_v30 = vmax.f32 %v7269_v28, 0.0  ;;  %7324 = vst [vmem:[#allocation6 + $0x100] sm:$0xff] %v7291_v6  ;;  %7325 = vst [vmem:[#allocation6 + $0x108] sm:$0xff] %v7292_v33 }
 0x773   :  { %7326 = vst [vmem:[#allocation6 + $0x110] sm:$0xff] %v7293_v13  ;;  %v7302_v55 = vmax.f32 %v7270_v3, 0.0  ;;  %v7303_v23 = vmax.f32 %v7271_v49, 0.0  ;;  %v7304_v53 = vmax.f32 %v7272_v19, 0.0  ;;  %v7305_v38 = vmax.f32 %v7273_v47, 0.0  ;;  %7327 = vst [vmem:[#allocation6 + $0x118] sm:$0xff] %v7294_v4 }
 0x774   :  { %7328 = vst [vmem:[#allocation6 + $0x120] sm:$0xff] %v7295_v35  ;;  %7329 = vst [vmem:[#allocation6 + $0x128] sm:$0xff] %v7296_v58  ;;  %v7306_v15 = vmax.f32 %v7274_v42, 0.0  ;;  %v7307_v16 = vmax.f32 %v7275_v43, 0.0  ;;  %v7308_v31 = vmax.f32 %v7276_v59, 0.0  ;;  %v7309_v18 = vmax.f32 %v7277_v1, 0.0 }
 0x775   :  { %7330 = vst [vmem:[#allocation6 + $0x130] sm:$0xff] %v7297_v27  ;;  %7331 = vst [vmem:[#allocation6 + $0x138] sm:$0xff] %v7298_v41  ;;  %v7310_v5 = vmax.f32 %v15289_v57, 0.0  ;;  %v7311_v9 = vmax.f32 %v15292_v10, 0.0  ;;  %v7312_v61 = vmax.f32 %v15295_v60, 0.0  ;;  %v7313_v14 = vmax.f32 %v15298_v44, 0.0 }
 0x776   :  { %7332 = vst [vmem:[#allocation6 + $0x140] sm:$0xff] %v7299_v11  ;;  %7333 = vst [vmem:[#allocation6 + $0x148] sm:$0xff] %v7300_v39  ;;  %v7314_v32 = vmax.f32 %v15301_v62, 0.0  ;;  %v7315_v52 = vmax.f32 %v15304_v8, 0.0  ;;  %v7316_v56 = vmax.f32 %v15307_v36, 0.0  ;;  %v7317_v34 = vmax.f32 %v15310_v46, 0.0 }
 0x777   :  { %7334 = vst [vmem:[#allocation6 + $0x150] sm:$0xff] %v7301_v30  ;;  %7335 = vst [vmem:[#allocation6 + $0x158] sm:$0xff] %v7302_v55  ;;  %v7318_v63 = vmax.f32 %v15313_v37, 0.0  ;;  %v7319_v12 = vmax.f32 %v15316_v48, 0.0  ;;  %v7321_v0 = vmax.f32 %v15319_v7, 0.0  ;;  %v7322_v51 = vmax.f32 %v15322_v50, 0.0 }
 0x778   :  { %7336 = vst [vmem:[#allocation6 + $0x160] sm:$0xff] %v7303_v23  ;;  %7337 = vst [vmem:[#allocation6 + $0x168] sm:$0xff] %v7304_v53 }
 0x779   :  { %7338 = vst [vmem:[#allocation6 + $0x170] sm:$0xff] %v7305_v38  ;;  %7339 = vst [vmem:[#allocation6 + $0x178] sm:$0xff] %v7306_v15 }
 0x77a   :  { %7340 = vst [vmem:[#allocation6 + $0x180] sm:$0xff] %v7307_v16  ;;  %7341 = vst [vmem:[#allocation6 + $0x188] sm:$0xff] %v7308_v31 }
 0x77b   :  { %7342 = vst [vmem:[#allocation6 + $0x190] sm:$0xff] %v7309_v18  ;;  %7343 = vst [vmem:[#allocation6 + $0x198] sm:$0xff] %v7310_v5 }
 0x77c   :  { %7344 = vst [vmem:[#allocation6 + $0x1a0] sm:$0xff] %v7311_v9  ;;  %7345 = vst [vmem:[#allocation6 + $0x1a8] sm:$0xff] %v7312_v61 }
 0x77d   :  { %7346 = vst [vmem:[#allocation6 + $0x1b0] sm:$0xff] %v7313_v14  ;;  %7347 = vst [vmem:[#allocation6 + $0x1b8] sm:$0xff] %v7314_v32 }
 0x77e   :  { %7348 = vst [vmem:[#allocation6 + $0x1c0] sm:$0xff] %v7315_v52  ;;  %7349 = vst [vmem:[#allocation6 + $0x1c8] sm:$0xff] %v7316_v56 }
 0x77f   :  { %7350 = vst [vmem:[#allocation6 + $0x1d0] sm:$0xff] %v7317_v34  ;;  %7351 = vst [vmem:[#allocation6 + $0x1d8] sm:$0xff] %v7318_v63 }
 0x780   :  { %7352 = vst [vmem:[#allocation6 + $0x1e0] sm:$0xff] %v7319_v12  ;;  %7354 = vst [vmem:[#allocation6 + $0x1f0] sm:$0xff] %v7321_v0 }
 0x781   :  { %7355 = vst [vmem:[#allocation6 + $0x1f8] sm:$0xff] %v7322_v51 }
 0x782   :  { %10843 = shalt.err (!%p10840_p12)
}
 0x783   :  { %s10844_s7 = scalar_lea.hbm %s15352_s4, 8192 }
 0x784   :  { %p10845_p13 = scmp.ne.s32.totalorder %s15352_s4, %s10844_s7  ;;  %p10848_p0 = scmp.lt.u32.totalorder %s10844_s7, %s15352_s4 }
 0x786   :  { %p10850_p1 = pnand %p10848_p0, %p10845_p13 }
 0x788   :  { %10853 = shalt.err (!%p10850_p1)
}
 0x789   :  { %s10865_s11 = smov 128   ;;  %s10866_s12 = smov 8  }
 0x78a   :  { %7367 = dma.vmem_to_hbm [thread:$0]  %s7362_s29, 8192, %s15352_s4, [#allocation5], %s10865_s11, %s10865_s11, %s10866_s12  }
 0x78b   :  { %10856 = dma.done.wait [#allocation5], 8192  }
 0x78c   :  { %10857 = vsyncadd [#allocation5], 4294959104 }
 0x78d   :  { %7371 = vsyncpa [#allocation4], 1 }
 0x78e   :  { %7372 = vsyncpa [#allocation5], 1 }

</bundles_post_ra>
